<compile_context>
chip_gen: v5e
topology: v5e:2x2
jax: 0.10.0
libtpu: 0.0.40
codegen_flags: <defaults>
</compile_context>

<pallas_src>
import jax
import jax.numpy as jnp
from jax import lax
from jax.experimental import pallas as pl
from jax.experimental.pallas import tpu as pltpu

EPS = 0.8   # nn.BatchNorm2d(in_features, 0.8) -> eps = 0.8
K = 3       # conv kernel size


def _build_im2col(src_ref, cols_ref, H, W, C):
    """src_ref: (H+2, W+2, C) or (1, H+2, W+2, C) zero-padded activation REF.
    Writes the (H, W, 9*C) im2col columns into cols_ref.
    Each tap is read straight from the ref as a small (H, W, C) window, so the
    whole padded sample is never materialized as one live value (no vreg
    spills at production sizes).  Column order is (kw, kh, ci) -- must match
    the weight reshape in the wrapper.  kh offsets are free major-axis slices;
    kw offsets are cheap unaligned sublane reads."""
    lead4 = (len(src_ref.shape) == 4)
    for kw in range(K):
        for kh in range(K):
            tap = kw * K + kh
            if lead4:
                v = src_ref[0, kh:kh + H, kw:kw + W, :]
            else:
                v = src_ref[kh:kh + H, kw:kw + W, :]
            cols_ref[:, :, tap * C:(tap + 1) * C] = v.astype(cols_ref.dtype)


def _matmul(cols_ref, w_ref, H, W, C):
    # f32 path (Precision.HIGHEST) is parity-check only; ship mm_dtype=bf16.
    prec = (lax.Precision.HIGHEST
            if cols_ref.dtype == jnp.float32 else None)
    return jnp.dot(cols_ref[...].reshape(H * W, K * K * C), w_ref[...],
                   preferred_element_type=jnp.float32, precision=prec)


def _conv1_stats_kernel(xp_ref, w_ref, y_ref, st_ref, cols_ref):
    # xp_ref:   (1, H+2, W+2, C) mm dtype  pre-padded input sample
    # w_ref:    (9*C, C)         mm dtype  im2col weight
    # y_ref:    (1, H, W, C)     mm dtype  conv1 output (pre-BN, bias-free)
    # st_ref:   (1, 2, C)        f32       per-sample [sum, sum of squares]
    # cols_ref: (H, W, 9*C)      mm dtype  im2col scratch
    _, H, W, C = y_ref.shape
    _build_im2col(xp_ref, cols_ref, H, W, C)
    y = _matmul(cols_ref, w_ref, H, W, C)                # (H*W, C) f32 acc
    y_ref[0] = y.reshape(H, W, C).astype(y_ref.dtype)
    # fused single-pass BN statistics (kept f32 -- do not move to bf16)
    st_ref[0, 0:1, :] = jnp.sum(y, axis=0, keepdims=True)
    st_ref[0, 1:2, :] = jnp.sum(y * y, axis=0, keepdims=True)


def _bn_prelu_conv2_stats_kernel(y1_ref, sc_ref, sh_ref, a_ref, w_ref,
                                 y2_ref, st_ref, pad_ref, cols_ref):
    # y1_ref: (1, H, W, C) mm dtype conv1 output; sc/sh_ref: (1, C) f32 BN1 affine
    # a_ref:  (1, 1) f32 PReLU slope in SMEM
    # w_ref:  (9*C, C) mm dtype; y2_ref: (1, H, W, C) mm dtype; st_ref: (1, 2, C) f32
    # pad_ref: (H+2, W+2, C) mm dtype scratch; cols_ref: (H, W, 9*C) mm dtype scratch
    _, H, W, C = y2_ref.shape
    z = y1_ref[0].astype(jnp.float32) * sc_ref[...] + sh_ref[...]   # BN1 (f32)
    a = a_ref[0, 0]
    z = jnp.where(z > 0, z, a * z)                                   # PReLU

    dt = pad_ref.dtype
    pad_ref[1:H + 1, 1:W + 1, :] = z.astype(dt)          # interior (single cast)
    # halo-only zeroing (done every step so it is megacore-safe)
    # TODO(synk): fold the border zeros into the im2col build instead of the
    # per-step 1-sublane column stores (minor win flagged by the perf review).
    pad_ref[0:1, :, :] = jnp.zeros((1, W + 2, C), dt)
    pad_ref[H + 1:H + 2, :, :] = jnp.zeros((1, W + 2, C), dt)
    pad_ref[:, 0:1, :] = jnp.zeros((H + 2, 1, C), dt)
    pad_ref[:, W + 1:W + 2, :] = jnp.zeros((H + 2, 1, C), dt)

    _build_im2col(pad_ref, cols_ref, H, W, C)
    y = _matmul(cols_ref, w_ref, H, W, C)                # conv2 (bias-free)
    y2_ref[0] = y.reshape(H, W, C).astype(y2_ref.dtype)
    st_ref[0, 0:1, :] = jnp.sum(y, axis=0, keepdims=True)
    st_ref[0, 1:2, :] = jnp.sum(y * y, axis=0, keepdims=True)


def _bn2_residual_kernel(x_ref, y_ref, sc_ref, sh_ref, o_ref):
    # lane-dense flattened layout: (TM, 128) blocks, unmasked 128-lane stores.
    # x arrives f32, y2 arrives in mm dtype; BN2 affine + residual done in f32.
    # sc/sh are (1, 128) rows with the per-channel BN2 affine tiled on lanes.
    o_ref[...] = (x_ref[...]
                  + y_ref[...].astype(jnp.float32) * sc_ref[...]
                  + sh_ref[...])


def residual_block_forward(x_nchw, params, mm_dtype=jnp.bfloat16):
    """ResidualBlock forward.  x_nchw: (N, C, H, W) float32 (PyTorch layout)."""
    N, C, H, W = x_nchw.shape
    f32 = jnp.float32

    x = jnp.transpose(x_nchw, (0, 2, 3, 1)).astype(f32)          # NHWC, f32 (residual)

    # PyTorch conv weight (Cout, Cin, kh, kw) -> im2col (kw, kh, Cin) x Cout
    def w_im2col(wp):
        return jnp.transpose(wp, (3, 2, 1, 0)).reshape(K * K * C, C).astype(mm_dtype)

    w1 = w_im2col(params["w1"])
    w2 = w_im2col(params["w2"])
    # NOTE: conv biases b1/b2 intentionally NOT passed -- train-mode BN's mean
    # subtraction cancels them exactly (see doc guard at top of file).

    # cast to the matmul dtype BEFORE padding: halves the phase-1 input DMA
    # and makes the im2col build a pure copy (no per-tap casts).
    xpad = jnp.pad(x.astype(mm_dtype), ((0, 0), (1, 1), (1, 1), (0, 0)))

    conv_params = pltpu.CompilerParams(
        dimension_semantics=("parallel",),
        vmem_limit_bytes=32 * 1024 * 1024)

    # ---------- phase 1: conv1 + per-sample BN1 partial stats ----------
    y1, s1 = pl.pallas_call(
        _conv1_stats_kernel,
        out_shape=(jax.ShapeDtypeStruct((N, H, W, C), mm_dtype),
                   jax.ShapeDtypeStruct((N, 2, C), f32)),
        grid=(N,),
        in_specs=[pl.BlockSpec((1, H + 2, W + 2, C), lambda n: (n, 0, 0, 0)),
                  pl.BlockSpec((K * K * C, C), lambda n: (0, 0))],
        out_specs=(pl.BlockSpec((1, H, W, C), lambda n: (n, 0, 0, 0)),
                   pl.BlockSpec((1, 2, C), lambda n: (n, 0, 0))),
        scratch_shapes=[pltpu.VMEM((H, W, K * K * C), mm_dtype)],
        compiler_params=conv_params,
    )(xpad, w1)

    def bn_affine(stats, gamma, beta):
        tot = float(N * H * W)
        s = jnp.sum(stats, axis=0)                       # (2, C) over batch
        mean = s[0] / tot
        var = s[1] / tot - mean * mean                   # biased (train-mode BN)
        rstd = lax.rsqrt(var + EPS)
        scale = gamma.astype(f32) * rstd
        shift = beta.astype(f32) - mean * scale
        return scale.reshape(1, C), shift.reshape(1, C)

    sc1, sh1 = bn_affine(s1, params["g1"], params["be1"])
    alpha = params["a"].reshape(1, 1).astype(f32)

    # ---------- phase 2: BN1 + PReLU + conv2 + BN2 partial stats ----------
    y2, s2 = pl.pallas_call(
        _bn_prelu_conv2_stats_kernel,
        out_shape=(jax.ShapeDtypeStruct((N, H, W, C), mm_dtype),
                   jax.ShapeDtypeStruct((N, 2, C), f32)),
        grid=(N,),
        in_specs=[pl.BlockSpec((1, H, W, C), lambda n: (n, 0, 0, 0)),
                  pl.BlockSpec((1, C), lambda n: (0, 0)),
                  pl.BlockSpec((1, C), lambda n: (0, 0)),
                  pl.BlockSpec(memory_space=pltpu.MemorySpace.SMEM),
                  pl.BlockSpec((K * K * C, C), lambda n: (0, 0))],
        out_specs=(pl.BlockSpec((1, H, W, C), lambda n: (n, 0, 0, 0)),
                   pl.BlockSpec((1, 2, C), lambda n: (n, 0, 0))),
        scratch_shapes=[pltpu.VMEM((H + 2, W + 2, C), mm_dtype),
                        pltpu.VMEM((H, W, K * K * C), mm_dtype)],
        compiler_params=conv_params,
    )(y1, sc1, sh1, alpha, w2)

    sc2, sh2 = bn_affine(s2, params["g2"], params["be2"])

    # ---------- phase 3: BN2 affine + residual, lane-dense layout ----------
    total = N * H * W * C
    if total % 128 == 0 and 128 % C == 0:
        LANES = 128
        M = total // LANES
        TM = 8 if M % 8 == 0 else M
        while TM * 2 <= 2048 and M % (TM * 2) == 0 and (M // (TM * 2)) >= 2:
            TM *= 2
        reps = LANES // C
        sc_row = jnp.tile(sc2, (1, reps))                # (1, 128)
        sh_row = jnp.tile(sh2, (1, reps))
        out_flat = pl.pallas_call(
            _bn2_residual_kernel,
            out_shape=jax.ShapeDtypeStruct((M, LANES), f32),
            grid=(M // TM,),
            in_specs=[pl.BlockSpec((TM, LANES), lambda i: (i, 0)),
                      pl.BlockSpec((TM, LANES), lambda i: (i, 0)),
                      pl.BlockSpec((1, LANES), lambda i: (0, 0)),
                      pl.BlockSpec((1, LANES), lambda i: (0, 0))],
            out_specs=pl.BlockSpec((TM, LANES), lambda i: (i, 0)),
            compiler_params=pltpu.CompilerParams(
                dimension_semantics=("parallel",)),
        )(x.reshape(M, LANES), y2.reshape(M, LANES), sc_row, sh_row)
        out = out_flat.reshape(N, H, W, C)
    else:
        # fallback when the flattened size can't be made lane-dense cleanly
        out = (x + y2.astype(f32) * sc2.reshape(1, 1, 1, C)
               + sh2.reshape(1, 1, 1, C))

    return jnp.transpose(out, (0, 3, 1, 2))              # back to NCHW


def init_params(key, C):
    """Deterministic synthetic parameters with the shapes of ResidualBlock.__init__."""
    ks = jax.random.split(key, 8)
    bound = 1.0 / ((C * 9) ** 0.5)
    return {
        "w1": jax.random.uniform(ks[0], (C, C, 3, 3), jnp.float32, -bound, bound),
        "b1": jax.random.uniform(ks[1], (C,), jnp.float32, -bound, bound),
        "g1": 1.0 + 0.1 * jax.random.normal(ks[2], (C,), jnp.float32),
        "be1": 0.1 * jax.random.normal(ks[3], (C,), jnp.float32),
        "a": jnp.full((1,), 0.25, jnp.float32),           # PReLU init
        "w2": jax.random.uniform(ks[4], (C, C, 3, 3), jnp.float32, -bound, bound),
        "b2": jax.random.uniform(ks[5], (C,), jnp.float32, -bound, bound),
        "g2": 1.0 + 0.1 * jax.random.normal(ks[6], (C,), jnp.float32),
        "be2": 0.1 * jax.random.normal(ks[7], (C,), jnp.float32),
    }


def reference(x, p, conv_dtype=jnp.float32):
    """Pure-JAX reference matching the PyTorch forward (train-mode BN, eps=0.8).
    conv_dtype lets the bf16-MXU kernel be checked against a bf16 conv."""
    prec = lax.Precision.HIGHEST if conv_dtype == jnp.float32 else None

    def conv(x, w, b):
        y = lax.conv_general_dilated(
            x.astype(conv_dtype), w.astype(conv_dtype), (1, 1),
            ((1, 1), (1, 1)), dimension_numbers=("NCHW", "OIHW", "NCHW"),
            preferred_element_type=jnp.float32, precision=prec)
        return y + b.reshape(1, -1, 1, 1).astype(jnp.float32)

    def bn(y, g, be):
        m = jnp.mean(y, axis=(0, 2, 3), keepdims=True)
        v = jnp.mean((y - m) ** 2, axis=(0, 2, 3), keepdims=True)
        return (y - m) / jnp.sqrt(v + EPS) * g.reshape(1, -1, 1, 1) + be.reshape(1, -1, 1, 1)

    y = bn(conv(x, p["w1"], p["b1"]), p["g1"], p["be1"])
    y = jnp.where(y > 0, y, p["a"][0] * y)
    y = bn(conv(y, p["w2"], p["b2"]), p["g2"], p["be2"])
    return x + y


if __name__ == "__main__":
    key = jax.random.PRNGKey(0)
    kx, kp = jax.random.split(key)
    N, C, H, W = 2, 4, 16, 16
    x = jax.random.normal(kx, (N, C, H, W), jnp.float32)
    params = init_params(kp, C)

    fwd_f32 = jax.jit(lambda xx, pp: residual_block_forward(xx, pp, jnp.float32))
    fwd_bf16 = jax.jit(lambda xx, pp: residual_block_forward(xx, pp, jnp.bfloat16))

    # f32 MXU path: strict parity check against the f32 reference
    out_f32 = jax.block_until_ready(fwd_f32(x, params))
    err_f32 = float(jnp.max(jnp.abs(out_f32 - reference(x, params, jnp.float32))))
    assert err_f32 < 2e-3, f"f32 kernel max abs error vs reference: {err_f32}"

    # bf16 MXU path (the one to ship): checked against a matching bf16-conv
    # reference; tolerance covers the bf16 storage of the y1/y2 intermediates.
    out_bf16 = jax.block_until_ready(fwd_bf16(x, params))
    err_bf16 = float(jnp.max(jnp.abs(out_bf16 - reference(x, params, jnp.bfloat16))))
    assert err_bf16 < 3e-2, f"bf16 kernel max abs error vs reference: {err_bf16}"

    print("KERNEL_OK")
</pallas_src>

<mosaic_0001>
module attributes {stable_mosaic.version = 11 : i64} {
  func.func @_bn_prelu_conv2_stats_kernel(%arg0: i32, %arg1: memref<1x16x16x4xf32, #tpu.memory_space<vmem>>, %arg2: memref<1x4xf32, #tpu.memory_space<vmem>>, %arg3: memref<1x4xf32, #tpu.memory_space<vmem>>, %arg4: memref<1x1xf32, #tpu.memory_space<smem>>, %arg5: memref<36x4xf32, #tpu.memory_space<vmem>>, %arg6: memref<1x16x16x4xf32, #tpu.memory_space<vmem>>, %arg7: memref<1x2x4xf32, #tpu.memory_space<vmem>>, %arg8: memref<18x18x4xf32, #tpu.memory_space<vmem>>, %arg9: memref<16x16x36xf32, #tpu.memory_space<vmem>>) attributes {dimension_semantics = [#tpu.dimension_semantics<parallel>], iteration_bounds = array<i64: 2>, scalar_prefetch = 0 : i64, scratch_operands = 2 : i64, tpu.core_type = #tpu.core_type<tc>, window_params = [{transform_indices = @transform_0, window_bounds = array<i64: 1, 16, 16, 4>}, {pipeline_mode = #tpu.pipeline_mode<synchronous>, transform_indices = @transform_1, window_bounds = array<i64: 1, 4>}, {pipeline_mode = #tpu.pipeline_mode<synchronous>, transform_indices = @transform_2, window_bounds = array<i64: 1, 4>}, {transform_indices = @transform_3, window_bounds = array<i64: 1, 1>}, {pipeline_mode = #tpu.pipeline_mode<synchronous>, transform_indices = @transform_4, window_bounds = array<i64: 36, 4>}, {transform_indices = @transform_5, window_bounds = array<i64: 1, 16, 16, 4>}, {transform_indices = @transform_6, window_bounds = array<i64: 1, 2, 4>}]} {
    %c0 = arith.constant 0 : index
    %c0_0 = arith.constant 0 : index
    %c0_1 = arith.constant 0 : index
    %c0_2 = arith.constant 0 : index
    %0 = vector.load %arg1[%c0, %c0_0, %c0_1, %c0_2] : memref<1x16x16x4xf32, #tpu.memory_space<vmem>>, vector<1x16x16x4xf32>
    %1 = vector.shape_cast %0 : vector<1x16x16x4xf32> to vector<16x16x4xf32>
    %c0_3 = arith.constant 0 : index
    %c0_4 = arith.constant 0 : index
    %2 = vector.load %arg2[%c0_3, %c0_4] : memref<1x4xf32, #tpu.memory_space<vmem>>, vector<1x4xf32>
    %3 = vector.shape_cast %2 : vector<1x4xf32> to vector<1x1x4xf32>
    %4 = vector.broadcast %3 : vector<1x1x4xf32> to vector<16x16x4xf32>
    %5 = arith.mulf %1, %4 : vector<16x16x4xf32>
    %c0_5 = arith.constant 0 : index
    %c0_6 = arith.constant 0 : index
    %6 = vector.load %arg3[%c0_5, %c0_6] : memref<1x4xf32, #tpu.memory_space<vmem>>, vector<1x4xf32>
    %7 = vector.shape_cast %6 : vector<1x4xf32> to vector<1x1x4xf32>
    %8 = vector.broadcast %7 : vector<1x1x4xf32> to vector<16x16x4xf32>
    %9 = arith.addf %5, %8 : vector<16x16x4xf32>
    %c0_7 = arith.constant 0 : index
    %c0_8 = arith.constant 0 : index
    %10 = memref.load %arg4[%c0_7, %c0_8] : memref<1x1xf32, #tpu.memory_space<smem>>
    %cst = arith.constant 0.000000e+00 : f32
    %11 = vector.broadcast %cst : f32 to vector<16x16x4xf32>
    %12 = arith.cmpf ogt, %9, %11 : vector<16x16x4xf32>
    %13 = vector.broadcast %10 : f32 to vector<16x16x4xf32>
    %14 = arith.mulf %13, %9 : vector<16x16x4xf32>
    %15 = arith.select %12, %9, %14 : vector<16x16x4xi1>, vector<16x16x4xf32>
    %c1 = arith.constant 1 : index
    %c1_9 = arith.constant 1 : index
    %c0_10 = arith.constant 0 : index
    %16 = vector.load %arg8[%c1, %c1_9, %c0_10] : memref<18x18x4xf32, #tpu.memory_space<vmem>>, vector<16x16x4xf32>
    tpu.vector_store %arg8[%c1, %c1_9, %c0_10], %15 {strides = array<i32>} : memref<18x18x4xf32, #tpu.memory_space<vmem>>, vector<16x16x4xf32>,
    %cst_11 = arith.constant 0.000000e+00 : f32
    %17 = vector.broadcast %cst_11 : f32 to vector<1x18x4xf32>
    %c0_12 = arith.constant 0 : index
    %c0_13 = arith.constant 0 : index
    %c0_14 = arith.constant 0 : index
    %18 = vector.load %arg8[%c0_12, %c0_13, %c0_14] : memref<18x18x4xf32, #tpu.memory_space<vmem>>, vector<1x18x4xf32>
    tpu.vector_store %arg8[%c0_12, %c0_13, %c0_14], %17 {strides = array<i32>} : memref<18x18x4xf32, #tpu.memory_space<vmem>>, vector<1x18x4xf32>,
    %cst_15 = arith.constant 0.000000e+00 : f32
    %19 = vector.broadcast %cst_15 : f32 to vector<1x18x4xf32>
    %c17 = arith.constant 17 : index
    %c0_16 = arith.constant 0 : index
    %c0_17 = arith.constant 0 : index
    %20 = vector.load %arg8[%c17, %c0_16, %c0_17] : memref<18x18x4xf32, #tpu.memory_space<vmem>>, vector<1x18x4xf32>
    tpu.vector_store %arg8[%c17, %c0_16, %c0_17], %19 {strides = array<i32>} : memref<18x18x4xf32, #tpu.memory_space<vmem>>, vector<1x18x4xf32>,
    %cst_18 = arith.constant 0.000000e+00 : f32
    %21 = vector.broadcast %cst_18 : f32 to vector<18x1x4xf32>
    %c0_19 = arith.constant 0 : index
    %c0_20 = arith.constant 0 : index
    %c0_21 = arith.constant 0 : index
    %22 = vector.load %arg8[%c0_19, %c0_20, %c0_21] : memref<18x18x4xf32, #tpu.memory_space<vmem>>, vector<18x1x4xf32>
    tpu.vector_store %arg8[%c0_19, %c0_20, %c0_21], %21 {strides = array<i32>} : memref<18x18x4xf32, #tpu.memory_space<vmem>>, vector<18x1x4xf32>,
    %cst_22 = arith.constant 0.000000e+00 : f32
    %23 = vector.broadcast %cst_22 : f32 to vector<18x1x4xf32>
    %c0_23 = arith.constant 0 : index
    %c17_24 = arith.constant 17 : index
    %c0_25 = arith.constant 0 : index
    %24 = vector.load %arg8[%c0_23, %c17_24, %c0_25] : memref<18x18x4xf32, #tpu.memory_space<vmem>>, vector<18x1x4xf32>
    tpu.vector_store %arg8[%c0_23, %c17_24, %c0_25], %23 {strides = array<i32>} : memref<18x18x4xf32, #tpu.memory_space<vmem>>, vector<18x1x4xf32>,
    %c0_26 = arith.constant 0 : index
    %c0_27 = arith.constant 0 : index
    %c0_28 = arith.constant 0 : index
    %25 = vector.load %arg8[%c0_26, %c0_27, %c0_28] : memref<18x18x4xf32, #tpu.memory_space<vmem>>, vector<16x16x4xf32>
    %c0_29 = arith.constant 0 : index
    %c0_30 = arith.constant 0 : index
    %c0_31 = arith.constant 0 : index
    %26 = vector.load %arg9[%c0_29, %c0_30, %c0_31] : memref<16x16x36xf32, #tpu.memory_space<vmem>>, vector<16x16x4xf32>
    tpu.vector_store %arg9[%c0_29, %c0_30, %c0_31], %25 {strides = array<i32>} : memref<16x16x36xf32, #tpu.memory_space<vmem>>, vector<16x16x4xf32>,
    %c1_32 = arith.constant 1 : index
    %c0_33 = arith.constant 0 : index
    %c0_34 = arith.constant 0 : index
    %27 = vector.load %arg8[%c1_32, %c0_33, %c0_34] : memref<18x18x4xf32, #tpu.memory_space<vmem>>, vector<16x16x4xf32>
    %c0_35 = arith.constant 0 : index
    %c0_36 = arith.constant 0 : index
    %c4 = arith.constant 4 : index
    %28 = vector.load %arg9[%c0_35, %c0_36, %c4] : memref<16x16x36xf32, #tpu.memory_space<vmem>>, vector<16x16x4xf32>
    tpu.vector_store %arg9[%c0_35, %c0_36, %c4], %27 {strides = array<i32>} : memref<16x16x36xf32, #tpu.memory_space<vmem>>, vector<16x16x4xf32>,
    %c2 = arith.constant 2 : index
    %c0_37 = arith.constant 0 : index
    %c0_38 = arith.constant 0 : index
    %29 = vector.load %arg8[%c2, %c0_37, %c0_38] : memref<18x18x4xf32, #tpu.memory_space<vmem>>, vector<16x16x4xf32>
    %c0_39 = arith.constant 0 : index
    %c0_40 = arith.constant 0 : index
    %c8 = arith.constant 8 : index
    %30 = vector.load %arg9[%c0_39, %c0_40, %c8] : memref<16x16x36xf32, #tpu.memory_space<vmem>>, vector<16x16x4xf32>
    tpu.vector_store %arg9[%c0_39, %c0_40, %c8], %29 {strides = array<i32>} : memref<16x16x36xf32, #tpu.memory_space<vmem>>, vector<16x16x4xf32>,
    %c0_41 = arith.constant 0 : index
    %c1_42 = arith.constant 1 : index
    %c0_43 = arith.constant 0 : index
    %31 = vector.load %arg8[%c0_41, %c1_42, %c0_43] : memref<18x18x4xf32, #tpu.memory_space<vmem>>, vector<16x16x4xf32>
    %c0_44 = arith.constant 0 : index
    %c0_45 = arith.constant 0 : index
    %c12 = arith.constant 12 : index
    %32 = vector.load %arg9[%c0_44, %c0_45, %c12] : memref<16x16x36xf32, #tpu.memory_space<vmem>>, vector<16x16x4xf32>
    tpu.vector_store %arg9[%c0_44, %c0_45, %c12], %31 {strides = array<i32>} : memref<16x16x36xf32, #tpu.memory_space<vmem>>, vector<16x16x4xf32>,
    %c1_46 = arith.constant 1 : index
    %c1_47 = arith.constant 1 : index
    %c0_48 = arith.constant 0 : index
    %33 = vector.load %arg8[%c1_46, %c1_47, %c0_48] : memref<18x18x4xf32, #tpu.memory_space<vmem>>, vector<16x16x4xf32>
    %c0_49 = arith.constant 0 : index
    %c0_50 = arith.constant 0 : index
    %c16 = arith.constant 16 : index
    %34 = vector.load %arg9[%c0_49, %c0_50, %c16] : memref<16x16x36xf32, #tpu.memory_space<vmem>>, vector<16x16x4xf32>
    tpu.vector_store %arg9[%c0_49, %c0_50, %c16], %33 {strides = array<i32>} : memref<16x16x36xf32, #tpu.memory_space<vmem>>, vector<16x16x4xf32>,
    %c2_51 = arith.constant 2 : index
    %c1_52 = arith.constant 1 : index
    %c0_53 = arith.constant 0 : index
    %35 = vector.load %arg8[%c2_51, %c1_52, %c0_53] : memref<18x18x4xf32, #tpu.memory_space<vmem>>, vector<16x16x4xf32>
    %c0_54 = arith.constant 0 : index
    %c0_55 = arith.constant 0 : index
    %c20 = arith.constant 20 : index
    %36 = vector.load %arg9[%c0_54, %c0_55, %c20] : memref<16x16x36xf32, #tpu.memory_space<vmem>>, vector<16x16x4xf32>
    tpu.vector_store %arg9[%c0_54, %c0_55, %c20], %35 {strides = array<i32>} : memref<16x16x36xf32, #tpu.memory_space<vmem>>, vector<16x16x4xf32>,
    %c0_56 = arith.constant 0 : index
    %c2_57 = arith.constant 2 : index
    %c0_58 = arith.constant 0 : index
    %37 = vector.load %arg8[%c0_56, %c2_57, %c0_58] : memref<18x18x4xf32, #tpu.memory_space<vmem>>, vector<16x16x4xf32>
    %c0_59 = arith.constant 0 : index
    %c0_60 = arith.constant 0 : index
    %c24 = arith.constant 24 : index
    %38 = vector.load %arg9[%c0_59, %c0_60, %c24] : memref<16x16x36xf32, #tpu.memory_space<vmem>>, vector<16x16x4xf32>
    tpu.vector_store %arg9[%c0_59, %c0_60, %c24], %37 {strides = array<i32>} : memref<16x16x36xf32, #tpu.memory_space<vmem>>, vector<16x16x4xf32>,
    %c1_61 = arith.constant 1 : index
    %c2_62 = arith.constant 2 : index
    %c0_63 = arith.constant 0 : index
    %39 = vector.load %arg8[%c1_61, %c2_62, %c0_63] : memref<18x18x4xf32, #tpu.memory_space<vmem>>, vector<16x16x4xf32>
    %c0_64 = arith.constant 0 : index
    %c0_65 = arith.constant 0 : index
    %c28 = arith.constant 28 : index
    %40 = vector.load %arg9[%c0_64, %c0_65, %c28] : memref<16x16x36xf32, #tpu.memory_space<vmem>>, vector<16x16x4xf32>
    tpu.vector_store %arg9[%c0_64, %c0_65, %c28], %39 {strides = array<i32>} : memref<16x16x36xf32, #tpu.memory_space<vmem>>, vector<16x16x4xf32>,
    %c2_66 = arith.constant 2 : index
    %c2_67 = arith.constant 2 : index
    %c0_68 = arith.constant 0 : index
    %41 = vector.load %arg8[%c2_66, %c2_67, %c0_68] : memref<18x18x4xf32, #tpu.memory_space<vmem>>, vector<16x16x4xf32>
    %c0_69 = arith.constant 0 : index
    %c0_70 = arith.constant 0 : index
    %c32 = arith.constant 32 : index
    %42 = vector.load %arg9[%c0_69, %c0_70, %c32] : memref<16x16x36xf32, #tpu.memory_space<vmem>>, vector<16x16x4xf32>
    tpu.vector_store %arg9[%c0_69, %c0_70, %c32], %41 {strides = array<i32>} : memref<16x16x36xf32, #tpu.memory_space<vmem>>, vector<16x16x4xf32>,
    %c0_71 = arith.constant 0 : index
    %c0_72 = arith.constant 0 : index
    %c0_73 = arith.constant 0 : index
    %43 = vector.load %arg9[%c0_71, %c0_72, %c0_73] : memref<16x16x36xf32, #tpu.memory_space<vmem>>, vector<16x16x36xf32>
    %44 = vector.shape_cast %43 : vector<16x16x36xf32> to vector<256x36xf32>
    %c0_74 = arith.constant 0 : index
    %c0_75 = arith.constant 0 : index
    %45 = vector.load %arg5[%c0_74, %c0_75] : memref<36x4xf32, #tpu.memory_space<vmem>>, vector<36x4xf32>
    %cst_76 = arith.constant dense<0.000000e+00> : vector<256x4xf32>
    %46 = tpu.matmul %44, %45, %cst_76 {dimension_numbers = #tpu.dot_dimension_numbers<[1], [0], [0], [1], [0, 0, 1, 1], [], []>, precision = #tpu.contract_precision<fp32>} : vector<256x36xf32>, vector<36x4xf32>, vector<256x4xf32> -> vector<256x4xf32>
    %47 = vector.shape_cast %46 : vector<256x4xf32> to vector<16x16x4xf32>
    %c0_77 = arith.constant 0 : index
    %c0_78 = arith.constant 0 : index
    %c0_79 = arith.constant 0 : index
    %c0_80 = arith.constant 0 : index
    %48 = vector.load %arg6[%c0_77, %c0_78, %c0_79, %c0_80] : memref<1x16x16x4xf32, #tpu.memory_space<vmem>>, vector<1x16x16x4xf32>
    %49 = vector.shape_cast %48 : vector<1x16x16x4xf32> to vector<16x16x4xf32>
    %50 = vector.shape_cast %47 : vector<16x16x4xf32> to vector<1x16x16x4xf32>
    tpu.vector_store %arg6[%c0_77, %c0_78, %c0_79, %c0_80], %50 {strides = array<i32>} : memref<1x16x16x4xf32, #tpu.memory_space<vmem>>, vector<1x16x16x4xf32>,
    %cst_81 = arith.constant dense<0.000000e+00> : vector<4xf32>
    %51 = vector.multi_reduction <add>, %46, %cst_81 [0] : vector<256x4xf32> to vector<4xf32>
    %52 = vector.shape_cast %51 : vector<4xf32> to vector<1x4xf32>
    %c0_82 = arith.constant 0 : index
    %c0_83 = arith.constant 0 : index
    %c0_84 = arith.constant 0 : index
    %53 = vector.load %arg7[%c0_82, %c0_83, %c0_84] : memref<1x2x4xf32, #tpu.memory_space<vmem>>, vector<1x1x4xf32>
    %54 = vector.shape_cast %53 : vector<1x1x4xf32> to vector<1x4xf32>
    %55 = vector.shape_cast %52 : vector<1x4xf32> to vector<1x1x4xf32>
    tpu.vector_store %arg7[%c0_82, %c0_83, %c0_84], %55 {strides = array<i32>} : memref<1x2x4xf32, #tpu.memory_space<vmem>>, vector<1x1x4xf32>,
    %56 = arith.mulf %46, %46 : vector<256x4xf32>
    %cst_85 = arith.constant dense<0.000000e+00> : vector<4xf32>
    %57 = vector.multi_reduction <add>, %56, %cst_85 [0] : vector<256x4xf32> to vector<4xf32>
    %58 = vector.shape_cast %57 : vector<4xf32> to vector<1x4xf32>
    %c0_86 = arith.constant 0 : index
    %c1_87 = arith.constant 1 : index
    %c0_88 = arith.constant 0 : index
    %59 = vector.load %arg7[%c0_86, %c1_87, %c0_88] : memref<1x2x4xf32, #tpu.memory_space<vmem>>, vector<1x1x4xf32>
    %60 = vector.shape_cast %59 : vector<1x1x4xf32> to vector<1x4xf32>
    %61 = vector.shape_cast %58 : vector<1x4xf32> to vector<1x1x4xf32>
    tpu.vector_store %arg7[%c0_86, %c1_87, %c0_88], %61 {strides = array<i32>} : memref<1x2x4xf32, #tpu.memory_space<vmem>>, vector<1x1x4xf32>,
    return
  }
  func.func @transform_0(%arg0: i32) -> (i32, i32, i32, i32) {
    %c0_i32 = arith.constant 0 : i32
    %c0_i32_0 = arith.constant 0 : i32
    %c0_i32_1 = arith.constant 0 : i32
    %c0_i32_2 = arith.constant 0 : i32
    return %arg0, %c0_i32, %c0_i32_0, %c0_i32_1 : i32, i32, i32, i32
  }
  func.func @transform_1(%arg0: i32) -> (i32, i32) {
    %c0_i32 = arith.constant 0 : i32
    %c0_i32_0 = arith.constant 0 : i32
    %c0_i32_1 = arith.constant 0 : i32
    return %c0_i32, %c0_i32_0 : i32, i32
  }
  func.func @transform_2(%arg0: i32) -> (i32, i32) {
    %c0_i32 = arith.constant 0 : i32
    %c0_i32_0 = arith.constant 0 : i32
    %c0_i32_1 = arith.constant 0 : i32
    return %c0_i32, %c0_i32_0 : i32, i32
  }
  func.func @transform_3(%arg0: i32) -> (i32, i32) {
    %c0_i32 = arith.constant 0 : i32
    %c0_i32_0 = arith.constant 0 : i32
    %c0_i32_1 = arith.constant 0 : i32
    return %c0_i32, %c0_i32_0 : i32, i32
  }
  func.func @transform_4(%arg0: i32) -> (i32, i32) {
    %c0_i32 = arith.constant 0 : i32
    %c0_i32_0 = arith.constant 0 : i32
    %c0_i32_1 = arith.constant 0 : i32
    return %c0_i32, %c0_i32_0 : i32, i32
  }
  func.func @transform_5(%arg0: i32) -> (i32, i32, i32, i32) {
    %c0_i32 = arith.constant 0 : i32
    %c0_i32_0 = arith.constant 0 : i32
    %c0_i32_1 = arith.constant 0 : i32
    %c0_i32_2 = arith.constant 0 : i32
    return %arg0, %c0_i32, %c0_i32_0, %c0_i32_1 : i32, i32, i32, i32
  }
  func.func @transform_6(%arg0: i32) -> (i32, i32, i32) {
    %c0_i32 = arith.constant 0 : i32
    %c0_i32_0 = arith.constant 0 : i32
    %c0_i32_1 = arith.constant 0 : i32
    return %arg0, %c0_i32, %c0_i32_0 : i32, i32, i32
  }
}

module attributes {stable_mosaic.version = 11 : i64} {
  func.func @_conv1_stats_kernel(%arg0: i32, %arg1: memref<1x18x18x4xf32, #tpu.memory_space<vmem>>, %arg2: memref<36x4xf32, #tpu.memory_space<vmem>>, %arg3: memref<1x16x16x4xf32, #tpu.memory_space<vmem>>, %arg4: memref<1x2x4xf32, #tpu.memory_space<vmem>>, %arg5: memref<16x16x36xf32, #tpu.memory_space<vmem>>) attributes {dimension_semantics = [#tpu.dimension_semantics<parallel>], iteration_bounds = array<i64: 2>, scalar_prefetch = 0 : i64, scratch_operands = 1 : i64, tpu.core_type = #tpu.core_type<tc>, window_params = [{transform_indices = @transform_0, window_bounds = array<i64: 1, 18, 18, 4>}, {pipeline_mode = #tpu.pipeline_mode<synchronous>, transform_indices = @transform_1, window_bounds = array<i64: 36, 4>}, {transform_indices = @transform_2, window_bounds = array<i64: 1, 16, 16, 4>}, {transform_indices = @transform_3, window_bounds = array<i64: 1, 2, 4>}]} {
    %c0 = arith.constant 0 : index
    %c0_0 = arith.constant 0 : index
    %c0_1 = arith.constant 0 : index
    %c0_2 = arith.constant 0 : index
    %0 = vector.load %arg1[%c0, %c0_0, %c0_1, %c0_2] : memref<1x18x18x4xf32, #tpu.memory_space<vmem>>, vector<1x16x16x4xf32>
    %1 = vector.shape_cast %0 : vector<1x16x16x4xf32> to vector<16x16x4xf32>
    %c0_3 = arith.constant 0 : index
    %c0_4 = arith.constant 0 : index
    %c0_5 = arith.constant 0 : index
    %2 = vector.load %arg5[%c0_3, %c0_4, %c0_5] : memref<16x16x36xf32, #tpu.memory_space<vmem>>, vector<16x16x4xf32>
    tpu.vector_store %arg5[%c0_3, %c0_4, %c0_5], %1 {strides = array<i32>} : memref<16x16x36xf32, #tpu.memory_space<vmem>>, vector<16x16x4xf32>,
    %c0_6 = arith.constant 0 : index
    %c1 = arith.constant 1 : index
    %c0_7 = arith.constant 0 : index
    %c0_8 = arith.constant 0 : index
    %3 = vector.load %arg1[%c0_6, %c1, %c0_7, %c0_8] : memref<1x18x18x4xf32, #tpu.memory_space<vmem>>, vector<1x16x16x4xf32>
    %4 = vector.shape_cast %3 : vector<1x16x16x4xf32> to vector<16x16x4xf32>
    %c0_9 = arith.constant 0 : index
    %c0_10 = arith.constant 0 : index
    %c4 = arith.constant 4 : index
    %5 = vector.load %arg5[%c0_9, %c0_10, %c4] : memref<16x16x36xf32, #tpu.memory_space<vmem>>, vector<16x16x4xf32>
    tpu.vector_store %arg5[%c0_9, %c0_10, %c4], %4 {strides = array<i32>} : memref<16x16x36xf32, #tpu.memory_space<vmem>>, vector<16x16x4xf32>,
    %c0_11 = arith.constant 0 : index
    %c2 = arith.constant 2 : index
    %c0_12 = arith.constant 0 : index
    %c0_13 = arith.constant 0 : index
    %6 = vector.load %arg1[%c0_11, %c2, %c0_12, %c0_13] : memref<1x18x18x4xf32, #tpu.memory_space<vmem>>, vector<1x16x16x4xf32>
    %7 = vector.shape_cast %6 : vector<1x16x16x4xf32> to vector<16x16x4xf32>
    %c0_14 = arith.constant 0 : index
    %c0_15 = arith.constant 0 : index
    %c8 = arith.constant 8 : index
    %8 = vector.load %arg5[%c0_14, %c0_15, %c8] : memref<16x16x36xf32, #tpu.memory_space<vmem>>, vector<16x16x4xf32>
    tpu.vector_store %arg5[%c0_14, %c0_15, %c8], %7 {strides = array<i32>} : memref<16x16x36xf32, #tpu.memory_space<vmem>>, vector<16x16x4xf32>,
    %c0_16 = arith.constant 0 : index
    %c0_17 = arith.constant 0 : index
    %c1_18 = arith.constant 1 : index
    %c0_19 = arith.constant 0 : index
    %9 = vector.load %arg1[%c0_16, %c0_17, %c1_18, %c0_19] : memref<1x18x18x4xf32, #tpu.memory_space<vmem>>, vector<1x16x16x4xf32>
    %10 = vector.shape_cast %9 : vector<1x16x16x4xf32> to vector<16x16x4xf32>
    %c0_20 = arith.constant 0 : index
    %c0_21 = arith.constant 0 : index
    %c12 = arith.constant 12 : index
    %11 = vector.load %arg5[%c0_20, %c0_21, %c12] : memref<16x16x36xf32, #tpu.memory_space<vmem>>, vector<16x16x4xf32>
    tpu.vector_store %arg5[%c0_20, %c0_21, %c12], %10 {strides = array<i32>} : memref<16x16x36xf32, #tpu.memory_space<vmem>>, vector<16x16x4xf32>,
    %c0_22 = arith.constant 0 : index
    %c1_23 = arith.constant 1 : index
    %c1_24 = arith.constant 1 : index
    %c0_25 = arith.constant 0 : index
    %12 = vector.load %arg1[%c0_22, %c1_23, %c1_24, %c0_25] : memref<1x18x18x4xf32, #tpu.memory_space<vmem>>, vector<1x16x16x4xf32>
    %13 = vector.shape_cast %12 : vector<1x16x16x4xf32> to vector<16x16x4xf32>
    %c0_26 = arith.constant 0 : index
    %c0_27 = arith.constant 0 : index
    %c16 = arith.constant 16 : index
    %14 = vector.load %arg5[%c0_26, %c0_27, %c16] : memref<16x16x36xf32, #tpu.memory_space<vmem>>, vector<16x16x4xf32>
    tpu.vector_store %arg5[%c0_26, %c0_27, %c16], %13 {strides = array<i32>} : memref<16x16x36xf32, #tpu.memory_space<vmem>>, vector<16x16x4xf32>,
    %c0_28 = arith.constant 0 : index
    %c2_29 = arith.constant 2 : index
    %c1_30 = arith.constant 1 : index
    %c0_31 = arith.constant 0 : index
    %15 = vector.load %arg1[%c0_28, %c2_29, %c1_30, %c0_31] : memref<1x18x18x4xf32, #tpu.memory_space<vmem>>, vector<1x16x16x4xf32>
    %16 = vector.shape_cast %15 : vector<1x16x16x4xf32> to vector<16x16x4xf32>
    %c0_32 = arith.constant 0 : index
    %c0_33 = arith.constant 0 : index
    %c20 = arith.constant 20 : index
    %17 = vector.load %arg5[%c0_32, %c0_33, %c20] : memref<16x16x36xf32, #tpu.memory_space<vmem>>, vector<16x16x4xf32>
    tpu.vector_store %arg5[%c0_32, %c0_33, %c20], %16 {strides = array<i32>} : memref<16x16x36xf32, #tpu.memory_space<vmem>>, vector<16x16x4xf32>,
    %c0_34 = arith.constant 0 : index
    %c0_35 = arith.constant 0 : index
    %c2_36 = arith.constant 2 : index
    %c0_37 = arith.constant 0 : index
    %18 = vector.load %arg1[%c0_34, %c0_35, %c2_36, %c0_37] : memref<1x18x18x4xf32, #tpu.memory_space<vmem>>, vector<1x16x16x4xf32>
    %19 = vector.shape_cast %18 : vector<1x16x16x4xf32> to vector<16x16x4xf32>
    %c0_38 = arith.constant 0 : index
    %c0_39 = arith.constant 0 : index
    %c24 = arith.constant 24 : index
    %20 = vector.load %arg5[%c0_38, %c0_39, %c24] : memref<16x16x36xf32, #tpu.memory_space<vmem>>, vector<16x16x4xf32>
    tpu.vector_store %arg5[%c0_38, %c0_39, %c24], %19 {strides = array<i32>} : memref<16x16x36xf32, #tpu.memory_space<vmem>>, vector<16x16x4xf32>,
    %c0_40 = arith.constant 0 : index
    %c1_41 = arith.constant 1 : index
    %c2_42 = arith.constant 2 : index
    %c0_43 = arith.constant 0 : index
    %21 = vector.load %arg1[%c0_40, %c1_41, %c2_42, %c0_43] : memref<1x18x18x4xf32, #tpu.memory_space<vmem>>, vector<1x16x16x4xf32>
    %22 = vector.shape_cast %21 : vector<1x16x16x4xf32> to vector<16x16x4xf32>
    %c0_44 = arith.constant 0 : index
    %c0_45 = arith.constant 0 : index
    %c28 = arith.constant 28 : index
    %23 = vector.load %arg5[%c0_44, %c0_45, %c28] : memref<16x16x36xf32, #tpu.memory_space<vmem>>, vector<16x16x4xf32>
    tpu.vector_store %arg5[%c0_44, %c0_45, %c28], %22 {strides = array<i32>} : memref<16x16x36xf32, #tpu.memory_space<vmem>>, vector<16x16x4xf32>,
    %c0_46 = arith.constant 0 : index
    %c2_47 = arith.constant 2 : index
    %c2_48 = arith.constant 2 : index
    %c0_49 = arith.constant 0 : index
    %24 = vector.load %arg1[%c0_46, %c2_47, %c2_48, %c0_49] : memref<1x18x18x4xf32, #tpu.memory_space<vmem>>, vector<1x16x16x4xf32>
    %25 = vector.shape_cast %24 : vector<1x16x16x4xf32> to vector<16x16x4xf32>
    %c0_50 = arith.constant 0 : index
    %c0_51 = arith.constant 0 : index
    %c32 = arith.constant 32 : index
    %26 = vector.load %arg5[%c0_50, %c0_51, %c32] : memref<16x16x36xf32, #tpu.memory_space<vmem>>, vector<16x16x4xf32>
    tpu.vector_store %arg5[%c0_50, %c0_51, %c32], %25 {strides = array<i32>} : memref<16x16x36xf32, #tpu.memory_space<vmem>>, vector<16x16x4xf32>,
    %c0_52 = arith.constant 0 : index
    %c0_53 = arith.constant 0 : index
    %c0_54 = arith.constant 0 : index
    %27 = vector.load %arg5[%c0_52, %c0_53, %c0_54] : memref<16x16x36xf32, #tpu.memory_space<vmem>>, vector<16x16x36xf32>
    %28 = vector.shape_cast %27 : vector<16x16x36xf32> to vector<256x36xf32>
    %c0_55 = arith.constant 0 : index
    %c0_56 = arith.constant 0 : index
    %29 = vector.load %arg2[%c0_55, %c0_56] : memref<36x4xf32, #tpu.memory_space<vmem>>, vector<36x4xf32>
    %cst = arith.constant dense<0.000000e+00> : vector<256x4xf32>
    %30 = tpu.matmul %28, %29, %cst {dimension_numbers = #tpu.dot_dimension_numbers<[1], [0], [0], [1], [0, 0, 1, 1], [], []>, precision = #tpu.contract_precision<fp32>} : vector<256x36xf32>, vector<36x4xf32>, vector<256x4xf32> -> vector<256x4xf32>
    %31 = vector.shape_cast %30 : vector<256x4xf32> to vector<16x16x4xf32>
    %c0_57 = arith.constant 0 : index
    %c0_58 = arith.constant 0 : index
    %c0_59 = arith.constant 0 : index
    %c0_60 = arith.constant 0 : index
    %32 = vector.load %arg3[%c0_57, %c0_58, %c0_59, %c0_60] : memref<1x16x16x4xf32, #tpu.memory_space<vmem>>, vector<1x16x16x4xf32>
    %33 = vector.shape_cast %32 : vector<1x16x16x4xf32> to vector<16x16x4xf32>
    %34 = vector.shape_cast %31 : vector<16x16x4xf32> to vector<1x16x16x4xf32>
    tpu.vector_store %arg3[%c0_57, %c0_58, %c0_59, %c0_60], %34 {strides = array<i32>} : memref<1x16x16x4xf32, #tpu.memory_space<vmem>>, vector<1x16x16x4xf32>,
    %cst_61 = arith.constant dense<0.000000e+00> : vector<4xf32>
    %35 = vector.multi_reduction <add>, %30, %cst_61 [0] : vector<256x4xf32> to vector<4xf32>
    %36 = vector.shape_cast %35 : vector<4xf32> to vector<1x4xf32>
    %c0_62 = arith.constant 0 : index
    %c0_63 = arith.constant 0 : index
    %c0_64 = arith.constant 0 : index
    %37 = vector.load %arg4[%c0_62, %c0_63, %c0_64] : memref<1x2x4xf32, #tpu.memory_space<vmem>>, vector<1x1x4xf32>
    %38 = vector.shape_cast %37 : vector<1x1x4xf32> to vector<1x4xf32>
    %39 = vector.shape_cast %36 : vector<1x4xf32> to vector<1x1x4xf32>
    tpu.vector_store %arg4[%c0_62, %c0_63, %c0_64], %39 {strides = array<i32>} : memref<1x2x4xf32, #tpu.memory_space<vmem>>, vector<1x1x4xf32>,
    %40 = arith.mulf %30, %30 : vector<256x4xf32>
    %cst_65 = arith.constant dense<0.000000e+00> : vector<4xf32>
    %41 = vector.multi_reduction <add>, %40, %cst_65 [0] : vector<256x4xf32> to vector<4xf32>
    %42 = vector.shape_cast %41 : vector<4xf32> to vector<1x4xf32>
    %c0_66 = arith.constant 0 : index
    %c1_67 = arith.constant 1 : index
    %c0_68 = arith.constant 0 : index
    %43 = vector.load %arg4[%c0_66, %c1_67, %c0_68] : memref<1x2x4xf32, #tpu.memory_space<vmem>>, vector<1x1x4xf32>
    %44 = vector.shape_cast %43 : vector<1x1x4xf32> to vector<1x4xf32>
    %45 = vector.shape_cast %42 : vector<1x4xf32> to vector<1x1x4xf32>
    tpu.vector_store %arg4[%c0_66, %c1_67, %c0_68], %45 {strides = array<i32>} : memref<1x2x4xf32, #tpu.memory_space<vmem>>, vector<1x1x4xf32>,
    return
  }
  func.func @transform_0(%arg0: i32) -> (i32, i32, i32, i32) {
    %c0_i32 = arith.constant 0 : i32
    %c0_i32_0 = arith.constant 0 : i32
    %c0_i32_1 = arith.constant 0 : i32
    %c0_i32_2 = arith.constant 0 : i32
    return %arg0, %c0_i32, %c0_i32_0, %c0_i32_1 : i32, i32, i32, i32
  }
  func.func @transform_1(%arg0: i32) -> (i32, i32) {
    %c0_i32 = arith.constant 0 : i32
    %c0_i32_0 = arith.constant 0 : i32
    %c0_i32_1 = arith.constant 0 : i32
    return %c0_i32, %c0_i32_0 : i32, i32
  }
  func.func @transform_2(%arg0: i32) -> (i32, i32, i32, i32) {
    %c0_i32 = arith.constant 0 : i32
    %c0_i32_0 = arith.constant 0 : i32
    %c0_i32_1 = arith.constant 0 : i32
    %c0_i32_2 = arith.constant 0 : i32
    return %arg0, %c0_i32, %c0_i32_0, %c0_i32_1 : i32, i32, i32, i32
  }
  func.func @transform_3(%arg0: i32) -> (i32, i32, i32) {
    %c0_i32 = arith.constant 0 : i32
    %c0_i32_0 = arith.constant 0 : i32
    %c0_i32_1 = arith.constant 0 : i32
    return %arg0, %c0_i32, %c0_i32_0 : i32, i32, i32
  }
}

module attributes {stable_mosaic.version = 11 : i64} {
  func.func @_bn2_residual_kernel(%arg0: i32, %arg1: memref<8x128xf32, #tpu.memory_space<vmem>>, %arg2: memref<8x128xf32, #tpu.memory_space<vmem>>, %arg3: memref<1x128xf32, #tpu.memory_space<vmem>>, %arg4: memref<1x128xf32, #tpu.memory_space<vmem>>, %arg5: memref<8x128xf32, #tpu.memory_space<vmem>>) attributes {dimension_semantics = [#tpu.dimension_semantics<parallel>], iteration_bounds = array<i64: 2>, scalar_prefetch = 0 : i64, scratch_operands = 0 : i64, tpu.core_type = #tpu.core_type<tc>, window_params = [{transform_indices = @transform_0, window_bounds = array<i64: 8, 128>}, {transform_indices = @transform_1, window_bounds = array<i64: 8, 128>}, {pipeline_mode = #tpu.pipeline_mode<synchronous>, transform_indices = @transform_2, window_bounds = array<i64: 1, 128>}, {pipeline_mode = #tpu.pipeline_mode<synchronous>, transform_indices = @transform_3, window_bounds = array<i64: 1, 128>}, {transform_indices = @transform_4, window_bounds = array<i64: 8, 128>}]} {
    %c0 = arith.constant 0 : index
    %c0_0 = arith.constant 0 : index
    %0 = vector.load %arg1[%c0, %c0_0] : memref<8x128xf32, #tpu.memory_space<vmem>>, vector<8x128xf32>
    %c0_1 = arith.constant 0 : index
    %c0_2 = arith.constant 0 : index
    %1 = vector.load %arg2[%c0_1, %c0_2] : memref<8x128xf32, #tpu.memory_space<vmem>>, vector<8x128xf32>
    %c0_3 = arith.constant 0 : index
    %c0_4 = arith.constant 0 : index
    %2 = vector.load %arg3[%c0_3, %c0_4] : memref<1x128xf32, #tpu.memory_space<vmem>>, vector<1x128xf32>
    %3 = vector.broadcast %2 : vector<1x128xf32> to vector<8x128xf32>
    %4 = arith.mulf %1, %3 : vector<8x128xf32>
    %5 = arith.addf %0, %4 : vector<8x128xf32>
    %c0_5 = arith.constant 0 : index
    %c0_6 = arith.constant 0 : index
    %6 = vector.load %arg4[%c0_5, %c0_6] : memref<1x128xf32, #tpu.memory_space<vmem>>, vector<1x128xf32>
    %7 = vector.broadcast %6 : vector<1x128xf32> to vector<8x128xf32>
    %8 = arith.addf %5, %7 : vector<8x128xf32>
    %c0_7 = arith.constant 0 : index
    %c0_8 = arith.constant 0 : index
    %9 = vector.load %arg5[%c0_7, %c0_8] : memref<8x128xf32, #tpu.memory_space<vmem>>, vector<8x128xf32>
    tpu.vector_store %arg5[%c0_7, %c0_8], %8 {strides = array<i32>} : memref<8x128xf32, #tpu.memory_space<vmem>>, vector<8x128xf32>,
    return
  }
  func.func @transform_0(%arg0: i32) -> (i32, i32) {
    %c0_i32 = arith.constant 0 : i32
    %c0_i32_0 = arith.constant 0 : i32
    return %arg0, %c0_i32 : i32, i32
  }
  func.func @transform_1(%arg0: i32) -> (i32, i32) {
    %c0_i32 = arith.constant 0 : i32
    %c0_i32_0 = arith.constant 0 : i32
    return %arg0, %c0_i32 : i32, i32
  }
  func.func @transform_2(%arg0: i32) -> (i32, i32) {
    %c0_i32 = arith.constant 0 : i32
    %c0_i32_0 = arith.constant 0 : i32
    %c0_i32_1 = arith.constant 0 : i32
    return %c0_i32, %c0_i32_0 : i32, i32
  }
  func.func @transform_3(%arg0: i32) -> (i32, i32) {
    %c0_i32 = arith.constant 0 : i32
    %c0_i32_0 = arith.constant 0 : i32
    %c0_i32_1 = arith.constant 0 : i32
    return %c0_i32, %c0_i32_0 : i32, i32
  }
  func.func @transform_4(%arg0: i32) -> (i32, i32) {
    %c0_i32 = arith.constant 0 : i32
    %c0_i32_0 = arith.constant 0 : i32
    return %arg0, %c0_i32 : i32, i32
  }
}

</mosaic_0001>

<bundles_post_ra>
// kernel: _lambda_.5
= control target key start
LH: loop header
LB: loop body
LE: loop exit
PB: predicated region body
PF: predicated region fallthrough
CT: control target
= control target key end

     0   :  { %s313_s15 = smov 0   ;;  %s357_s0 = inlined_call_operand.vmem [shape: f32[16,128], index: 0, kind: input, shape index: {}]   ;;  %s358_s1 = inlined_call_operand.vmem [shape: f32[16,128], index: 1, kind: input, shape index: {}]   ;;  %s359_s2 = inlined_call_operand.vmem [shape: f32[1,128], index: 2, kind: input, shape index: {}]   ;;  %s360_s3 = inlined_call_operand.vmem [shape: f32[1,128], index: 3, kind: input, shape index: {}]   ;;  %s361_s4 = inlined_call_operand.vmem [shape: f32[16,128], index: 4, kind: output, shape index: {}]  }
   0x1 LB: > { %s289_s16 = sadd.s32 4294967295, %s315_s15   ;;  %p293_p0 = scmp.ge.s32.totalorder %s315_s15, 1  ;;  %s315_s15 = sphi %s313_s15, %s14_s15  }
   0x2   : > { %p170_p1 = scmp.lt.s32.totalorder %s315_s15, 3 }
   0x4   : > { %p171_p2 = pnand %p293_p0, %p170_p1 }
   0x5   : > { %p198_p3 = scmp.lt.s32.totalorder (!%p171_p2), %s289_s16, 1 }
   0x6   : > { %174 = sbr.rel (%p171_p2) target bundleno = 23 (0x17), region = 36 }
   0xb   : > { %s363_s16 = smov (!%p198_p3, %s289_s16), 1  ;;  %v307_v0 = vld [vmem:[%s359_s2] ss:$0 sm:$0xff] }
   0xc   : > { %s294_s19 = sshll.u32 %s363_s16, 3  ;;  %v308_v4 = vld [vmem:[%s360_s3] ss:$0 sm:$0xff] }
   0xd   : > { %s201_s22 = scalar_lea.vmem %s357_s0, %s294_s19  ;;  %s205_s25 = scalar_lea.vmem %s358_s1, %s294_s19 }
   0xe   : > { %v210_v1 = vld [vmem:[%s201_s22] sm:$0xff]  ;;  %s209_s30 = scalar_lea.vmem %s361_s4, %s294_s19 }
   0xf   : > { %v211_v2 = vld [vmem:[%s205_s25] sm:$0xff] }
  0x10   : > { %v216_v3 = vmul.f32 %v307_v0, %v211_v2 }
  0x12   : > { %v217_v5 = vadd.f32 %v216_v3, %v210_v1 }
  0x14   : > { %v222_v6 = vadd.f32 %v308_v4, %v217_v5 }
  0x16   : > { %223 = vst [vmem:[%s209_s30] sm:$0xff] %v222_v6 }
  0x17 PF: > { %s14_s15 = sadd.s32 1, %s315_s15  }
  0x18   : > { %p11_p4 = scmp.ge.s32.totalorder %s14_s15, 4  }
  0x1a   :  { %13 = sbr.rel (!%p11_p4) target bundleno = 1 (0x1), region = 69 }

// kernel: _lambda_.3
= control target key start
LH: loop header
LB: loop body
LE: loop exit
PB: predicated region body
PF: predicated region fallthrough
CT: control target
= control target key end

     0   :  { %s3648_s12 = smov 0   ;;  %s5696_s0 = inlined_call_operand.vmem [shape: f32[2,18,18,4], index: 0, kind: input, shape index: {}]   ;;  %s5697_s1 = inlined_call_operand.vmem [shape: f32[36,4], index: 1, kind: input, shape index: {}]   ;;  %s5698_s2 = inlined_call_operand.vmem [shape: f32[2,16,16,4], index: 2, kind: output, shape index: {0}]   ;;  %s5699_s3 = inlined_call_operand.vmem [shape: f32[2,2,4], index: 3, kind: output, shape index: {1}]  }
   0x1 LB: > { %s3381_s13 = sadd.s32 4294967295, %s3618_s12   ;;  %p3385_p0 = scmp.ge.s32.totalorder %s3618_s12, 1  ;;  %s3618_s12 = sphi %s3648_s12, %s14_s12  }
   0x2   : > { %p140_p1 = scmp.lt.s32.totalorder %s3618_s12, 3 }
   0x4   : > { %p141_p2 = pnand %p3385_p0, %p140_p1 }
   0x6   : > { %144 = sbr.rel (%p141_p2) target bundleno = 1237 (0x4d5), region = 28 }
   0xb   : > { %p168_p3 = scmp.lt.s32.totalorder %s3381_s13, 1  ;;  %s3620_s18 = smov 4   ;;  %vm214_vm0 = vcmask 31744   ;;  %vm408_vm1 = vcmask 64544   ;;  %vm602_vm2 = vcmask 97344   ;;  %vm1927_vm3 = vcmask 1043456  }
   0xc   : > { %s3621_s19 = smov 8   ;;  %s3622_s20 = smov 12   ;;  %vm795_vm4 = vcmask 130144   ;;  %vm988_vm5 = vcmask 162944   ;;  %vm1181_vm6 = vcmask 195744   ;;  %vm1374_vm7 = vcmask 228544  }
   0xd   : > { %s5871_s13 = smov (!%p168_p3, %s3381_s13), 1  ;;  %s3623_s21 = smov 16   ;;  %vm1567_vm8 = vcmask 261344   ;;  %vm1760_vm9 = vcmask 294144   ;;  %vm1830_vm10 = vcmask 293888   ;;  %vm3191_vm11 = vcmask 24576  }
   0xe   : > { %s3595_s14 = smul.u32 432, %s5871_s13  ;;  %s3624_s22 = smov 24  }
   0xf   : > { %s3625_s23 = smov 20   ;;  %s3626_s24 = smov 28  }
  0x10   : > { %s3662_s17 = scalar_lea.vmem %s5696_s0, %s3595_s14  ;;  %s3627_s25 = smov 32  }
  0x11   : > { %v3665_v0 = vld [vmem:[%s3662_s17 + $0x30] sm:$0xff]  ;;  %v3668_v1 = vld [vmem:[%s3662_s17 + $0x18] sm:$0xff]  ;;  %v3675_v2 = vld [vmem:[%s3662_s17 + $0x48] sm:$0xff]  ;;  %s3584_s9 = sshll.u32 %s5871_s13, 8  ;;  %s3389_s15 = sshll.u32 %s5871_s13, 1 }
  0x12   : > { %316 = vrot.lane.b32.xlu1 %v3665_v0, %s3620_s18  ;;  %312 = vrot.lane.b32.xlu0 %v3668_v1, %s3620_s18  ;;  %v3680_v3 = vld [vmem:[%s3662_s17 + $0x38] sm:$0xff]  ;;  %v3683_v4 = vld [vmem:[%s3662_s17 + $0x20] sm:$0xff]  ;;  %217 = vst.msk [vmem:[#allocation2 + $0x10] sm:$0xff] %vm214_vm0, %v3668_v1  ;;  %s5408_s14 = scalar_lea.vmem %s5698_s2, %s3584_s9 }
  0x13   : > { %320 = vrot.lane.b32.xlu2 %v3675_v2, %s3620_s18  ;;  %v3690_v5 = vld [vmem:[%s3662_s17 + $0x50] sm:$0xff]  ;;  %v3695_v6 = vld [vmem:[%s3662_s17 + $0x68] sm:$0xff]  ;;  %v3698_v7 = vld [vmem:[%s3662_s17 + $0x60] sm:$0xff]  ;;  %219 = vst.msk [vmem:[#allocation2 + $0x20] sm:$0xff] %vm214_vm0, %v3665_v0 }
  0x14   : > { %v3705_v8 = vld [vmem:[%s3662_s17 + $0x78] sm:$0xff]  ;;  %v3710_v9 = vld [vmem:[%s3662_s17 + $0x90] sm:$0xff]  ;;  %v3713_v10 = vld [vmem:[%s3662_s17 + $0x80] sm:$0xff]  ;;  %218 = vst.msk [vmem:[#allocation2 + $0x18] sm:$0xff] %vm214_vm0, %v3683_v4 }
  0x15   : > { %v3720_v11 = vld [vmem:[%s3662_s17 + $0x98] sm:$0xff]  ;;  %v3725_v12 = vld [vmem:[%s3662_s17 + $0xb0] sm:$0xff]  ;;  %v3728_v13 = vld [vmem:[%s3662_s17 + $0xa8] sm:$0xff]  ;;  %220 = vst.msk [vmem:[#allocation2 + $0x28] sm:$0xff] %vm214_vm0, %v3680_v3 }
  0x16   : > { %v3735_v14 = vld [vmem:[%s3662_s17 + $0xc0] sm:$0xff]  ;;  %v3740_v15 = vld [vmem:[%s3662_s17 + $0xd8] sm:$0xff]  ;;  %v3743_v16 = vld [vmem:[%s3662_s17 + $0xc8] sm:$0xff]  ;;  %222 = vst.msk [vmem:[#allocation2 + $0x38] sm:$0xff] %vm214_vm0, %v3690_v5 }
  0x17   : > { %v3750_v17 = vld [vmem:[%s3662_s17 + $0xe0] sm:$0xff]  ;;  %v3755_v18 = vld [vmem:[%s3662_s17 + $0xf8] sm:$0xff]  ;;  %v3758_v19 = vld [vmem:[%s3662_s17 + $0xf0] sm:$0xff]  ;;  %221 = vst.msk [vmem:[#allocation2 + $0x30] sm:$0xff] %vm214_vm0, %v3675_v2 }
  0x18   : > { %v3765_v20 = vld [vmem:[%s3662_s17 + $0x108] sm:$0xff]  ;;  %v3770_v21 = vld [vmem:[%s3662_s17 + $0x120] sm:$0xff]  ;;  %v3773_v22 = vld [vmem:[%s3662_s17 + $0x110] sm:$0xff]  ;;  %223 = vst.msk [vmem:[#allocation2 + $0x40] sm:$0xff] %vm214_vm0, %v3698_v7 }
  0x19   : > { %v3780_v23 = vld [vmem:[%s3662_s17 + $0x128] sm:$0xff]  ;;  %v3785_v24 = vld [vmem:[%s3662_s17 + $0x140] sm:$0xff]  ;;  %v3788_v25 = vld [vmem:[%s3662_s17 + $0x138] sm:$0xff]  ;;  %225 = vst.msk [vmem:[#allocation2 + $0x50] sm:$0xff] %vm214_vm0, %v3705_v8 }
  0x1a   : > { %318 = vrot.lane.b32.xlu1 %v3680_v3, %s3620_s18  ;;  %314 = vrot.lane.b32.xlu0 %v3683_v4, %s3620_s18  ;;  %v3795_v26 = vld [vmem:[%s3662_s17 + $0x150] sm:$0xff]  ;;  %v3800_v27 = vld [vmem:[%s3662_s17 + $0x168] sm:$0xff]  ;;  %224 = vst.msk [vmem:[#allocation2 + $0x48] sm:$0xff] %vm214_vm0, %v3695_v6 }
  0x1b   : > { %322 = vrot.lane.b32.xlu2 %v3690_v5, %s3620_s18  ;;  %v3803_v28 = vld [vmem:[%s3662_s17 + $0x158] sm:$0xff]  ;;  %v3419_v29 = vld [vmem:[%s3662_s17 + $0x170] sm:$0xff]  ;;  %v3421_v30 = vld [vmem:[%s3662_s17 + $0x188] sm:$0xff]  ;;  %226 = vst.msk [vmem:[#allocation2 + $0x58] sm:$0xff] %vm214_vm0, %v3713_v10 }
  0x1c   : > { %v3420_v31 = vld [vmem:[%s3662_s17 + $0x180] sm:$0xff]  ;;  %v183_v33 = vld [vmem:[%s3662_s17 + $0x8] sm:$0xff]  ;;  %228 = vst.msk [vmem:[#allocation2 + $0x68] sm:$0xff] %vm214_vm0, %v3720_v11  ;;  %v3959_v57 = vld [vmem:[%s3662_s17 + $0xf1] sm:$0xff] }
  0x1d   : > { %v182_v32 = vld [vmem:[%s3662_s17] sm:$0xff]  ;;  %216 = vst.msk [vmem:[#allocation2 + $0x8] sm:$0xff] %vm214_vm0, %v183_v33  ;;  %v652_v62 = vld [vmem:[%s3662_s17 + $0xc9] sm:$0xff]  ;;  %v3974_v63 = vld [vmem:[%s3662_s17 + $0xf2] sm:$0xff] }
  0x1e   : > { %215 = vst.msk [vmem:[#allocation2] sm:$0xff] %vm214_vm0, %v182_v32  ;;  %v651_v51 = vld [vmem:[%s3662_s17 + $0xc1] sm:$0xff]  ;;  %v3951_v53 = vld [vmem:[%s3662_s17 + $0xd9] sm:$0xff] }
  0x1f   : > { %227 = vst.msk [vmem:[#allocation2 + $0x60] sm:$0xff] %vm214_vm0, %v3710_v9  ;;  %v1230_v56 = vld [vmem:[%s3662_s17 + $0xc2] sm:$0xff]  ;;  %v3966_v59 = vld [vmem:[%s3662_s17 + $0xda] sm:$0xff] }
  0x20   : > { %229 = vst.msk [vmem:[#allocation2 + $0x70] sm:$0xff] %vm214_vm0, %v3728_v13  ;;  %v3981_v1 = vld [vmem:[%s3662_s17 + $0xe1] sm:$0xff]  ;;  %v3988_v4 = vld [vmem:[%s3662_s17 + $0xf9] sm:$0xff] }
  0x21   : > { %231 = vst.msk [vmem:[#allocation2 + $0x80] sm:$0xff] %vm214_vm0, %v3735_v14  ;;  %v4060_v32 = vld [vmem:[%s3662_s17 + $0x39] sm:$0xff] }
  0x22   : > { %326 = vrot.lane.b32.xlu1 %v3695_v6, %s3620_s18  ;;  %324 = vrot.lane.b32.xlu0 %v3698_v7, %s3620_s18  ;;  %230 = vst.msk [vmem:[#allocation2 + $0x78] sm:$0xff] %vm214_vm0, %v3725_v12 }
  0x23   : > { %328 = vrot.lane.b32.xlu2 %v3705_v8, %s3620_s18  ;;  %232 = vst.msk [vmem:[#allocation2 + $0x88] sm:$0xff] %vm214_vm0, %v3743_v16 }
  0x24   : > { %234 = vst.msk [vmem:[#allocation2 + $0x98] sm:$0xff] %vm214_vm0, %v3750_v17 }
  0x25   : > { %233 = vst.msk [vmem:[#allocation2 + $0x90] sm:$0xff] %vm214_vm0, %v3740_v15 }
  0x26   : > { %235 = vst.msk [vmem:[#allocation2 + $0xa0] sm:$0xff] %vm214_vm0, %v3758_v19 }
  0x27   : > { %237 = vst.msk [vmem:[#allocation2 + $0xb0] sm:$0xff] %vm214_vm0, %v3765_v20 }
  0x28   : > { %236 = vst.msk [vmem:[#allocation2 + $0xa8] sm:$0xff] %vm214_vm0, %v3755_v18 }
  0x29   : > { %238 = vst.msk [vmem:[#allocation2 + $0xb8] sm:$0xff] %vm214_vm0, %v3773_v22 }
  0x2a   : > { %332 = vrot.lane.b32.xlu1 %v3710_v9, %s3620_s18  ;;  %330 = vrot.lane.b32.xlu0 %v3713_v10, %s3620_s18  ;;  %240 = vst.msk [vmem:[#allocation2 + $0xc8] sm:$0xff] %vm214_vm0, %v3780_v23 }
  0x2b   : > { %334 = vrot.lane.b32.xlu2 %v3720_v11, %s3620_s18  ;;  %239 = vst.msk [vmem:[#allocation2 + $0xc0] sm:$0xff] %vm214_vm0, %v3770_v21 }
  0x2c   : > { %241 = vst.msk [vmem:[#allocation2 + $0xd0] sm:$0xff] %vm214_vm0, %v3788_v25 }
  0x2d   : > { %243 = vst.msk [vmem:[#allocation2 + $0xe0] sm:$0xff] %vm214_vm0, %v3795_v26 }
  0x2e   : > { %242 = vst.msk [vmem:[#allocation2 + $0xd8] sm:$0xff] %vm214_vm0, %v3785_v24 }
  0x2f   : > { %244 = vst.msk [vmem:[#allocation2 + $0xe8] sm:$0xff] %vm214_vm0, %v3803_v28 }
  0x30   : > { %246 = vst.msk [vmem:[#allocation2 + $0xf8] sm:$0xff] %vm214_vm0, %v3419_v29 }
  0x31   : > { %245 = vst.msk [vmem:[#allocation2 + $0xf0] sm:$0xff] %vm214_vm0, %v3800_v27 }
  0x32   : > { %338 = vrot.lane.b32.xlu1 %v3725_v12, %s3620_s18  ;;  %336 = vrot.lane.b32.xlu0 %v3728_v13, %s3620_s18 }
  0x33   : > { %340 = vrot.lane.b32.xlu2 %v3735_v14, %s3620_s18 }
  0x3a   : > { %344 = vrot.lane.b32.xlu1 %v3740_v15, %s3620_s18  ;;  %342 = vrot.lane.b32.xlu0 %v3743_v16, %s3620_s18 }
  0x3b   : > { %346 = vrot.lane.b32.xlu2 %v3750_v17, %s3620_s18 }
  0x42   : > { %350 = vrot.lane.b32.xlu1 %v3755_v18, %s3620_s18  ;;  %348 = vrot.lane.b32.xlu0 %v3758_v19, %s3620_s18 }
  0x43   : > { %352 = vrot.lane.b32.xlu2 %v3765_v20, %s3620_s18 }
  0x4a   : > { %356 = vrot.lane.b32.xlu1 %v3770_v21, %s3620_s18  ;;  %354 = vrot.lane.b32.xlu0 %v3773_v22, %s3620_s18 }
  0x4b   : > { %358 = vrot.lane.b32.xlu2 %v3780_v23, %s3620_s18 }
  0x52   : > { %362 = vrot.lane.b32.xlu1 %v3785_v24, %s3620_s18  ;;  %360 = vrot.lane.b32.xlu0 %v3788_v25, %s3620_s18 }
  0x53   : > { %364 = vrot.lane.b32.xlu2 %v3795_v26, %s3620_s18 }
  0x5a   : > { %368 = vrot.lane.b32.xlu1 %v3800_v27, %s3620_s18  ;;  %366 = vrot.lane.b32.xlu0 %v3803_v28, %s3620_s18  ;;  %v636_v27 = vld [vmem:[%s3662_s17 + $0x9] sm:$0xff] }
  0x5b   : > { %370 = vrot.lane.b32.xlu2 %v3419_v29, %s3620_s18  ;;  %v4053_v29 = vld [vmem:[%s3662_s17 + $0x21] sm:$0xff] }
  0x62   : > { %374 = vrot.lane.b32.xlu1 %v3421_v30, %s3620_s18  ;;  %372 = vrot.lane.b32.xlu0 %v3420_v31, %s3620_s18  ;;  %s181_s18 = scalar_lea.vmem %s5699_s3, %s3389_s15 }
  0x63   : > { %506 = vrot.lane.b32.xlu2 %v3665_v0, %s3621_s19 }
  0x6a   : > { %510 = vrot.lane.b32.xlu1 %v3675_v2, %s3621_s19  ;;  %508 = vrot.lane.b32.xlu0 %v3680_v3, %s3621_s19 }
  0x6b   : > { %512 = vrot.lane.b32.xlu2 %v3690_v5, %s3621_s19  ;;  %v635_v5 = vld [vmem:[%s3662_s17 + $0x1] sm:$0xff] }
  0x6d   : > { %v321_v34 = vpop.permute.xlu2 %320 }
  0x6e   : > { %413 = vst.msk [vmem:[#allocation2 + $0x20] sm:$0xff] %vm408_vm1, %v321_v34 }
  0x72   : > { %516 = vrot.lane.b32.xlu1 %v3695_v6, %s3621_s19  ;;  %514 = vrot.lane.b32.xlu0 %v3698_v7, %s3621_s19  ;;  %v3996_v7 = vld [vmem:[%s3662_s17 + $0x19] sm:$0xff] }
  0x73   : > { %518 = vrot.lane.b32.xlu2 %v3705_v8, %s3621_s19 }
  0x75   : > { %v323_v35 = vpop.permute.xlu2 %322 }
  0x76   : > { %414 = vst.msk [vmem:[#allocation2 + $0x28] sm:$0xff] %vm408_vm1, %v323_v35 }
  0x7a   : > { %522 = vrot.lane.b32.xlu1 %v3710_v9, %s3621_s19  ;;  %520 = vrot.lane.b32.xlu0 %v3713_v10, %s3621_s19  ;;  %v4003_v10 = vld [vmem:[%s3662_s17 + $0x31] sm:$0xff] }
  0x7b   : > { %524 = vrot.lane.b32.xlu2 %v3720_v11, %s3621_s19  ;;  %v1231_v11 = vld [vmem:[%s3662_s17 + $0xca] sm:$0xff] }
  0x7d   : > { %v329_v36 = vpop.permute.xlu2 %328 }
  0x7e   : > { %417 = vst.msk [vmem:[#allocation2 + $0x40] sm:$0xff] %vm408_vm1, %v329_v36  ;;  %v4072_v36 = vld [vmem:[%s3662_s17 + $0x10a] sm:$0xff] }
  0x82   : > { %528 = vrot.lane.b32.xlu1 %v3725_v12, %s3621_s19  ;;  %526 = vrot.lane.b32.xlu0 %v3728_v13, %s3621_s19  ;;  %v4011_v13 = vld [vmem:[%s3662_s17 + $0xe2] sm:$0xff] }
  0x83   : > { %530 = vrot.lane.b32.xlu2 %v3735_v14, %s3621_s19 }
  0x84   : > { %v317_v37 = vpop.permute.xlu1 %316  ;;  %v313_v38 = vpop.permute.xlu0 %312 }
  0x85   : > { %411 = vst.msk [vmem:[#allocation2 + $0x10] sm:$0xff] %vm408_vm1, %v317_v37  ;;  %v335_v39 = vpop.permute.xlu2 %334  ;;  %v1215_v37 = vld [vmem:[%s3662_s17 + $0xa] sm:$0xff] }
  0x86   : > { %409 = vst.msk [vmem:[#allocation2] sm:$0xff] %vm408_vm1, %v313_v38 }
  0x87   : > { %420 = vst.msk [vmem:[#allocation2 + $0x58] sm:$0xff] %vm408_vm1, %v335_v39  ;;  %v4080_v39 = vld [vmem:[%s3662_s17 + $0x22] sm:$0xff] }
  0x8a   : > { %534 = vrot.lane.b32.xlu1 %v3740_v15, %s3621_s19  ;;  %532 = vrot.lane.b32.xlu0 %v3743_v16, %s3621_s19  ;;  %v4018_v16 = vld [vmem:[%s3662_s17 + $0xfa] sm:$0xff] }
  0x8b   : > { %536 = vrot.lane.b32.xlu2 %v3750_v17, %s3621_s19  ;;  %v1214_v17 = vld [vmem:[%s3662_s17 + $0x2] sm:$0xff] }
  0x8c   : > { %v319_v40 = vpop.permute.xlu1 %318  ;;  %v315_v41 = vpop.permute.xlu0 %314 }
  0x8d   : > { %412 = vst.msk [vmem:[#allocation2 + $0x18] sm:$0xff] %vm408_vm1, %v319_v40  ;;  %v341_v42 = vpop.permute.xlu2 %340 }
  0x8e   : > { %410 = vst.msk [vmem:[#allocation2 + $0x8] sm:$0xff] %vm408_vm1, %v315_v41 }
  0x8f   : > { %423 = vst.msk [vmem:[#allocation2 + $0x70] sm:$0xff] %vm408_vm1, %v341_v42  ;;  %v4087_v42 = vld [vmem:[%s3662_s17 + $0x3a] sm:$0xff] }
  0x92   : > { %540 = vrot.lane.b32.xlu1 %v3755_v18, %s3621_s19  ;;  %538 = vrot.lane.b32.xlu0 %v3758_v19, %s3621_s19  ;;  %v4026_v19 = vld [vmem:[%s3662_s17 + $0x1a] sm:$0xff] }
  0x93   : > { %542 = vrot.lane.b32.xlu2 %v3765_v20, %s3621_s19 }
  0x94   : > { %v327_v43 = vpop.permute.xlu1 %326  ;;  %v325_v44 = vpop.permute.xlu0 %324 }
  0x95   : > { %416 = vst.msk [vmem:[#allocation2 + $0x38] sm:$0xff] %vm408_vm1, %v327_v43  ;;  %v347_v45 = vpop.permute.xlu2 %346 }
  0x96   : > { %415 = vst.msk [vmem:[#allocation2 + $0x30] sm:$0xff] %vm408_vm1, %v325_v44 }
  0x97   : > { %426 = vst.msk [vmem:[#allocation2 + $0x88] sm:$0xff] %vm408_vm1, %v347_v45 }
  0x9a   : > { %546 = vrot.lane.b32.xlu1 %v3770_v21, %s3621_s19  ;;  %544 = vrot.lane.b32.xlu0 %v3773_v22, %s3621_s19  ;;  %v4033_v22 = vld [vmem:[%s3662_s17 + $0x32] sm:$0xff] }
  0x9b   : > { %548 = vrot.lane.b32.xlu2 %v3780_v23, %s3621_s19 }
  0x9c   : > { %v333_v46 = vpop.permute.xlu1 %332  ;;  %v331_v47 = vpop.permute.xlu0 %330 }
  0x9d   : > { %419 = vst.msk [vmem:[#allocation2 + $0x50] sm:$0xff] %vm408_vm1, %v333_v46  ;;  %v353_v48 = vpop.permute.xlu2 %352  ;;  %v4099_v46 = vld [vmem:[%s3662_s17 + $0x111] sm:$0xff] }
  0x9e   : > { %418 = vst.msk [vmem:[#allocation2 + $0x48] sm:$0xff] %vm408_vm1, %v331_v47 }
  0x9f   : > { %429 = vst.msk [vmem:[#allocation2 + $0xa0] sm:$0xff] %vm408_vm1, %v353_v48 }
  0xa2   : > { %552 = vrot.lane.b32.xlu1 %v3785_v24, %s3621_s19  ;;  %550 = vrot.lane.b32.xlu0 %v3788_v25, %s3621_s19 }
  0xa3   : > { %554 = vrot.lane.b32.xlu2 %v3795_v26, %s3621_s19  ;;  %v4045_v26 = vld [vmem:[%s3662_s17 + $0x109] sm:$0xff] }
  0xa4   : > { %v339_v49 = vpop.permute.xlu1 %338  ;;  %v337_v50 = vpop.permute.xlu0 %336 }
  0xa5   : > { %422 = vst.msk [vmem:[#allocation2 + $0x68] sm:$0xff] %vm408_vm1, %v339_v49  ;;  %v359_v52 = vpop.permute.xlu2 %358 }
  0xa6   : > { %421 = vst.msk [vmem:[#allocation2 + $0x60] sm:$0xff] %vm408_vm1, %v337_v50  ;;  %v1829_v50 = vld [vmem:[%s5697_s1 + $0x20] sm:$0xf] }
  0xa7   : > { %432 = vst.msk [vmem:[#allocation2 + $0xb8] sm:$0xff] %vm408_vm1, %v359_v52 }
  0xaa   : > { %731 = vrot.lane.b32.xlu1 %v651_v51, %s3622_s20  ;;  %556 = vrot.lane.b32.xlu0 %v3803_v28, %s3621_s19  ;;  %v1929_v51 = vsel %vm1927_vm3, %v1829_v50, 0 }
  0xab   : > { %924 = vrot.lane.b32.xlu2 %v3951_v53, %s3623_s21  ;;  %v4113_v52 = vand.u32 4294901760, %v1929_v51 }
  0xac   : > { %v345_v54 = vpop.permute.xlu1 %344  ;;  %v343_v55 = vpop.permute.xlu0 %342 }
  0xad   : > { %425 = vst.msk [vmem:[#allocation2 + $0x80] sm:$0xff] %vm408_vm1, %v345_v54  ;;  %v365_v58 = vpop.permute.xlu2 %364  ;;  %3585 = vmatpush.msra.mxu2 %v4113_v52  ;;  %1943 = vmatpush.msra.mxu0 %v4113_v52 }
  0xae   : > { %424 = vst.msk [vmem:[#allocation2 + $0x78] sm:$0xff] %vm408_vm1, %v343_v55  ;;  %v1828_v55 = vld [vmem:[%s5697_s1 + $0x18] sm:$0xff] }
  0xaf   : > { %435 = vst.msk [vmem:[#allocation2 + $0xd0] sm:$0xff] %vm408_vm1, %v365_v58  ;;  %v4124_v58 = vand.u32 4294901760, %v1828_v55 }
  0xb1   : > { %3586 = vmatpush.msra.mxu2 %v4124_v58  ;;  %1945 = vmatpush.msra.mxu0 %v4124_v58 }
  0xb2   : > { %1310 = vrot.lane.b32.xlu1 %v1230_v56, %s3624_s22  ;;  %1117 = vrot.lane.b32.xlu0 %v3959_v57, %s3625_s23  ;;  %v2221_v56 = vsub.f32 %v1929_v51, %v4113_v52 }
  0xb3   : > { %1503 = vrot.lane.b32.xlu2 %v3966_v59, %s3626_s24 }
  0xb4   : > { %v351_v60 = vpop.permute.xlu1 %350  ;;  %v349_v61 = vpop.permute.xlu0 %348 }
  0xb5   : > { %428 = vst.msk [vmem:[#allocation2 + $0x98] sm:$0xff] %vm408_vm1, %v351_v60  ;;  %v371_v0 = vpop.permute.xlu2 %370  ;;  %v2222_v60 = vand.u32 4294901760, %v2221_v56 }
  0xb6   : > { %427 = vst.msk [vmem:[#allocation2 + $0x90] sm:$0xff] %vm408_vm1, %v349_v61  ;;  %v2227_v61 = vsub.f32 %v1828_v55, %v4124_v58  ;;  %v4240_v55 = vld [vmem:[%s3662_s17 + $0x52] sm:$0xff] }
  0xb7   : > { %438 = vst.msk [vmem:[#allocation2 + $0xe8] sm:$0xff] %vm408_vm1, %v371_v0  ;;  %v1826_v0 = vld [vmem:[%s5697_s1 + $0x8] sm:$0xff] }
  0xba   : > { %733 = vrot.lane.b32.xlu1 %v652_v62, %s3622_s20  ;;  %1696 = vrot.lane.b32.xlu0 %v3974_v63, %s3627_s25 }
  0xbb   : > { %926 = vrot.lane.b32.xlu2 %v3981_v1, %s3623_s21 }
  0xbc   : > { %v357_v2 = vpop.permute.xlu1 %356  ;;  %v355_v3 = vpop.permute.xlu0 %354 }
  0xbd   : > { %431 = vst.msk [vmem:[#allocation2 + $0xb0] sm:$0xff] %vm408_vm1, %v357_v2  ;;  %v507_v6 = vpop.permute.xlu2 %506 }
  0xbe   : > { %430 = vst.msk [vmem:[#allocation2 + $0xa8] sm:$0xff] %vm408_vm1, %v355_v3  ;;  %v2223_v3 = vsub.f32 %v2221_v56, %v2222_v60 }
  0xbf   : > { %603 = vst.msk [vmem:[#allocation2] sm:$0xff] %vm602_vm2, %v507_v6 }
  0xc2   : > { %1119 = vrot.lane.b32.xlu1 %v3988_v4, %s3625_s23  ;;  %699 = vrot.lane.b32.xlu0 %v635_v5, %s3622_s20  ;;  %v2228_v5 = vand.u32 4294901760, %v2227_v61 }
  0xc3   : > { %892 = vrot.lane.b32.xlu2 %v3996_v7, %s3623_s21 }
  0xc4   : > { %v363_v8 = vpop.permute.xlu1 %362  ;;  %v361_v9 = vpop.permute.xlu0 %360 }
  0xc5   : > { %434 = vst.msk [vmem:[#allocation2 + $0xc8] sm:$0xff] %vm408_vm1, %v363_v8  ;;  %v513_v12 = vpop.permute.xlu2 %512  ;;  %v1825_v8 = vld [vmem:[%s5697_s1] sm:$0xff] }
  0xc6   : > { %433 = vst.msk [vmem:[#allocation2 + $0xc0] sm:$0xff] %vm408_vm1, %v361_v9  ;;  %v2224_v9 = vand.u32 4294901760, %v2223_v3  ;;  %v4272_v3 = vld [vmem:[%s3662_s17 + $0x61] sm:$0xff] }
  0xc7   : > { %606 = vst.msk [vmem:[#allocation2 + $0x18] sm:$0xff] %vm602_vm2, %v513_v12 }
  0xc8   : > { %3590 = vmatpush.msra.mxu3 %v2224_v9  ;;  %2225 = vmatpush.msra.mxu1 %v2224_v9 }
  0xca   : > { %1085 = vrot.lane.b32.xlu1 %v4003_v10, %s3625_s23  ;;  %1312 = vrot.lane.b32.xlu0 %v1231_v11, %s3624_s22  ;;  %v2229_v11 = vsub.f32 %v2227_v61, %v2228_v5 }
  0xcb   : > { %1505 = vrot.lane.b32.xlu2 %v4011_v13, %s3626_s24 }
  0xcc   : > { %v369_v14 = vpop.permute.xlu1 %368  ;;  %v367_v15 = vpop.permute.xlu0 %366 }
  0xcd   : > { %437 = vst.msk [vmem:[#allocation2 + $0xe0] sm:$0xff] %vm408_vm1, %v369_v14  ;;  %v519_v18 = vpop.permute.xlu2 %518  ;;  %v4157_v14 = vld [vmem:[%s3662_s17 + $0x112] sm:$0xff] }
  0xce   : > { %436 = vst.msk [vmem:[#allocation2 + $0xd8] sm:$0xff] %vm408_vm1, %v367_v15 }
  0xcf   : > { %609 = vst.msk [vmem:[#allocation2 + $0x30] sm:$0xff] %vm602_vm2, %v519_v18  ;;  %v2230_v18 = vand.u32 4294901760, %v2229_v11  ;;  %v4287_v11 = vld [vmem:[%s3662_s17 + $0x12a] sm:$0xff] }
  0xd1   : > { %3591 = vmatpush.msra.mxu3 %v2230_v18  ;;  %2231 = vmatpush.msra.mxu1 %v2230_v18 }
  0xd2   : > { %1698 = vrot.lane.b32.xlu1 %v4018_v16, %s3627_s25  ;;  %1278 = vrot.lane.b32.xlu0 %v1214_v17, %s3624_s22  ;;  %v4161_v17 = vand.u32 4294901760, %v1825_v8 }
  0xd3   : > { %1471 = vrot.lane.b32.xlu2 %v4026_v19, %s3626_s24 }
  0xd4   : > { %v375_v20 = vpop.permute.xlu1 %374  ;;  %v373_v21 = vpop.permute.xlu0 %372 }
  0xd5   : > { %440 = vst.msk [vmem:[#allocation2 + $0xf8] sm:$0xff] %vm408_vm1, %v375_v20  ;;  %v525_v23 = vpop.permute.xlu2 %524 }
  0xd6   : > { %439 = vst.msk [vmem:[#allocation2 + $0xf0] sm:$0xff] %vm408_vm1, %v373_v21 }
  0xd7   : > { %612 = vst.msk [vmem:[#allocation2 + $0x48] sm:$0xff] %vm602_vm2, %v525_v23  ;;  %v2245_v23 = vsub.f32 %v1825_v8, %v4161_v17 }
  0xda   : > { %735 = vrot.lane.b32.xlu1 %v3951_v53, %s3622_s20  ;;  %1664 = vrot.lane.b32.xlu0 %v4033_v22, %s3627_s25  ;;  %v4116_v53 = vld [vmem:[%s3662_s17 + $0x49] sm:$0xff] }
  0xdb   : > { %928 = vrot.lane.b32.xlu2 %v3959_v57, %s3623_s21 }
  0xdc   : > { %v511_v24 = vpop.permute.xlu1 %510  ;;  %v509_v25 = vpop.permute.xlu0 %508 }
  0xdd   : > { %605 = vst.msk [vmem:[#allocation2 + $0x10] sm:$0xff] %vm602_vm2, %v511_v24  ;;  %v531_v28 = vpop.permute.xlu2 %530 }
  0xde   : > { %604 = vst.msk [vmem:[#allocation2 + $0x8] sm:$0xff] %vm602_vm2, %v509_v25 }
  0xdf   : > { %615 = vst.msk [vmem:[#allocation2 + $0x60] sm:$0xff] %vm602_vm2, %v531_v28 }
  0xe2   : > { %1121 = vrot.lane.b32.xlu1 %v4045_v26, %s3625_s23  ;;  %701 = vrot.lane.b32.xlu0 %v636_v27, %s3622_s20  ;;  %v2246_v27 = vand.u32 4294901760, %v2245_v23 }
  0xe3   : > { %894 = vrot.lane.b32.xlu2 %v4053_v29, %s3623_s21 }
  0xe4   : > { %v517_v30 = vpop.permute.xlu1 %516  ;;  %v515_v31 = vpop.permute.xlu0 %514 }
  0xe5   : > { %608 = vst.msk [vmem:[#allocation2 + $0x28] sm:$0xff] %vm602_vm2, %v517_v30  ;;  %v537_v33 = vpop.permute.xlu2 %536 }
  0xe6   : > { %607 = vst.msk [vmem:[#allocation2 + $0x20] sm:$0xff] %vm602_vm2, %v515_v31 }
  0xe7   : > { %618 = vst.msk [vmem:[#allocation2 + $0x78] sm:$0xff] %vm602_vm2, %v537_v33  ;;  %v2247_v33 = vsub.f32 %v2245_v23, %v2246_v27 }
  0xea   : > { %1087 = vrot.lane.b32.xlu1 %v4060_v32, %s3625_s23  ;;  %1314 = vrot.lane.b32.xlu0 %v3966_v59, %s3624_s22  ;;  %v1827_v59 = vld [vmem:[%s5697_s1 + $0x10] sm:$0xff] }
  0xeb   : > { %1507 = vrot.lane.b32.xlu2 %v3974_v63, %s3626_s24  ;;  %v4136_v62 = vand.u32 4294901760, %v1827_v59 }
  0xec   : > { %v523_v34 = vpop.permute.xlu1 %522  ;;  %v521_v35 = vpop.permute.xlu0 %520 }
  0xed   : > { %611 = vst.msk [vmem:[#allocation2 + $0x40] sm:$0xff] %vm602_vm2, %v523_v34  ;;  %v543_v38 = vpop.permute.xlu2 %542  ;;  %v2233_v6 = vsub.f32 %v1827_v59, %v4136_v62  ;;  %3587 = vmatpush.msra.mxu2 %v4136_v62  ;;  %1947 = vmatpush.msra.mxu0 %v4136_v62 }
  0xee   : > { %610 = vst.msk [vmem:[#allocation2 + $0x38] sm:$0xff] %vm602_vm2, %v521_v35  ;;  %v2248_v35 = vand.u32 4294901760, %v2247_v33 }
  0xef   : > { %621 = vst.msk [vmem:[#allocation2 + $0x90] sm:$0xff] %vm602_vm2, %v543_v38  ;;  %v2234_v12 = vand.u32 4294901760, %v2233_v6 }
  0xf1   : > { %v2235_v20 = vsub.f32 %v2233_v6, %v2234_v12 }
  0xf2   : > { %1700 = vrot.lane.b32.xlu1 %v4072_v36, %s3627_s25  ;;  %1280 = vrot.lane.b32.xlu0 %v1215_v37, %s3624_s22 }
  0xf3   : > { %1473 = vrot.lane.b32.xlu2 %v4080_v39, %s3626_s24  ;;  %v2236_v24 = vand.u32 4294901760, %v2235_v20 }
  0xf4   : > { %v529_v40 = vpop.permute.xlu1 %528  ;;  %v527_v41 = vpop.permute.xlu0 %526 }
  0xf5   : > { %614 = vst.msk [vmem:[#allocation2 + $0x58] sm:$0xff] %vm602_vm2, %v529_v40  ;;  %v549_v43 = vpop.permute.xlu2 %548  ;;  %3592 = vmatpush.msra.mxu3 %v2236_v24  ;;  %2237 = vmatpush.msra.mxu1 %v2236_v24  ;;  %v4310_v24 = vld [vmem:[%s3662_s17 + $0x62] sm:$0xff] }
  0xf6   : > { %613 = vst.msk [vmem:[#allocation2 + $0x50] sm:$0xff] %vm602_vm2, %v527_v41 }
  0xf7   : > { %624 = vst.msk [vmem:[#allocation2 + $0xa8] sm:$0xff] %vm602_vm2, %v549_v43 }
  0xfa   : > { %737 = vrot.lane.b32.xlu1 %v3981_v1, %s3622_s20  ;;  %1666 = vrot.lane.b32.xlu0 %v4087_v42, %s3627_s25 }
  0xfb   : > { %930 = vrot.lane.b32.xlu2 %v3988_v4, %s3623_s21 }
  0xfc   : > { %v535_v44 = vpop.permute.xlu1 %534  ;;  %v533_v45 = vpop.permute.xlu0 %532 }
  0xfd   : > { %617 = vst.msk [vmem:[#allocation2 + $0x70] sm:$0xff] %vm602_vm2, %v535_v44  ;;  %v555_v47 = vpop.permute.xlu2 %554 }
  0xfe   : > { %616 = vst.msk [vmem:[#allocation2 + $0x68] sm:$0xff] %vm602_vm2, %v533_v45 }
  0xff   : > { %627 = vst.msk [vmem:[#allocation2 + $0xc0] sm:$0xff] %vm602_vm2, %v555_v47 }
 0x102   : > { %1123 = vrot.lane.b32.xlu1 %v4099_v46, %s3625_s23  ;;  %703 = vrot.lane.b32.xlu0 %v3996_v7, %s3622_s20  ;;  %v4144_v7 = vand.u32 4294901760, %v1826_v0 }
 0x103   : > { %896 = vrot.lane.b32.xlu2 %v4003_v10, %s3623_s21 }
 0x104   : > { %v541_v48 = vpop.permute.xlu1 %540  ;;  %v539_v49 = vpop.permute.xlu0 %538  ;;  %3588 = vmatpush.msra.mxu2 %v4144_v7  ;;  %1949 = vmatpush.msra.mxu0 %v4144_v7 }
 0x105   : > { %620 = vst.msk [vmem:[#allocation2 + $0x88] sm:$0xff] %vm602_vm2, %v541_v48  ;;  %v4118_v54 = vpop.permute.xlu2 %924  ;;  %v4225_v48 = vld [vmem:[%s3662_s17 + $0x122] sm:$0xff] }
 0x106   : > { %619 = vst.msk [vmem:[#allocation2 + $0x80] sm:$0xff] %vm602_vm2, %v539_v49  ;;  %3589 = vmatpush.msra.mxu2 %v4161_v17  ;;  %1951 = vmatpush.msra.mxu0 %v4161_v17 }
 0x108   : > { %2392 = vmatpush.msrb.mxu2 %v2221_v56  ;;  %2794 = vmatpush.msrb.mxu0 %v2222_v60 }
 0x10a   : > { %1089 = vrot.lane.b32.xlu1 %v4116_v53, %s3625_s23  ;;  %1316 = vrot.lane.b32.xlu0 %v4011_v13, %s3624_s22  ;;  %v2239_v13 = vsub.f32 %v1826_v0, %v4144_v7 }
 0x10b   : > { %1509 = vrot.lane.b32.xlu2 %v4018_v16, %s3626_s24  ;;  %2395 = vmatpush.msrb.mxu2 %v2227_v61 }
 0x10c   : > { %v547_v1 = vpop.permute.xlu1 %546  ;;  %v545_v2 = vpop.permute.xlu0 %544  ;;  %v2240_v21 = vand.u32 4294901760, %v2239_v13  ;;  %2798 = vmatpush.msrb.mxu0 %v2228_v5 }
 0x10d   : > { %623 = vst.msk [vmem:[#allocation2 + $0xa0] sm:$0xff] %vm602_vm2, %v547_v1  ;;  %v4159_v15 = vpop.permute.xlu2 %1503  ;;  %2398 = vmatpush.msrb.mxu2 %v2233_v6 }
 0x10e   : > { %622 = vst.msk [vmem:[#allocation2 + $0x98] sm:$0xff] %vm602_vm2, %v545_v2  ;;  %v2241_v25 = vsub.f32 %v2239_v13, %v2240_v21  ;;  %2802 = vmatpush.msrb.mxu0 %v2234_v12 }
 0x10f   : > { %2401 = vmatpush.msrb.mxu2 %v2239_v13 }
 0x110   : > { %v2242_v31 = vand.u32 4294901760, %v2241_v25  ;;  %2806 = vmatpush.msrb.mxu0 %v2240_v21 }
 0x111   : > { %2404 = vmatpush.msrb.mxu2 %v2245_v23 }
 0x112   : > { %1702 = vrot.lane.b32.xlu1 %v4157_v14, %s3627_s25  ;;  %1282 = vrot.lane.b32.xlu0 %v4026_v19, %s3624_s22  ;;  %v4177_v19 = vld [vmem:[%s3662_s17 + $0x4a] sm:$0xff] }
 0x113   : > { %1475 = vrot.lane.b32.xlu2 %v4033_v22, %s3626_s24  ;;  %3593 = vmatpush.msra.mxu3 %v2242_v31 }
 0x114   : > { %v553_v28 = vpop.permute.xlu1 %552  ;;  %v551_v30 = vpop.permute.xlu0 %550  ;;  %2243 = vmatpush.msra.mxu1 %v2242_v31  ;;  %2810 = vmatpush.msrb.mxu0 %v2246_v27 }
 0x115   : > { %626 = vst.msk [vmem:[#allocation2 + $0xb8] sm:$0xff] %vm602_vm2, %v553_v28  ;;  %v927_v34 = vpop.permute.xlu2 %926  ;;  %3594 = vmatpush.msra.mxu3 %v2248_v35 }
 0x116   : > { %625 = vst.msk [vmem:[#allocation2 + $0xb0] sm:$0xff] %vm602_vm2, %v551_v30  ;;  %2249 = vmatpush.msra.mxu1 %v2248_v35 }
 0x117   : > { %2578 = vmatpush.msrb.mxu3 %v4113_v52 }
 0x118   : > { %2952 = vmatpush.msrb.mxu1 %v4113_v52 }
 0x119   : > { %2580 = vmatpush.msrb.mxu3 %v4124_v58 }
 0x11a   : > { %739 = vrot.lane.b32.xlu1 %v3959_v57, %s3622_s20  ;;  %1668 = vrot.lane.b32.xlu0 %v4177_v19, %s3627_s25  ;;  %v4194_v57 = vld [vmem:[%s3662_s17 + $0x121] sm:$0xff] }
 0x11b   : > { %932 = vrot.lane.b32.xlu2 %v4045_v26, %s3623_s21  ;;  %2954 = vmatpush.msrb.mxu1 %v4124_v58 }
 0x11c   : > { %v732_v37 = vpop.permute.xlu1 %731  ;;  %v557_v38 = vpop.permute.xlu0 %556  ;;  %2582 = vmatpush.msrb.mxu3 %v4136_v62 }
 0x11d   : > { %812 = vst.msk [vmem:[#allocation2 + $0x80] sm:$0xff] %vm795_vm4, %v732_v37  ;;  %v893_v40 = vpop.permute.xlu2 %892  ;;  %2956 = vmatpush.msrb.mxu1 %v4136_v62  ;;  %v4260_v62 = vld [vmem:[%s3662_s17 + $0x129] sm:$0xff] }
 0x11e   : > { %628 = vst.msk [vmem:[#allocation2 + $0xc8] sm:$0xff] %vm602_vm2, %v557_v38  ;;  %2584 = vmatpush.msrb.mxu3 %v4144_v7 }
 0x11f   : > { %1005 = vst.msk [vmem:[#allocation2 + $0x80] sm:$0xff] %vm988_vm5, %v4118_v54  ;;  %2958 = vmatpush.msrb.mxu1 %v4144_v7 }
 0x120   : > { %2586 = vmatpush.msrb.mxu3 %v4161_v17 }
 0x121   : > { %2960 = vmatpush.msrb.mxu1 %v4161_v17 }
 0x122   : > { %1125 = vrot.lane.b32.xlu1 %v4194_v57, %s3625_s23  ;;  %705 = vrot.lane.b32.xlu0 %v4053_v29, %s3622_s20  ;;  %v4213_v29 = vld [vmem:[%s3662_s17 + $0x51] sm:$0xff] }
 0x123   : > { %898 = vrot.lane.b32.xlu2 %v4060_v32, %s3623_s21 }
 0x124   : > { %v1311_v41 = vpop.permute.xlu1 %1310  ;;  %v1118_v43 = vpop.permute.xlu0 %1117 }
 0x125   : > { %1198 = vst.msk [vmem:[#allocation2 + $0x80] sm:$0xff] %vm1181_vm6, %v1118_v43  ;;  %v1506_v44 = vpop.permute.xlu2 %1505 }
 0x126   : > { %1391 = vst.msk [vmem:[#allocation2 + $0x80] sm:$0xff] %vm1374_vm7, %v1311_v41 }
 0x127   : > { %1584 = vst.msk [vmem:[#allocation2 + $0x80] sm:$0xff] %vm1567_vm8, %v4159_v15 }
 0x12a   : > { %1091 = vrot.lane.b32.xlu1 %v4213_v29, %s3625_s23  ;;  %1318 = vrot.lane.b32.xlu0 %v3974_v63, %s3624_s22 }
 0x12b   : > { %1511 = vrot.lane.b32.xlu2 %v4072_v36, %s3626_s24 }
 0x12c   : > { %v734_v45 = vpop.permute.xlu1 %733  ;;  %v1697_v47 = vpop.permute.xlu0 %1696 }
 0x12d   : > { %813 = vst.msk [vmem:[#allocation2 + $0x88] sm:$0xff] %vm795_vm4, %v734_v45  ;;  %v1472_v49 = vpop.permute.xlu2 %1471 }
 0x12e   : > { %1777 = vst.msk [vmem:[#allocation2 + $0x80] sm:$0xff] %vm1760_vm9, %v1697_v47 }
 0x12f   : > { %1006 = vst.msk [vmem:[#allocation2 + $0x88] sm:$0xff] %vm988_vm5, %v927_v34  ;;  %v4330_v34 = vld [vmem:[%s3662_s17 + $0x139] sm:$0xff] }
 0x132   : > { %1704 = vrot.lane.b32.xlu1 %v4225_v48, %s3627_s25  ;;  %1284 = vrot.lane.b32.xlu0 %v4080_v39, %s3624_s22 }
 0x133   : > { %1477 = vrot.lane.b32.xlu2 %v4087_v42, %s3626_s24 }
 0x134   : > { %v1120_v63 = vpop.permute.xlu1 %1119  ;;  %v700_v50 = vpop.permute.xlu0 %699 }
 0x135   : > { %1199 = vst.msk [vmem:[#allocation2 + $0x88] sm:$0xff] %vm1181_vm6, %v1120_v63  ;;  %v1809_v51 = vld [vmem:[#allocation2 + $0x80] sm:$0xff]  ;;  %v929_v39 = vpop.permute.xlu2 %928 }
 0x136   : > { %796 = vst.msk [vmem:[#allocation2] sm:$0xff] %vm795_vm4, %v700_v50  ;;  %v1880_v52 = vsel %vm1830_vm10, %v1809_v51, 0 }
 0x137   : > { %989 = vst.msk [vmem:[#allocation2] sm:$0xff] %vm988_vm5, %v893_v40  ;;  %v4237_v54 = vand.u32 4294901760, %v1880_v52  ;;  %v4342_v40 = vld [vmem:[%s3662_s17 + $0x69] sm:$0xff] }
 0x139   : > { %2315 = vmatmul.f32.vlgmr.msra.gmra.mxu3 %v4237_v54  ;;  %v4244_v56 = vsub.f32 %v1880_v52, %v4237_v54 }
 0x13a   : > { %741 = vrot.lane.b32.xlu1 %v3988_v4, %s3622_s20  ;;  %1670 = vrot.lane.b32.xlu0 %v4240_v55, %s3627_s25 }
 0x13b   : > { %v5707_v58 = vand.u32 4294901760, %v4244_v56  ;;  %934 = vrot.lane.b32.xlu2 %v4099_v46, %s3623_s21 }
 0x13c   : > { %v1086_v59 = vpop.permute.xlu1 %1085  ;;  %v1313_v60 = vpop.permute.xlu0 %1312 }
 0x13d   : > { %1182 = vst.msk [vmem:[#allocation2] sm:$0xff] %vm1181_vm6, %v1086_v59  ;;  %v2083_v61 = vsub.f32 %v4244_v56, %v5707_v58  ;;  %v895_v0 = vpop.permute.xlu2 %894 }
 0x13e   : > { %1392 = vst.msk [vmem:[#allocation2 + $0x88] sm:$0xff] %vm1374_vm7, %v1313_v60 }
 0x13f   : > { %1585 = vst.msk [vmem:[#allocation2 + $0x88] sm:$0xff] %vm1567_vm8, %v1506_v44  ;;  %v2084_v4 = vand.u32 4294901760, %v2083_v61 }
 0x141   : > { %2085 = vmatmul.f32.vlgmr.msra.gmra.mxu2 %v2084_v4  ;;  %v4380_v4 = vld [vmem:[%s3662_s17 + $0x6a] sm:$0xff] }
 0x142   : > { %1127 = vrot.lane.b32.xlu1 %v4260_v62, %s3625_s23  ;;  %707 = vrot.lane.b32.xlu0 %v4003_v10, %s3622_s20 }
 0x143   : > { %900 = vrot.lane.b32.xlu2 %v4116_v53, %s3623_s21 }
 0x144   : > { %v1699_v1 = vpop.permute.xlu1 %1698  ;;  %v1279_v2 = vpop.permute.xlu0 %1278 }
 0x145   : > { %1778 = vst.msk [vmem:[#allocation2 + $0x88] sm:$0xff] %vm1760_vm9, %v1699_v1  ;;  %v1508_v5 = vpop.permute.xlu2 %1507 }
 0x146   : > { %1375 = vst.msk [vmem:[#allocation2] sm:$0xff] %vm1374_vm7, %v1279_v2 }
 0x147   : > { %1568 = vst.msk [vmem:[#allocation2] sm:$0xff] %vm1567_vm8, %v1472_v49  ;;  %v4357_v49 = vld [vmem:[%s3662_s17 + $0x13a] sm:$0xff] }
 0x14a   : > { %1093 = vrot.lane.b32.xlu1 %v4272_v3, %s3625_s23  ;;  %1320 = vrot.lane.b32.xlu0 %v4018_v16, %s3624_s22 }
 0x14b   : > { %1513 = vrot.lane.b32.xlu2 %v4157_v14, %s3626_s24 }
 0x14c   : > { %v736_v10 = vpop.permute.xlu1 %735  ;;  %v1665_v6 = vpop.permute.xlu0 %1664  ;;  %v1810_v7 = vld [vmem:[#allocation2 + $0x88] sm:$0xff] }
 0x14d   : > { %814 = vst.msk [vmem:[#allocation2 + $0x90] sm:$0xff] %vm795_vm4, %v736_v10  ;;  %v1883_v8 = vsel %vm1830_vm10, %v1810_v7, 0  ;;  %v1474_v12 = vpop.permute.xlu2 %1473  ;;  %v4400_v7 = vld [vmem:[%s3662_s17 + $0x141] sm:$0xff] }
 0x14e   : > { %1761 = vst.msk [vmem:[#allocation2] sm:$0xff] %vm1760_vm9, %v1665_v6  ;;  %v4283_v9 = vand.u32 4294901760, %v1883_v8 }
 0x14f   : > { %1007 = vst.msk [vmem:[#allocation2 + $0x90] sm:$0xff] %vm988_vm5, %v929_v39 }
 0x150   : > { %2319 = vmatmul.f32.gmra.mxu3 %v4283_v9  ;;  %v4291_v16 = vsub.f32 %v1883_v8, %v4283_v9 }
 0x152   : > { %1706 = vrot.lane.b32.xlu1 %v4287_v11, %s3627_s25  ;;  %1286 = vrot.lane.b32.xlu0 %v4033_v22, %s3624_s22  ;;  %v5706_v13 = vand.u32 4294901760, %v4291_v16 }
 0x153   : > { %1479 = vrot.lane.b32.xlu2 %v4177_v19, %s3626_s24 }
 0x154   : > { %v1122_v15 = vpop.permute.xlu1 %1121  ;;  %v702_v17 = vpop.permute.xlu0 %701  ;;  %v2091_v18 = vsub.f32 %v4291_v16, %v5706_v13 }
 0x155   : > { %1200 = vst.msk [vmem:[#allocation2 + $0x90] sm:$0xff] %vm1181_vm6, %v1122_v15  ;;  %v1793_v20 = vld [vmem:[#allocation2] sm:$0xff]  ;;  %v931_v25 = vpop.permute.xlu2 %930 }
 0x156   : > { %797 = vst.msk [vmem:[#allocation2 + $0x8] sm:$0xff] %vm795_vm4, %v702_v17  ;;  %v2092_v21 = vand.u32 4294901760, %v2091_v18  ;;  %v1832_v23 = vsel %vm1830_vm10, %v1793_v20, 0  ;;  %v4412_v17 = vld [vmem:[%s3662_s17 + $0x79] sm:$0xff] }
 0x157   : > { %990 = vst.msk [vmem:[#allocation2 + $0x8] sm:$0xff] %vm988_vm5, %v895_v0  ;;  %v4307_v22 = vand.u32 4294901760, %v1832_v23 }
 0x158   : > { %2093 = vmatmul.f32.gmra.mxu2 %v2092_v21 }
 0x159   : > { %2251 = vmatmul.f32.vlgmr.msra.gmra.mxu1 %v4307_v22  ;;  %v4314_v27 = vsub.f32 %v1832_v23, %v4307_v22 }
 0x15a   : > { %743 = vrot.lane.b32.xlu1 %v4045_v26, %s3622_s20  ;;  %1672 = vrot.lane.b32.xlu0 %v4310_v24, %s3627_s25 }
 0x15b   : > { %v5718_v28 = vand.u32 4294901760, %v4314_v27  ;;  %936 = vrot.lane.b32.xlu2 %v4194_v57, %s3623_s21 }
 0x15c   : > { %v1088_v30 = vpop.permute.xlu1 %1087  ;;  %v1315_v31 = vpop.permute.xlu0 %1314 }
 0x15d   : > { %1183 = vst.msk [vmem:[#allocation2 + $0x8] sm:$0xff] %vm1181_vm6, %v1088_v30  ;;  %v1955_v33 = vsub.f32 %v4314_v27, %v5718_v28  ;;  %v897_v35 = vpop.permute.xlu2 %896  ;;  %v4427_v30 = vld [vmem:[%s3662_s17 + $0x142] sm:$0xff] }
 0x15e   : > { %1393 = vst.msk [vmem:[#allocation2 + $0x90] sm:$0xff] %vm1374_vm7, %v1315_v31  ;;  %v4929_v28 = vld [vmem:[%s3662_s17 + $0xc9] sm:$0xff] }
 0x15f   : > { %1586 = vst.msk [vmem:[#allocation2 + $0x90] sm:$0xff] %vm1567_vm8, %v1508_v5  ;;  %v1956_v26 = vand.u32 4294901760, %v1955_v33 }
 0x161   : > { %1957 = vmatmul.f32.vlgmr.msra.gmra.mxu0 %v1956_v26 }
 0x162   : > { %1129 = vrot.lane.b32.xlu1 %v4330_v34, %s3625_s23  ;;  %709 = vrot.lane.b32.xlu0 %v4060_v32, %s3622_s20 }
 0x163   : > { %902 = vrot.lane.b32.xlu2 %v4213_v29, %s3623_s21 }
 0x164   : > { %v1701_v37 = vpop.permute.xlu1 %1700  ;;  %v1281_v38 = vpop.permute.xlu0 %1280 }
 0x165   : > { %1779 = vst.msk [vmem:[#allocation2 + $0x90] sm:$0xff] %vm1760_vm9, %v1701_v37  ;;  %v1510_v41 = vpop.permute.xlu2 %1509 }
 0x166   : > { %1376 = vst.msk [vmem:[#allocation2 + $0x8] sm:$0xff] %vm1374_vm7, %v1281_v38 }
 0x167   : > { %1569 = vst.msk [vmem:[#allocation2 + $0x8] sm:$0xff] %vm1567_vm8, %v1474_v12 }
 0x16a   : > { %1095 = vrot.lane.b32.xlu1 %v4342_v40, %s3625_s23  ;;  %1322 = vrot.lane.b32.xlu0 %v4072_v36, %s3624_s22 }
 0x16b   : > { %1515 = vrot.lane.b32.xlu2 %v4225_v48, %s3626_s24 }
 0x16c   : > { %v738_v32 = vpop.permute.xlu1 %737  ;;  %v1667_v43 = vpop.permute.xlu0 %1666  ;;  %v1811_v44 = vld [vmem:[#allocation2 + $0x90] sm:$0xff] }
 0x16d   : > { %815 = vst.msk [vmem:[#allocation2 + $0x98] sm:$0xff] %vm795_vm4, %v738_v32  ;;  %v1886_v45 = vsel %vm1830_vm10, %v1811_v44, 0  ;;  %v1476_v63 = vpop.permute.xlu2 %1475 }
 0x16e   : > { %1762 = vst.msk [vmem:[#allocation2 + $0x8] sm:$0xff] %vm1760_vm9, %v1667_v43  ;;  %v4353_v47 = vand.u32 4294901760, %v1886_v45  ;;  %v4450_v43 = vld [vmem:[%s3662_s17 + $0x7a] sm:$0xff] }
 0x16f   : > { %1008 = vst.msk [vmem:[#allocation2 + $0x98] sm:$0xff] %vm988_vm5, %v931_v25 }
 0x170   : > { %2323 = vmatmul.f32.gmra.mxu3 %v4353_v47  ;;  %v4361_v36 = vsub.f32 %v1886_v45, %v4353_v47 }
 0x172   : > { %1708 = vrot.lane.b32.xlu1 %v4357_v49, %s3627_s25  ;;  %1288 = vrot.lane.b32.xlu0 %v4087_v42, %s3624_s22  ;;  %v5705_v50 = vand.u32 4294901760, %v4361_v36 }
 0x173   : > { %1481 = vrot.lane.b32.xlu2 %v4240_v55, %s3626_s24 }
 0x174   : > { %v1124_v51 = vpop.permute.xlu1 %1123  ;;  %v704_v52 = vpop.permute.xlu0 %703  ;;  %v2099_v39 = vsub.f32 %v4361_v36, %v5705_v50 }
 0x175   : > { %1201 = vst.msk [vmem:[#allocation2 + $0x98] sm:$0xff] %vm1181_vm6, %v1124_v51  ;;  %v1794_v59 = vld [vmem:[#allocation2 + $0x8] sm:$0xff]  ;;  %v933_v0 = vpop.permute.xlu2 %932 }
 0x176   : > { %798 = vst.msk [vmem:[#allocation2 + $0x10] sm:$0xff] %vm795_vm4, %v704_v52  ;;  %v2100_v60 = vand.u32 4294901760, %v2099_v39  ;;  %v1835_v61 = vsel %vm1830_vm10, %v1794_v59, 0  ;;  %v4470_v59 = vld [vmem:[%s3662_s17 + $0x151] sm:$0xff] }
 0x177   : > { %991 = vst.msk [vmem:[#allocation2 + $0x10] sm:$0xff] %vm988_vm5, %v897_v35  ;;  %v4377_v42 = vand.u32 4294901760, %v1835_v61 }
 0x178   : > { %2101 = vmatmul.f32.gmra.mxu2 %v2100_v60 }
 0x179   : > { %2255 = vmatmul.f32.gmra.mxu1 %v4377_v42  ;;  %v4384_v1 = vsub.f32 %v1835_v61, %v4377_v42 }
 0x17a   : > { %745 = vrot.lane.b32.xlu1 %v4099_v46, %s3622_s20  ;;  %1674 = vrot.lane.b32.xlu0 %v4380_v4, %s3627_s25 }
 0x17b   : > { %v5715_v2 = vand.u32 4294901760, %v4384_v1  ;;  %938 = vrot.lane.b32.xlu2 %v4260_v62, %s3623_s21 }
 0x17c   : > { %v1090_v5 = vpop.permute.xlu1 %1089  ;;  %v1317_v10 = vpop.permute.xlu0 %1316 }
 0x17d   : > { %1184 = vst.msk [vmem:[#allocation2 + $0x10] sm:$0xff] %vm1181_vm6, %v1090_v5  ;;  %v1963_v6 = vsub.f32 %v4384_v1, %v5715_v2  ;;  %v899_v8 = vpop.permute.xlu2 %898  ;;  %v4482_v5 = vld [vmem:[%s3662_s17 + $0x81] sm:$0xff] }
 0x17e   : > { %1394 = vst.msk [vmem:[#allocation2 + $0x98] sm:$0xff] %vm1374_vm7, %v1317_v10 }
 0x17f   : > { %1587 = vst.msk [vmem:[#allocation2 + $0x98] sm:$0xff] %vm1567_vm8, %v1510_v41  ;;  %v1964_v46 = vand.u32 4294901760, %v1963_v6 }
 0x181   : > { %1965 = vmatmul.f32.gmra.mxu0 %v1964_v46 }
 0x182   : > { %1131 = vrot.lane.b32.xlu1 %v4400_v7, %s3625_s23  ;;  %711 = vrot.lane.b32.xlu0 %v4116_v53, %s3622_s20 }
 0x183   : > { %904 = vrot.lane.b32.xlu2 %v4272_v3, %s3623_s21 }
 0x184   : > { %v1703_v12 = vpop.permute.xlu1 %1702  ;;  %v1283_v15 = vpop.permute.xlu0 %1282 }
 0x185   : > { %1780 = vst.msk [vmem:[#allocation2 + $0x98] sm:$0xff] %vm1760_vm9, %v1703_v12  ;;  %v1512_v18 = vpop.permute.xlu2 %1511 }
 0x186   : > { %1377 = vst.msk [vmem:[#allocation2 + $0x10] sm:$0xff] %vm1374_vm7, %v1283_v15  ;;  %v4497_v15 = vld [vmem:[%s3662_s17 + $0x152] sm:$0xff] }
 0x187   : > { %1570 = vst.msk [vmem:[#allocation2 + $0x10] sm:$0xff] %vm1567_vm8, %v1476_v63 }
 0x18a   : > { %1097 = vrot.lane.b32.xlu1 %v4412_v17, %s3625_s23  ;;  %1324 = vrot.lane.b32.xlu0 %v4157_v14, %s3624_s22 }
 0x18b   : > { %1517 = vrot.lane.b32.xlu2 %v4287_v11, %s3626_s24 }
 0x18c   : > { %v740_v53 = vpop.permute.xlu1 %739  ;;  %v1669_v20 = vpop.permute.xlu0 %1668  ;;  %v1812_v21 = vld [vmem:[#allocation2 + $0x98] sm:$0xff] }
 0x18d   : > { %816 = vst.msk [vmem:[#allocation2 + $0xa0] sm:$0xff] %vm795_vm4, %v740_v53  ;;  %v1889_v23 = vsel %vm1830_vm10, %v1812_v21, 0  ;;  %v1478_v31 = vpop.permute.xlu2 %1477 }
 0x18e   : > { %1763 = vst.msk [vmem:[#allocation2 + $0x10] sm:$0xff] %vm1760_vm9, %v1669_v20  ;;  %v4423_v25 = vand.u32 4294901760, %v1889_v23 }
 0x18f   : > { %1009 = vst.msk [vmem:[#allocation2 + $0xa0] sm:$0xff] %vm988_vm5, %v933_v0 }
 0x190   : > { %2327 = vmatmul.f32.gmra.mxu3 %v4423_v25  ;;  %v4431_v14 = vsub.f32 %v1889_v23, %v4423_v25 }
 0x192   : > { %1710 = vrot.lane.b32.xlu1 %v4427_v30, %s3627_s25  ;;  %1290 = vrot.lane.b32.xlu0 %v4177_v19, %s3624_s22  ;;  %v5703_v33 = vand.u32 4294901760, %v4431_v14 }
 0x193   : > { %1483 = vrot.lane.b32.xlu2 %v4310_v24, %s3626_s24 }
 0x194   : > { %v1126_v26 = vpop.permute.xlu1 %1125  ;;  %v706_v35 = vpop.permute.xlu0 %705  ;;  %v2107_v37 = vsub.f32 %v4431_v14, %v5703_v33  ;;  %v4727_v33 = vld [vmem:[%s3662_s17 + $0x172] sm:$0xff] }
 0x195   : > { %1202 = vst.msk [vmem:[#allocation2 + $0xa0] sm:$0xff] %vm1181_vm6, %v1126_v26  ;;  %v1795_v38 = vld [vmem:[#allocation2 + $0x10] sm:$0xff]  ;;  %v935_v44 = vpop.permute.xlu2 %934 }
 0x196   : > { %799 = vst.msk [vmem:[#allocation2 + $0x18] sm:$0xff] %vm795_vm4, %v706_v35  ;;  %v2108_v41 = vand.u32 4294901760, %v2107_v37  ;;  %v1838_v32 = vsel %vm1830_vm10, %v1795_v38, 0  ;;  %v4520_v37 = vld [vmem:[%s3662_s17 + $0x82] sm:$0xff] }
 0x197   : > { %992 = vst.msk [vmem:[#allocation2 + $0x18] sm:$0xff] %vm988_vm5, %v899_v8  ;;  %v4447_v19 = vand.u32 4294901760, %v1838_v32 }
 0x198   : > { %2109 = vmatmul.f32.gmra.mxu2 %v2108_v41 }
 0x199   : > { %2259 = vmatmul.f32.gmra.mxu1 %v4447_v19  ;;  %v4454_v45 = vsub.f32 %v1838_v32, %v4447_v19 }
 0x19a   : > { %747 = vrot.lane.b32.xlu1 %v4194_v57, %s3622_s20  ;;  %1676 = vrot.lane.b32.xlu0 %v4450_v43, %s3627_s25 }
 0x19b   : > { %v5714_v63 = vand.u32 4294901760, %v4454_v45  ;;  %940 = vrot.lane.b32.xlu2 %v4330_v34, %s3623_s21 }
 0x19c   : > { %v1092_v51 = vpop.permute.xlu1 %1091  ;;  %v1319_v52 = vpop.permute.xlu0 %1318 }
 0x19d   : > { %1185 = vst.msk [vmem:[#allocation2 + $0x18] sm:$0xff] %vm1181_vm6, %v1092_v51  ;;  %v1971_v39 = vsub.f32 %v4454_v45, %v5714_v63  ;;  %v901_v60 = vpop.permute.xlu2 %900 }
 0x19e   : > { %1395 = vst.msk [vmem:[#allocation2 + $0xa0] sm:$0xff] %vm1374_vm7, %v1319_v52 }
 0x19f   : > { %1588 = vst.msk [vmem:[#allocation2 + $0xa0] sm:$0xff] %vm1567_vm8, %v1512_v18  ;;  %v1972_v57 = vand.u32 4294901760, %v1971_v39  ;;  %v4540_v39 = vld [vmem:[%s3662_s17 + $0x159] sm:$0xff] }
 0x1a1   : > { %1973 = vmatmul.f32.gmra.mxu0 %v1972_v57 }
 0x1a2   : > { %1133 = vrot.lane.b32.xlu1 %v4470_v59, %s3625_s23  ;;  %713 = vrot.lane.b32.xlu0 %v4213_v29, %s3622_s20 }
 0x1a3   : > { %906 = vrot.lane.b32.xlu2 %v4342_v40, %s3623_s21 }
 0x1a4   : > { %v1705_v61 = vpop.permute.xlu1 %1704  ;;  %v1285_v0 = vpop.permute.xlu0 %1284 }
 0x1a5   : > { %1781 = vst.msk [vmem:[#allocation2 + $0xa0] sm:$0xff] %vm1760_vm9, %v1705_v61  ;;  %v1514_v10 = vpop.permute.xlu2 %1513 }
 0x1a6   : > { %1378 = vst.msk [vmem:[#allocation2 + $0x18] sm:$0xff] %vm1374_vm7, %v1285_v0  ;;  %v4552_v0 = vld [vmem:[%s3662_s17 + $0x91] sm:$0xff] }
 0x1a7   : > { %1571 = vst.msk [vmem:[#allocation2 + $0x18] sm:$0xff] %vm1567_vm8, %v1478_v31 }
 0x1aa   : > { %1099 = vrot.lane.b32.xlu1 %v4482_v5, %s3625_s23  ;;  %1326 = vrot.lane.b32.xlu0 %v4225_v48, %s3624_s22 }
 0x1ab   : > { %1519 = vrot.lane.b32.xlu2 %v4357_v49, %s3626_s24 }
 0x1ac   : > { %v742_v29 = vpop.permute.xlu1 %741  ;;  %v1671_v6 = vpop.permute.xlu0 %1670  ;;  %v1813_v46 = vld [vmem:[#allocation2 + $0xa0] sm:$0xff] }
 0x1ad   : > { %817 = vst.msk [vmem:[#allocation2 + $0xa8] sm:$0xff] %vm795_vm4, %v742_v29  ;;  %v1892_v8 = vsel %vm1830_vm10, %v1813_v46, 0  ;;  %v1480_v18 = vpop.permute.xlu2 %1479 }
 0x1ae   : > { %1764 = vst.msk [vmem:[#allocation2 + $0x18] sm:$0xff] %vm1760_vm9, %v1671_v6  ;;  %v4493_v12 = vand.u32 4294901760, %v1892_v8 }
 0x1af   : > { %1010 = vst.msk [vmem:[#allocation2 + $0xa8] sm:$0xff] %vm988_vm5, %v935_v44 }
 0x1b0   : > { %2331 = vmatmul.f32.gmra.mxu3 %v4493_v12  ;;  %v4501_v48 = vsub.f32 %v1892_v8, %v4493_v12 }
 0x1b2   : > { %1712 = vrot.lane.b32.xlu1 %v4497_v15, %s3627_s25  ;;  %1292 = vrot.lane.b32.xlu0 %v4240_v55, %s3624_s22  ;;  %v5702_v53 = vand.u32 4294901760, %v4501_v48 }
 0x1b3   : > { %1485 = vrot.lane.b32.xlu2 %v4380_v4, %s3626_s24 }
 0x1b4   : > { %v1128_v20 = vpop.permute.xlu1 %1127  ;;  %v708_v21 = vpop.permute.xlu0 %707  ;;  %v2115_v23 = vsub.f32 %v4501_v48, %v5702_v53 }
 0x1b5   : > { %1203 = vst.msk [vmem:[#allocation2 + $0xa8] sm:$0xff] %vm1181_vm6, %v1128_v20  ;;  %v1796_v31 = vld [vmem:[#allocation2 + $0x18] sm:$0xff]  ;;  %v937_v38 = vpop.permute.xlu2 %936 }
 0x1b6   : > { %800 = vst.msk [vmem:[#allocation2 + $0x20] sm:$0xff] %vm795_vm4, %v708_v21  ;;  %v2116_v26 = vand.u32 4294901760, %v2115_v23  ;;  %v1841_v35 = vsel %vm1830_vm10, %v1796_v31, 0 }
 0x1b7   : > { %993 = vst.msk [vmem:[#allocation2 + $0x20] sm:$0xff] %vm988_vm5, %v901_v60  ;;  %v4517_v55 = vand.u32 4294901760, %v1841_v35 }
 0x1b8   : > { %2117 = vmatmul.f32.gmra.mxu2 %v2116_v26 }
 0x1b9   : > { %2263 = vmatmul.f32.gmra.mxu1 %v4517_v55  ;;  %v4524_v41 = vsub.f32 %v1841_v35, %v4517_v55 }
 0x1ba   : > { %749 = vrot.lane.b32.xlu1 %v4260_v62, %s3622_s20  ;;  %1678 = vrot.lane.b32.xlu0 %v4520_v37, %s3627_s25 }
 0x1bb   : > { %v5713_v32 = vand.u32 4294901760, %v4524_v41  ;;  %942 = vrot.lane.b32.xlu2 %v4400_v7, %s3623_s21 }
 0x1bc   : > { %v1094_v44 = vpop.permute.xlu1 %1093  ;;  %v1321_v51 = vpop.permute.xlu0 %1320 }
 0x1bd   : > { %1186 = vst.msk [vmem:[#allocation2 + $0x20] sm:$0xff] %vm1181_vm6, %v1094_v44  ;;  %v1979_v52 = vsub.f32 %v4524_v41, %v5713_v32  ;;  %v903_v57 = vpop.permute.xlu2 %902 }
 0x1be   : > { %1396 = vst.msk [vmem:[#allocation2 + $0xa8] sm:$0xff] %vm1374_vm7, %v1321_v51  ;;  %v4590_v51 = vld [vmem:[%s3662_s17 + $0x92] sm:$0xff] }
 0x1bf   : > { %1589 = vst.msk [vmem:[#allocation2 + $0xa8] sm:$0xff] %vm1567_vm8, %v1514_v10  ;;  %v1980_v62 = vand.u32 4294901760, %v1979_v52  ;;  %v3448_v52 = vld [vmem:[%s3662_s17 + $0x168] sm:$0xff] }
 0x1c1   : > { %1981 = vmatmul.f32.gmra.mxu0 %v1980_v62 }
 0x1c2   : > { %1135 = vrot.lane.b32.xlu1 %v4540_v39, %s3625_s23  ;;  %715 = vrot.lane.b32.xlu0 %v4272_v3, %s3622_s20 }
 0x1c3   : > { %908 = vrot.lane.b32.xlu2 %v4412_v17, %s3623_s21 }
 0x1c4   : > { %v1707_v60 = vpop.permute.xlu1 %1706  ;;  %v1287_v61 = vpop.permute.xlu0 %1286 }
 0x1c5   : > { %1782 = vst.msk [vmem:[#allocation2 + $0xa8] sm:$0xff] %vm1760_vm9, %v1707_v60  ;;  %v1516_v10 = vpop.permute.xlu2 %1515 }
 0x1c6   : > { %1379 = vst.msk [vmem:[#allocation2 + $0x20] sm:$0xff] %vm1374_vm7, %v1287_v61 }
 0x1c7   : > { %1572 = vst.msk [vmem:[#allocation2 + $0x20] sm:$0xff] %vm1567_vm8, %v1480_v18  ;;  %v4567_v18 = vld [vmem:[%s3662_s17 + $0x15a] sm:$0xff] }
 0x1ca   : > { %1101 = vrot.lane.b32.xlu1 %v4552_v0, %s3625_s23  ;;  %1328 = vrot.lane.b32.xlu0 %v4287_v11, %s3624_s22 }
 0x1cb   : > { %1521 = vrot.lane.b32.xlu2 %v4427_v30, %s3626_s24 }
 0x1cc   : > { %v744_v3 = vpop.permute.xlu1 %743  ;;  %v1814_v29 = vld [vmem:[#allocation2 + $0xa8] sm:$0xff]  ;;  %v1673_v6 = vpop.permute.xlu0 %1672 }
 0x1cd   : > { %818 = vst.msk [vmem:[#allocation2 + $0xb0] sm:$0xff] %vm795_vm4, %v744_v3  ;;  %v1895_v46 = vsel %vm1830_vm10, %v1814_v29, 0  ;;  %v1482_v20 = vpop.permute.xlu2 %1481 }
 0x1ce   : > { %1765 = vst.msk [vmem:[#allocation2 + $0x20] sm:$0xff] %vm1760_vm9, %v1673_v6  ;;  %v4563_v8 = vand.u32 4294901760, %v1895_v46 }
 0x1cf   : > { %1011 = vst.msk [vmem:[#allocation2 + $0xb0] sm:$0xff] %vm988_vm5, %v937_v38 }
 0x1d0   : > { %2335 = vmatmul.f32.gmra.mxu3 %v4563_v8  ;;  %v4571_v11 = vsub.f32 %v1895_v46, %v4563_v8 }
 0x1d2   : > { %1714 = vrot.lane.b32.xlu1 %v4567_v18, %s3627_s25  ;;  %1294 = vrot.lane.b32.xlu0 %v4310_v24, %s3624_s22  ;;  %v5701_v21 = vand.u32 4294901760, %v4571_v11 }
 0x1d3   : > { %1487 = vrot.lane.b32.xlu2 %v4450_v43, %s3626_s24 }
 0x1d4   : > { %v1130_v23 = vpop.permute.xlu1 %1129  ;;  %v2123_v31 = vsub.f32 %v4571_v11, %v5701_v21  ;;  %v710_v26 = vpop.permute.xlu0 %709 }
 0x1d5   : > { %1204 = vst.msk [vmem:[#allocation2 + $0xb0] sm:$0xff] %vm1181_vm6, %v1130_v23  ;;  %v1797_v35 = vld [vmem:[#allocation2 + $0x20] sm:$0xff]  ;;  %v939_v62 = vpop.permute.xlu2 %938  ;;  %v4614_v23 = vld [vmem:[%s3662_s17 + $0x169] sm:$0xff] }
 0x1d6   : > { %801 = vst.msk [vmem:[#allocation2 + $0x28] sm:$0xff] %vm795_vm4, %v710_v26  ;;  %v2124_v38 = vand.u32 4294901760, %v2123_v31  ;;  %v1844_v44 = vsel %vm1830_vm10, %v1797_v35, 0 }
 0x1d7   : > { %994 = vst.msk [vmem:[#allocation2 + $0x28] sm:$0xff] %vm988_vm5, %v903_v57  ;;  %v4587_v24 = vand.u32 4294901760, %v1844_v44 }
 0x1d8   : > { %2125 = vmatmul.f32.gmra.mxu2 %v2124_v38 }
 0x1d9   : > { %2267 = vmatmul.f32.gmra.mxu1 %v4587_v24  ;;  %v4595_v60 = vsub.f32 %v1844_v44, %v4587_v24 }
 0x1da   : > { %1680 = vrot.lane.b32.xlu1 %v4590_v51, %s3627_s25  ;;  %558 = vrot.lane.b32.xlu0 %v3448_v52, %s3621_s19 }
 0x1db   : > { %v5711_v57 = vand.u32 4294901760, %v4595_v60  ;;  %751 = vrot.lane.b32.xlu2 %v4330_v34, %s3622_s20 }
 0x1dc   : > { %v1096_v61 = vpop.permute.xlu1 %1095  ;;  %v1323_v3 = vpop.permute.xlu0 %1322 }
 0x1dd   : > { %1187 = vst.msk [vmem:[#allocation2 + $0x28] sm:$0xff] %vm1181_vm6, %v1096_v61  ;;  %v1987_v29 = vsub.f32 %v4595_v60, %v5711_v57  ;;  %v905_v46 = vpop.permute.xlu2 %904 }
 0x1de   : > { %1397 = vst.msk [vmem:[#allocation2 + $0xb0] sm:$0xff] %vm1374_vm7, %v1323_v3  ;;  %v4646_v3 = vld [vmem:[%s3662_s17 + $0x16a] sm:$0xff] }
 0x1df   : > { %1590 = vst.msk [vmem:[#allocation2 + $0xb0] sm:$0xff] %vm1567_vm8, %v1516_v10  ;;  %v1988_v6 = vand.u32 4294901760, %v1987_v29 }
 0x1e1   : > { %1989 = vmatmul.f32.gmra.mxu0 %v1988_v6 }
 0x1e2   : > { %717 = vrot.lane.b32.xlu1 %v4342_v40, %s3622_s20  ;;  %944 = vrot.lane.b32.xlu0 %v4470_v59, %s3623_s21  ;;  %v4626_v40 = vld [vmem:[%s3662_s17 + $0x99] sm:$0xff] }
 0x1e3   : > { %1137 = vrot.lane.b32.xlu2 %v4614_v23, %s3625_s23 }
 0x1e4   : > { %v1709_v31 = vpop.permute.xlu1 %1708  ;;  %v1289_v34 = vpop.permute.xlu0 %1288 }
 0x1e5   : > { %1783 = vst.msk [vmem:[#allocation2 + $0xb0] sm:$0xff] %vm1760_vm9, %v1709_v31  ;;  %v1518_v10 = vpop.permute.xlu2 %1517 }
 0x1e6   : > { %1380 = vst.msk [vmem:[#allocation2 + $0x28] sm:$0xff] %vm1374_vm7, %v1289_v34 }
 0x1e7   : > { %1573 = vst.msk [vmem:[#allocation2 + $0x28] sm:$0xff] %vm1567_vm8, %v1482_v20 }
 0x1ea   : > { %1330 = vrot.lane.b32.xlu1 %v4357_v49, %s3624_s22  ;;  %910 = vrot.lane.b32.xlu0 %v4482_v5, %s3623_s21 }
 0x1eb   : > { %1103 = vrot.lane.b32.xlu2 %v4626_v40, %s3625_s23 }
 0x1ec   : > { %v746_v26 = vpop.permute.xlu1 %745  ;;  %v1815_v35 = vld [vmem:[#allocation2 + $0xb0] sm:$0xff]  ;;  %v1675_v38 = vpop.permute.xlu0 %1674 }
 0x1ed   : > { %819 = vst.msk [vmem:[#allocation2 + $0xb8] sm:$0xff] %vm795_vm4, %v746_v26  ;;  %v1898_v44 = vsel %vm1830_vm10, %v1815_v35, 0  ;;  %v1484_v49 = vpop.permute.xlu2 %1483  ;;  %v3449_v35 = vld [vmem:[%s3662_s17 + $0x170] sm:$0xff] }
 0x1ee   : > { %1766 = vst.msk [vmem:[#allocation2 + $0x28] sm:$0xff] %vm1760_vm9, %v1675_v38  ;;  %v4633_v20 = vand.u32 4294901760, %v1898_v44 }
 0x1ef   : > { %1012 = vst.msk [vmem:[#allocation2 + $0xb8] sm:$0xff] %vm988_vm5, %v939_v62 }
 0x1f0   : > { %2339 = vmatmul.f32.gmra.mxu3 %v4633_v20  ;;  %v4638_v52 = vsub.f32 %v1898_v44, %v4633_v20 }
 0x1f2   : > { %1296 = vrot.lane.b32.xlu1 %v4380_v4, %s3624_s22  ;;  %1523 = vrot.lane.b32.xlu0 %v4497_v15, %s3626_s24  ;;  %v5700_v61 = vand.u32 4294901760, %v4638_v52 }
 0x1f3   : > { %1716 = vrot.lane.b32.xlu2 %v4646_v3, %s3627_s25 }
 0x1f4   : > { %v1132_v29 = vpop.permute.xlu1 %1131  ;;  %v2131_v62 = vsub.f32 %v4638_v52, %v5700_v61  ;;  %v712_v6 = vpop.permute.xlu0 %711 }
 0x1f5   : > { %1205 = vst.msk [vmem:[#allocation2 + $0xb8] sm:$0xff] %vm1181_vm6, %v1132_v29  ;;  %v1798_v31 = vld [vmem:[#allocation2 + $0x28] sm:$0xff]  ;;  %v941_v38 = vpop.permute.xlu2 %940  ;;  %v4668_v29 = vld [vmem:[%s3662_s17 + $0x9a] sm:$0xff] }
 0x1f6   : > { %802 = vst.msk [vmem:[#allocation2 + $0x30] sm:$0xff] %vm795_vm4, %v712_v6  ;;  %v2132_v4 = vand.u32 4294901760, %v2131_v62  ;;  %v1847_v34 = vsel %vm1830_vm10, %v1798_v31, 0 }
 0x1f7   : > { %995 = vst.msk [vmem:[#allocation2 + $0x30] sm:$0xff] %vm988_vm5, %v905_v46  ;;  %v4657_v26 = vand.u32 4294901760, %v1847_v34 }
 0x1f8   : > { %2133 = vmatmul.f32.gmra.mxu2 %v2132_v4 }
 0x1f9   : > { %2271 = vmatmul.f32.gmra.mxu1 %v4657_v26  ;;  %v4662_v44 = vsub.f32 %v1847_v34, %v4657_v26 }
 0x1fa   : > { %560 = vrot.lane.b32.xlu1 %v3449_v35, %s3621_s19  ;;  %1489 = vrot.lane.b32.xlu0 %v4520_v37, %s3626_s24 }
 0x1fb   : > { %v5709_v62 = vand.u32 4294901760, %v4662_v44  ;;  %1682 = vrot.lane.b32.xlu2 %v4668_v29, %s3627_s25 }
 0x1fc   : > { %v1098_v46 = vpop.permute.xlu1 %1097  ;;  %v1325_v6 = vpop.permute.xlu0 %1324 }
 0x1fd   : > { %1188 = vst.msk [vmem:[#allocation2 + $0x30] sm:$0xff] %vm1181_vm6, %v1098_v46  ;;  %v1995_v31 = vsub.f32 %v4662_v44, %v5709_v62  ;;  %v907_v34 = vpop.permute.xlu2 %906  ;;  %v4797_v62 = vld [vmem:[%s3662_s17 + $0x182] sm:$0xff] }
 0x1fe   : > { %1398 = vst.msk [vmem:[#allocation2 + $0xb8] sm:$0xff] %vm1374_vm7, %v1325_v6 }
 0x1ff   : > { %1591 = vst.msk [vmem:[#allocation2 + $0xb8] sm:$0xff] %vm1567_vm8, %v1518_v10  ;;  %v1996_v4 = vand.u32 4294901760, %v1995_v31  ;;  %v4689_v10 = vld [vmem:[%s3662_s17 + $0x171] sm:$0xff] }
 0x201   : > { %1997 = vmatmul.f32.gmra.mxu0 %v1996_v4 }
 0x202   : > { %946 = vrot.lane.b32.xlu1 %v4540_v39, %s3623_s21  ;;  %753 = vrot.lane.b32.xlu0 %v4400_v7, %s3622_s20 }
 0x203   : > { %719 = vrot.lane.b32.xlu2 %v4412_v17, %s3622_s20 }
 0x204   : > { %v1711_v35 = vpop.permute.xlu1 %1710  ;;  %v1291_v46 = vpop.permute.xlu0 %1290 }
 0x205   : > { %1784 = vst.msk [vmem:[#allocation2 + $0xb8] sm:$0xff] %vm1760_vm9, %v1711_v35  ;;  %v1520_v6 = vpop.permute.xlu2 %1519  ;;  %v4704_v35 = vld [vmem:[%s3662_s17 + $0xa9] sm:$0xff] }
 0x206   : > { %1381 = vst.msk [vmem:[#allocation2 + $0x30] sm:$0xff] %vm1374_vm7, %v1291_v46 }
 0x207   : > { %1574 = vst.msk [vmem:[#allocation2 + $0x30] sm:$0xff] %vm1567_vm8, %v1484_v49 }
 0x20a   : > { %912 = vrot.lane.b32.xlu1 %v4552_v0, %s3623_s21  ;;  %1139 = vrot.lane.b32.xlu0 %v4689_v10, %s3625_s23 }
 0x20b   : > { %1332 = vrot.lane.b32.xlu2 %v4427_v30, %s3624_s22 }
 0x20c   : > { %v748_v7 = vpop.permute.xlu1 %747  ;;  %v1816_v31 = vld [vmem:[#allocation2 + $0xb8] sm:$0xff]  ;;  %v1677_v4 = vpop.permute.xlu0 %1676 }
 0x20d   : > { %820 = vst.msk [vmem:[#allocation2 + $0xc0] sm:$0xff] %vm795_vm4, %v748_v7  ;;  %v1901_v17 = vsel %vm1830_vm10, %v1816_v31, 0  ;;  %v1486_v46 = vpop.permute.xlu2 %1485 }
 0x20e   : > { %1767 = vst.msk [vmem:[#allocation2 + $0x30] sm:$0xff] %vm1760_vm9, %v1677_v4  ;;  %v4700_v49 = vand.u32 4294901760, %v1901_v17 }
 0x20f   : > { %1013 = vst.msk [vmem:[#allocation2 + $0xc0] sm:$0xff] %vm988_vm5, %v941_v38 }
 0x210   : > { %2343 = vmatmul.f32.gmra.mxu3 %v4700_v49  ;;  %v4708_v7 = vsub.f32 %v1901_v17, %v4700_v49 }
 0x212   : > { %1525 = vrot.lane.b32.xlu1 %v4567_v18, %s3626_s24  ;;  %1105 = vrot.lane.b32.xlu0 %v4704_v35, %s3625_s23  ;;  %v5704_v30 = vand.u32 4294901760, %v4708_v7 }
 0x213   : > { %1298 = vrot.lane.b32.xlu2 %v4450_v43, %s3624_s22  ;;  %v3450_v43 = vld [vmem:[%s3662_s17 + $0x180] sm:$0xff] }
 0x214   : > { %v1134_v31 = vpop.permute.xlu1 %1133  ;;  %v2139_v38 = vsub.f32 %v4708_v7, %v5704_v30  ;;  %v714_v4 = vpop.permute.xlu0 %713 }
 0x215   : > { %1206 = vst.msk [vmem:[#allocation2 + $0xc0] sm:$0xff] %vm1181_vm6, %v1134_v31  ;;  %v1799_v61 = vld [vmem:[#allocation2 + $0x30] sm:$0xff]  ;;  %v943_v30 = vpop.permute.xlu2 %942 }
 0x216   : > { %803 = vst.msk [vmem:[#allocation2 + $0x38] sm:$0xff] %vm795_vm4, %v714_v4  ;;  %v2140_v17 = vand.u32 4294901760, %v2139_v38  ;;  %v1850_v21 = vsel %vm1830_vm10, %v1799_v61, 0 }
 0x217   : > { %996 = vst.msk [vmem:[#allocation2 + $0x38] sm:$0xff] %vm988_vm5, %v907_v34  ;;  %v4724_v53 = vand.u32 4294901760, %v1850_v21 }
 0x218   : > { %2141 = vmatmul.f32.gmra.mxu2 %v2140_v17  ;;  %v4747_v17 = vld [vmem:[%s3662_s17 + $0xaa] sm:$0xff] }
 0x219   : > { %2275 = vmatmul.f32.gmra.mxu1 %v4724_v53  ;;  %v4731_v31 = vsub.f32 %v1850_v21, %v4724_v53 }
 0x21a   : > { %1491 = vrot.lane.b32.xlu1 %v4590_v51, %s3626_s24  ;;  %1718 = vrot.lane.b32.xlu0 %v4727_v33, %s3627_s25 }
 0x21b   : > { %v5708_v61 = vand.u32 4294901760, %v4731_v31  ;;  %562 = vrot.lane.b32.xlu2 %v3450_v43, %s3621_s19 }
 0x21c   : > { %v1100_v34 = vpop.permute.xlu1 %1099  ;;  %v1327_v38 = vpop.permute.xlu0 %1326 }
 0x21d   : > { %1189 = vst.msk [vmem:[#allocation2 + $0x38] sm:$0xff] %vm1181_vm6, %v1100_v34  ;;  %v2003_v4 = vsub.f32 %v4731_v31, %v5708_v61  ;;  %v909_v50 = vpop.permute.xlu2 %908 }
 0x21e   : > { %1399 = vst.msk [vmem:[#allocation2 + $0xc0] sm:$0xff] %vm1374_vm7, %v1327_v38 }
 0x21f   : > { %1592 = vst.msk [vmem:[#allocation2 + $0xc0] sm:$0xff] %vm1567_vm8, %v1520_v6  ;;  %v2004_v21 = vand.u32 4294901760, %v2003_v4  ;;  %v4759_v6 = vld [vmem:[%s3662_s17 + $0x181] sm:$0xff] }
 0x221   : > { %2005 = vmatmul.f32.gmra.mxu0 %v2004_v21 }
 0x222   : > { %755 = vrot.lane.b32.xlu1 %v4470_v59, %s3622_s20  ;;  %1684 = vrot.lane.b32.xlu0 %v4747_v17, %s3627_s25 }
 0x223   : > { %948 = vrot.lane.b32.xlu2 %v4614_v23, %s3623_s21 }
 0x224   : > { %v1713_v34 = vpop.permute.xlu1 %1712  ;;  %v1293_v13 = vpop.permute.xlu0 %1292 }
 0x225   : > { %1785 = vst.msk [vmem:[#allocation2 + $0xc0] sm:$0xff] %vm1760_vm9, %v1713_v34  ;;  %v1522_v43 = vpop.permute.xlu2 %1521 }
 0x226   : > { %1382 = vst.msk [vmem:[#allocation2 + $0x38] sm:$0xff] %vm1374_vm7, %v1293_v13 }
 0x227   : > { %1575 = vst.msk [vmem:[#allocation2 + $0x38] sm:$0xff] %vm1567_vm8, %v1486_v46  ;;  %v4774_v46 = vld [vmem:[%s3662_s17 + $0xb1] sm:$0xff] }
 0x22a   : > { %1141 = vrot.lane.b32.xlu1 %v4759_v6, %s3625_s23  ;;  %721 = vrot.lane.b32.xlu0 %v4482_v5, %s3622_s20 }
 0x22b   : > { %914 = vrot.lane.b32.xlu2 %v4626_v40, %s3623_s21 }
 0x22c   : > { %v750_v59 = vpop.permute.xlu1 %749  ;;  %v1817_v38 = vld [vmem:[#allocation2 + $0xc0] sm:$0xff]  ;;  %v1679_v4 = vpop.permute.xlu0 %1678 }
 0x22d   : > { %821 = vst.msk [vmem:[#allocation2 + $0xc8] sm:$0xff] %vm795_vm4, %v750_v59  ;;  %v1904_v21 = vsel %vm1830_vm10, %v1817_v38, 0  ;;  %v1488_v34 = vpop.permute.xlu2 %1487 }
 0x22e   : > { %1768 = vst.msk [vmem:[#allocation2 + $0x38] sm:$0xff] %vm1760_vm9, %v1679_v4  ;;  %v4770_v13 = vand.u32 4294901760, %v1904_v21 }
 0x22f   : > { %1014 = vst.msk [vmem:[#allocation2 + $0xc8] sm:$0xff] %vm988_vm5, %v943_v30 }
 0x230   : > { %2347 = vmatmul.f32.gmra.mxu3 %v4770_v13  ;;  %v4778_v5 = vsub.f32 %v1904_v21, %v4770_v13 }
 0x232   : > { %1107 = vrot.lane.b32.xlu1 %v4774_v46, %s3625_s23  ;;  %1334 = vrot.lane.b32.xlu0 %v4497_v15, %s3624_s22  ;;  %v5710_v59 = vand.u32 4294901760, %v4778_v5 }
 0x233   : > { %1527 = vrot.lane.b32.xlu2 %v4646_v3, %s3626_s24 }
 0x234   : > { %v1136_v38 = vpop.permute.xlu1 %1135  ;;  %v2147_v30 = vsub.f32 %v4778_v5, %v5710_v59  ;;  %v716_v4 = vpop.permute.xlu0 %715 }
 0x235   : > { %1207 = vst.msk [vmem:[#allocation2 + $0xc8] sm:$0xff] %vm1181_vm6, %v1136_v38  ;;  %v1800_v58 = vld [vmem:[#allocation2 + $0x38] sm:$0xff]  ;;  %v752_v59 = vpop.permute.xlu2 %751 }
 0x236   : > { %804 = vst.msk [vmem:[#allocation2 + $0x40] sm:$0xff] %vm795_vm4, %v716_v4  ;;  %v2148_v21 = vand.u32 4294901760, %v2147_v30  ;;  %v1853_v61 = vsel %vm1830_vm10, %v1800_v58, 0 }
 0x237   : > { %997 = vst.msk [vmem:[#allocation2 + $0x40] sm:$0xff] %vm988_vm5, %v909_v50  ;;  %v4794_v15 = vand.u32 4294901760, %v1853_v61 }
 0x238   : > { %2149 = vmatmul.f32.gmra.mxu2 %v2148_v21  ;;  %v3451_v21 = vld [vmem:[%s3662_s17 + $0x188] sm:$0xff] }
 0x239   : > { %2279 = vmatmul.f32.gmra.mxu1 %v4794_v15  ;;  %v4801_v38 = vsub.f32 %v1853_v61, %v4794_v15 }
 0x23a   : > { %1720 = vrot.lane.b32.xlu1 %v4797_v62, %s3627_s25  ;;  %1300 = vrot.lane.b32.xlu0 %v4520_v37, %s3624_s22  ;;  %v4817_v37 = vld [vmem:[%s3662_s17 + $0xb2] sm:$0xff] }
 0x23b   : > { %v5712_v58 = vand.u32 4294901760, %v4801_v38  ;;  %1493 = vrot.lane.b32.xlu2 %v4668_v29, %s3626_s24 }
 0x23c   : > { %v1102_v50 = vpop.permute.xlu1 %1101  ;;  %v1329_v30 = vpop.permute.xlu0 %1328 }
 0x23d   : > { %1190 = vst.msk [vmem:[#allocation2 + $0x40] sm:$0xff] %vm1181_vm6, %v1102_v50  ;;  %v2011_v4 = vsub.f32 %v4801_v38, %v5712_v58  ;;  %v1138_v57 = vpop.permute.xlu2 %1137 }
 0x23e   : > { %1400 = vst.msk [vmem:[#allocation2 + $0xc8] sm:$0xff] %vm1374_vm7, %v1329_v30  ;;  %v4833_v30 = vld [vmem:[%s3662_s17 + $0x189] sm:$0xff] }
 0x23f   : > { %1593 = vst.msk [vmem:[#allocation2 + $0xc8] sm:$0xff] %vm1567_vm8, %v1522_v43  ;;  %v2012_v61 = vand.u32 4294901760, %v2011_v4 }
 0x241   : > { %2013 = vmatmul.f32.gmra.mxu0 %v2012_v61 }
 0x242   : > { %1686 = vrot.lane.b32.xlu1 %v4817_v37, %s3627_s25  ;;  %564 = vrot.lane.b32.xlu0 %v3451_v21, %s3621_s19 }
 0x243   : > { %757 = vrot.lane.b32.xlu2 %v4540_v39, %s3622_s20 }
 0x244   : > { %v1715_v50 = vpop.permute.xlu1 %1714  ;;  %v1295_v58 = vpop.permute.xlu0 %1294 }
 0x245   : > { %1786 = vst.msk [vmem:[#allocation2 + $0xc8] sm:$0xff] %vm1760_vm9, %v1715_v50  ;;  %v1104_v43 = vpop.permute.xlu2 %1103 }
 0x246   : > { %1383 = vst.msk [vmem:[#allocation2 + $0x40] sm:$0xff] %vm1374_vm7, %v1295_v58 }
 0x247   : > { %1576 = vst.msk [vmem:[#allocation2 + $0x40] sm:$0xff] %vm1567_vm8, %v1488_v34 }
 0x24a   : > { %723 = vrot.lane.b32.xlu1 %v4552_v0, %s3622_s20  ;;  %950 = vrot.lane.b32.xlu0 %v4689_v10, %s3623_s21 }
 0x24b   : > { %1143 = vrot.lane.b32.xlu2 %v4833_v30, %s3625_s23 }
 0x24c   : > { %v1681_v4 = vpop.permute.xlu1 %1680  ;;  %v1818_v61 = vld [vmem:[#allocation2 + $0xc8] sm:$0xff]  ;;  %v559_v21 = vpop.permute.xlu0 %558 }
 0x24d   : > { %1769 = vst.msk [vmem:[#allocation2 + $0x40] sm:$0xff] %vm1760_vm9, %v1681_v4  ;;  %v1907_v39 = vsel %vm1830_vm10, %v1818_v61, 0  ;;  %v1717_v0 = vpop.permute.xlu2 %1716  ;;  %v4853_v4 = vld [vmem:[%s3662_s17 + $0xc1] sm:$0xff] }
 0x24e   : > { %629 = vst.msk [vmem:[#allocation2 + $0xd0] sm:$0xff] %vm602_vm2, %v559_v21  ;;  %v4840_v34 = vand.u32 4294901760, %v1907_v39 }
 0x24f   : > { %822 = vst.msk [vmem:[#allocation2 + $0xd0] sm:$0xff] %vm795_vm4, %v752_v59 }
 0x250   : > { %2351 = vmatmul.f32.gmra.mxu3 %v4840_v34  ;;  %v4845_v58 = vsub.f32 %v1907_v39, %v4840_v34 }
 0x252   : > { %1336 = vrot.lane.b32.xlu1 %v4567_v18, %s3624_s22  ;;  %916 = vrot.lane.b32.xlu0 %v4704_v35, %s3623_s21  ;;  %v5716_v50 = vand.u32 4294901760, %v4845_v58 }
 0x253   : > { %1109 = vrot.lane.b32.xlu2 %v4853_v4, %s3625_s23 }
 0x254   : > { %v718_v61 = vpop.permute.xlu1 %717  ;;  %v2155_v59 = vsub.f32 %v4845_v58, %v5716_v50  ;;  %v1801_v21 = vld [vmem:[#allocation2 + $0x40] sm:$0xff]  ;;  %v945_v39 = vpop.permute.xlu0 %944 }
 0x255   : > { %805 = vst.msk [vmem:[#allocation2 + $0x48] sm:$0xff] %vm795_vm4, %v718_v61  ;;  %v1856_v32 = vsel %vm1830_vm10, %v1801_v21, 0  ;;  %v1683_v2 = vpop.permute.xlu2 %1682  ;;  %v4876_v21 = vld [vmem:[%s3662_s17 + $0x18a] sm:$0xff] }
 0x256   : > { %1015 = vst.msk [vmem:[#allocation2 + $0xd0] sm:$0xff] %vm988_vm5, %v945_v39  ;;  %v2156_v18 = vand.u32 4294901760, %v2155_v59  ;;  %v4863_v63 = vand.u32 4294901760, %v1856_v32 }
 0x257   : > { %1208 = vst.msk [vmem:[#allocation2 + $0xd0] sm:$0xff] %vm1181_vm6, %v1138_v57 }
 0x258   : > { %2157 = vmatmul.f32.gmra.mxu2 %v2156_v18  ;;  %2283 = vmatmul.f32.gmra.mxu1 %v4863_v63  ;;  %v4868_v61 = vsub.f32 %v1856_v32, %v4863_v63  ;;  %v3452_v18 = vld [vmem:[%s3662_s17 + $0x198] sm:$0xff] }
 0x25a   : > { %1302 = vrot.lane.b32.xlu1 %v4590_v51, %s3624_s22  ;;  %1529 = vrot.lane.b32.xlu0 %v4727_v33, %s3626_s24  ;;  %v5717_v59 = vand.u32 4294901760, %v4868_v61 }
 0x25b   : > { %1722 = vrot.lane.b32.xlu2 %v4876_v21, %s3627_s25 }
 0x25c   : > { %v1331_v57 = vpop.permute.xlu1 %1330  ;;  %v2019_v39 = vsub.f32 %v4868_v61, %v5717_v59  ;;  %v911_v32 = vpop.permute.xlu0 %910 }
 0x25d   : > { %1401 = vst.msk [vmem:[#allocation2 + $0xd0] sm:$0xff] %vm1374_vm7, %v1331_v57  ;;  %v720_v50 = vpop.permute.xlu2 %719  ;;  %v4892_v57 = vld [vmem:[%s3662_s17 + $0xc2] sm:$0xff] }
 0x25e   : > { %998 = vst.msk [vmem:[#allocation2 + $0x48] sm:$0xff] %vm988_vm5, %v911_v32  ;;  %v2020_v51 = vand.u32 4294901760, %v2019_v39 }
 0x25f   : > { %1191 = vst.msk [vmem:[#allocation2 + $0x48] sm:$0xff] %vm1181_vm6, %v1104_v43 }
 0x260   : > { %2021 = vmatmul.f32.gmra.mxu0 %v2020_v51  ;;  %806 = vst.msk [vmem:[#allocation2 + $0x50] sm:$0xff] %vm795_vm4, %v720_v50 }
 0x262   : > { %566 = vrot.lane.b32.xlu1 %v3452_v18, %s3621_s19  ;;  %1495 = vrot.lane.b32.xlu0 %v4747_v17, %s3626_s24 }
 0x263   : > { %1688 = vrot.lane.b32.xlu2 %v4892_v57, %s3627_s25 }
 0x264   : > { %v1297_v59 = vpop.permute.xlu1 %1296  ;;  %v1524_v32 = vpop.permute.xlu0 %1523 }
 0x265   : > { %1384 = vst.msk [vmem:[#allocation2 + $0x48] sm:$0xff] %vm1374_vm7, %v1297_v59  ;;  %v1333_v43 = vpop.permute.xlu2 %1332 }
 0x266   : > { %1594 = vst.msk [vmem:[#allocation2 + $0xd0] sm:$0xff] %vm1567_vm8, %v1524_v32 }
 0x267   : > { %1787 = vst.msk [vmem:[#allocation2 + $0xd0] sm:$0xff] %vm1760_vm9, %v1717_v0  ;;  %v3516_v0 = vld [vmem:[%s3662_s17 + $0x199] sm:$0xff] }
 0x26a   : > { %952 = vrot.lane.b32.xlu1 %v4759_v6, %s3623_s21  ;;  %759 = vrot.lane.b32.xlu0 %v4614_v23, %s3622_s20 }
 0x26b   : > { %725 = vrot.lane.b32.xlu2 %v4626_v40, %s3622_s20 }
 0x26c   : > { %v561_v50 = vpop.permute.xlu1 %560  ;;  %v1490_v39 = vpop.permute.xlu0 %1489 }
 0x26d   : > { %630 = vst.msk [vmem:[#allocation2 + $0xd8] sm:$0xff] %vm602_vm2, %v561_v50  ;;  %v1299_v18 = vpop.permute.xlu2 %1298 }
 0x26e   : > { %1577 = vst.msk [vmem:[#allocation2 + $0x48] sm:$0xff] %vm1567_vm8, %v1490_v39  ;;  %v1819_v59 = vld [vmem:[#allocation2 + $0xd0] sm:$0xff] }
 0x26f   : > { %1770 = vst.msk [vmem:[#allocation2 + $0x48] sm:$0xff] %vm1760_vm9, %v1683_v2  ;;  %v1910_v51 = vsel %vm1830_vm10, %v1819_v59, 0 }
 0x270   : > { %v4910_v6 = vand.u32 4294901760, %v1910_v51 }
 0x272   : > { %5748 = vst [vmem:[#allocation3_spill] sm:$0xff] %v4910_v6  ;;  %918 = vrot.lane.b32.xlu1 %v4774_v46, %s3623_s21  ;;  %1145 = vrot.lane.b32.xlu0 %v3516_v0, %s3625_s23  ;;  %v4916_v23 = vsub.f32 %v1910_v51, %v4910_v6 }
 0x273   : > { %2355 = vmatmul.f32.gmra.mxu3 %v4910_v6  ;;  %1338 = vrot.lane.b32.xlu2 %v4646_v3, %s3624_s22 }
 0x274   : > { %v947_v40 = vpop.permute.xlu1 %946  ;;  %v5723_v2 = vand.u32 4294901760, %v4916_v23  ;;  %v754_v32 = vpop.permute.xlu0 %753 }
 0x275   : > { %823 = vst.msk [vmem:[#allocation2 + $0xd8] sm:$0xff] %vm795_vm4, %v754_v32  ;;  %v563_v0 = vpop.permute.xlu2 %562 }
 0x276   : > { %v2163_v50 = vsub.f32 %v4916_v23, %v5723_v2  ;;  %v1802_v39 = vld [vmem:[#allocation2 + $0x48] sm:$0xff]  ;;  %1016 = vst.msk [vmem:[#allocation2 + $0xd8] sm:$0xff] %vm988_vm5, %v947_v40 }
 0x277   : > { %v1859_v59 = vsel %vm1830_vm10, %v1802_v39, 0  ;;  %631 = vst.msk [vmem:[#allocation2 + $0xe0] sm:$0xff] %vm602_vm2, %v563_v0  ;;  %v3580_v0 = vld [vmem:[%s3662_s17 + $0x19a] sm:$0xff] }
 0x278   : > { %v2164_v51 = vand.u32 4294901760, %v2163_v50  ;;  %v4931_v6 = vand.u32 4294901760, %v1859_v59 }
 0x27a   : > { %2165 = vmatmul.f32.gmra.mxu2 %v2164_v51  ;;  %1531 = vrot.lane.b32.xlu1 %v4797_v62, %s3626_s24  ;;  %v4937_v3 = vsub.f32 %v1859_v59, %v4931_v6  ;;  %v3453_v51 = vld [vmem:[%s3662_s17 + $0x1a0] sm:$0xff] }
 0x27b   : > { %1111 = vrot.lane.b32.xlu0 %v4929_v28, %s3625_s23  ;;  %2287 = vmatmul.f32.gmra.mxu1 %v4931_v6 }
 0x27c   : > { %v913_v40 = vpop.permute.xlu1 %912  ;;  %v5728_v32 = vand.u32 4294901760, %v4937_v3  ;;  %v1140_v50 = vpop.permute.xlu0 %1139  ;;  %1304 = vrot.lane.b32.xlu2 %v4668_v29, %s3624_s22 }
 0x27d   : > { %999 = vst.msk [vmem:[#allocation2 + $0x50] sm:$0xff] %vm988_vm5, %v913_v40  ;;  %v949_v39 = vpop.permute.xlu2 %948 }
 0x27e   : > { %1209 = vst.msk [vmem:[#allocation2 + $0xd8] sm:$0xff] %vm1181_vm6, %v1140_v50  ;;  %v2027_v62 = vsub.f32 %v4937_v3, %v5728_v32  ;;  %v4961_v50 = vld [vmem:[%s3662_s17 + $0xca] sm:$0xff] }
 0x27f   : > { %1402 = vst.msk [vmem:[#allocation2 + $0xd8] sm:$0xff] %vm1374_vm7, %v1333_v43 }
 0x280   : > { %v2028_v59 = vand.u32 4294901760, %v2027_v62 }
 0x282   : > { %2029 = vmatmul.f32.gmra.mxu0 %v2028_v59  ;;  %1497 = vrot.lane.b32.xlu1 %v4817_v37, %s3626_s24 }
 0x283   : > { %1724 = vrot.lane.b32.xlu0 %v3580_v0, %s3627_s25 }
 0x284   : > { %v1526_v29 = vpop.permute.xlu1 %1525  ;;  %v1106_v40 = vpop.permute.xlu0 %1105  ;;  %568 = vrot.lane.b32.xlu2 %v3453_v51, %s3621_s19 }
 0x285   : > { %1595 = vst.msk [vmem:[#allocation2 + $0xd8] sm:$0xff] %vm1567_vm8, %v1526_v29  ;;  %v915_v43 = vpop.permute.xlu2 %914 }
 0x286   : > { %1192 = vst.msk [vmem:[#allocation2 + $0x50] sm:$0xff] %vm1181_vm6, %v1106_v40 }
 0x287   : > { %1385 = vst.msk [vmem:[#allocation2 + $0x50] sm:$0xff] %vm1374_vm7, %v1299_v18  ;;  %v3517_v18 = vld [vmem:[%s3662_s17 + $0x1a1] sm:$0xff] }
 0x28a   : > { %761 = vrot.lane.b32.xlu1 %v4689_v10, %s3622_s20 }
 0x28b   : > { %1690 = vrot.lane.b32.xlu0 %v4961_v50, %s3627_s25 }
 0x28c   : > { %v1492_v62 = vpop.permute.xlu1 %1491  ;;  %v1719_v59 = vpop.permute.xlu0 %1718  ;;  %954 = vrot.lane.b32.xlu2 %v4833_v30, %s3623_s21 }
 0x28d   : > { %1578 = vst.msk [vmem:[#allocation2 + $0x50] sm:$0xff] %vm1567_vm8, %v1492_v62  ;;  %v1528_v0 = vpop.permute.xlu2 %1527  ;;  %v3500_v62 = vld [vmem:[%s3662_s17 + $0xd9] sm:$0xff] }
 0x28e   : > { %1788 = vst.msk [vmem:[#allocation2 + $0xd8] sm:$0xff] %vm1760_vm9, %v1719_v59 }
 0x292   : > { %1147 = vrot.lane.b32.xlu1 %v3517_v18, %s3625_s23 }
 0x293   : > { %727 = vrot.lane.b32.xlu0 %v4704_v35, %s3622_s20 }
 0x294   : > { %v756_v10 = vpop.permute.xlu1 %755  ;;  %v1685_v51 = vpop.permute.xlu0 %1684  ;;  %920 = vrot.lane.b32.xlu2 %v4853_v4, %s3623_s21 }
 0x295   : > { %824 = vst.msk [vmem:[#allocation2 + $0xe0] sm:$0xff] %vm795_vm4, %v756_v10  ;;  %v1820_v29 = vld [vmem:[#allocation2 + $0xd8] sm:$0xff]  ;;  %v1494_v59 = vpop.permute.xlu2 %1493 }
 0x296   : > { %1771 = vst.msk [vmem:[#allocation2 + $0x50] sm:$0xff] %vm1760_vm9, %v1685_v51  ;;  %v1913_v30 = vsel %vm1830_vm10, %v1820_v29, 0 }
 0x297   : > { %1017 = vst.msk [vmem:[#allocation2 + $0xe0] sm:$0xff] %vm988_vm5, %v949_v39  ;;  %v4981_v40 = vand.u32 4294901760, %v1913_v30 }
 0x299   : > { %5749 = vst [vmem:[#allocation4_spill] sm:$0xff] %v4981_v40  ;;  %2359 = vmatmul.f32.gmra.mxu3 %v4981_v40  ;;  %v4986_v35 = vsub.f32 %v1913_v30, %v4981_v40 }
 0x29a   : > { %1113 = vrot.lane.b32.xlu1 %v3500_v62, %s3625_s23  ;;  %v3581_v62 = vld [vmem:[%s3662_s17 + $0x1a2] sm:$0xff] }
 0x29b   : > { %1340 = vrot.lane.b32.xlu0 %v4727_v33, %s3624_s22  ;;  %v5721_v4 = vand.u32 4294901760, %v4986_v35 }
 0x29c   : > { %v1142_v18 = vpop.permute.xlu1 %1141  ;;  %v722_v39 = vpop.permute.xlu0 %721  ;;  %1533 = vrot.lane.b32.xlu2 %v4876_v21, %s3626_s24 }
 0x29d   : > { %1210 = vst.msk [vmem:[#allocation2 + $0xe0] sm:$0xff] %vm1181_vm6, %v1142_v18  ;;  %v2171_v10 = vsub.f32 %v4986_v35, %v5721_v4  ;;  %v1803_v51 = vld [vmem:[#allocation2 + $0x50] sm:$0xff]  ;;  %v758_v18 = vpop.permute.xlu2 %757 }
 0x29e   : > { %807 = vst.msk [vmem:[#allocation2 + $0x58] sm:$0xff] %vm795_vm4, %v722_v39  ;;  %v1862_v29 = vsel %vm1830_vm10, %v1803_v51, 0 }
 0x29f   : > { %1000 = vst.msk [vmem:[#allocation2 + $0x58] sm:$0xff] %vm988_vm5, %v915_v43  ;;  %v2172_v33 = vand.u32 4294901760, %v2171_v10  ;;  %v5001_v30 = vand.u32 4294901760, %v1862_v29 }
 0x2a1   : > { %2173 = vmatmul.f32.gmra.mxu2 %v2172_v33  ;;  %2291 = vmatmul.f32.gmra.mxu1 %v5001_v30  ;;  %v5006_v4 = vsub.f32 %v1862_v29, %v5001_v30  ;;  %v3564_v29 = vld [vmem:[%s3662_s17 + $0xda] sm:$0xff] }
 0x2a2   : > { %1726 = vrot.lane.b32.xlu1 %v3581_v62, %s3627_s25 }
 0x2a3   : > { %1306 = vrot.lane.b32.xlu0 %v4747_v17, %s3624_s22  ;;  %v5725_v21 = vand.u32 4294901760, %v5006_v4 }
 0x2a4   : > { %v1108_v43 = vpop.permute.xlu1 %1107  ;;  %v1335_v39 = vpop.permute.xlu0 %1334  ;;  %1499 = vrot.lane.b32.xlu2 %v4892_v57, %s3626_s24 }
 0x2a5   : > { %1193 = vst.msk [vmem:[#allocation2 + $0x58] sm:$0xff] %vm1181_vm6, %v1108_v43  ;;  %v2035_v10 = vsub.f32 %v5006_v4, %v5725_v21  ;;  %v1144_v17 = vpop.permute.xlu2 %1143 }
 0x2a6   : > { %1403 = vst.msk [vmem:[#allocation2 + $0xe0] sm:$0xff] %vm1374_vm7, %v1335_v39 }
 0x2a7   : > { %1596 = vst.msk [vmem:[#allocation2 + $0xe0] sm:$0xff] %vm1567_vm8, %v1528_v0  ;;  %v2036_v51 = vand.u32 4294901760, %v2035_v10  ;;  %v3501_v0 = vld [vmem:[%s3662_s17 + $0xe1] sm:$0xff] }
 0x2a9   : > { %2037 = vmatmul.f32.gmra.mxu0 %v2036_v51 }
 0x2aa   : > { %729 = vrot.lane.b32.xlu1 %v4774_v46, %s3622_s20 }
 0x2ab   : > { %1692 = vrot.lane.b32.xlu0 %v3564_v29, %s3627_s25 }
 0x2ac   : > { %v1721_v33 = vpop.permute.xlu1 %1720  ;;  %v1301_v62 = vpop.permute.xlu0 %1300  ;;  %922 = vrot.lane.b32.xlu2 %v4929_v28, %s3623_s21 }
 0x2ad   : > { %1789 = vst.msk [vmem:[#allocation2 + $0xe0] sm:$0xff] %vm1760_vm9, %v1721_v33  ;;  %v1110_v57 = vpop.permute.xlu2 %1109 }
 0x2ae   : > { %1386 = vst.msk [vmem:[#allocation2 + $0x58] sm:$0xff] %vm1374_vm7, %v1301_v62 }
 0x2af   : > { %1579 = vst.msk [vmem:[#allocation2 + $0x58] sm:$0xff] %vm1567_vm8, %v1494_v59 }
 0x2b2   : > { %1308 = vrot.lane.b32.xlu1 %v4817_v37, %s3624_s22  ;;  %v3565_v37 = vld [vmem:[%s3662_s17 + $0xe2] sm:$0xff] }
 0x2b3   : > { %1115 = vrot.lane.b32.xlu0 %v3501_v0, %s3625_s23 }
 0x2b4   : > { %v1687_v46 = vpop.permute.xlu1 %1686  ;;  %v1821_v43 = vld [vmem:[#allocation2 + $0xe0] sm:$0xff]  ;;  %v565_v39 = vpop.permute.xlu0 %564  ;;  %1501 = vrot.lane.b32.xlu2 %v4961_v50, %s3626_s24 }
 0x2b5   : > { %1772 = vst.msk [vmem:[#allocation2 + $0x58] sm:$0xff] %vm1760_vm9, %v1687_v46  ;;  %v1916_v10 = vsel %vm1830_vm10, %v1821_v43, 0  ;;  %v1723_v59 = vpop.permute.xlu2 %1722 }
 0x2b6   : > { %632 = vst.msk [vmem:[#allocation2 + $0xe8] sm:$0xff] %vm602_vm2, %v565_v39  ;;  %v5038_v28 = vand.u32 4294901760, %v1916_v10 }
 0x2b7   : > { %825 = vst.msk [vmem:[#allocation2 + $0xe8] sm:$0xff] %vm795_vm4, %v758_v18 }
 0x2b8   : > { %5750 = vst [vmem:[#allocation5_spill] sm:$0xff] %v5038_v28  ;;  %2363 = vmatmul.f32.gmra.mxu3 %v5038_v28  ;;  %v5044_v51 = vsub.f32 %v1916_v10, %v5038_v28 }
 0x2ba   : > { %v5722_v29 = vand.u32 4294901760, %v5044_v51 }
 0x2bb   : > { %1694 = vrot.lane.b32.xlu0 %v3565_v37, %s3627_s25 }
 0x2bc   : > { %v724_v33 = vpop.permute.xlu1 %723  ;;  %v2179_v50 = vsub.f32 %v5044_v51, %v5722_v29  ;;  %v1804_v62 = vld [vmem:[#allocation2 + $0x58] sm:$0xff]  ;;  %v951_v18 = vpop.permute.xlu0 %950 }
 0x2bd   : > { %808 = vst.msk [vmem:[#allocation2 + $0x60] sm:$0xff] %vm795_vm4, %v724_v33  ;;  %v1865_v0 = vsel %vm1830_vm10, %v1804_v62, 0  ;;  %v1689_v39 = vpop.permute.xlu2 %1688 }
 0x2be   : > { %1018 = vst.msk [vmem:[#allocation2 + $0xe8] sm:$0xff] %vm988_vm5, %v951_v18  ;;  %v2180_v46 = vand.u32 4294901760, %v2179_v50  ;;  %v5054_v43 = vand.u32 4294901760, %v1865_v0 }
 0x2bf   : > { %1211 = vst.msk [vmem:[#allocation2 + $0xe8] sm:$0xff] %vm1181_vm6, %v1144_v17 }
 0x2c0   : > { %2181 = vmatmul.f32.gmra.mxu2 %v2180_v46  ;;  %2295 = vmatmul.f32.gmra.mxu1 %v5054_v43  ;;  %v5059_v10 = vsub.f32 %v1865_v0, %v5054_v43 }
 0x2c2   : > { %v5724_v37 = vand.u32 4294901760, %v5059_v10 }
 0x2c4   : > { %v1337_v33 = vpop.permute.xlu1 %1336  ;;  %v2043_v62 = vsub.f32 %v5059_v10, %v5724_v37  ;;  %v917_v50 = vpop.permute.xlu0 %916 }
 0x2c5   : > { %1404 = vst.msk [vmem:[#allocation2 + $0xe8] sm:$0xff] %vm1374_vm7, %v1337_v33  ;;  %v726_v18 = vpop.permute.xlu2 %725 }
 0x2c6   : > { %1001 = vst.msk [vmem:[#allocation2 + $0x60] sm:$0xff] %vm988_vm5, %v917_v50  ;;  %v2044_v17 = vand.u32 4294901760, %v2043_v62 }
 0x2c7   : > { %1194 = vst.msk [vmem:[#allocation2 + $0x60] sm:$0xff] %vm1181_vm6, %v1110_v57 }
 0x2c8   : > { %2045 = vmatmul.f32.gmra.mxu0 %v2044_v17  ;;  %809 = vst.msk [vmem:[#allocation2 + $0x68] sm:$0xff] %vm795_vm4, %v726_v18 }
 0x2cc   : > { %v1303_v0 = vpop.permute.xlu1 %1302  ;;  %v1530_v46 = vpop.permute.xlu0 %1529 }
 0x2cd   : > { %1387 = vst.msk [vmem:[#allocation2 + $0x60] sm:$0xff] %vm1374_vm7, %v1303_v0  ;;  %v1339_v29 = vpop.permute.xlu2 %1338 }
 0x2ce   : > { %1597 = vst.msk [vmem:[#allocation2 + $0xe8] sm:$0xff] %vm1567_vm8, %v1530_v46 }
 0x2cf   : > { %1790 = vst.msk [vmem:[#allocation2 + $0xe8] sm:$0xff] %vm1760_vm9, %v1723_v59 }
 0x2d4   : > { %v567_v33 = vpop.permute.xlu1 %566  ;;  %v1496_v50 = vpop.permute.xlu0 %1495 }
 0x2d5   : > { %633 = vst.msk [vmem:[#allocation2 + $0xf0] sm:$0xff] %vm602_vm2, %v567_v33 }
 0x2d6   : > { %1580 = vst.msk [vmem:[#allocation2 + $0x60] sm:$0xff] %vm1567_vm8, %v1496_v50  ;;  %v1822_v57 = vld [vmem:[#allocation2 + $0xe8] sm:$0xff]  ;;  %v1305_v17 = vpop.permute.xlu2 %1304 }
 0x2d7   : > { %1773 = vst.msk [vmem:[#allocation2 + $0x60] sm:$0xff] %vm1760_vm9, %v1689_v39  ;;  %v1919_v62 = vsel %vm1830_vm10, %v1822_v57, 0 }
 0x2d8   : > { %v5076_v18 = vand.u32 4294901760, %v1919_v62 }
 0x2da   : > { %5751 = vst [vmem:[#allocation6_spill] sm:$0xff] %v5076_v18  ;;  %2367 = vmatmul.f32.gmra.mxu3 %v5076_v18  ;;  %v5080_v0 = vsub.f32 %v1919_v62, %v5076_v18 }
 0x2dc   : > { %v953_v59 = vpop.permute.xlu1 %952  ;;  %v5726_v46 = vand.u32 4294901760, %v5080_v0  ;;  %v760_v33 = vpop.permute.xlu0 %759 }
 0x2dd   : > { %826 = vst.msk [vmem:[#allocation2 + $0xf0] sm:$0xff] %vm795_vm4, %v760_v33 }
 0x2de   : > { %v2187_v39 = vsub.f32 %v5080_v0, %v5726_v46  ;;  %v1805_v50 = vld [vmem:[#allocation2 + $0x60] sm:$0xff]  ;;  %1019 = vst.msk [vmem:[#allocation2 + $0xf0] sm:$0xff] %vm988_vm5, %v953_v59  ;;  %v569_v2 = vpop.permute.xlu2 %568 }
 0x2df   : > { %v1868_v57 = vsel %vm1830_vm10, %v1805_v50, 0  ;;  %634 = vst.msk [vmem:[#allocation2 + $0xf8] sm:$0xff] %vm602_vm2, %v569_v2 }
 0x2e0   : > { %v2188_v37 = vand.u32 4294901760, %v2187_v39  ;;  %v5089_v21 = vand.u32 4294901760, %v1868_v57 }
 0x2e2   : > { %2189 = vmatmul.f32.gmra.mxu2 %v2188_v37  ;;  %2299 = vmatmul.f32.gmra.mxu1 %v5089_v21  ;;  %v5094_v62 = vsub.f32 %v1868_v57, %v5089_v21 }
 0x2e4   : > { %v919_v33 = vpop.permute.xlu1 %918  ;;  %v5727_v46 = vand.u32 4294901760, %v5094_v62  ;;  %v1146_v59 = vpop.permute.xlu0 %1145 }
 0x2e5   : > { %1002 = vst.msk [vmem:[#allocation2 + $0x68] sm:$0xff] %vm988_vm5, %v919_v33 }
 0x2e6   : > { %1212 = vst.msk [vmem:[#allocation2 + $0xf0] sm:$0xff] %vm1181_vm6, %v1146_v59  ;;  %v2051_v39 = vsub.f32 %v5094_v62, %v5727_v46  ;;  %v955_v57 = vpop.permute.xlu2 %954 }
 0x2e7   : > { %1405 = vst.msk [vmem:[#allocation2 + $0xf0] sm:$0xff] %vm1374_vm7, %v1339_v29 }
 0x2e8   : > { %v2052_v2 = vand.u32 4294901760, %v2051_v39 }
 0x2ea   : > { %2053 = vmatmul.f32.gmra.mxu0 %v2052_v2 }
 0x2ec   : > { %v1532_v37 = vpop.permute.xlu1 %1531 }
 0x2ed   : > { %1598 = vst.msk [vmem:[#allocation2 + $0xf0] sm:$0xff] %vm1567_vm8, %v1532_v37  ;;  %v1112_v50 = vpop.permute.xlu0 %1111 }
 0x2ee   : > { %1195 = vst.msk [vmem:[#allocation2 + $0x68] sm:$0xff] %vm1181_vm6, %v1112_v50  ;;  %v921_v2 = vpop.permute.xlu2 %920 }
 0x2ef   : > { %1388 = vst.msk [vmem:[#allocation2 + $0x68] sm:$0xff] %vm1374_vm7, %v1305_v17 }
 0x2f4   : > { %v1498_v33 = vpop.permute.xlu1 %1497 }
 0x2f5   : > { %1581 = vst.msk [vmem:[#allocation2 + $0x68] sm:$0xff] %vm1567_vm8, %v1498_v33  ;;  %v1725_v59 = vpop.permute.xlu0 %1724 }
 0x2f6   : > { %1791 = vst.msk [vmem:[#allocation2 + $0xf0] sm:$0xff] %vm1760_vm9, %v1725_v59 }
 0x2fc   : > { %v762_v46 = vpop.permute.xlu1 %761 }
 0x2fd   : > { %827 = vst.msk [vmem:[#allocation2 + $0xf8] sm:$0xff] %vm795_vm4, %v762_v46  ;;  %v1691_v29 = vpop.permute.xlu0 %1690  ;;  %v1823_v39 = vld [vmem:[#allocation2 + $0xf0] sm:$0xff] }
 0x2fe   : > { %1774 = vst.msk [vmem:[#allocation2 + $0x68] sm:$0xff] %vm1760_vm9, %v1691_v29  ;;  %v1922_v37 = vsel %vm1830_vm10, %v1823_v39, 0 }
 0x2ff   : > { %v5111_v50 = vand.u32 4294901760, %v1922_v37  ;;  %1020 = vst.msk [vmem:[#allocation2 + $0xf8] sm:$0xff] %vm988_vm5, %v955_v57 }
 0x301   : > { %5752 = vst [vmem:[#allocation7_spill] sm:$0xff] %v5111_v50  ;;  %2371 = vmatmul.f32.gmra.mxu3 %v5111_v50  ;;  %v5116_v17 = vsub.f32 %v1922_v37, %v5111_v50  ;;  %v1534_v37 = vpop.permute.xlu2 %1533 }
 0x303   : > { %5753 = vst [vmem:[#allocation8_spill] sm:$0xff] %v5116_v17  ;;  %v5733_v33 = vand.u32 4294901760, %v5116_v17 }
 0x304   : > { %v1148_v59 = vpop.permute.xlu1 %1147 }
 0x305   : > { %1213 = vst.msk [vmem:[#allocation2 + $0xf8] sm:$0xff] %vm1181_vm6, %v1148_v59  ;;  %v728_v46 = vpop.permute.xlu0 %727  ;;  %v2195_v29 = vsub.f32 %v5116_v17, %v5733_v33  ;;  %v1806_v39 = vld [vmem:[#allocation2 + $0x68] sm:$0xff] }
 0x306   : > { %810 = vst.msk [vmem:[#allocation2 + $0x70] sm:$0xff] %vm795_vm4, %v728_v46  ;;  %v1871_v57 = vsel %vm1830_vm10, %v1806_v39, 0 }
 0x307   : > { %v2196_v32 = vand.u32 4294901760, %v2195_v29  ;;  %v5125_v18 = vand.u32 4294901760, %v1871_v57  ;;  %1003 = vst.msk [vmem:[#allocation2 + $0x70] sm:$0xff] %vm988_vm5, %v921_v2 }
 0x309   : > { %2197 = vmatmul.f32.gmra.mxu2 %v2196_v32  ;;  %2303 = vmatmul.f32.gmra.mxu1 %v5125_v18  ;;  %v5130_v59 = vsub.f32 %v1871_v57, %v5125_v18  ;;  %v1500_v32 = vpop.permute.xlu2 %1499 }
 0x30b   : > { %v5740_v50 = vand.u32 4294901760, %v5130_v59 }
 0x30c   : > { %v1114_v33 = vpop.permute.xlu1 %1113 }
 0x30d   : > { %1196 = vst.msk [vmem:[#allocation2 + $0x70] sm:$0xff] %vm1181_vm6, %v1114_v33  ;;  %v1341_v46 = vpop.permute.xlu0 %1340  ;;  %v2059_v29 = vsub.f32 %v5130_v59, %v5740_v50 }
 0x30e   : > { %1406 = vst.msk [vmem:[#allocation2 + $0xf8] sm:$0xff] %vm1374_vm7, %v1341_v46 }
 0x30f   : > { %v2060_v2 = vand.u32 4294901760, %v2059_v29  ;;  %1599 = vst.msk [vmem:[#allocation2 + $0xf8] sm:$0xff] %vm1567_vm8, %v1534_v37 }
 0x311   : > { %2061 = vmatmul.f32.gmra.mxu0 %v2060_v2  ;;  %v923_v33 = vpop.permute.xlu2 %922 }
 0x314   : > { %v1727_v39 = vpop.permute.xlu1 %1726 }
 0x315   : > { %1792 = vst.msk [vmem:[#allocation2 + $0xf8] sm:$0xff] %vm1760_vm9, %v1727_v39  ;;  %v1307_v57 = vpop.permute.xlu0 %1306 }
 0x316   : > { %1389 = vst.msk [vmem:[#allocation2 + $0x70] sm:$0xff] %vm1374_vm7, %v1307_v57 }
 0x317   : > { %1582 = vst.msk [vmem:[#allocation2 + $0x70] sm:$0xff] %vm1567_vm8, %v1500_v32 }
 0x319   : > { %v1502_v39 = vpop.permute.xlu2 %1501 }
 0x31c   : > { %v1824_v28 = vld [vmem:[#allocation2 + $0xf8] sm:$0xff]  ;;  %v730_v40 = vpop.permute.xlu1 %729 }
 0x31d   : > { %v1693_v17 = vpop.permute.xlu0 %1692  ;;  %v1925_v50 = vsel %vm1830_vm10, %v1824_v28, 0  ;;  %811 = vst.msk [vmem:[#allocation2 + $0x78] sm:$0xff] %vm795_vm4, %v730_v40 }
 0x31e   : > { %1775 = vst.msk [vmem:[#allocation2 + $0x70] sm:$0xff] %vm1760_vm9, %v1693_v17  ;;  %v5145_v37 = vand.u32 4294901760, %v1925_v50 }
 0x31f   : > { %1004 = vst.msk [vmem:[#allocation2 + $0x78] sm:$0xff] %vm988_vm5, %v923_v33 }
 0x320   : > { %5754 = vst [vmem:[#allocation9_spill] sm:$0xff] %v5145_v37  ;;  %2375 = vmatmul.f32.gmra.mxu3 %v5145_v37  ;;  %v5150_v46 = vsub.f32 %v1925_v50, %v5145_v37  ;;  %v5756_v50 = vand.u32 4294901760, %v4314_v27  ;;  %v5168_v37 = vpop.f32.mrf.mxu3 }
 0x321   : > { %5757 = vst [vmem:[#allocation11_spill] sm:$0xff] %v5168_v37 }
 0x322   : > { %5755 = vst [vmem:[#allocation10_spill] sm:$0xff] %v5150_v46  ;;  %v5741_v29 = vand.u32 4294901760, %v5150_v46 }
 0x324   : > { %v2203_v2 = vsub.f32 %v5150_v46, %v5741_v29  ;;  %v1309_v28 = vpop.permute.xlu1 %1308 }
 0x325   : > { %v1116_v32 = vpop.permute.xlu0 %1115  ;;  %v1807_v40 = vld [vmem:[#allocation2 + $0x70] sm:$0xff] }
 0x326   : > { %1197 = vst.msk [vmem:[#allocation2 + $0x78] sm:$0xff] %vm1181_vm6, %v1116_v32  ;;  %v2204_v17 = vand.u32 4294901760, %v2203_v2  ;;  %v1874_v57 = vsel %vm1830_vm10, %v1807_v40, 0 }
 0x327   : > { %v5158_v33 = vand.u32 4294901760, %v1874_v57  ;;  %1390 = vst.msk [vmem:[#allocation2 + $0x78] sm:$0xff] %vm1374_vm7, %v1309_v28 }
 0x328   : > { %2205 = vmatmul.f32.gmra.mxu2 %v2204_v17  ;;  %2590 = vmatmul.f32.vlgmr.msrb.gmra.mxu3 %v5756_v50  ;;  %1583 = vst.msk [vmem:[#allocation2 + $0x78] sm:$0xff] %vm1567_vm8, %v1502_v39  ;;  %v5758_v39 = vand.u32 4294901760, %v4384_v1  ;;  %v5178_v17 = vpop.f32.mrf.mxu2 }
 0x329   : > { %2307 = vmatmul.f32.gmra.mxu1 %v5158_v33  ;;  %v5166_v29 = vsub.f32 %v1874_v57, %v5158_v33  ;;  %5759 = vst [vmem:[#allocation12_spill] sm:$0xff] %v5178_v17  ;;  %v5180_v57 = vpop.f32.mrf.mxu3  ;;  %v5807_v17 = vand.u32 4294901760, %v4291_v16 }
 0x32a   : > { %5760 = vst [vmem:[#allocation13_spill] sm:$0xff] %v5180_v57  ;;  %v5210_v57 = vpop.f32.mrf.mxu0 }
 0x32b   : > { %v5746_v2 = vand.u32 4294901760, %v5166_v29 }
 0x32d   : > { %v1695_v32 = vpop.permute.xlu0 %1694  ;;  %v2067_v28 = vsub.f32 %v5166_v29, %v5746_v2  ;;  %v5200_v2 = vpop.f32.mrf.mxu1 }
 0x32e   : > { %1776 = vst.msk [vmem:[#allocation2 + $0x78] sm:$0xff] %vm1760_vm9, %v1695_v32  ;;  %v5761_v32 = vand.u32 4294901760, %v4454_v45 }
 0x32f   : > { %v2068_v40 = vand.u32 4294901760, %v2067_v28 }
 0x330   : > { %2407 = vmatmul.f32.vlgmr.msrb.gmra.mxu2 %v4314_v27  ;;  %2596 = vmatmul.f32.gmra.mxu3 %v5758_v39  ;;  %v5192_v28 = vpop.f32.mrf.mxu2 }
 0x331   : > { %2069 = vmatmul.f32.gmra.mxu0 %v2068_v40  ;;  %5762 = vst [vmem:[#allocation14_spill] sm:$0xff] %v5192_v28  ;;  %v5194_v40 = vpop.f32.mrf.mxu3 }
 0x332   : > { %5763 = vst [vmem:[#allocation15_spill] sm:$0xff] %v5194_v40 }
 0x335   : > { %v1808_v50 = vld [vmem:[#allocation2 + $0x78] sm:$0xff]  ;;  %v5212_v28 = vpop.f32.mrf.mxu1 }
 0x336   : > { %v1877_v37 = vsel %vm1830_vm10, %v1808_v50, 0 }
 0x337   : > { %v5183_v46 = vand.u32 4294901760, %v1877_v37 }
 0x338   : > { %2412 = vmatmul.f32.gmra.mxu2 %v4384_v1  ;;  %2602 = vmatmul.f32.gmra.mxu3 %v5761_v32  ;;  %v5764_v32 = vand.u32 4294901760, %v4524_v41 }
 0x339   : > { %2311 = vmatmul.f32.gmra.mxu1 %v5183_v46  ;;  %v5190_v27 = vsub.f32 %v1877_v37, %v5183_v46  ;;  %v5206_v37 = vpop.f32.mrf.mxu2  ;;  %v5208_v40 = vpop.f32.mrf.mxu3 }
 0x33a   : > { %5765 = vst [vmem:[#allocation16_spill] sm:$0xff] %v5206_v37 }
 0x33b   : > { %v5747_v39 = vand.u32 4294901760, %v5190_v27  ;;  %5766 = vst [vmem:[#allocation17_spill] sm:$0xff] %v5208_v40  ;;  %v5770_v40 = vand.u32 4294901760, %v4662_v44 }
 0x33d   : > { %v2075_v50 = vsub.f32 %v5190_v27, %v5747_v39  ;;  %v5225_v39 = vpop.f32.mrf.mxu1 }
 0x33f   : > { %v2076_v1 = vand.u32 4294901760, %v2075_v50  ;;  %v5767_v50 = vand.u32 4294901760, %v4595_v60 }
 0x340   : > { %2417 = vmatmul.f32.gmra.mxu2 %v4454_v45  ;;  %2608 = vmatmul.f32.gmra.mxu3 %v5764_v32  ;;  %v5223_v32 = vpop.f32.mrf.mxu0 }
 0x341   : > { %2077 = vmatmul.f32.gmra.mxu0 %v2076_v1  ;;  %2962 = vmatmul.f32.vlgmr.msrb.gmra.mxu1 %v4307_v22  ;;  %v5219_v45 = vpop.f32.mrf.mxu2  ;;  %v5221_v1 = vpop.f32.mrf.mxu3 }
 0x342   : > { %5768 = vst [vmem:[#allocation18_spill] sm:$0xff] %v5219_v45  ;;  %v5773_v45 = vand.u32 4294901760, %v4731_v31 }
 0x343   : > { %5769 = vst [vmem:[#allocation19_spill] sm:$0xff] %v5221_v1 }
 0x345   : > { %v5238_v1 = vpop.f32.mrf.mxu1 }
 0x348   : > { %2422 = vmatmul.f32.gmra.mxu2 %v4524_v41  ;;  %2614 = vmatmul.f32.gmra.mxu3 %v5767_v50  ;;  %v5236_v50 = vpop.f32.mrf.mxu0 }
 0x349   : > { %2812 = vmatmul.f32.vlgmr.msrb.gmra.mxu0 %v4307_v22  ;;  %2966 = vmatmul.f32.gmra.mxu1 %v4377_v42  ;;  %v5232_v22 = vpop.f32.mrf.mxu2  ;;  %v5234_v41 = vpop.f32.mrf.mxu3 }
 0x34a   : > { %5771 = vst [vmem:[#allocation20_spill] sm:$0xff] %v5232_v22  ;;  %v5776_v22 = vand.u32 4294901760, %v4801_v38 }
 0x34b   : > { %5772 = vst [vmem:[#allocation21_spill] sm:$0xff] %v5234_v41 }
 0x34d   : > { %v5251_v41 = vpop.f32.mrf.mxu1 }
 0x350   : > { %2427 = vmatmul.f32.gmra.mxu2 %v4595_v60  ;;  %2620 = vmatmul.f32.gmra.mxu3 %v5770_v40  ;;  %v5249_v40 = vpop.f32.mrf.mxu0 }
 0x351   : > { %2816 = vmatmul.f32.gmra.mxu0 %v4377_v42  ;;  %2970 = vmatmul.f32.gmra.mxu1 %v4447_v19  ;;  %v5245_v42 = vpop.f32.mrf.mxu2  ;;  %v5247_v60 = vpop.f32.mrf.mxu3 }
 0x352   : > { %5774 = vst [vmem:[#allocation22_spill] sm:$0xff] %v5245_v42  ;;  %v5779_v42 = vand.u32 4294901760, %v4868_v61 }
 0x353   : > { %5775 = vst [vmem:[#allocation23_spill] sm:$0xff] %v5247_v60 }
 0x355   : > { %v5264_v60 = vpop.f32.mrf.mxu1 }
 0x358   : > { %2432 = vmatmul.f32.gmra.mxu2 %v4662_v44  ;;  %2626 = vmatmul.f32.gmra.mxu3 %v5773_v45  ;;  %v5262_v45 = vpop.f32.mrf.mxu0 }
 0x359   : > { %2820 = vmatmul.f32.gmra.mxu0 %v4447_v19  ;;  %2974 = vmatmul.f32.gmra.mxu1 %v4517_v55  ;;  %v5258_v19 = vpop.f32.mrf.mxu2  ;;  %v5260_v44 = vpop.f32.mrf.mxu3 }
 0x35a   : > { %5777 = vst [vmem:[#allocation24_spill] sm:$0xff] %v5258_v19  ;;  %v5782_v19 = vand.u32 4294901760, %v4937_v3 }
 0x35b   : > { %5778 = vst [vmem:[#allocation25_spill] sm:$0xff] %v5260_v44 }
 0x35d   : > { %v5277_v44 = vpop.f32.mrf.mxu1 }
 0x360   : > { %2437 = vmatmul.f32.gmra.mxu2 %v4731_v31  ;;  %2632 = vmatmul.f32.gmra.mxu3 %v5776_v22  ;;  %v5275_v22 = vpop.f32.mrf.mxu0 }
 0x361   : > { %2824 = vmatmul.f32.gmra.mxu0 %v4517_v55  ;;  %2978 = vmatmul.f32.gmra.mxu1 %v4587_v24  ;;  %v5271_v55 = vpop.f32.mrf.mxu2  ;;  %v5273_v31 = vpop.f32.mrf.mxu3 }
 0x362   : > { %5780 = vst [vmem:[#allocation26_spill] sm:$0xff] %v5271_v55  ;;  %v5785_v55 = vand.u32 4294901760, %v5006_v4 }
 0x363   : > { %5781 = vst [vmem:[#allocation27_spill] sm:$0xff] %v5273_v31 }
 0x365   : > { %v5290_v31 = vpop.f32.mrf.mxu1 }
 0x368   : > { %2442 = vmatmul.f32.gmra.mxu2 %v4801_v38  ;;  %2638 = vmatmul.f32.gmra.mxu3 %v5779_v42  ;;  %v5288_v42 = vpop.f32.mrf.mxu0 }
 0x369   : > { %2828 = vmatmul.f32.gmra.mxu0 %v4587_v24  ;;  %2982 = vmatmul.f32.gmra.mxu1 %v4657_v26  ;;  %v5284_v24 = vpop.f32.mrf.mxu2  ;;  %v5286_v38 = vpop.f32.mrf.mxu3 }
 0x36a   : > { %5783 = vst [vmem:[#allocation28_spill] sm:$0xff] %v5284_v24  ;;  %v5788_v24 = vand.u32 4294901760, %v5059_v10 }
 0x36b   : > { %5784 = vst [vmem:[#allocation29_spill] sm:$0xff] %v5286_v38 }
 0x36d   : > { %v5303_v38 = vpop.f32.mrf.mxu1 }
 0x370   : > { %2447 = vmatmul.f32.gmra.mxu2 %v4868_v61  ;;  %2644 = vmatmul.f32.gmra.mxu3 %v5782_v19  ;;  %v5301_v19 = vpop.f32.mrf.mxu0 }
 0x371   : > { %2832 = vmatmul.f32.gmra.mxu0 %v4657_v26  ;;  %2986 = vmatmul.f32.gmra.mxu1 %v4724_v53  ;;  %v5297_v26 = vpop.f32.mrf.mxu2  ;;  %v5299_v61 = vpop.f32.mrf.mxu3 }
 0x372   : > { %5786 = vst [vmem:[#allocation30_spill] sm:$0xff] %v5297_v26  ;;  %v5791_v26 = vand.u32 4294901760, %v5094_v62 }
 0x373   : > { %5787 = vst [vmem:[#allocation31_spill] sm:$0xff] %v5299_v61 }
 0x375   : > { %v5316_v61 = vpop.f32.mrf.mxu1 }
 0x378   : > { %2452 = vmatmul.f32.gmra.mxu2 %v4937_v3  ;;  %2650 = vmatmul.f32.gmra.mxu3 %v5785_v55  ;;  %v5314_v55 = vpop.f32.mrf.mxu0 }
 0x379   : > { %2836 = vmatmul.f32.gmra.mxu0 %v4724_v53  ;;  %2990 = vmatmul.f32.gmra.mxu1 %v4794_v15  ;;  %v5310_v53 = vpop.f32.mrf.mxu2  ;;  %v5312_v3 = vpop.f32.mrf.mxu3 }
 0x37a   : > { %5789 = vst [vmem:[#allocation32_spill] sm:$0xff] %v5310_v53  ;;  %v5794_v53 = vand.u32 4294901760, %v5130_v59 }
 0x37b   : > { %5790 = vst [vmem:[#allocation33_spill] sm:$0xff] %v5312_v3 }
 0x37d   : > { %v5329_v3 = vpop.f32.mrf.mxu1 }
 0x380   : > { %2457 = vmatmul.f32.gmra.mxu2 %v5006_v4  ;;  %2656 = vmatmul.f32.gmra.mxu3 %v5788_v24  ;;  %v5327_v24 = vpop.f32.mrf.mxu0 }
 0x381   : > { %2840 = vmatmul.f32.gmra.mxu0 %v4794_v15  ;;  %2994 = vmatmul.f32.gmra.mxu1 %v4863_v63  ;;  %v5323_v15 = vpop.f32.mrf.mxu2  ;;  %v5325_v4 = vpop.f32.mrf.mxu3 }
 0x382   : > { %5792 = vst [vmem:[#allocation34_spill] sm:$0xff] %v5323_v15  ;;  %v5797_v15 = vand.u32 4294901760, %v5166_v29 }
 0x383   : > { %5793 = vst [vmem:[#allocation35_spill] sm:$0xff] %v5325_v4 }
 0x385   : > { %v5342_v4 = vpop.f32.mrf.mxu1 }
 0x388   : > { %2462 = vmatmul.f32.gmra.mxu2 %v5059_v10  ;;  %2662 = vmatmul.f32.gmra.mxu3 %v5791_v26  ;;  %v5340_v26 = vpop.f32.mrf.mxu0 }
 0x389   : > { %2844 = vmatmul.f32.gmra.mxu0 %v4863_v63  ;;  %2998 = vmatmul.f32.gmra.mxu1 %v4931_v6  ;;  %v5336_v63 = vpop.f32.mrf.mxu2  ;;  %v5338_v10 = vpop.f32.mrf.mxu3 }
 0x38a   : > { %5795 = vst [vmem:[#allocation36_spill] sm:$0xff] %v5336_v63  ;;  %v5800_v63 = vand.u32 4294901760, %v5190_v27 }
 0x38b   : > { %5796 = vst [vmem:[#allocation37_spill] sm:$0xff] %v5338_v10 }
 0x38d   : > { %v5355_v10 = vpop.f32.mrf.mxu1 }
 0x390   : > { %2467 = vmatmul.f32.gmra.mxu2 %v5094_v62  ;;  %2668 = vmatmul.f32.gmra.mxu3 %v5794_v53  ;;  %v5353_v53 = vpop.f32.mrf.mxu0 }
 0x391   : > { %2848 = vmatmul.f32.gmra.mxu0 %v4931_v6  ;;  %3002 = vmatmul.f32.gmra.mxu1 %v5001_v30  ;;  %v5349_v6 = vpop.f32.mrf.mxu2  ;;  %v5351_v62 = vpop.f32.mrf.mxu3 }
 0x392   : > { %5798 = vst [vmem:[#allocation38_spill] sm:$0xff] %v5349_v6 }
 0x393   : > { %5799 = vst [vmem:[#allocation39_spill] sm:$0xff] %v5351_v62  ;;  %v5803_v62 = vand.u32 4294901760, %v4244_v56 }
 0x395   : > { %v5366_v6 = vpop.f32.mrf.mxu1 }
 0x396   : > { %5802 = vst [vmem:[#allocation41_spill] sm:$0xff] %v5366_v6 }
 0x398   : > { %2472 = vmatmul.f32.gmra.mxu2 %v5130_v59  ;;  %2674 = vmatmul.f32.gmra.mxu3 %v5797_v15  ;;  %v5364_v15 = vpop.f32.mrf.mxu0 }
 0x399   : > { %2852 = vmatmul.f32.gmra.mxu0 %v5001_v30  ;;  %3006 = vmatmul.f32.gmra.mxu1 %v5054_v43  ;;  %v5362_v30 = vpop.f32.mrf.mxu2 }
 0x39a   : > { %5801 = vst [vmem:[#allocation40_spill] sm:$0xff] %v5362_v30 }
 0x3a0   : > { %2477 = vmatmul.f32.gmra.mxu2 %v5166_v29  ;;  %2680 = vmatmul.f32.gmra.mxu3 %v5800_v63  ;;  %v5375_v37 = vpop.f32.mrf.mxu0 }
 0x3a1   : > { %2856 = vmatmul.f32.gmra.mxu0 %v5054_v43  ;;  %3010 = vmatmul.f32.gmra.mxu1 %v5089_v21  ;;  %5805 = vst [vmem:[#allocation43_spill] sm:$0xff] %v5375_v37  ;;  %v2257_v37 = vadd.f32 %v5212_v28, %v5223_v32 }
 0x3a3   : > { %v2376_v59 = vpop.f32.mrf.mxu3 }
 0x3a6   : > { %v5377_v30 = vpop.f32.mrf.mxu1 }
 0x3a7   : > { %5806 = vst [vmem:[#allocation44_spill] sm:$0xff] %v5377_v30 }
 0x3a8   : > { %2482 = vmatmul.f32.gmra.mxu2 %v5190_v27  ;;  %2686 = vmatmul.f32.gmra.mxu3 %v5803_v62 }
 0x3a9   : > { %2860 = vmatmul.f32.gmra.mxu0 %v5089_v21  ;;  %3014 = vmatmul.f32.gmra.mxu1 %v5125_v18 }
 0x3ab   : > { %v2206_v29 = vpop.f32.mrf.mxu2  ;;  %v2591_v43 = vpop.f32.mrf.mxu3 }
 0x3ac   : > { %v5373_v63 = vadd.f32 %v2376_v59, %v2206_v29  ;;  %v5810_v59 = vand.u32 4294901760, %v4361_v36 }
 0x3ae   : > { %5804 = vst [vmem:[#allocation42_spill] sm:$0xff] %v5373_v63  ;;  %v5384_v62 = vpop.f32.mrf.mxu0  ;;  %v2253_v63 = vadd.f32 %v5200_v2, %v5210_v57 }
 0x3af   : > { %5808 = vst [vmem:[#allocation45_spill] sm:$0xff] %v5384_v62 }
 0x3b0   : > { %2487 = vmatmul.f32.gmra.mxu2 %v4244_v56  ;;  %2692 = vmatmul.f32.gmra.mxu3 %v5807_v17 }
 0x3b1   : > { %2864 = vmatmul.f32.gmra.mxu0 %v5125_v18  ;;  %3018 = vmatmul.f32.gmra.mxu1 %v5158_v33 }
 0x3b3   : > { %v2408_v21 = vpop.f32.mrf.mxu2  ;;  %v2597_v27 = vpop.f32.mrf.mxu3 }
 0x3b6   : > { %v5386_v6 = vpop.f32.mrf.mxu1 }
 0x3b7   : > { %5809 = vst [vmem:[#allocation46_spill] sm:$0xff] %v5386_v6  ;;  %v2409_v6 = vadd.f32 %v2408_v21, %v2253_v63 }
 0x3b8   : > { %2492 = vmatmul.f32.gmra.mxu2 %v4291_v16  ;;  %2698 = vmatmul.f32.gmra.mxu3 %v5810_v59  ;;  %v5812_v16 = vand.u32 4294901760, %v4431_v14 }
 0x3b9   : > { %2868 = vmatmul.f32.gmra.mxu0 %v5158_v33  ;;  %3022 = vmatmul.f32.gmra.mxu1 %v5183_v46  ;;  %v2592_v30 = vadd.f32 %v2591_v43, %v2409_v6 }
 0x3bb   : > { %v2413_v56 = vpop.f32.mrf.mxu2  ;;  %v2603_v18 = vpop.f32.mrf.mxu3 }
 0x3be   : > { %v5393_v17 = vpop.f32.mrf.mxu0  ;;  %v2963_v29 = vpop.f32.mrf.mxu1 }
 0x3bf   : > { %5811 = vst [vmem:[#allocation47_spill] sm:$0xff] %v5393_v17 }
 0x3c0   : > { %2497 = vmatmul.f32.gmra.mxu2 %v4361_v36  ;;  %2704 = vmatmul.f32.gmra.mxu3 %v5812_v16  ;;  %v5813_v36 = vand.u32 4294901760, %v4501_v48 }
 0x3c1   : > { %2872 = vmatmul.f32.gmra.mxu0 %v5183_v46  ;;  %3026 = vmatmul.f32.gmra.mxu1 %v4237_v54  ;;  %v2414_v46 = vadd.f32 %v2413_v56, %v2257_v37  ;;  %v5814_v37 = vand.u32 4294901760, %v4571_v11 }
 0x3c3   : > { %v2418_v33 = vpop.f32.mrf.mxu2  ;;  %v2609_v59 = vpop.f32.mrf.mxu3  ;;  %v2598_v6 = vadd.f32 %v2597_v27, %v2414_v46  ;;  %v2265_v46 = vadd.f32 %v5238_v1, %v5249_v40 }
 0x3c6   : > { %v2813_v62 = vpop.f32.mrf.mxu0  ;;  %v2967_v17 = vpop.f32.mrf.mxu1 }
 0x3c7   : > { %v2814_v2 = vadd.f32 %v2813_v62, %v2592_v30 }
 0x3c8   : > { %2502 = vmatmul.f32.gmra.mxu2 %v4431_v14  ;;  %2710 = vmatmul.f32.gmra.mxu3 %v5813_v36  ;;  %v2261_v14 = vadd.f32 %v5225_v39, %v5236_v50 }
 0x3c9   : > { %v2964_v57 = vadd.f32 %v2963_v29, %v2814_v2  ;;  %2876 = vmatmul.f32.gmra.mxu0 %v4237_v54  ;;  %3030 = vmatmul.f32.gmra.mxu1 %v4283_v9 }
 0x3ca   : > { %v2419_v54 = vadd.f32 %v2418_v33, %v2261_v14 }
 0x3cb   : > { %3090 = vst.msk [vmem:[%s5408_s14] sm:$0xff] %vm214_vm0, %v2964_v57  ;;  %v2423_v28 = vpop.f32.mrf.mxu2  ;;  %v2615_v32 = vpop.f32.mrf.mxu3  ;;  %v3193_v21 = vmul.f32 %v2964_v57, %v2964_v57  ;;  %v3122_v27 = vsel %vm214_vm0, %v2964_v57, 0.0 }
 0x3cd   : > { %v3225_v16 = vsel %vm214_vm0, %v3193_v21, 0.0 }
 0x3ce   : > { %v2817_v30 = vpop.f32.mrf.mxu0  ;;  %v2971_v43 = vpop.f32.mrf.mxu1 }
 0x3cf   : > { %v2818_v63 = vadd.f32 %v2817_v30, %v2598_v6  ;;  %v5815_v6 = vand.u32 4294901760, %v4638_v52  ;;  %v2424_v30 = vadd.f32 %v2423_v28, %v2265_v46 }
 0x3d0   : > { %2507 = vmatmul.f32.gmra.mxu2 %v4501_v48  ;;  %2716 = vmatmul.f32.gmra.mxu3 %v5814_v37 }
 0x3d1   : > { %v2968_v62 = vadd.f32 %v2967_v17, %v2818_v63  ;;  %2880 = vmatmul.f32.gmra.mxu0 %v4283_v9  ;;  %3034 = vmatmul.f32.gmra.mxu1 %v4353_v47  ;;  %v2604_v17 = vadd.f32 %v2603_v18, %v2419_v54  ;;  %v2610_v54 = vadd.f32 %v2609_v59, %v2424_v30 }
 0x3d3   : > { %3091 = vst.msk [vmem:[%s5408_s14 + $0x8] sm:$0xff] %vm214_vm0, %v2968_v62  ;;  %v3123_v56 = vsel %vm214_vm0, %v2968_v62, 0.0  ;;  %v3194_v39 = vmul.f32 %v2968_v62, %v2968_v62  ;;  %v2428_v50 = vpop.f32.mrf.mxu2  ;;  %v2621_v29 = vpop.f32.mrf.mxu3 }
 0x3d4   : > { %v3124_v48 = vadd.f32 %v3123_v56, %v3122_v27  ;;  %v5816_v27 = vand.u32 4294901760, %v4708_v7 }
 0x3d5   : > { %v3226_v33 = vsel %vm214_vm0, %v3194_v39, 0.0 }
 0x3d6   : > { %v3227_v2 = vadd.f32 %v3226_v33, %v3225_v16  ;;  %v2821_v9 = vpop.f32.mrf.mxu0  ;;  %v2975_v36 = vpop.f32.mrf.mxu1 }
 0x3d7   : > { %v2822_v57 = vadd.f32 %v2821_v9, %v2604_v17 }
 0x3d8   : > { %2512 = vmatmul.f32.gmra.mxu2 %v4571_v11  ;;  %2722 = vmatmul.f32.gmra.mxu3 %v5815_v6 }
 0x3d9   : > { %v2972_v14 = vadd.f32 %v2971_v43, %v2822_v57  ;;  %2884 = vmatmul.f32.gmra.mxu0 %v4353_v47  ;;  %3038 = vmatmul.f32.gmra.mxu1 %v4423_v25  ;;  %v2269_v47 = vadd.f32 %v5251_v41, %v5262_v45 }
 0x3db   : > { %3092 = vst.msk [vmem:[%s5408_s14 + $0x10] sm:$0xff] %vm214_vm0, %v2972_v14  ;;  %v3125_v18 = vsel %vm214_vm0, %v2972_v14, 0.0  ;;  %v3195_v63 = vmul.f32 %v2972_v14, %v2972_v14  ;;  %v2433_v37 = vpop.f32.mrf.mxu2  ;;  %v2627_v1 = vpop.f32.mrf.mxu3  ;;  %v2429_v56 = vadd.f32 %v2428_v50, %v2269_v47 }
 0x3dc   : > { %v3126_v40 = vadd.f32 %v3125_v18, %v3124_v48 }
 0x3dd   : > { %v3228_v11 = vsel %vm214_vm0, %v3195_v63, 0.0  ;;  %v2616_v33 = vadd.f32 %v2615_v32, %v2429_v56 }
 0x3de   : > { %v3229_v21 = vadd.f32 %v3228_v11, %v3227_v2  ;;  %v2825_v62 = vpop.f32.mrf.mxu0  ;;  %v2979_v28 = vpop.f32.mrf.mxu1  ;;  %v5818_v11 = vand.u32 4294901760, %v4845_v58 }
 0x3df   : > { %v2826_v43 = vadd.f32 %v2825_v62, %v2610_v54 }
 0x3e0   : > { %2517 = vmatmul.f32.gmra.mxu2 %v4638_v52  ;;  %2728 = vmatmul.f32.gmra.mxu3 %v5816_v27 }
 0x3e1   : > { %v2976_v39 = vadd.f32 %v2975_v36, %v2826_v43  ;;  %2888 = vmatmul.f32.gmra.mxu0 %v4423_v25  ;;  %3042 = vmatmul.f32.gmra.mxu1 %v4493_v12  ;;  %v2273_v25 = vadd.f32 %v5264_v60, %v5275_v22  ;;  %v5817_v36 = vand.u32 4294901760, %v4778_v5 }
 0x3e3   : > { %3093 = vst.msk [vmem:[%s5408_s14 + $0x18] sm:$0xff] %vm214_vm0, %v2976_v39  ;;  %v3127_v59 = vsel %vm214_vm0, %v2976_v39, 0.0  ;;  %v3196_v48 = vmul.f32 %v2976_v39, %v2976_v39  ;;  %v2438_v16 = vpop.f32.mrf.mxu2  ;;  %v2633_v41 = vpop.f32.mrf.mxu3  ;;  %v2434_v46 = vadd.f32 %v2433_v37, %v2273_v25 }
 0x3e4   : > { %v3128_v45 = vadd.f32 %v3127_v59, %v3126_v40  ;;  %v5819_v59 = vand.u32 4294901760, %v4916_v23 }
 0x3e5   : > { %v3230_v52 = vsel %vm214_vm0, %v3196_v48, 0.0  ;;  %v2622_v14 = vadd.f32 %v2621_v29, %v2434_v46 }
 0x3e6   : > { %v3231_v17 = vadd.f32 %v3230_v52, %v3229_v21  ;;  %v2829_v2 = vpop.f32.mrf.mxu0  ;;  %v2983_v50 = vpop.f32.mrf.mxu1 }
 0x3e7   : > { %v2830_v9 = vadd.f32 %v2829_v2, %v2616_v33 }
 0x3e8   : > { %2522 = vmatmul.f32.gmra.mxu2 %v4708_v7  ;;  %2734 = vmatmul.f32.gmra.mxu3 %v5817_v36 }
 0x3e9   : > { %v2980_v57 = vadd.f32 %v2979_v28, %v2830_v9  ;;  %2892 = vmatmul.f32.gmra.mxu0 %v4493_v12  ;;  %3046 = vmatmul.f32.gmra.mxu1 %v4563_v8  ;;  %v2277_v12 = vadd.f32 %v5277_v44, %v5288_v42  ;;  %v5820_v9 = vand.u32 4294901760, %v4986_v35 }
 0x3eb   : > { %3094 = vst.msk [vmem:[%s5408_s14 + $0x20] sm:$0xff] %vm214_vm0, %v2980_v57  ;;  %v3129_v32 = vsel %vm214_vm0, %v2980_v57, 0.0  ;;  %v3197_v6 = vmul.f32 %v2980_v57, %v2980_v57  ;;  %v2443_v30 = vpop.f32.mrf.mxu2  ;;  %v2639_v60 = vpop.f32.mrf.mxu3  ;;  %v2439_v54 = vadd.f32 %v2438_v16, %v2277_v12 }
 0x3ec   : > { %v3130_v22 = vadd.f32 %v3129_v32, %v3128_v45 }
 0x3ed   : > { %v3232_v7 = vsel %vm214_vm0, %v3197_v6, 0.0  ;;  %v2628_v47 = vadd.f32 %v2627_v1, %v2439_v54 }
 0x3ee   : > { %v3233_v18 = vadd.f32 %v3232_v7, %v3231_v17  ;;  %v2833_v63 = vpop.f32.mrf.mxu0  ;;  %v2987_v37 = vpop.f32.mrf.mxu1 }
 0x3ef   : > { %v2834_v40 = vadd.f32 %v2833_v63, %v2622_v14 }
 0x3f0   : > { %2527 = vmatmul.f32.gmra.mxu2 %v4778_v5  ;;  %2740 = vmatmul.f32.gmra.mxu3 %v5818_v11 }
 0x3f1   : > { %v2984_v21 = vadd.f32 %v2983_v50, %v2834_v40  ;;  %2896 = vmatmul.f32.gmra.mxu0 %v4563_v8  ;;  %3050 = vmatmul.f32.gmra.mxu1 %v4633_v20  ;;  %v2281_v8 = vadd.f32 %v5290_v31, %v5301_v19 }
 0x3f3   : > { %3095 = vst.msk [vmem:[%s5408_s14 + $0x28] sm:$0xff] %vm214_vm0, %v2984_v21  ;;  %v3131_v29 = vsel %vm214_vm0, %v2984_v21, 0.0  ;;  %v3198_v62 = vmul.f32 %v2984_v21, %v2984_v21  ;;  %v2448_v28 = vpop.f32.mrf.mxu2  ;;  %v2645_v44 = vpop.f32.mrf.mxu3  ;;  %v2444_v48 = vadd.f32 %v2443_v30, %v2281_v8 }
 0x3f4   : > { %v3132_v42 = vadd.f32 %v3131_v29, %v3130_v22 }
 0x3f5   : > { %v3234_v5 = vsel %vm214_vm0, %v3198_v62, 0.0  ;;  %v2634_v33 = vadd.f32 %v2633_v41, %v2444_v48 }
 0x3f6   : > { %v3235_v43 = vadd.f32 %v3234_v5, %v3233_v18  ;;  %v2837_v27 = vpop.f32.mrf.mxu0  ;;  %v2991_v56 = vpop.f32.mrf.mxu1  ;;  %v5821_v18 = vand.u32 4294901760, %v5044_v51 }
 0x3f7   : > { %v2838_v39 = vadd.f32 %v2837_v27, %v2628_v47  ;;  %v5823_v47 = vld [vmem:[#allocation3_spill] sm:$0xff] }
 0x3f8   : > { %2532 = vmatmul.f32.gmra.mxu2 %v4845_v58  ;;  %2746 = vmatmul.f32.gmra.mxu3 %v5819_v59 }
 0x3f9   : > { %v2988_v16 = vadd.f32 %v2987_v37, %v2838_v39  ;;  %2900 = vmatmul.f32.gmra.mxu0 %v4633_v20  ;;  %3054 = vmatmul.f32.gmra.mxu1 %v4700_v49  ;;  %v2285_v20 = vadd.f32 %v5303_v38, %v5314_v55 }
 0x3fb   : > { %3096 = vst.msk [vmem:[%s5408_s14 + $0x30] sm:$0xff] %vm214_vm0, %v2988_v16  ;;  %v3133_v1 = vsel %vm214_vm0, %v2988_v16, 0.0  ;;  %v3199_v45 = vmul.f32 %v2988_v16, %v2988_v16  ;;  %v2453_v52 = vpop.f32.mrf.mxu2  ;;  %v2651_v31 = vpop.f32.mrf.mxu3  ;;  %v2449_v36 = vadd.f32 %v2448_v28, %v2285_v20  ;;  %v5822_v28 = vand.u32 4294901760, %v5080_v0  ;;  %v5824_v16 = vld [vmem:[#allocation8_spill] sm:$0xff] }
 0x3fc   : > { %v3134_v19 = vadd.f32 %v3133_v1, %v3132_v42  ;;  %v5825_v1 = vand.u32 4294901760, %v5824_v16 }
 0x3fd   : > { %v3236_v58 = vsel %vm214_vm0, %v3199_v45, 0.0  ;;  %v2640_v6 = vadd.f32 %v2639_v60, %v2449_v36  ;;  %v5827_v36 = vld [vmem:[#allocation10_spill] sm:$0xff] }
 0x3fe   : > { %v3237_v17 = vadd.f32 %v3236_v58, %v3235_v43  ;;  %v2841_v2 = vpop.f32.mrf.mxu0  ;;  %v2995_v50 = vpop.f32.mrf.mxu1 }
 0x3ff   : > { %v2842_v25 = vadd.f32 %v2841_v2, %v2634_v33 }
 0x400   : > { %2537 = vmatmul.f32.gmra.mxu2 %v4916_v23  ;;  %2752 = vmatmul.f32.gmra.mxu3 %v5820_v9 }
 0x401   : > { %v2992_v46 = vadd.f32 %v2991_v56, %v2842_v25  ;;  %2904 = vmatmul.f32.gmra.mxu0 %v4700_v49  ;;  %3058 = vmatmul.f32.gmra.mxu1 %v4770_v13  ;;  %v2289_v49 = vadd.f32 %v5316_v61, %v5327_v24  ;;  %v2301_v25 = vadd.f32 %v5355_v10, %v5364_v15 }
 0x403   : > { %3097 = vst.msk [vmem:[%s5408_s14 + $0x38] sm:$0xff] %vm214_vm0, %v2992_v46  ;;  %v3135_v41 = vsel %vm214_vm0, %v2992_v46, 0.0  ;;  %v3200_v57 = vmul.f32 %v2992_v46, %v2992_v46  ;;  %v2458_v32 = vpop.f32.mrf.mxu2  ;;  %v2657_v38 = vpop.f32.mrf.mxu3  ;;  %v2454_v63 = vadd.f32 %v2453_v52, %v2289_v49  ;;  %v5828_v46 = vand.u32 4294901760, %v5827_v36 }
 0x404   : > { %v3136_v55 = vadd.f32 %v3135_v41, %v3134_v19  ;;  %v5826_v19 = vld [vmem:[#allocation4_spill] sm:$0xff] }
 0x405   : > { %v3238_v23 = vsel %vm214_vm0, %v3200_v57, 0.0  ;;  %v2646_v11 = vadd.f32 %v2645_v44, %v2454_v63 }
 0x406   : > { %v3239_v30 = vadd.f32 %v3238_v23, %v3237_v17  ;;  %v2845_v22 = vpop.f32.mrf.mxu0  ;;  %v2999_v7 = vpop.f32.mrf.mxu1 }
 0x407   : > { %v2846_v14 = vadd.f32 %v2845_v22, %v2640_v6 }
 0x408   : > { %2542 = vmatmul.f32.gmra.mxu2 %v4986_v35  ;;  %2758 = vmatmul.f32.gmra.mxu3 %v5821_v18  ;;  %v5831_v18 = vld [vmem:[#allocation41_spill] sm:$0xff] }
 0x409   : > { %v2996_v37 = vadd.f32 %v2995_v50, %v2846_v14  ;;  %2908 = vmatmul.f32.gmra.mxu0 %v4770_v13  ;;  %3062 = vmatmul.f32.gmra.mxu1 %v4840_v34  ;;  %v2293_v13 = vadd.f32 %v5329_v3, %v5340_v26  ;;  %v5830_v14 = vld [vmem:[#allocation43_spill] sm:$0xff] }
 0x40a   : > { %v2305_v63 = vadd.f32 %v5831_v18, %v5830_v14 }
 0x40b   : > { %3098 = vst.msk [vmem:[%s5408_s14 + $0x40] sm:$0xff] %vm214_vm0, %v2996_v37  ;;  %v3137_v60 = vsel %vm214_vm0, %v2996_v37, 0.0  ;;  %v3201_v12 = vmul.f32 %v2996_v37, %v2996_v37  ;;  %v2463_v40 = vpop.f32.mrf.mxu2  ;;  %v2663_v61 = vpop.f32.mrf.mxu3  ;;  %v2459_v42 = vadd.f32 %v2458_v32, %v2293_v13  ;;  %v5829_v32 = vld [vmem:[#allocation5_spill] sm:$0xff] }
 0x40c   : > { %v3138_v24 = vadd.f32 %v3137_v60, %v3136_v55 }
 0x40d   : > { %v3240_v35 = vsel %vm214_vm0, %v3201_v12, 0.0  ;;  %v2652_v56 = vadd.f32 %v2651_v31, %v2459_v42  ;;  %v5833_v42 = vld [vmem:[#allocation45_spill] sm:$0xff] }
 0x40e   : > { %v3241_v54 = vadd.f32 %v3240_v35, %v3239_v30  ;;  %v2849_v21 = vpop.f32.mrf.mxu0  ;;  %v3003_v29 = vpop.f32.mrf.mxu1 }
 0x40f   : > { %v2850_v62 = vadd.f32 %v2849_v21, %v2646_v11 }
 0x410   : > { %2547 = vmatmul.f32.gmra.mxu2 %v5044_v51  ;;  %2764 = vmatmul.f32.gmra.mxu3 %v5822_v28 }
 0x411   : > { %v3000_v5 = vadd.f32 %v2999_v7, %v2850_v62  ;;  %2912 = vmatmul.f32.gmra.mxu0 %v4840_v34  ;;  %3066 = vmatmul.f32.gmra.mxu1 %v5823_v47  ;;  %v2297_v34 = vadd.f32 %v5342_v4, %v5353_v53 }
 0x413   : > { %3099 = vst.msk [vmem:[%s5408_s14 + $0x48] sm:$0xff] %vm214_vm0, %v3000_v5  ;;  %v3139_v44 = vsel %vm214_vm0, %v3000_v5, 0.0  ;;  %v3202_v43 = vmul.f32 %v3000_v5, %v3000_v5  ;;  %v2468_v27 = vpop.f32.mrf.mxu2  ;;  %v2669_v3 = vpop.f32.mrf.mxu3  ;;  %v2464_v45 = vadd.f32 %v2463_v40, %v2297_v34  ;;  %v5832_v40 = vld [vmem:[#allocation6_spill] sm:$0xff]  ;;  %v5834_v5 = vld [vmem:[#allocation44_spill] sm:$0xff] }
 0x414   : > { %v3140_v26 = vadd.f32 %v3139_v44, %v3138_v24  ;;  %v2469_v41 = vadd.f32 %v2468_v27, %v2301_v25 }
 0x415   : > { %v3242_v51 = vsel %vm214_vm0, %v3202_v43, 0.0  ;;  %v2658_v17 = vadd.f32 %v2657_v38, %v2464_v45  ;;  %v5836_v45 = vld [vmem:[#allocation47_spill] sm:$0xff] }
 0x416   : > { %v3243_v8 = vadd.f32 %v3242_v51, %v3241_v54  ;;  %v2853_v39 = vpop.f32.mrf.mxu0  ;;  %v3007_v59 = vpop.f32.mrf.mxu1  ;;  %v2664_v30 = vadd.f32 %v2663_v61, %v2469_v41  ;;  %v5839_v41 = vld [vmem:[#allocation12_spill] sm:$0xff] }
 0x417   : > { %v2854_v48 = vadd.f32 %v2853_v39, %v2652_v56 }
 0x418   : > { %2552 = vmatmul.f32.gmra.mxu2 %v5080_v0  ;;  %2770 = vmatmul.f32.gmra.mxu3 %v5825_v1 }
 0x419   : > { %v3004_v52 = vadd.f32 %v3003_v29, %v2854_v48  ;;  %2916 = vmatmul.f32.gmra.mxu0 %v5823_v47  ;;  %3070 = vmatmul.f32.gmra.mxu1 %v5826_v19  ;;  %v2309_v47 = vadd.f32 %v5834_v5, %v5833_v42 }
 0x41b   : > { %3100 = vst.msk [vmem:[%s5408_s14 + $0x50] sm:$0xff] %vm214_vm0, %v3004_v52  ;;  %v3141_v31 = vsel %vm214_vm0, %v3004_v52, 0.0  ;;  %v3203_v58 = vmul.f32 %v3004_v52, %v3004_v52  ;;  %v2473_v33 = vpop.f32.mrf.mxu2  ;;  %v2675_v4 = vpop.f32.mrf.mxu3  ;;  %v5837_v52 = vld [vmem:[#allocation46_spill] sm:$0xff] }
 0x41c   : > { %v3142_v53 = vadd.f32 %v3141_v31, %v3140_v26  ;;  %v2474_v60 = vadd.f32 %v2473_v33, %v2305_v63  ;;  %v5835_v26 = vld [vmem:[#allocation7_spill] sm:$0xff] }
 0x41d   : > { %v3244_v0 = vsel %vm214_vm0, %v3203_v58, 0.0 }
 0x41e   : > { %v3245_v2 = vadd.f32 %v3244_v0, %v3243_v8  ;;  %v2857_v50 = vpop.f32.mrf.mxu0  ;;  %v3011_v20 = vpop.f32.mrf.mxu1  ;;  %v2670_v29 = vadd.f32 %v2669_v3, %v2474_v60  ;;  %v5842_v60 = vld [vmem:[#allocation13_spill] sm:$0xff] }
 0x41f   : > { %v2858_v9 = vadd.f32 %v2857_v50, %v2658_v17 }
 0x420   : > { %2557 = vmatmul.f32.gmra.mxu2 %v5824_v16  ;;  %2776 = vmatmul.f32.gmra.mxu3 %v5828_v46 }
 0x421   : > { %v3008_v57 = vadd.f32 %v3007_v59, %v2858_v9  ;;  %2920 = vmatmul.f32.gmra.mxu0 %v5826_v19  ;;  %3074 = vmatmul.f32.gmra.mxu1 %v5829_v32  ;;  %v2313_v19 = vadd.f32 %v5837_v52, %v5836_v45  ;;  %v5845_v45 = vld [vmem:[#allocation18_spill] sm:$0xff]  ;;  %v5846_v52 = vld [vmem:[#allocation17_spill] sm:$0xff] }
 0x423   : > { %3101 = vst.msk [vmem:[%s5408_s14 + $0x58] sm:$0xff] %vm214_vm0, %v3008_v57  ;;  %v3143_v38 = vsel %vm214_vm0, %v3008_v57, 0.0  ;;  %v3204_v55 = vmul.f32 %v3008_v57, %v3008_v57  ;;  %v2478_v23 = vpop.f32.mrf.mxu2  ;;  %v2681_v10 = vpop.f32.mrf.mxu3  ;;  %v5840_v57 = vld [vmem:[#allocation11_spill] sm:$0xff] }
 0x424   : > { %v3144_v15 = vadd.f32 %v3143_v38, %v3142_v53  ;;  %v2479_v43 = vadd.f32 %v2478_v23, %v2309_v47  ;;  %v5838_v53 = vld [vmem:[#allocation9_spill] sm:$0xff]  ;;  %v5843_v47 = vld [vmem:[#allocation16_spill] sm:$0xff] }
 0x425   : > { %v3246_v6 = vsel %vm214_vm0, %v3204_v55, 0.0 }
 0x426   : > { %v3247_v22 = vadd.f32 %v3246_v6, %v3245_v2  ;;  %v2861_v7 = vpop.f32.mrf.mxu0  ;;  %v3015_v49 = vpop.f32.mrf.mxu1  ;;  %v2676_v34 = vadd.f32 %v2675_v4, %v2479_v43 }
 0x427   : > { %v2862_v37 = vadd.f32 %v2861_v7, %v2664_v30 }
 0x428   : > { %2562 = vmatmul.f32.gmra.mxu2 %v5827_v36 }
 0x429   : > { %v3012_v12 = vadd.f32 %v3011_v20, %v2862_v37  ;;  %2924 = vmatmul.f32.gmra.mxu0 %v5829_v32  ;;  %3078 = vmatmul.f32.gmra.mxu1 %v5832_v40  ;;  %v2317_v32 = vadd.f32 %v5840_v57, %v5839_v41  ;;  %v5841_v37 = vld [vmem:[#allocation14_spill] sm:$0xff]  ;;  %v5848_v41 = vld [vmem:[#allocation19_spill] sm:$0xff] }
 0x42b   : > { %3102 = vst.msk [vmem:[%s5408_s14 + $0x60] sm:$0xff] %vm214_vm0, %v3012_v12  ;;  %v3145_v24 = vsel %vm214_vm0, %v3012_v12, 0.0  ;;  %v3205_v61 = vmul.f32 %v3012_v12, %v3012_v12  ;;  %v2483_v35 = vpop.f32.mrf.mxu2  ;;  %v2687_v11 = vpop.f32.mrf.mxu3  ;;  %v2321_v12 = vadd.f32 %v5842_v60, %v5841_v37  ;;  %v5850_v37 = vld [vmem:[#allocation21_spill] sm:$0xff] }
 0x42c   : > { %v3146_v54 = vadd.f32 %v3145_v24, %v3144_v15  ;;  %v2484_v58 = vadd.f32 %v2483_v35, %v2313_v19  ;;  %v2329_v19 = vadd.f32 %v5846_v52, %v5845_v45 }
 0x42d   : > { %v3248_v21 = vsel %vm214_vm0, %v3205_v61, 0.0 }
 0x42e   : > { %v3249_v13 = vadd.f32 %v3248_v21, %v3247_v22  ;;  %v2865_v62 = vpop.f32.mrf.mxu0  ;;  %v3019_v28 = vpop.f32.mrf.mxu1  ;;  %v2682_v25 = vadd.f32 %v2681_v10, %v2484_v58 }
 0x42f   : > { %v2866_v44 = vadd.f32 %v2865_v62, %v2670_v29 }
 0x431   : > { %v3016_v27 = vadd.f32 %v3015_v49, %v2866_v44  ;;  %2928 = vmatmul.f32.gmra.mxu0 %v5832_v40  ;;  %3082 = vmatmul.f32.gmra.mxu1 %v5835_v26  ;;  %v5844_v44 = vld [vmem:[#allocation15_spill] sm:$0xff] }
 0x432   : > { %v2325_v43 = vadd.f32 %v5844_v44, %v5843_v47  ;;  %v5852_v47 = vld [vmem:[#allocation23_spill] sm:$0xff] }
 0x433   : > { %3103 = vst.msk [vmem:[%s5408_s14 + $0x68] sm:$0xff] %vm214_vm0, %v3016_v27  ;;  %v3147_v51 = vsel %vm214_vm0, %v3016_v27, 0.0  ;;  %v3206_v56 = vmul.f32 %v3016_v27, %v3016_v27  ;;  %v2488_v3 = vpop.f32.mrf.mxu2  ;;  %v2693_v8 = vpop.f32.mrf.mxu3 }
 0x434   : > { %v3148_v39 = vadd.f32 %v3147_v51, %v3146_v54  ;;  %v2489_v55 = vadd.f32 %v2488_v3, %v2317_v32 }
 0x435   : > { %v3250_v59 = vsel %vm214_vm0, %v3206_v56, 0.0 }
 0x436   : > { %v3251_v48 = vadd.f32 %v3250_v59, %v3249_v13  ;;  %v2869_v16 = vpop.f32.mrf.mxu0  ;;  %v3023_v1 = vpop.f32.mrf.mxu1  ;;  %v2688_v49 = vadd.f32 %v2687_v11, %v2489_v55 }
 0x437   : > { %v2870_v31 = vadd.f32 %v2869_v16, %v2676_v34 }
 0x439   : > { %v3020_v33 = vadd.f32 %v3019_v28, %v2870_v31  ;;  %2932 = vmatmul.f32.gmra.mxu0 %v5835_v26  ;;  %3086 = vmatmul.f32.gmra.mxu1 %v5838_v53 }
 0x43b   : > { %3104 = vst.msk [vmem:[%s5408_s14 + $0x70] sm:$0xff] %vm214_vm0, %v3020_v33  ;;  %v3149_v0 = vsel %vm214_vm0, %v3020_v33, 0.0  ;;  %v3207_v17 = vmul.f32 %v3020_v33, %v3020_v33  ;;  %v2493_v4 = vpop.f32.mrf.mxu2  ;;  %v2699_v2 = vpop.f32.mrf.mxu3 }
 0x43c   : > { %v3150_v50 = vadd.f32 %v3149_v0, %v3148_v39  ;;  %v2494_v24 = vadd.f32 %v2493_v4, %v2321_v12 }
 0x43d   : > { %v3252_v20 = vsel %vm214_vm0, %v3207_v17, 0.0 }
 0x43e   : > { %v3253_v9 = vadd.f32 %v3252_v20, %v3251_v48  ;;  %v2873_v36 = vpop.f32.mrf.mxu0  ;;  %v3027_v46 = vpop.f32.mrf.mxu1  ;;  %v2694_v62 = vadd.f32 %v2693_v8, %v2494_v24 }
 0x43f   : > { %v2874_v38 = vadd.f32 %v2873_v36, %v2682_v25 }
 0x441   : > { %v3024_v23 = vadd.f32 %v3023_v1, %v2874_v38  ;;  %2936 = vmatmul.f32.gmra.mxu0 %v5838_v53 }
 0x443   : > { %3105 = vst.msk [vmem:[%s5408_s14 + $0x78] sm:$0xff] %vm214_vm0, %v3024_v23  ;;  %v3151_v15 = vsel %vm214_vm0, %v3024_v23, 0.0  ;;  %v3208_v6 = vmul.f32 %v3024_v23, %v3024_v23  ;;  %v2498_v30 = vpop.f32.mrf.mxu2  ;;  %v2705_v22 = vpop.f32.mrf.mxu3 }
 0x444   : > { %v3152_v10 = vadd.f32 %v3151_v15, %v3150_v50  ;;  %v2499_v26 = vadd.f32 %v2498_v30, %v2325_v43 }
 0x445   : > { %v3254_v7 = vsel %vm214_vm0, %v3208_v6, 0.0 }
 0x446   : > { %v3255_v14 = vadd.f32 %v3254_v7, %v3253_v9  ;;  %v2877_v18 = vpop.f32.mrf.mxu0  ;;  %v3031_v63 = vpop.f32.mrf.mxu1  ;;  %v2700_v8 = vadd.f32 %v2699_v2, %v2499_v26 }
 0x447   : > { %v2878_v40 = vadd.f32 %v2877_v18, %v2688_v49 }
 0x449   : > { %v3028_v61 = vadd.f32 %v3027_v46, %v2878_v40  ;;  %v5847_v46 = vld [vmem:[#allocation20_spill] sm:$0xff] }
 0x44a   : > { %v2333_v57 = vadd.f32 %v5848_v41, %v5847_v46  ;;  %v5857_v46 = vld [vmem:[#allocation30_spill] sm:$0xff]  ;;  %v5858_v41 = vld [vmem:[#allocation29_spill] sm:$0xff] }
 0x44b   : > { %3106 = vst.msk [vmem:[%s5408_s14 + $0x80] sm:$0xff] %vm214_vm0, %v3028_v61  ;;  %v3153_v35 = vsel %vm214_vm0, %v3028_v61, 0.0  ;;  %v3209_v54 = vmul.f32 %v3028_v61, %v3028_v61  ;;  %v2503_v21 = vpop.f32.mrf.mxu2  ;;  %v2711_v11 = vpop.f32.mrf.mxu3 }
 0x44c   : > { %v3154_v29 = vadd.f32 %v3153_v35, %v3152_v10  ;;  %v2504_v33 = vadd.f32 %v2503_v21, %v2329_v19 }
 0x44d   : > { %v3256_v13 = vsel %vm214_vm0, %v3209_v54, 0.0 }
 0x44e   : > { %v3257_v28 = vadd.f32 %v3256_v13, %v3255_v14  ;;  %v2881_v42 = vpop.f32.mrf.mxu0  ;;  %v3035_v5 = vpop.f32.mrf.mxu1  ;;  %v2706_v20 = vadd.f32 %v2705_v22, %v2504_v33  ;;  %v5855_v33 = vld [vmem:[#allocation28_spill] sm:$0xff] }
 0x44f   : > { %v2882_v27 = vadd.f32 %v2881_v42, %v2694_v62 }
 0x451   : > { %v3032_v51 = vadd.f32 %v3031_v63, %v2882_v27  ;;  %v5849_v63 = vld [vmem:[#allocation22_spill] sm:$0xff] }
 0x452   : > { %v2337_v60 = vadd.f32 %v5850_v37, %v5849_v63 }
 0x453   : > { %3107 = vst.msk [vmem:[%s5408_s14 + $0x88] sm:$0xff] %vm214_vm0, %v3032_v51  ;;  %v3155_v56 = vsel %vm214_vm0, %v3032_v51, 0.0  ;;  %v3210_v3 = vmul.f32 %v3032_v51, %v3032_v51  ;;  %v2508_v39 = vpop.f32.mrf.mxu2  ;;  %v2717_v31 = vpop.f32.mrf.mxu3 }
 0x454   : > { %v3156_v59 = vadd.f32 %v3155_v56, %v3154_v29  ;;  %v2509_v38 = vadd.f32 %v2508_v39, %v2333_v57  ;;  %v2353_v57 = vadd.f32 %v5858_v41, %v5857_v46 }
 0x455   : > { %v3258_v34 = vsel %vm214_vm0, %v3210_v3, 0.0 }
 0x456   : > { %v3259_v48 = vadd.f32 %v3258_v34, %v3257_v28  ;;  %v2885_v16 = vpop.f32.mrf.mxu0  ;;  %v3039_v1 = vpop.f32.mrf.mxu1  ;;  %v2712_v7 = vadd.f32 %v2711_v11, %v2509_v38  ;;  %v5853_v34 = vld [vmem:[#allocation26_spill] sm:$0xff] }
 0x457   : > { %v2886_v58 = vadd.f32 %v2885_v16, %v2700_v8  ;;  %v5854_v8 = vld [vmem:[#allocation25_spill] sm:$0xff] }
 0x459   : > { %v3036_v53 = vadd.f32 %v3035_v5, %v2886_v58  ;;  %v5851_v5 = vld [vmem:[#allocation24_spill] sm:$0xff] }
 0x45a   : > { %v2341_v44 = vadd.f32 %v5852_v47, %v5851_v5  ;;  %v5863_v47 = vld [vmem:[#allocation36_spill] sm:$0xff] }
 0x45b   : > { %3108 = vst.msk [vmem:[%s5408_s14 + $0x90] sm:$0xff] %vm214_vm0, %v3036_v53  ;;  %v3157_v0 = vsel %vm214_vm0, %v3036_v53, 0.0  ;;  %v3211_v17 = vmul.f32 %v3036_v53, %v3036_v53  ;;  %v2513_v4 = vpop.f32.mrf.mxu2  ;;  %v2723_v55 = vpop.f32.mrf.mxu3  ;;  %v5856_v53 = vld [vmem:[#allocation27_spill] sm:$0xff] }
 0x45c   : > { %v3158_v50 = vadd.f32 %v3157_v0, %v3156_v59  ;;  %v2514_v40 = vadd.f32 %v2513_v4, %v2337_v60  ;;  %v2349_v0 = vadd.f32 %v5856_v53, %v5855_v33 }
 0x45d   : > { %v3260_v2 = vsel %vm214_vm0, %v3211_v17, 0.0 }
 0x45e   : > { %v3261_v25 = vadd.f32 %v3260_v2, %v3259_v48  ;;  %v2889_v9 = vpop.f32.mrf.mxu0  ;;  %v3043_v36 = vpop.f32.mrf.mxu1  ;;  %v2718_v11 = vadd.f32 %v2717_v31, %v2514_v40  ;;  %v2345_v48 = vadd.f32 %v5854_v8, %v5853_v34  ;;  %v5861_v40 = vld [vmem:[#allocation34_spill] sm:$0xff] }
 0x45f   : > { %v2890_v32 = vadd.f32 %v2889_v9, %v2706_v20  ;;  %v5865_v8 = vld [vmem:[#allocation38_spill] sm:$0xff] }
 0x461   : > { %v3040_v23 = vadd.f32 %v3039_v1, %v2890_v32 }
 0x463   : > { %3109 = vst.msk [vmem:[%s5408_s14 + $0x98] sm:$0xff] %vm214_vm0, %v3040_v23  ;;  %v3159_v15 = vsel %vm214_vm0, %v3040_v23, 0.0  ;;  %v3212_v6 = vmul.f32 %v3040_v23, %v3040_v23  ;;  %v2518_v30 = vpop.f32.mrf.mxu2  ;;  %v2729_v61 = vpop.f32.mrf.mxu3 }
 0x464   : > { %v3160_v10 = vadd.f32 %v3159_v15, %v3158_v50  ;;  %v2519_v27 = vadd.f32 %v2518_v30, %v2341_v44  ;;  %v5864_v44 = vld [vmem:[#allocation35_spill] sm:$0xff] }
 0x465   : > { %v3262_v22 = vsel %vm214_vm0, %v3212_v6, 0.0 }
 0x466   : > { %v3263_v49 = vadd.f32 %v3262_v22, %v3261_v25  ;;  %v2893_v14 = vpop.f32.mrf.mxu0  ;;  %v3047_v18 = vpop.f32.mrf.mxu1  ;;  %v2724_v3 = vadd.f32 %v2723_v55, %v2519_v27  ;;  %v5859_v22 = vld [vmem:[#allocation32_spill] sm:$0xff] }
 0x467   : > { %v2894_v12 = vadd.f32 %v2893_v14, %v2712_v7  ;;  %v5860_v7 = vld [vmem:[#allocation31_spill] sm:$0xff] }
 0x469   : > { %v3044_v24 = vadd.f32 %v3043_v36, %v2894_v12 }
 0x46b   : > { %3110 = vst.msk [vmem:[%s5408_s14 + $0xa0] sm:$0xff] %vm214_vm0, %v3044_v24  ;;  %v3161_v35 = vsel %vm214_vm0, %v3044_v24, 0.0  ;;  %v3213_v54 = vmul.f32 %v3044_v24, %v3044_v24  ;;  %v2523_v21 = vpop.f32.mrf.mxu2  ;;  %v2735_v56 = vpop.f32.mrf.mxu3  ;;  %v5862_v24 = vld [vmem:[#allocation33_spill] sm:$0xff] }
 0x46c   : > { %v5601_v29 = vadd.f32 %v3161_v35, %v3160_v10  ;;  %v2524_v1 = vadd.f32 %v2523_v21, %v2345_v48  ;;  %v5866_v48 = vld [vmem:[#allocation37_spill] sm:$0xff] }
 0x46d   : > { %v3264_v13 = vsel %vm214_vm0, %v3213_v54, 0.0 }
 0x46e   : > { %v5604_v62 = vadd.f32 %v3264_v13, %v3263_v49  ;;  %v2897_v28 = vpop.f32.mrf.mxu0  ;;  %v3051_v42 = vpop.f32.mrf.mxu1  ;;  %v2730_v19 = vadd.f32 %v2729_v61, %v2524_v1  ;;  %v2357_v49 = vadd.f32 %v5860_v7, %v5859_v22  ;;  %v2361_v61 = vadd.f32 %v5862_v24, %v5861_v40 }
 0x46f   : > { %v2898_v43 = vadd.f32 %v2897_v28, %v2718_v11 }
 0x471   : > { %v5608_v26 = vadd.f32 %v3047_v18, %v2898_v43  ;;  %v2365_v43 = vadd.f32 %v5864_v44, %v5863_v47  ;;  %v5869_v47 = vld [vmem:[#allocation42_spill] sm:$0xff] }
 0x473   : > { %3111 = vst.msk [vmem:[%s5408_s14 + $0xa8] sm:$0xff] %vm214_vm0, %v5608_v26  ;;  %v2528_v51 = vpop.f32.mrf.mxu2  ;;  %v2741_v4 = vpop.f32.mrf.mxu3 }
 0x474   : > { %v2529_v50 = vadd.f32 %v2528_v51, %v2349_v0 }
 0x476   : > { %v2901_v39 = vpop.f32.mrf.mxu0  ;;  %v3055_v59 = vpop.f32.mrf.mxu1  ;;  %v2736_v25 = vadd.f32 %v2735_v56, %v2529_v50  ;;  %v5867_v50 = vld [vmem:[#allocation40_spill] sm:$0xff] }
 0x477   : > { %v2902_v16 = vadd.f32 %v2901_v39, %v2724_v3 }
 0x479   : > { %v5615_v45 = vadd.f32 %v3051_v42, %v2902_v16  ;;  %v2369_v16 = vadd.f32 %v5866_v48, %v5865_v8 }
 0x47b   : > { %3112 = vst.msk [vmem:[%s5408_s14 + $0xb0] sm:$0xff] %vm214_vm0, %v5615_v45  ;;  %v2533_v52 = vpop.f32.mrf.mxu2  ;;  %v2747_v23 = vpop.f32.mrf.mxu3  ;;  %v3215_v53 = vmul.f32 %v5615_v45, %v5615_v45  ;;  %v3165_v46 = vsel %vm214_vm0, %v5615_v45, 0.0 }
 0x47c   : > { %v2534_v38 = vadd.f32 %v2533_v52, %v2353_v57 }
 0x47e   : > { %v2905_v31 = vpop.f32.mrf.mxu0  ;;  %v3059_v58 = vpop.f32.mrf.mxu1  ;;  %v2742_v6 = vadd.f32 %v2741_v4, %v2534_v38  ;;  %v3268_v38 = vsel %vm214_vm0, %v3215_v53, 0.0 }
 0x47f   : > { %v2906_v17 = vadd.f32 %v2905_v31, %v2730_v19 }
 0x481   : > { %v5622_v2 = vadd.f32 %v3055_v59, %v2906_v17  ;;  %v3163_v17 = vsel %vm214_vm0, %v5608_v26, 0.0 }
 0x483   : > { %3113 = vst.msk [vmem:[%s5408_s14 + $0xb8] sm:$0xff] %vm214_vm0, %v5622_v2  ;;  %v2538_v20 = vpop.f32.mrf.mxu2  ;;  %v2753_v37 = vpop.f32.mrf.mxu3  ;;  %v3216_v41 = vmul.f32 %v5622_v2, %v5622_v2 }
 0x484   : > { %v2539_v18 = vadd.f32 %v2538_v20, %v2357_v49  ;;  %v5868_v20 = vld [vmem:[#allocation39_spill] sm:$0xff] }
 0x485   : > { %v3270_v45 = vsel %vm214_vm0, %v3216_v41, 0.0 }
 0x486   : > { %v2909_v9 = vpop.f32.mrf.mxu0  ;;  %v3063_v36 = vpop.f32.mrf.mxu1  ;;  %v2748_v60 = vadd.f32 %v2747_v23, %v2539_v18 }
 0x487   : > { %v2910_v32 = vadd.f32 %v2909_v9, %v2736_v25  ;;  %v2373_v25 = vadd.f32 %v5868_v20, %v5867_v50 }
 0x489   : > { %v3060_v55 = vadd.f32 %v3059_v58, %v2910_v32  ;;  %v3214_v58 = vmul.f32 %v5608_v26, %v5608_v26  ;;  %v3164_v32 = vadd.f32 %v3163_v17, %v5601_v29  ;;  %v3167_v26 = vsel %vm214_vm0, %v5622_v2, 0.0 }
 0x48b   : > { %3114 = vst.msk [vmem:[%s5408_s14 + $0xc0] sm:$0xff] %vm214_vm0, %v3060_v55  ;;  %v2543_v15 = vpop.f32.mrf.mxu2  ;;  %v2759_v42 = vpop.f32.mrf.mxu3  ;;  %v3217_v23 = vmul.f32 %v3060_v55, %v3060_v55  ;;  %v3169_v7 = vsel %vm214_vm0, %v3060_v55, 0.0 }
 0x48c   : > { %v2544_v13 = vadd.f32 %v2543_v15, %v2361_v61 }
 0x48e   : > { %v2913_v30 = vpop.f32.mrf.mxu0  ;;  %v3067_v10 = vpop.f32.mrf.mxu1  ;;  %v2754_v28 = vadd.f32 %v2753_v37, %v2544_v13  ;;  %v3272_v37 = vsel %vm214_vm0, %v3217_v23, 0.0 }
 0x48f   : > { %v2914_v14 = vadd.f32 %v2913_v30, %v2742_v6 }
 0x491   : > { %v3064_v63 = vadd.f32 %v3063_v36, %v2914_v14  ;;  %v3266_v36 = vsel %vm214_vm0, %v3214_v58, 0.0 }
 0x492   : > { %v3267_v30 = vadd.f32 %v3266_v36, %v5604_v62 }
 0x493   : > { %3115 = vst.msk [vmem:[%s5408_s14 + $0xc8] sm:$0xff] %vm214_vm0, %v3064_v63  ;;  %v2548_v35 = vpop.f32.mrf.mxu2  ;;  %v2765_v52 = vpop.f32.mrf.mxu3  ;;  %v3218_v49 = vmul.f32 %v3064_v63, %v3064_v63  ;;  %v3171_v2 = vsel %vm214_vm0, %v3064_v63, 0.0 }
 0x494   : > { %v2549_v51 = vadd.f32 %v2548_v35, %v2365_v43  ;;  %v3269_v29 = vadd.f32 %v3268_v38, %v3267_v30 }
 0x495   : > { %v3274_v35 = vsel %vm214_vm0, %v3218_v49, 0.0 }
 0x496   : > { %v2917_v12 = vpop.f32.mrf.mxu0  ;;  %v3071_v21 = vpop.f32.mrf.mxu1  ;;  %v2760_v59 = vadd.f32 %v2759_v42, %v2549_v51  ;;  %v3271_v40 = vadd.f32 %v3270_v45, %v3269_v29 }
 0x497   : > { %v2918_v54 = vadd.f32 %v2917_v12, %v2748_v60 }
 0x498   : > { %v3273_v13 = vadd.f32 %v3272_v37, %v3271_v40 }
 0x499   : > { %v3068_v11 = vadd.f32 %v3067_v10, %v2918_v54  ;;  %v3166_v10 = vadd.f32 %v3165_v46, %v3164_v32 }
 0x49b   : > { %3116 = vst.msk [vmem:[%s5408_s14 + $0xd0] sm:$0xff] %vm214_vm0, %v3068_v11  ;;  %v2553_v56 = vpop.f32.mrf.mxu2  ;;  %v2771_v22 = vpop.f32.mrf.mxu3  ;;  %v3168_v14 = vadd.f32 %v3167_v26, %v3166_v10  ;;  %v3219_v18 = vmul.f32 %v3068_v11, %v3068_v11  ;;  %v3173_v55 = vsel %vm214_vm0, %v3068_v11, 0.0 }
 0x49c   : > { %v2554_v19 = vadd.f32 %v2553_v56, %v2369_v16 }
 0x49d   : > { %v3170_v62 = vadd.f32 %v3169_v7, %v3168_v14  ;;  %v3276_v42 = vsel %vm214_vm0, %v3219_v18, 0.0 }
 0x49e   : > { %v2921_v5 = vpop.f32.mrf.mxu0  ;;  %v3075_v39 = vpop.f32.mrf.mxu1  ;;  %v2766_v4 = vadd.f32 %v2765_v52, %v2554_v19 }
 0x49f   : > { %v2922_v27 = vadd.f32 %v2921_v5, %v2754_v28  ;;  %v3172_v28 = vadd.f32 %v3171_v2, %v3170_v62 }
 0x4a1   : > { %v3072_v3 = vadd.f32 %v3071_v21, %v2922_v27  ;;  %v3275_v27 = vadd.f32 %v3274_v35, %v3273_v13  ;;  %v3174_v51 = vadd.f32 %v3173_v55, %v3172_v28 }
 0x4a3   : > { %3117 = vst.msk [vmem:[%s5408_s14 + $0xd8] sm:$0xff] %vm214_vm0, %v3072_v3  ;;  %v2558_v33 = vpop.f32.mrf.mxu2  ;;  %v3220_v54 = vmul.f32 %v3072_v3, %v3072_v3  ;;  %v3175_v5 = vsel %vm214_vm0, %v3072_v3, 0.0  ;;  %v3277_v11 = vadd.f32 %v3276_v42, %v3275_v27  ;;  %v2777_v8 = vpop.f32.mrf.mxu3 }
 0x4a4   : > { %v2559_v15 = vadd.f32 %v2558_v33, %v2373_v25 }
 0x4a5   : > { %v3278_v56 = vsel %vm214_vm0, %v3220_v54, 0.0 }
 0x4a6   : > { %v2925_v34 = vpop.f32.mrf.mxu0  ;;  %v3079_v0 = vpop.f32.mrf.mxu1  ;;  %v2772_v12 = vadd.f32 %v2771_v22, %v2559_v15  ;;  %v3279_v52 = vadd.f32 %v3278_v56, %v3277_v11 }
 0x4a7   : > { %v2926_v1 = vadd.f32 %v2925_v34, %v2760_v59  ;;  %v3176_v34 = vadd.f32 %v3175_v5, %v3174_v51 }
 0x4a9   : > { %v3076_v31 = vadd.f32 %v3075_v39, %v2926_v1 }
 0x4ab   : > { %3118 = vst.msk [vmem:[%s5408_s14 + $0xe0] sm:$0xff] %vm214_vm0, %v3076_v31  ;;  %v2563_v60 = vpop.f32.mrf.mxu2  ;;  %v3221_v63 = vmul.f32 %v3076_v31, %v3076_v31  ;;  %v3177_v39 = vsel %vm214_vm0, %v3076_v31, 0.0 }
 0x4ac   : > { %v2564_v44 = vadd.f32 %v2563_v60, %v5869_v47  ;;  %v3178_v19 = vadd.f32 %v3177_v39, %v3176_v34 }
 0x4ad   : > { %v3280_v48 = vsel %vm214_vm0, %v3221_v63, 0.0 }
 0x4ae   : > { %v2929_v9 = vpop.f32.mrf.mxu0  ;;  %v3083_v24 = vpop.f32.mrf.mxu1  ;;  %v2778_v1 = vadd.f32 %v2777_v8, %v2564_v44 }
 0x4af   : > { %v2930_v57 = vadd.f32 %v2929_v9, %v2766_v4 }
 0x4b1   : > { %v3080_v6 = vadd.f32 %v3079_v0, %v2930_v57  ;;  %v3281_v0 = vadd.f32 %v3280_v48, %v3279_v52 }
 0x4b3   : > { %3119 = vst.msk [vmem:[%s5408_s14 + $0xe8] sm:$0xff] %vm214_vm0, %v3080_v6  ;;  %v3222_v59 = vmul.f32 %v3080_v6, %v3080_v6  ;;  %v3179_v3 = vsel %vm214_vm0, %v3080_v6, 0.0 }
 0x4b4   : > { %v3180_v17 = vadd.f32 %v3179_v3, %v3178_v19 }
 0x4b5   : > { %v3282_v33 = vsel %vm214_vm0, %v3222_v59, 0.0 }
 0x4b6   : > { %v2933_v61 = vpop.f32.mrf.mxu0  ;;  %v3087_v4 = vpop.f32.mrf.mxu1  ;;  %v3283_v25 = vadd.f32 %v3282_v33, %v3281_v0 }
 0x4b7   : > { %v2934_v21 = vadd.f32 %v2933_v61, %v2772_v12 }
 0x4b9   : > { %v3084_v43 = vadd.f32 %v3083_v24, %v2934_v21 }
 0x4bb   : > { %3120 = vst.msk [vmem:[%s5408_s14 + $0xf0] sm:$0xff] %vm214_vm0, %v3084_v43  ;;  %v3223_v16 = vmul.f32 %v3084_v43, %v3084_v43  ;;  %v3181_v31 = vsel %vm214_vm0, %v3084_v43, 0.0 }
 0x4bc   : > { %v3182_v9 = vadd.f32 %v3181_v31, %v3180_v17 }
 0x4bd   : > { %v3284_v50 = vsel %vm214_vm0, %v3223_v16, 0.0 }
 0x4be   : > { %v2937_v58 = vpop.f32.mrf.mxu0  ;;  %v3285_v41 = vadd.f32 %v3284_v50, %v3283_v25 }
 0x4bf   : > { %v2938_v53 = vadd.f32 %v2937_v58, %v2778_v1 }
 0x4c1   : > { %v3088_v20 = vadd.f32 %v3087_v4, %v2938_v53 }
 0x4c3   : > { %3121 = vst.msk [vmem:[%s5408_s14 + $0xf8] sm:$0xff] %vm214_vm0, %v3088_v20  ;;  %v3183_v36 = vsel %vm214_vm0, %v3088_v20, 0.0  ;;  %v3224_v46 = vmul.f32 %v3088_v20, %v3088_v20 }
 0x4c4   : > { %v3184_v57 = vadd.f32 %v3183_v36, %v3182_v9 }
 0x4c5   : > { %v3286_v32 = vsel %vm214_vm0, %v3224_v46, 0.0 }
 0x4c6   : > { %v3185_v38 = vrot.slane %v3184_v57, 4  ;;  %v3287_v26 = vadd.f32 %v3286_v32, %v3285_v41 }
 0x4c8   : > { %v3186_v23 = vadd.f32 %v3185_v38, %v3184_v57  ;;  %v3288_v15 = vrot.slane %v3287_v26, 4 }
 0x4ca   : > { %v3187_v6 = vrot.slane %v3186_v23, 2  ;;  %v3289_v30 = vadd.f32 %v3288_v15, %v3287_v26 }
 0x4cc   : > { %v3188_v10 = vadd.f32 %v3187_v6, %v3186_v23  ;;  %v3290_v22 = vrot.slane %v3289_v30, 2 }
 0x4ce   : > { %v3189_v45 = vrot.slane %v3188_v10, 1  ;;  %v3291_v7 = vadd.f32 %v3290_v22, %v3289_v30 }
 0x4d0   : > { %v3190_v49 = vadd.f32 %v3189_v45, %v3188_v10  ;;  %v3292_v29 = vrot.slane %v3291_v7, 1 }
 0x4d2   : > { %3192 = vst.msk [vmem:[%s181_s18] sm:$0x1] %vm3191_vm11, %v3190_v49  ;;  %v3293_v14 = vadd.f32 %v3292_v29, %v3291_v7 }
 0x4d4   : > { %3294 = vst.msk [vmem:[%s181_s18 + $0x1] sm:$0x1] %vm3191_vm11, %v3293_v14 }
 0x4d5 PF: > { %s14_s12 = sadd.s32 1, %s3618_s12  }
 0x4d6   : > { %p11_p4 = scmp.ge.s32.totalorder %s14_s12, 4  }
 0x4d8   :  { %13 = sbr.rel (!%p11_p4) target bundleno = 1 (0x1), region = 72 }

// kernel: _lambda_.4
= control target key start
LH: loop header
LB: loop body
LE: loop exit
PB: predicated region body
PF: predicated region fallthrough
CT: control target
= control target key end

     0   :  { %s3839_s23 = smov 0   ;;  %s6061_s0 = inlined_call_operand.vmem [shape: f32[2,16,16,4], index: 0, kind: input, shape index: {}]   ;;  %s6062_s1 = inlined_call_operand.vmem [shape: f32[1,4], index: 1, kind: input, shape index: {}]   ;;  %s6063_s2 = inlined_call_operand.vmem [shape: f32[1,4], index: 2, kind: input, shape index: {}]   ;;  %s6064_s3 = inlined_call_operand.<no memory space> [shape: f32[1,1], index: 3, kind: input, shape index: {}]   ;;  %s6065_s4 = inlined_call_operand.vmem [shape: f32[36,4], index: 4, kind: input, shape index: {}]   ;;  %s6066_s5 = inlined_call_operand.vmem [shape: f32[2,16,16,4], index: 5, kind: output, shape index: {0}]   ;;  %s6067_s6 = inlined_call_operand.vmem [shape: f32[2,2,4], index: 6, kind: output, shape index: {1}]  }
   0x1   :  { %12 = sst [smem:[#allocation4]] %s6064_s3 }
   0x2 LB: > { %s3741_s24 = sadd.s32 4294967295, %s3790_s23   ;;  %p3745_p0 = scmp.ge.s32.totalorder %s3790_s23, 1  ;;  %s3790_s23 = sphi %s3839_s23, %s18_s23  }
   0x3   : > { %p216_p1 = scmp.lt.s32.totalorder %s3790_s23, 3 }
   0x5   : > { %p217_p2 = pnand %p3745_p0, %p216_p1 }
   0x7   : > { %220 = sbr.rel (%p217_p2) target bundleno = 1277 (0x4fd), region = 40 }
   0xc   : > { %p250_p3 = scmp.lt.s32.totalorder %s3741_s24, 1  ;;  %s368_s25 = sld [smem:[#allocation4]]  ;;  %vm508_vm0 = vcmask 24576   ;;  %v3852_v0 = vld [vmem:[%s6062_s1] ss:$0 sm:$0xff]  ;;  %vm467_vm1 = vcmask 31744  }
   0xd   : > { %v3792_v1 = vmov 0.0   ;;  %v3869_v2 = vld [vmem:[%s6063_s2] ss:$0 sm:$0xff]  ;;  %s3793_s9 = smov 4   ;;  %s3794_s10 = smov 8  }
   0xe   : > { %s6239_s24 = smov (!%p250_p3, %s3741_s24), 1  ;;  %511 = vst.msk [vmem:[#allocation2 + $0x30] sm:$0x1] %vm508_vm0, %v3792_v1  ;;  %s3795_s11 = smov 12  }
   0xf   : > { %s3753_s27 = sshll.u32 %s6239_s24, 8  ;;  %500 = vst.msk [vmem:[#allocation2] sm:$0xff] %vm467_vm1, %v3792_v1  ;;  %s3796_s12 = smov 24  }
  0x10   : > { %s3864_s30 = scalar_lea.vmem %s6061_s0, %s3753_s27  ;;  %501 = vst.msk [vmem:[#allocation2 + $0x8] sm:$0xff] %vm467_vm1, %v3792_v1  ;;  %s3797_s13 = smov 20  }
  0x11   : > { %v266_v3 = vld [vmem:[%s3864_s30 + $0x10] sm:$0xff]  ;;  %505 = vst.msk [vmem:[#allocation2 + $0x198] sm:$0xff] %vm467_vm1, %v3792_v1  ;;  %v264_v10 = vld [vmem:[%s3864_s30] sm:$0xff]  ;;  %v267_v11 = vld [vmem:[%s3864_s30 + $0x18] sm:$0xff]  ;;  %s3798_s14 = smov 16   ;;  %s3799_s15 = smov 32  }
  0x12   : > { %v302_v4 = vmul.f32 %v3852_v0, %v266_v3  ;;  %506 = vst.msk [vmem:[#allocation2 + $0x1a0] sm:$0xff] %vm467_vm1, %v3792_v1  ;;  %v3879_v5 = vstv %s368_s25  ;;  %v265_v12 = vld [vmem:[%s3864_s30 + $0x8] sm:$0xff]  ;;  %v300_v13 = vmul.f32 %v3852_v0, %v264_v10  ;;  %v270_v14 = vld [vmem:[%s3864_s30 + $0x30] sm:$0xff]  ;;  %v303_v15 = vmul.f32 %v3852_v0, %v267_v11  ;;  %v271_v17 = vld [vmem:[%s3864_s30 + $0x38] sm:$0xff]  ;;  %s3800_s16 = smov 28   ;;  %s5743_s7 = scalar_lea.vmem %s6066_s5, %s3753_s27 }
  0x13   : > { %510 = vst.msk [vmem:[#allocation2 + $0x18] sm:$0x1] %vm508_vm0, %v3792_v1  ;;  %v301_v16 = vmul.f32 %v3852_v0, %v265_v12  ;;  %v306_v18 = vmul.f32 %v3852_v0, %v270_v14  ;;  %v274_v19 = vld [vmem:[%s3864_s30 + $0x50] sm:$0xff]  ;;  %v307_v22 = vmul.f32 %v3852_v0, %v271_v17  ;;  %v272_v23 = vld [vmem:[%s3864_s30 + $0x40] sm:$0xff]  ;;  %v273_v26 = vld [vmem:[%s3864_s30 + $0x48] sm:$0xff]  ;;  %s3750_s27 = sshll.u32 %s6239_s24, 1 }
  0x14   : > { %v338_v6 = vadd.f32 %v3869_v2, %v302_v4  ;;  %512 = vst.msk [vmem:[#allocation2 + $0x48] sm:$0x1] %vm508_vm0, %v3792_v1  ;;  %v336_v20 = vadd.f32 %v3869_v2, %v300_v13  ;;  %v339_v21 = vadd.f32 %v3869_v2, %v303_v15  ;;  %v310_v25 = vmul.f32 %v3852_v0, %v274_v19  ;;  %v268_v28 = vld [vmem:[%s3864_s30 + $0x20] sm:$0xff]  ;;  %v277_v32 = vld [vmem:[%s3864_s30 + $0x68] sm:$0xff]  ;;  %v278_v56 = vld [vmem:[%s3864_s30 + $0x70] sm:$0xff] }
  0x15   : > { %513 = vst.msk [vmem:[#allocation2 + $0x60] sm:$0x1] %vm508_vm0, %v3792_v1  ;;  %v337_v24 = vadd.f32 %v3869_v2, %v301_v16  ;;  %v342_v27 = vadd.f32 %v3869_v2, %v306_v18  ;;  %v308_v30 = vmul.f32 %v3852_v0, %v272_v23  ;;  %v276_v31 = vld [vmem:[%s3864_s30 + $0x60] sm:$0xff]  ;;  %v343_v34 = vadd.f32 %v3869_v2, %v307_v22  ;;  %v269_v39 = vld [vmem:[%s3864_s30 + $0x28] sm:$0xff]  ;;  %v279_v57 = vld [vmem:[%s3864_s30 + $0x78] sm:$0xff] }
  0x16   : > { %vm371_vm2 = vcmp.gt.f32.partialorder %v338_v6, 0.0  ;;  %v404_v7 = vmul.f32 %v3879_v5, %v338_v6  ;;  %514 = vst.msk [vmem:[#allocation2 + $0x78] sm:$0x1] %vm508_vm0, %v3792_v1  ;;  %v402_v29 = vmul.f32 %v3879_v5, %v336_v20  ;;  %vm369_vm3 = vcmp.gt.f32.partialorder %v336_v20, 0.0  ;;  %v280_v55 = vld [vmem:[%s3864_s30 + $0x80] sm:$0xff]  ;;  %v282_v22 = vld [vmem:[%s3864_s30 + $0x90] sm:$0xff] }
  0x17   : > { %515 = vst.msk [vmem:[#allocation2 + $0x90] sm:$0x1] %vm508_vm0, %v3792_v1  ;;  %v405_v33 = vmul.f32 %v3879_v5, %v339_v21  ;;  %v309_v35 = vmul.f32 %v3852_v0, %v273_v26  ;;  %vm372_vm4 = vcmp.gt.f32.partialorder %v339_v21, 0.0  ;;  %v403_v36 = vmul.f32 %v3879_v5, %v337_v24  ;;  %v283_v23 = vld [vmem:[%s3864_s30 + $0x98] sm:$0xff] }
  0x18   : > { %v436_v8 = vsel %vm371_vm2, %v338_v6, %v404_v7  ;;  %516 = vst.msk [vmem:[#allocation2 + $0xa8] sm:$0x1] %vm508_vm0, %v3792_v1  ;;  %v346_v37 = vadd.f32 %v3869_v2, %v310_v25  ;;  %v304_v38 = vmul.f32 %v3852_v0, %v268_v28  ;;  %vm370_vm5 = vcmp.gt.f32.partialorder %v337_v24, 0.0 }
  0x19   : > { %470 = vst.msk [vmem:[#allocation2 + $0x31] sm:$0xff] %vm467_vm1, %v436_v8  ;;  %v408_v40 = vmul.f32 %v3879_v5, %v342_v27  ;;  %v312_v41 = vmul.f32 %v3852_v0, %v276_v31  ;;  %v313_v42 = vmul.f32 %v3852_v0, %v277_v32  ;;  %v434_v43 = vsel %vm369_vm3, %v336_v20, %v402_v29 }
  0x1a   : > { %517 = vst.msk [vmem:[#allocation2 + $0xc0] sm:$0x1] %vm508_vm0, %v3792_v1  ;;  %vm375_vm6 = vcmp.gt.f32.partialorder %v342_v27, 0.0  ;;  %v344_v44 = vadd.f32 %v3869_v2, %v308_v30  ;;  %v437_v45 = vsel %vm372_vm4, %v339_v21, %v405_v33  ;;  %v409_v46 = vmul.f32 %v3879_v5, %v343_v34 }
  0x1b   : > { %518 = vst.msk [vmem:[#allocation2 + $0xd8] sm:$0x1] %vm508_vm0, %v3792_v1  ;;  %v345_v47 = vadd.f32 %v3869_v2, %v309_v35  ;;  %v305_v48 = vmul.f32 %v3852_v0, %v269_v39  ;;  %v435_v49 = vsel %vm370_vm5, %v337_v24, %v403_v36  ;;  %vm376_vm7 = vcmp.gt.f32.partialorder %v343_v34, 0.0 }
  0x1c   : > { %519 = vst.msk [vmem:[#allocation2 + $0xf0] sm:$0x1] %vm508_vm0, %v3792_v1  ;;  %v412_v50 = vmul.f32 %v3879_v5, %v346_v37  ;;  %v340_v51 = vadd.f32 %v3869_v2, %v304_v38  ;;  %v440_v52 = vsel %vm375_vm6, %v342_v27, %v408_v40  ;;  %vm379_vm8 = vcmp.gt.f32.partialorder %v346_v37, 0.0  ;;  %v275_v27 = vld [vmem:[%s3864_s30 + $0x58] sm:$0xff] }
  0x1d   : > { %520 = vst.msk [vmem:[#allocation2 + $0x108] sm:$0x1] %vm508_vm0, %v3792_v1  ;;  %v348_v53 = vadd.f32 %v3869_v2, %v312_v41  ;;  %v349_v54 = vadd.f32 %v3869_v2, %v313_v42  ;;  %v410_v58 = vmul.f32 %v3879_v5, %v344_v44  ;;  %v316_v59 = vmul.f32 %v3852_v0, %v280_v55 }
  0x1e   : > { %521 = vst.msk [vmem:[#allocation2 + $0x120] sm:$0x1] %vm508_vm0, %v3792_v1  ;;  %v314_v60 = vmul.f32 %v3852_v0, %v278_v56  ;;  %v315_v61 = vmul.f32 %v3852_v0, %v279_v57  ;;  %v441_v62 = vsel %vm376_vm7, %v343_v34, %v409_v46  ;;  %vm377_vm9 = vcmp.gt.f32.partialorder %v344_v44, 0.0 }
  0x1f   : > { %522 = vst.msk [vmem:[#allocation2 + $0x138] sm:$0x1] %vm508_vm0, %v3792_v1  ;;  %v411_v63 = vmul.f32 %v3879_v5, %v345_v47  ;;  %v341_v3 = vadd.f32 %v3869_v2, %v305_v48  ;;  %v444_v4 = vsel %vm379_vm8, %v346_v37, %v412_v50  ;;  %vm378_vm10 = vcmp.gt.f32.partialorder %v345_v47, 0.0  ;;  %v284_v48 = vld [vmem:[%s3864_s30 + $0xa0] sm:$0xff] }
  0x20   : > { %v3908_v9 = vld [vmem:[#allocation2 + $0x30] sm:$0xff]  ;;  %523 = vst.msk [vmem:[#allocation2 + $0x150] sm:$0x1] %vm508_vm0, %v3792_v1  ;;  %v406_v6 = vmul.f32 %v3879_v5, %v340_v51  ;;  %v352_v7 = vadd.f32 %v3869_v2, %v316_v59  ;;  %vm373_vm11 = vcmp.gt.f32.partialorder %v340_v51, 0.0  ;;  %v414_v8 = vmul.f32 %v3879_v5, %v348_v53 }
  0x21   : > { %677 = vrot.lane.b32.xlu1 %v3908_v9, %s3793_s9  ;;  %524 = vst.msk [vmem:[#allocation2 + $0x168] sm:$0x1] %vm508_vm0, %v3792_v1  ;;  %v415_v10 = vmul.f32 %v3879_v5, %v349_v54  ;;  %v350_v11 = vadd.f32 %v3869_v2, %v314_v60  ;;  %v442_v12 = vsel %vm377_vm9, %v344_v44, %v410_v58  ;;  %vm381_vm12 = vcmp.gt.f32.partialorder %v348_v53, 0.0 }
  0x22   : > { %525 = vst.msk [vmem:[#allocation2 + $0x180] sm:$0x1] %vm508_vm0, %v3792_v1  ;;  %vm382_vm13 = vcmp.gt.f32.partialorder %v349_v54, 0.0  ;;  %v351_v13 = vadd.f32 %v3869_v2, %v315_v61  ;;  %v443_v14 = vsel %vm378_vm10, %v345_v47, %v411_v63  ;;  %v407_v15 = vmul.f32 %v3879_v5, %v341_v3  ;;  %v288_v63 = vld [vmem:[%s3864_s30 + $0xc0] sm:$0xff] }
  0x23   : > { %528 = vst.msk [vmem:[#allocation2 + $0x29] sm:$0x1] %vm508_vm0, %v3792_v1  ;;  %v438_v17 = vsel %vm373_vm11, %v340_v51, %v406_v6  ;;  %vm374_vm14 = vcmp.gt.f32.partialorder %v341_v3, 0.0  ;;  %v418_v18 = vmul.f32 %v3879_v5, %v352_v7  ;;  %v446_v19 = vsel %vm381_vm12, %v348_v53, %v414_v8  ;;  %v281_v8 = vld [vmem:[%s3864_s30 + $0x88] sm:$0xff] }
  0x24   : > { %529 = vst.msk [vmem:[#allocation2 + $0x41] sm:$0x1] %vm508_vm0, %v3792_v1  ;;  %v447_v20 = vsel %vm382_vm13, %v349_v54, %v415_v10  ;;  %vm385_vm15 = vcmp.gt.f32.partialorder %v352_v7, 0.0  ;;  %v416_v21 = vmul.f32 %v3879_v5, %v350_v11  ;;  %vm383_vm2 = vcmp.gt.f32.partialorder %v350_v11, 0.0 }
  0x25   : > { %530 = vst.msk [vmem:[#allocation2 + $0x59] sm:$0x1] %vm508_vm0, %v3792_v1  ;;  %v417_v24 = vmul.f32 %v3879_v5, %v351_v13  ;;  %v318_v25 = vmul.f32 %v3852_v0, %v282_v22  ;;  %v319_v26 = vmul.f32 %v3852_v0, %v283_v23  ;;  %v439_v29 = vsel %vm374_vm14, %v341_v3, %v407_v15  ;;  %v289_v3 = vld [vmem:[%s3864_s30 + $0xc8] sm:$0xff]  ;;  %v292_v23 = vld [vmem:[%s3864_s30 + $0xe0] sm:$0xff] }
  0x26   : > { %531 = vst.msk [vmem:[#allocation2 + $0x71] sm:$0x1] %vm508_vm0, %v3792_v1  ;;  %vm384_vm3 = vcmp.gt.f32.partialorder %v351_v13, 0.0  ;;  %v311_v30 = vmul.f32 %v3852_v0, %v275_v27  ;;  %v450_v31 = vsel %vm385_vm15, %v352_v7, %v418_v18  ;;  %v448_v34 = vsel %vm383_vm2, %v350_v11, %v416_v21 }
  0x27   : > { %532 = vst.msk [vmem:[#allocation2 + $0x89] sm:$0x1] %vm508_vm0, %v3792_v1  ;;  %v354_v32 = vadd.f32 %v3869_v2, %v318_v25  ;;  %v355_v33 = vadd.f32 %v3869_v2, %v319_v26  ;;  %v449_v37 = vsel %vm384_vm3, %v351_v13, %v417_v24  ;;  %v320_v50 = vmul.f32 %v3852_v0, %v284_v48  ;;  %v290_v24 = vld [vmem:[%s3864_s30 + $0xd0] sm:$0xff]  ;;  %v291_v26 = vld [vmem:[%s3864_s30 + $0xd8] sm:$0xff] }
  0x28   : > { %533 = vst.msk [vmem:[#allocation2 + $0xa1] sm:$0x1] %vm508_vm0, %v3792_v1  ;;  %v347_v35 = vadd.f32 %v3869_v2, %v311_v30  ;;  %v324_v6 = vmul.f32 %v3852_v0, %v288_v63  ;;  %v325_v7 = vmul.f32 %v3852_v0, %v289_v3  ;;  %v317_v10 = vmul.f32 %v3852_v0, %v281_v8 }
  0x29   : > { %534 = vst.msk [vmem:[#allocation2 + $0xb9] sm:$0x1] %vm508_vm0, %v3792_v1  ;;  %v420_v38 = vmul.f32 %v3879_v5, %v354_v32  ;;  %v421_v39 = vmul.f32 %v3879_v5, %v355_v33  ;;  %vm387_vm4 = vcmp.gt.f32.partialorder %v354_v32, 0.0  ;;  %vm388_vm5 = vcmp.gt.f32.partialorder %v355_v33, 0.0 }
  0x2a   : > { %535 = vst.msk [vmem:[#allocation2 + $0xd1] sm:$0x1] %vm508_vm0, %v3792_v1  ;;  %v413_v40 = vmul.f32 %v3879_v5, %v347_v35  ;;  %vm380_vm6 = vcmp.gt.f32.partialorder %v347_v35, 0.0  ;;  %v356_v53 = vadd.f32 %v3869_v2, %v320_v50  ;;  %v360_v11 = vadd.f32 %v3869_v2, %v324_v6 }
  0x2b   : > { %536 = vst.msk [vmem:[#allocation2 + $0xe9] sm:$0x1] %vm508_vm0, %v3792_v1  ;;  %v452_v41 = vsel %vm387_vm4, %v354_v32, %v420_v38  ;;  %v453_v42 = vsel %vm388_vm5, %v355_v33, %v421_v39  ;;  %v353_v13 = vadd.f32 %v3869_v2, %v317_v10  ;;  %v328_v25 = vmul.f32 %v3852_v0, %v292_v23 }
  0x2c   : > { %537 = vst.msk [vmem:[#allocation2 + $0x101] sm:$0x1] %vm508_vm0, %v3792_v1  ;;  %v445_v44 = vsel %vm380_vm6, %v347_v35, %v413_v40  ;;  %vm389_vm8 = vcmp.gt.f32.partialorder %v356_v53, 0.0  ;;  %v422_v57 = vmul.f32 %v3879_v5, %v356_v53  ;;  %vm393_vm10 = vcmp.gt.f32.partialorder %v360_v11, 0.0 }
  0x2d   : > { %538 = vst.msk [vmem:[#allocation2 + $0x119] sm:$0x1] %vm508_vm0, %v3792_v1  ;;  %v419_v18 = vmul.f32 %v3879_v5, %v353_v13  ;;  %vm386_vm12 = vcmp.gt.f32.partialorder %v353_v13, 0.0  ;;  %v326_v27 = vmul.f32 %v3852_v0, %v290_v24  ;;  %vm769_vm6 = vcmask 64544  }
  0x2e   : > { %539 = vst.msk [vmem:[#allocation2 + $0x131] sm:$0x1] %vm508_vm0, %v3792_v1 }
  0x2f   : > { %540 = vst.msk [vmem:[#allocation2 + $0x149] sm:$0x1] %vm508_vm0, %v3792_v1  ;;  %v451_v22 = vsel %vm386_vm12, %v353_v13, %v419_v18  ;;  %v362_v32 = vadd.f32 %v3869_v2, %v326_v27  ;;  %v546_v27 = vld [vmem:[#allocation2 + $0x8] sm:$0xff]  ;;  %vm1542_vm12 = vcmask 195744  }
  0x30   : > { %541 = vst.msk [vmem:[#allocation2 + $0x161] sm:$0x1] %vm508_vm0, %v3792_v1 }
  0x31   : > { %542 = vst.msk [vmem:[#allocation2 + $0x179] sm:$0x1] %vm508_vm0, %v3792_v1  ;;  %vm395_vm14 = vcmp.gt.f32.partialorder %v362_v32, 0.0 }
  0x32   : > { %543 = vst.msk [vmem:[#allocation2 + $0x191] sm:$0x1] %vm508_vm0, %v3792_v1 }
  0x33   : > { %468 = vst.msk [vmem:[#allocation2 + $0x19] sm:$0xff] %vm467_vm1, %v434_v43 }
  0x34   : > { %509 = vst.msk [vmem:[#allocation2] sm:$0x1] %vm508_vm0, %v3792_v1 }
  0x35   : > { %526 = vst.msk [vmem:[#allocation2 + $0x198] sm:$0x1] %vm508_vm0, %v3792_v1 }
  0x36   : > { %471 = vst.msk [vmem:[#allocation2 + $0x39] sm:$0xff] %vm467_vm1, %v437_v45  ;;  %v286_v45 = vld [vmem:[%s3864_s30 + $0xb0] sm:$0xff] }
  0x37   : > { %469 = vst.msk [vmem:[#allocation2 + $0x21] sm:$0xff] %vm467_vm1, %v435_v49  ;;  %v322_v47 = vmul.f32 %v3852_v0, %v286_v45  ;;  %v285_v49 = vld [vmem:[%s3864_s30 + $0xa8] sm:$0xff]  ;;  %v295_v45 = vld [vmem:[%s3864_s30 + $0xf8] sm:$0xff] }
  0x38   : > { %474 = vst.msk [vmem:[#allocation2 + $0x61] sm:$0xff] %vm467_vm1, %v440_v52  ;;  %v321_v51 = vmul.f32 %v3852_v0, %v285_v49  ;;  %v331_v48 = vmul.f32 %v3852_v0, %v295_v45  ;;  %v287_v49 = vld [vmem:[%s3864_s30 + $0xb8] sm:$0xff] }
  0x39   : > { %475 = vst.msk [vmem:[#allocation2 + $0x69] sm:$0xff] %vm467_vm1, %v441_v62  ;;  %v358_v52 = vadd.f32 %v3869_v2, %v322_v47  ;;  %v454_v62 = vsel %vm389_vm8, %v356_v53, %v422_v57  ;;  %v323_v50 = vmul.f32 %v3852_v0, %v287_v49  ;;  %vm963_vm8 = vcmask 97344  }
  0x3a   : > { %v4019_v16 = vld [vmem:[#allocation2 + $0x18] sm:$0xff]  ;;  %478 = vst.msk [vmem:[#allocation2 + $0x91] sm:$0xff] %vm467_vm1, %v444_v4  ;;  %v357_v54 = vadd.f32 %v3869_v2, %v321_v51  ;;  %v367_v53 = vadd.f32 %v3869_v2, %v331_v48 }
  0x3b   : > { %673 = vrot.lane.b32.xlu0 %v4019_v16, %s3793_s9  ;;  %476 = vst.msk [vmem:[#allocation2 + $0x79] sm:$0xff] %vm467_vm1, %v442_v12  ;;  %v424_v56 = vmul.f32 %v3879_v5, %v358_v52  ;;  %vm391_vm7 = vcmp.gt.f32.partialorder %v358_v52, 0.0  ;;  %v361_v12 = vadd.f32 %v3869_v2, %v325_v7 }
  0x3c   : > { %477 = vst.msk [vmem:[#allocation2 + $0x81] sm:$0xff] %vm467_vm1, %v443_v14  ;;  %vm390_vm9 = vcmp.gt.f32.partialorder %v357_v54, 0.0  ;;  %v423_v60 = vmul.f32 %v3879_v5, %v357_v54  ;;  %vm400_vm3 = vcmp.gt.f32.partialorder %v367_v53, 0.0 }
  0x3d   : > { %v4034_v28 = vld [vmem:[#allocation2 + $0x38] sm:$0xff]  ;;  %472 = vst.msk [vmem:[#allocation2 + $0x49] sm:$0xff] %vm467_vm1, %v438_v17  ;;  %v456_v59 = vsel %vm391_vm7, %v358_v52, %v424_v56  ;;  %v427_v17 = vmul.f32 %v3879_v5, %v361_v12  ;;  %vm394_vm11 = vcmp.gt.f32.partialorder %v361_v12, 0.0  ;;  %v359_v56 = vadd.f32 %v3869_v2, %v323_v50 }
  0x3e   : > { %679 = vrot.lane.b32.xlu1 %v4034_v28, %s3793_s9  ;;  %480 = vst.msk [vmem:[#allocation2 + $0xa9] sm:$0xff] %vm467_vm1, %v446_v19  ;;  %v610_v36 = vld [vmem:[#allocation2 + $0x20] sm:$0xff]  ;;  %v455_v4 = vsel %vm390_vm9, %v357_v54, %v423_v60  ;;  %vm502_vm7 = vcmask 25600   ;;  %vm2288_vm9 = vcmask 1043456  }
  0x3f   : > { %481 = vst.msk [vmem:[#allocation2 + $0xb1] sm:$0xff] %vm467_vm1, %v447_v20  ;;  %v4078_v55 = vld [vmem:[#allocation2 + $0x60] sm:$0xff]  ;;  %v459_v20 = vsel %vm394_vm11, %v361_v12, %v427_v17  ;;  %vm392_vm4 = vcmp.gt.f32.partialorder %v359_v56, 0.0  ;;  %v293_v17 = vld [vmem:[%s3864_s30 + $0xe8] sm:$0xff]  ;;  %vm1349_vm11 = vcmask 162944  }
  0x40   : > { %473 = vst.msk [vmem:[#allocation2 + $0x51] sm:$0xff] %vm467_vm1, %v439_v29  ;;  %v4055_v43 = vld [vmem:[#allocation2 + $0x68] sm:$0xff]  ;;  %v327_v29 = vmul.f32 %v3852_v0, %v291_v26 }
  0x41   : > { %484 = vst.msk [vmem:[#allocation2 + $0xd9] sm:$0xff] %vm467_vm1, %v450_v31  ;;  %v4092_v61 = vld [vmem:[#allocation2 + $0x90] sm:$0xff]  ;;  %v364_v31 = vadd.f32 %v3869_v2, %v328_v25  ;;  %v545_v25 = vld [vmem:[#allocation2] sm:$0xff] }
  0x42   : > { %482 = vst.msk [vmem:[#allocation2 + $0xc1] sm:$0xff] %vm467_vm1, %v448_v34  ;;  %v4116_v15 = vld [vmem:[#allocation2 + $0x78] sm:$0xff]  ;;  %v363_v33 = vadd.f32 %v3869_v2, %v327_v29 }
  0x43   : > { %675 = vrot.lane.b32.xlu0 %v610_v36, %s3793_s9  ;;  %483 = vst.msk [vmem:[#allocation2 + $0xc9] sm:$0xff] %vm467_vm1, %v449_v37  ;;  %v4114_v14 = vld [vmem:[#allocation2 + $0x80] sm:$0xff]  ;;  %v430_v35 = vmul.f32 %v3879_v5, %v364_v31  ;;  %vm397_vm13 = vcmp.gt.f32.partialorder %v364_v31, 0.0 }
  0x44   : > { %v4059_v46 = vld [vmem:[#allocation2 + $0x48] sm:$0xff]  ;;  %486 = vst.msk [vmem:[#allocation2 + $0xf1] sm:$0xff] %vm467_vm1, %v452_v41  ;;  %vm396_vm15 = vcmp.gt.f32.partialorder %v363_v33, 0.0  ;;  %v429_v38 = vmul.f32 %v3879_v5, %v363_v33 }
  0x45   : > { %681 = vrot.lane.b32.xlu2 %v4059_v46, %s3793_s9  ;;  %487 = vst.msk [vmem:[#allocation2 + $0xf9] sm:$0xff] %vm467_vm1, %v453_v42  ;;  %v4153_v34 = vld [vmem:[#allocation2 + $0xa8] sm:$0xff]  ;;  %v462_v39 = vsel %vm397_vm13, %v364_v31, %v430_v35  ;;  %vm1735_vm13 = vcmask 228544  }
  0x46   : > { %687 = vrot.lane.b32.xlu1 %v4055_v43, %s3793_s9  ;;  %479 = vst.msk [vmem:[#allocation2 + $0x99] sm:$0xff] %vm467_vm1, %v445_v44  ;;  %v4129_v21 = vld [vmem:[#allocation2 + $0xb0] sm:$0xff]  ;;  %v461_v42 = vsel %vm396_vm15, %v363_v33, %v429_v38  ;;  %vm2121_vm15 = vcmask 294144  }
  0x47   : > { %579 = vst.msk [vmem:[#allocation3 + $0x10] sm:$0xff] %vm467_vm1, %v4019_v16  ;;  %v4085_v58 = vld [vmem:[#allocation2 + $0x50] sm:$0xff]  ;;  %v426_v16 = vmul.f32 %v3879_v5, %v360_v11 }
  0x48   : > { %581 = vst.msk [vmem:[#allocation3 + $0x20] sm:$0xff] %vm467_vm1, %v3908_v9  ;;  %v4168_v41 = vld [vmem:[#allocation2 + $0xd8] sm:$0xff]  ;;  %v294_v44 = vld [vmem:[%s3864_s30 + $0xf0] sm:$0xff] }
  0x49   : > { %580 = vst.msk [vmem:[#allocation3 + $0x18] sm:$0xff] %vm467_vm1, %v610_v36  ;;  %v458_v19 = vsel %vm393_vm10, %v360_v11, %v426_v16  ;;  %v428_v36 = vmul.f32 %v3879_v5, %v362_v32  ;;  %v4159_v37 = vld [vmem:[#allocation2 + $0xc0] sm:$0xff]  ;;  %v330_v47 = vmul.f32 %v3852_v0, %v294_v44  ;;  %vm1156_vm10 = vcmask 130144  }
  0x4a   : > { %582 = vst.msk [vmem:[#allocation3 + $0x28] sm:$0xff] %vm467_vm1, %v4034_v28  ;;  %v4183_v51 = vld [vmem:[#allocation2 + $0xc8] sm:$0xff] }
  0x4b   : > { %685 = vrot.lane.b32.xlu0 %v4078_v55, %s3793_s9  ;;  %490 = vst.msk [vmem:[#allocation2 + $0x121] sm:$0xff] %vm467_vm1, %v456_v59  ;;  %v460_v40 = vsel %vm395_vm14, %v362_v32, %v428_v36  ;;  %v366_v52 = vadd.f32 %v3869_v2, %v330_v47  ;;  %v433_v59 = vmul.f32 %v3879_v5, %v367_v53  ;;  %v4198_v60 = vld [vmem:[#allocation2 + $0xf0] sm:$0xff]  ;;  %v1012_v33 = vld [vmem:[#allocation2 + $0xc1] sm:$0xff]  ;;  %vm1928_vm14 = vcmask 261344  }
  0x4c   : > { %488 = vst.msk [vmem:[#allocation2 + $0x109] sm:$0xff] %vm467_vm1, %v454_v62  ;;  %v425_v62 = vmul.f32 %v3879_v5, %v359_v56  ;;  %v1013_v44 = vld [vmem:[#allocation2 + $0xc9] sm:$0xff]  ;;  %v4368_v48 = vld [vmem:[#allocation2 + $0xf2] sm:$0xff] }
  0x4d   : > { %683 = vrot.lane.b32.xlu2 %v4085_v58, %s3793_s9  ;;  %489 = vst.msk [vmem:[#allocation2 + $0x111] sm:$0xff] %vm467_vm1, %v455_v4  ;;  %v4144_v30 = vld [vmem:[#allocation2 + $0x98] sm:$0xff]  ;;  %v432_v57 = vmul.f32 %v3879_v5, %v366_v52  ;;  %vm399_vm2 = vcmp.gt.f32.partialorder %v366_v52, 0.0  ;;  %v465_v3 = vsel %vm400_vm3, %v367_v53, %v433_v59 }
  0x4e   : > { %693 = vrot.lane.b32.xlu1 %v4092_v61, %s3793_s9  ;;  %584 = vst.msk [vmem:[#allocation3 + $0x38] sm:$0xff] %vm467_vm1, %v4085_v58  ;;  %v4207_v4 = vld [vmem:[#allocation2 + $0xf8] sm:$0xff]  ;;  %v457_v6 = vsel %vm392_vm4, %v359_v56, %v425_v62  ;;  %v1592_v62 = vld [vmem:[#allocation2 + $0xca] sm:$0xff] }
  0x4f   : > { %583 = vst.msk [vmem:[#allocation3 + $0x30] sm:$0xff] %vm467_vm1, %v4059_v46  ;;  %v464_v63 = vsel %vm399_vm2, %v366_v52, %v432_v57  ;;  %v4394_v59 = vld [vmem:[#allocation2 + $0x31] sm:$0xff]  ;;  %vm2191_vm2 = vcmask 293888  }
  0x50   : > { %585 = vst.msk [vmem:[#allocation3 + $0x40] sm:$0xff] %vm467_vm1, %v4078_v55 }
  0x51   : > { %587 = vst.msk [vmem:[#allocation3 + $0x50] sm:$0xff] %vm467_vm1, %v4116_v15 }
  0x52   : > { %586 = vst.msk [vmem:[#allocation3 + $0x48] sm:$0xff] %vm467_vm1, %v4055_v43  ;;  %v4224_v10 = vld [vmem:[#allocation2 + $0x120] sm:$0xff] }
  0x53   : > { %691 = vrot.lane.b32.xlu0 %v4114_v14, %s3793_s9  ;;  %492 = vst.msk [vmem:[#allocation2 + $0x139] sm:$0xff] %vm467_vm1, %v458_v19  ;;  %v4213_v7 = vld [vmem:[#allocation2 + $0x108] sm:$0xff]  ;;  %v329_v19 = vmul.f32 %v3852_v0, %v293_v17 }
  0x54   : > { %493 = vst.msk [vmem:[#allocation2 + $0x141] sm:$0xff] %vm467_vm1, %v459_v20  ;;  %v4220_v8 = vld [vmem:[#allocation2 + $0x110] sm:$0xff] }
  0x55   : > { %689 = vrot.lane.b32.xlu2 %v4116_v15, %s3793_s9  ;;  %485 = vst.msk [vmem:[#allocation2 + $0xe1] sm:$0xff] %vm467_vm1, %v451_v22  ;;  %v365_v20 = vadd.f32 %v3869_v2, %v329_v19  ;;  %v4431_v19 = vld [vmem:[#allocation2 + $0x109] sm:$0xff] }
  0x56   : > { %699 = vrot.lane.b32.xlu1 %v4129_v21, %s3793_s9  ;;  %588 = vst.msk [vmem:[#allocation3 + $0x58] sm:$0xff] %vm467_vm1, %v4114_v14 }
  0x57   : > { %590 = vst.msk [vmem:[#allocation3 + $0x68] sm:$0xff] %vm467_vm1, %v4144_v30  ;;  %v431_v22 = vmul.f32 %v3879_v5, %v365_v20  ;;  %vm398_vm5 = vcmp.gt.f32.partialorder %v365_v20, 0.0 }
  0x58   : > { %589 = vst.msk [vmem:[#allocation3 + $0x60] sm:$0xff] %vm467_vm1, %v4092_v61 }
  0x59   : > { %591 = vst.msk [vmem:[#allocation3 + $0x70] sm:$0xff] %vm467_vm1, %v4153_v34  ;;  %v463_v23 = vsel %vm398_vm5, %v365_v20, %v431_v22 }
  0x5a   : > { %593 = vst.msk [vmem:[#allocation3 + $0x80] sm:$0xff] %vm467_vm1, %v4159_v37  ;;  %v4228_v11 = vld [vmem:[#allocation2 + $0x138] sm:$0xff] }
  0x5b   : > { %697 = vrot.lane.b32.xlu0 %v4153_v34, %s3793_s9  ;;  %496 = vst.msk [vmem:[#allocation2 + $0x169] sm:$0xff] %vm467_vm1, %v462_v39  ;;  %v4232_v12 = vld [vmem:[#allocation2 + $0x140] sm:$0xff] }
  0x5c   : > { %494 = vst.msk [vmem:[#allocation2 + $0x151] sm:$0xff] %vm467_vm1, %v460_v40  ;;  %v4189_v54 = vld [vmem:[#allocation2 + $0xe0] sm:$0xff]  ;;  %v4356_v40 = vld [vmem:[#allocation2 + $0xf1] sm:$0xff] }
  0x5d   : > { %695 = vrot.lane.b32.xlu2 %v4144_v30, %s3793_s9  ;;  %495 = vst.msk [vmem:[#allocation2 + $0x159] sm:$0xff] %vm467_vm1, %v461_v42  ;;  %v4360_v42 = vld [vmem:[#allocation2 + $0xd9] sm:$0xff]  ;;  %v4391_v57 = vld [vmem:[#allocation2 + $0xe1] sm:$0xff] }
  0x5e   : > { %705 = vrot.lane.b32.xlu1 %v4168_v41, %s3793_s9  ;;  %592 = vst.msk [vmem:[#allocation3 + $0x78] sm:$0xff] %vm467_vm1, %v4129_v21  ;;  %v4372_v50 = vld [vmem:[#allocation2 + $0xda] sm:$0xff] }
  0x5f   : > { %594 = vst.msk [vmem:[#allocation3 + $0x88] sm:$0xff] %vm467_vm1, %v4183_v51 }
  0x60   : > { %596 = vst.msk [vmem:[#allocation3 + $0x98] sm:$0xff] %vm467_vm1, %v4189_v54 }
  0x61   : > { %595 = vst.msk [vmem:[#allocation3 + $0x90] sm:$0xff] %vm467_vm1, %v4168_v41 }
  0x62   : > { %597 = vst.msk [vmem:[#allocation3 + $0xa0] sm:$0xff] %vm467_vm1, %v4198_v60  ;;  %v637_v18 = vld [vmem:[#allocation2 + $0x168] sm:$0xff] }
  0x63   : > { %703 = vrot.lane.b32.xlu0 %v4183_v51, %s3793_s9  ;;  %498 = vst.msk [vmem:[#allocation2 + $0x181] sm:$0xff] %vm467_vm1, %v464_v63  ;;  %v4259_v24 = vld [vmem:[#allocation2 + $0x150] sm:$0xff] }
  0x64   : > { %499 = vst.msk [vmem:[#allocation2 + $0x189] sm:$0xff] %vm467_vm1, %v465_v3  ;;  %v4238_v13 = vld [vmem:[#allocation2 + $0x158] sm:$0xff] }
  0x65   : > { %701 = vrot.lane.b32.xlu2 %v4159_v37, %s3793_s9  ;;  %491 = vst.msk [vmem:[#allocation2 + $0x129] sm:$0xff] %vm467_vm1, %v457_v6  ;;  %v4403_v3 = vld [vmem:[#allocation2 + $0x19] sm:$0xff] }
  0x66   : > { %711 = vrot.lane.b32.xlu1 %v4207_v4, %s3793_s9  ;;  %599 = vst.msk [vmem:[#allocation3 + $0xb0] sm:$0xff] %vm467_vm1, %v4213_v7 }
  0x67   : > { %598 = vst.msk [vmem:[#allocation3 + $0xa8] sm:$0xff] %vm467_vm1, %v4207_v4 }
  0x68   : > { %600 = vst.msk [vmem:[#allocation3 + $0xb8] sm:$0xff] %vm467_vm1, %v4220_v8 }
  0x69   : > { %601 = vst.msk [vmem:[#allocation3 + $0xc0] sm:$0xff] %vm467_vm1, %v4224_v10 }
  0x6a   : > { %603 = vst.msk [vmem:[#allocation3 + $0xd0] sm:$0xff] %vm467_vm1, %v4228_v11  ;;  %v639_v5 = vld [vmem:[#allocation2 + $0x180] sm:$0xff] }
  0x6b   : > { %709 = vrot.lane.b32.xlu0 %v4198_v60, %s3793_s9  ;;  %604 = vst.msk [vmem:[#allocation3 + $0xd8] sm:$0xff] %vm467_vm1, %v4232_v12  ;;  %v640_v2 = vld [vmem:[#allocation2 + $0x188] sm:$0xff] }
  0x6c   : > { %v4242_v16 = vld [vmem:[#allocation2 + $0x128] sm:$0xff]  ;;  %606 = vst.msk [vmem:[#allocation3 + $0xe8] sm:$0xff] %vm467_vm1, %v4238_v13 }
  0x6d   : > { %707 = vrot.lane.b32.xlu2 %v4189_v54, %s3793_s9  ;;  %602 = vst.msk [vmem:[#allocation3 + $0xc8] sm:$0xff] %vm467_vm1, %v4242_v16 }
  0x6e   : > { %717 = vrot.lane.b32.xlu1 %v4224_v10, %s3793_s9  ;;  %607 = vst.msk [vmem:[#allocation3 + $0xf0] sm:$0xff] %vm467_vm1, %v637_v18 }
  0x6f   : > { %497 = vst.msk [vmem:[#allocation2 + $0x171] sm:$0xff] %vm467_vm1, %v463_v23 }
  0x70   : > { %605 = vst.msk [vmem:[#allocation3 + $0xe0] sm:$0xff] %vm467_vm1, %v4259_v24 }
  0x71   : > { %577 = vst.msk [vmem:[#allocation3] sm:$0xff] %vm467_vm1, %v545_v25 }
  0x72   : > { %578 = vst.msk [vmem:[#allocation3 + $0x8] sm:$0xff] %vm467_vm1, %v546_v27  ;;  %v4454_v27 = vld [vmem:[#allocation2 + $0x10a] sm:$0xff] }
  0x73   : > { %715 = vrot.lane.b32.xlu0 %v4220_v8, %s3793_s9  ;;  %503 = vst.msk [vmem:[#allocation2 + $0x10] sm:$0x3] %vm502_vm7, %v3792_v1 }
  0x74   : > { %507 = vst.msk [vmem:[#allocation2 + $0x1a8] sm:$0x3] %vm502_vm7, %v3792_v1 }
  0x75   : > { %713 = vrot.lane.b32.xlu2 %v4213_v7, %s3793_s9  ;;  %527 = vst.msk [vmem:[#allocation2 + $0x11] sm:$0x1] %vm508_vm0, %v3792_v1 }
  0x76   : > { %723 = vrot.lane.b32.xlu1 %v4232_v12, %s3793_s9  ;;  %v638_v0 = vld [vmem:[#allocation2 + $0x170] sm:$0xff]  ;;  %544 = vst.msk [vmem:[#allocation2 + $0x1a9] sm:$0x1] %vm508_vm0, %v3792_v1 }
  0x77   : > { %608 = vst.msk [vmem:[#allocation3 + $0xf8] sm:$0xff] %vm467_vm1, %v638_v0 }
  0x7a   : > { %v997_v23 = vld [vmem:[#allocation2 + $0x9] sm:$0xff] }
  0x7b   : > { %721 = vrot.lane.b32.xlu0 %v4228_v11, %s3793_s9 }
  0x7d   : > { %719 = vrot.lane.b32.xlu2 %v4242_v16, %s3793_s9 }
  0x7e   : > { %729 = vrot.lane.b32.xlu1 %v637_v18, %s3793_s9  ;;  %v4427_v18 = vld [vmem:[#allocation2 + $0x1a] sm:$0xff] }
  0x83   : > { %727 = vrot.lane.b32.xlu0 %v4238_v13, %s3793_s9 }
  0x85   : > { %725 = vrot.lane.b32.xlu2 %v4259_v24, %s3793_s9 }
  0x86   : > { %735 = vrot.lane.b32.xlu1 %v640_v2, %s3793_s9 }
  0x8b   : > { %733 = vrot.lane.b32.xlu0 %v639_v5, %s3793_s9 }
  0x8d   : > { %731 = vrot.lane.b32.xlu2 %v638_v0, %s3793_s9  ;;  %v4441_v0 = vld [vmem:[#allocation2 + $0x39] sm:$0xff] }
  0x8e   : > { %871 = vrot.lane.b32.xlu1 %v4059_v46, %s3794_s10 }
  0x93   : > { %869 = vrot.lane.b32.xlu0 %v4034_v28, %s3794_s10  ;;  %v678_v26 = vpop.permute.xlu1 %677 }
  0x94   : > { %772 = vst.msk [vmem:[#allocation3 + $0x10] sm:$0xff] %vm769_vm6, %v678_v26  ;;  %v4450_v26 = vld [vmem:[#allocation2 + $0x21] sm:$0xff] }
  0x95   : > { %867 = vrot.lane.b32.xlu2 %v3908_v9, %s3794_s10 }
  0x96   : > { %877 = vrot.lane.b32.xlu1 %v4055_v43, %s3794_s10 }
  0x9b   : > { %875 = vrot.lane.b32.xlu0 %v4078_v55, %s3794_s10 }
  0x9d   : > { %873 = vrot.lane.b32.xlu2 %v4085_v58, %s3794_s10 }
  0x9e   : > { %883 = vrot.lane.b32.xlu1 %v4092_v61, %s3794_s10 }
  0x9f   : > { %v682_v28 = vpop.permute.xlu2 %681 }
  0xa0   : > { %774 = vst.msk [vmem:[#allocation3 + $0x20] sm:$0xff] %vm769_vm6, %v682_v28 }
  0xa3   : > { %881 = vrot.lane.b32.xlu0 %v4114_v14, %s3794_s10 }
  0xa5   : > { %879 = vrot.lane.b32.xlu2 %v4116_v15, %s3794_s10 }
  0xa6   : > { %889 = vrot.lane.b32.xlu1 %v4129_v21, %s3794_s10 }
  0xa7   : > { %v684_v9 = vpop.permute.xlu2 %683 }
  0xa8   : > { %775 = vst.msk [vmem:[#allocation3 + $0x28] sm:$0xff] %vm769_vm6, %v684_v9 }
  0xab   : > { %887 = vrot.lane.b32.xlu0 %v4153_v34, %s3794_s10 }
  0xad   : > { %v674_v43 = vpop.permute.xlu0 %673  ;;  %885 = vrot.lane.b32.xlu2 %v4144_v30, %s3794_s10 }
  0xae   : > { %770 = vst.msk [vmem:[#allocation3] sm:$0xff] %vm769_vm6, %v674_v43  ;;  %895 = vrot.lane.b32.xlu1 %v4168_v41, %s3794_s10  ;;  %v1576_v43 = vld [vmem:[#allocation2 + $0xa] sm:$0xff] }
  0xaf   : > { %v690_v46 = vpop.permute.xlu2 %689 }
  0xb0   : > { %v680_v55 = vpop.permute.xlu1 %679  ;;  %778 = vst.msk [vmem:[#allocation3 + $0x40] sm:$0xff] %vm769_vm6, %v690_v46 }
  0xb1   : > { %773 = vst.msk [vmem:[#allocation3 + $0x18] sm:$0xff] %vm769_vm6, %v680_v55 }
  0xb3   : > { %893 = vrot.lane.b32.xlu0 %v4183_v51, %s3794_s10  ;;  %v4376_v51 = vld [vmem:[#allocation2 + $0xf9] sm:$0xff] }
  0xb5   : > { %v676_v58 = vpop.permute.xlu0 %675  ;;  %891 = vrot.lane.b32.xlu2 %v4159_v37, %s3794_s10  ;;  %v1591_v37 = vld [vmem:[#allocation2 + $0xc2] sm:$0xff] }
  0xb6   : > { %771 = vst.msk [vmem:[#allocation3 + $0x8] sm:$0xff] %vm769_vm6, %v676_v58  ;;  %901 = vrot.lane.b32.xlu1 %v4207_v4, %s3794_s10  ;;  %v4406_v4 = vld [vmem:[#allocation2 + $0xfa] sm:$0xff] }
  0xb7   : > { %v696_v61 = vpop.permute.xlu2 %695 }
  0xb8   : > { %v688_v14 = vpop.permute.xlu1 %687  ;;  %781 = vst.msk [vmem:[#allocation3 + $0x58] sm:$0xff] %vm769_vm6, %v696_v61  ;;  %v4469_v61 = vld [vmem:[#allocation2 + $0x3a] sm:$0xff] }
  0xb9   : > { %777 = vst.msk [vmem:[#allocation3 + $0x38] sm:$0xff] %vm769_vm6, %v688_v14 }
  0xbb   : > { %899 = vrot.lane.b32.xlu0 %v4198_v60, %s3794_s10 }
  0xbd   : > { %v686_v15 = vpop.permute.xlu0 %685  ;;  %897 = vrot.lane.b32.xlu2 %v4189_v54, %s3794_s10  ;;  %v996_v54 = vld [vmem:[#allocation2 + $0x1] sm:$0xff] }
  0xbe   : > { %776 = vst.msk [vmem:[#allocation3 + $0x30] sm:$0xff] %vm769_vm6, %v686_v15  ;;  %907 = vrot.lane.b32.xlu1 %v4224_v10, %s3794_s10  ;;  %v4473_v15 = vld [vmem:[#allocation2 + $0x22] sm:$0xff] }
  0xbf   : > { %v702_v21 = vpop.permute.xlu2 %701 }
  0xc0   : > { %v694_v29 = vpop.permute.xlu1 %693  ;;  %784 = vst.msk [vmem:[#allocation3 + $0x70] sm:$0xff] %vm769_vm6, %v702_v21  ;;  %v4477_v21 = vld [vmem:[#allocation2 + $0x111] sm:$0xff] }
  0xc1   : > { %780 = vst.msk [vmem:[#allocation3 + $0x50] sm:$0xff] %vm769_vm6, %v694_v29 }
  0xc3   : > { %905 = vrot.lane.b32.xlu0 %v4220_v8, %s3794_s10  ;;  %v1575_v8 = vld [vmem:[#allocation2 + $0x2] sm:$0xff] }
  0xc5   : > { %v692_v30 = vpop.permute.xlu0 %691  ;;  %903 = vrot.lane.b32.xlu2 %v4213_v7, %s3794_s10 }
  0xc6   : > { %779 = vst.msk [vmem:[#allocation3 + $0x48] sm:$0xff] %vm769_vm6, %v692_v30  ;;  %913 = vrot.lane.b32.xlu1 %v4232_v12, %s3794_s10 }
  0xc7   : > { %v708_v31 = vpop.permute.xlu2 %707 }
  0xc8   : > { %v700_v32 = vpop.permute.xlu1 %699  ;;  %787 = vst.msk [vmem:[#allocation3 + $0x88] sm:$0xff] %vm769_vm6, %v708_v31 }
  0xc9   : > { %783 = vst.msk [vmem:[#allocation3 + $0x68] sm:$0xff] %vm769_vm6, %v700_v32  ;;  %v4488_v32 = vld [vmem:[#allocation2 + $0x49] sm:$0xff] }
  0xcb   : > { %911 = vrot.lane.b32.xlu0 %v4228_v11, %s3794_s10  ;;  %v4415_v11 = vld [vmem:[#allocation2 + $0xe2] sm:$0xff] }
  0xcd   : > { %v698_v34 = vpop.permute.xlu0 %697  ;;  %909 = vrot.lane.b32.xlu2 %v4242_v16, %s3794_s10  ;;  %v4423_v16 = vld [vmem:[#allocation2 + $0x32] sm:$0xff] }
  0xce   : > { %782 = vst.msk [vmem:[#allocation3 + $0x60] sm:$0xff] %vm769_vm6, %v698_v34  ;;  %1092 = vrot.lane.b32.xlu1 %v1012_v33, %s3795_s11  ;;  %v2190_v33 = vld [vmem:[%s6065_s4 + $0x20] sm:$0xf] }
  0xcf   : > { %v714_v35 = vpop.permute.xlu2 %713 }
  0xd0   : > { %v706_v36 = vpop.permute.xlu1 %705  ;;  %790 = vst.msk [vmem:[#allocation3 + $0xa0] sm:$0xff] %vm769_vm6, %v714_v35  ;;  %v2290_v35 = vsel %vm2288_vm9, %v2190_v33, 0 }
  0xd1   : > { %786 = vst.msk [vmem:[#allocation3 + $0x80] sm:$0xff] %vm769_vm6, %v706_v36  ;;  %v4498_v36 = vand.u32 4294901760, %v2290_v35 }
  0xd3   : > { %917 = vrot.lane.b32.xlu0 %v4238_v13, %s3794_s10  ;;  %3755 = vmatpush.msra.mxu2 %v4498_v36 }
  0xd4   : > { %2304 = vmatpush.msra.mxu0 %v4498_v36 }
  0xd5   : > { %v704_v38 = vpop.permute.xlu0 %703  ;;  %915 = vrot.lane.b32.xlu2 %v4259_v24, %s3794_s10 }
  0xd6   : > { %785 = vst.msk [vmem:[#allocation3 + $0x78] sm:$0xff] %vm769_vm6, %v704_v38  ;;  %1671 = vrot.lane.b32.xlu1 %v1591_v37, %s3796_s12  ;;  %v2189_v38 = vld [vmem:[%s6065_s4 + $0x18] sm:$0xff] }
  0xd7   : > { %v720_v39 = vpop.permute.xlu2 %719 }
  0xd8   : > { %v712_v41 = vpop.permute.xlu1 %711  ;;  %793 = vst.msk [vmem:[#allocation3 + $0xb8] sm:$0xff] %vm769_vm6, %v720_v39 }
  0xd9   : > { %789 = vst.msk [vmem:[#allocation3 + $0x98] sm:$0xff] %vm769_vm6, %v712_v41  ;;  %v2582_v41 = vsub.f32 %v2290_v35, %v4498_v36 }
  0xdb   : > { %1478 = vrot.lane.b32.xlu0 %v4356_v40, %s3797_s13 }
  0xdd   : > { %v710_v45 = vpop.permute.xlu0 %709  ;;  %1285 = vrot.lane.b32.xlu2 %v4360_v42, %s3798_s14 }
  0xde   : > { %788 = vst.msk [vmem:[#allocation3 + $0x90] sm:$0xff] %vm769_vm6, %v710_v45  ;;  %1094 = vrot.lane.b32.xlu1 %v1013_v44, %s3795_s11  ;;  %v2188_v44 = vld [vmem:[%s6065_s4 + $0x10] sm:$0xff]  ;;  %v2583_v45 = vand.u32 4294901760, %v2582_v41 }
  0xdf   : > { %v726_v47 = vpop.permute.xlu2 %725 }
  0xe0   : > { %v718_v49 = vpop.permute.xlu1 %717  ;;  %796 = vst.msk [vmem:[#allocation3 + $0xd0] sm:$0xff] %vm769_vm6, %v726_v47 }
  0xe1   : > { %792 = vst.msk [vmem:[#allocation3 + $0xb0] sm:$0xff] %vm769_vm6, %v718_v49  ;;  %v4514_v49 = vand.u32 4294901760, %v2188_v44 }
  0xe3   : > { %2057 = vrot.lane.b32.xlu0 %v4368_v48, %s3799_s15 }
  0xe5   : > { %v716_v52 = vpop.permute.xlu0 %715  ;;  %1864 = vrot.lane.b32.xlu2 %v4372_v50, %s3800_s16 }
  0xe6   : > { %791 = vst.msk [vmem:[#allocation3 + $0xa8] sm:$0xff] %vm769_vm6, %v716_v52  ;;  %1480 = vrot.lane.b32.xlu1 %v4376_v51, %s3797_s13  ;;  %v2187_v52 = vld [vmem:[%s6065_s4 + $0x8] sm:$0xff] }
  0xe7   : > { %v732_v53 = vpop.permute.xlu2 %731 }
  0xe8   : > { %v724_v56 = vpop.permute.xlu1 %723  ;;  %799 = vst.msk [vmem:[#allocation3 + $0xe8] sm:$0xff] %vm769_vm6, %v732_v53  ;;  %v2584_v53 = vsub.f32 %v2582_v41, %v2583_v45 }
  0xe9   : > { %795 = vst.msk [vmem:[#allocation3 + $0xc8] sm:$0xff] %vm769_vm6, %v724_v56  ;;  %v4526_v56 = vsub.f32 %v2188_v44, %v4514_v49 }
  0xeb   : > { %1060 = vrot.lane.b32.xlu0 %v996_v54, %s3795_s11 }
  0xed   : > { %v722_v60 = vpop.permute.xlu0 %721  ;;  %1287 = vrot.lane.b32.xlu2 %v4391_v57, %s3798_s14 }
  0xee   : > { %794 = vst.msk [vmem:[#allocation3 + $0xc0] sm:$0xff] %vm769_vm6, %v722_v60  ;;  %1446 = vrot.lane.b32.xlu1 %v4394_v59, %s3797_s13 }
  0xef   : > { %v868_v1 = vpop.permute.xlu2 %867 }
  0xf0   : > { %v730_v63 = vpop.permute.xlu1 %729  ;;  %964 = vst.msk [vmem:[#allocation3] sm:$0xff] %vm963_vm8, %v868_v1  ;;  %v2186_v1 = vld [vmem:[%s6065_s4] sm:$0xff] }
  0xf1   : > { %798 = vst.msk [vmem:[#allocation3 + $0xe0] sm:$0xff] %vm769_vm6, %v730_v63 }
  0xf3   : > { %1673 = vrot.lane.b32.xlu0 %v1592_v62, %s3796_s12  ;;  %v2585_v62 = vand.u32 4294901760, %v2584_v53  ;;  %v4645_v53 = vld [vmem:[#allocation2 + $0x61] sm:$0xff] }
  0xf5   : > { %v728_v6 = vpop.permute.xlu0 %727  ;;  %1253 = vrot.lane.b32.xlu2 %v4403_v3, %s3798_s14  ;;  %3760 = vmatpush.msra.mxu3 %v2585_v62 }
  0xf6   : > { %797 = vst.msk [vmem:[#allocation3 + $0xd8] sm:$0xff] %vm769_vm6, %v728_v6  ;;  %2059 = vrot.lane.b32.xlu1 %v4406_v4, %s3799_s15  ;;  %2586 = vmatpush.msra.mxu1 %v2585_v62  ;;  %v4660_v62 = vld [vmem:[#allocation2 + $0x12a] sm:$0xff] }
  0xf7   : > { %v874_v7 = vpop.permute.xlu2 %873 }
  0xf8   : > { %v736_v10 = vpop.permute.xlu1 %735  ;;  %967 = vst.msk [vmem:[#allocation3 + $0x18] sm:$0xff] %vm963_vm8, %v874_v7 }
  0xf9   : > { %801 = vst.msk [vmem:[#allocation3 + $0xf8] sm:$0xff] %vm769_vm6, %v736_v10 }
  0xfb   : > { %1639 = vrot.lane.b32.xlu0 %v1575_v8, %s3796_s12  ;;  %v4545_v8 = vand.u32 4294901760, %v2186_v1 }
  0xfd   : > { %v734_v12 = vpop.permute.xlu0 %733  ;;  %1866 = vrot.lane.b32.xlu2 %v4415_v11, %s3800_s16 }
  0xfe   : > { %800 = vst.msk [vmem:[#allocation3 + $0xf0] sm:$0xff] %vm769_vm6, %v734_v12  ;;  %1096 = vrot.lane.b32.xlu1 %v4360_v42, %s3795_s11  ;;  %v4505_v42 = vand.u32 4294901760, %v2189_v38 }
  0xff   : > { %v880_v13 = vpop.permute.xlu2 %879 }
 0x100   : > { %v872_v17 = vpop.permute.xlu1 %871  ;;  %970 = vst.msk [vmem:[#allocation3 + $0x30] sm:$0xff] %vm963_vm8, %v880_v13  ;;  %v2588_v47 = vsub.f32 %v2189_v38, %v4505_v42  ;;  %3756 = vmatpush.msra.mxu2 %v4505_v42  ;;  %2306 = vmatpush.msra.mxu0 %v4505_v42 }
 0x101   : > { %966 = vst.msk [vmem:[#allocation3 + $0x10] sm:$0xff] %vm963_vm8, %v872_v17  ;;  %v2606_v17 = vsub.f32 %v2186_v1, %v4545_v8 }
 0x102   : > { %v2589_v54 = vand.u32 4294901760, %v2588_v47  ;;  %3757 = vmatpush.msra.mxu2 %v4514_v49  ;;  %2308 = vmatpush.msra.mxu0 %v4514_v49 }
 0x103   : > { %2025 = vrot.lane.b32.xlu0 %v4423_v16, %s3799_s15 }
 0x104   : > { %v2590_v63 = vsub.f32 %v2588_v47, %v2589_v54 }
 0x105   : > { %v870_v20 = vpop.permute.xlu0 %869  ;;  %1832 = vrot.lane.b32.xlu2 %v4427_v18, %s3800_s16 }
 0x106   : > { %965 = vst.msk [vmem:[#allocation3 + $0x8] sm:$0xff] %vm963_vm8, %v870_v20  ;;  %1482 = vrot.lane.b32.xlu1 %v4431_v19, %s3797_s13 }
 0x107   : > { %v886_v22 = vpop.permute.xlu2 %885 }
 0x108   : > { %v878_v24 = vpop.permute.xlu1 %877  ;;  %973 = vst.msk [vmem:[#allocation3 + $0x48] sm:$0xff] %vm963_vm8, %v886_v22 }
 0x109   : > { %969 = vst.msk [vmem:[#allocation3 + $0x28] sm:$0xff] %vm963_vm8, %v878_v24 }
 0x10b   : > { %1062 = vrot.lane.b32.xlu0 %v997_v23, %s3795_s11  ;;  %v2607_v23 = vand.u32 4294901760, %v2606_v17 }
 0x10d   : > { %v876_v2 = vpop.permute.xlu0 %875  ;;  %1289 = vrot.lane.b32.xlu2 %v4356_v40, %s3798_s14 }
 0x10e   : > { %968 = vst.msk [vmem:[#allocation3 + $0x20] sm:$0xff] %vm963_vm8, %v876_v2  ;;  %1448 = vrot.lane.b32.xlu1 %v4441_v0, %s3797_s13 }
 0x10f   : > { %v892_v5 = vpop.permute.xlu2 %891 }
 0x110   : > { %v884_v25 = vpop.permute.xlu1 %883  ;;  %976 = vst.msk [vmem:[#allocation3 + $0x60] sm:$0xff] %vm963_vm8, %v892_v5  ;;  %v2608_v5 = vsub.f32 %v2606_v17, %v2607_v23 }
 0x111   : > { %972 = vst.msk [vmem:[#allocation3 + $0x40] sm:$0xff] %vm963_vm8, %v884_v25 }
 0x112   : > { %v2609_v25 = vand.u32 4294901760, %v2608_v5 }
 0x113   : > { %1675 = vrot.lane.b32.xlu0 %v4372_v50, %s3796_s12  ;;  %v4520_v50 = vld [vmem:[#allocation2 + $0x112] sm:$0xff] }
 0x115   : > { %v882_v28 = vpop.permute.xlu0 %881  ;;  %1255 = vrot.lane.b32.xlu2 %v4450_v26, %s3798_s14 }
 0x116   : > { %971 = vst.msk [vmem:[#allocation3 + $0x38] sm:$0xff] %vm963_vm8, %v882_v28  ;;  %2061 = vrot.lane.b32.xlu1 %v4454_v27, %s3799_s15  ;;  %v4562_v28 = vld [vmem:[#allocation2 + $0x4a] sm:$0xff] }
 0x117   : > { %v898_v9 = vpop.permute.xlu2 %897 }
 0x118   : > { %v890_v46 = vpop.permute.xlu1 %889  ;;  %979 = vst.msk [vmem:[#allocation3 + $0x78] sm:$0xff] %vm963_vm8, %v898_v9 }
 0x119   : > { %975 = vst.msk [vmem:[#allocation3 + $0x58] sm:$0xff] %vm963_vm8, %v890_v46 }
 0x11b   : > { %1641 = vrot.lane.b32.xlu0 %v1576_v43, %s3796_s12 }
 0x11d   : > { %v888_v55 = vpop.permute.xlu0 %887  ;;  %1868 = vrot.lane.b32.xlu2 %v4368_v48, %s3800_s16 }
 0x11e   : > { %974 = vst.msk [vmem:[#allocation3 + $0x50] sm:$0xff] %vm963_vm8, %v888_v55  ;;  %1098 = vrot.lane.b32.xlu1 %v4391_v57, %s3795_s11  ;;  %v4528_v57 = vand.u32 4294901760, %v2187_v52 }
 0x11f   : > { %v904_v58 = vpop.permute.xlu2 %903 }
 0x120   : > { %v896_v14 = vpop.permute.xlu1 %895  ;;  %982 = vst.msk [vmem:[#allocation3 + $0x90] sm:$0xff] %vm963_vm8, %v904_v58  ;;  %v4542_v6 = vsub.f32 %v2187_v52, %v4528_v57  ;;  %3758 = vmatpush.msra.mxu2 %v4528_v57  ;;  %2310 = vmatpush.msra.mxu0 %v4528_v57  ;;  %v4588_v58 = vld [vmem:[#allocation2 + $0x51] sm:$0xff] }
 0x121   : > { %978 = vst.msk [vmem:[#allocation3 + $0x70] sm:$0xff] %vm963_vm8, %v896_v14 }
 0x122   : > { %v2601_v13 = vand.u32 4294901760, %v4542_v6  ;;  %3759 = vmatpush.msra.mxu2 %v4545_v8  ;;  %2312 = vmatpush.msra.mxu0 %v4545_v8 }
 0x123   : > { %2027 = vrot.lane.b32.xlu0 %v4469_v61, %s3799_s15 }
 0x124   : > { %v2602_v22 = vsub.f32 %v4542_v6, %v2601_v13  ;;  %2753 = vmatpush.msrb.mxu2 %v2582_v41  ;;  %3155 = vmatpush.msrb.mxu0 %v2583_v45 }
 0x125   : > { %v894_v29 = vpop.permute.xlu0 %893  ;;  %1834 = vrot.lane.b32.xlu2 %v4473_v15, %s3800_s16 }
 0x126   : > { %977 = vst.msk [vmem:[#allocation3 + $0x68] sm:$0xff] %vm963_vm8, %v894_v29  ;;  %1484 = vrot.lane.b32.xlu1 %v4477_v21, %s3797_s13  ;;  %v2603_v24 = vand.u32 4294901760, %v2602_v22  ;;  %2756 = vmatpush.msrb.mxu2 %v2588_v47  ;;  %v4687_v22 = vld [vmem:[#allocation2 + $0x62] sm:$0xff] }
 0x127   : > { %v910_v30 = vpop.permute.xlu2 %909  ;;  %3159 = vmatpush.msrb.mxu0 %v2589_v54 }
 0x128   : > { %v902_v31 = vpop.permute.xlu1 %901  ;;  %985 = vst.msk [vmem:[#allocation3 + $0xa8] sm:$0xff] %vm963_vm8, %v910_v30  ;;  %2759 = vmatpush.msrb.mxu2 %v4526_v56  ;;  %v4602_v30 = vld [vmem:[#allocation2 + $0x122] sm:$0xff] }
 0x129   : > { %981 = vst.msk [vmem:[#allocation3 + $0x88] sm:$0xff] %vm963_vm8, %v902_v31 }
 0x12a   : > { %2762 = vmatpush.msrb.mxu2 %v4542_v6 }
 0x12b   : > { %1064 = vrot.lane.b32.xlu0 %v4403_v3, %s3795_s11  ;;  %v2595_v3 = vand.u32 4294901760, %v4526_v56 }
 0x12c   : > { %2765 = vmatpush.msrb.mxu2 %v2606_v17 }
 0x12d   : > { %v900_v34 = vpop.permute.xlu0 %899  ;;  %1291 = vrot.lane.b32.xlu2 %v4376_v51, %s3798_s14  ;;  %v2596_v12 = vsub.f32 %v4526_v56, %v2595_v3  ;;  %3163 = vmatpush.msrb.mxu0 %v2595_v3 }
 0x12e   : > { %980 = vst.msk [vmem:[#allocation3 + $0x80] sm:$0xff] %vm963_vm8, %v900_v34  ;;  %1450 = vrot.lane.b32.xlu1 %v4488_v32, %s3797_s13 }
 0x12f   : > { %v916_v37 = vpop.permute.xlu2 %915  ;;  %v2597_v20 = vand.u32 4294901760, %v2596_v12  ;;  %3167 = vmatpush.msrb.mxu0 %v2601_v13 }
 0x130   : > { %v908_v39 = vpop.permute.xlu1 %907  ;;  %988 = vst.msk [vmem:[#allocation3 + $0xc0] sm:$0xff] %vm963_vm8, %v916_v37 }
 0x131   : > { %984 = vst.msk [vmem:[#allocation3 + $0xa0] sm:$0xff] %vm963_vm8, %v908_v39  ;;  %3171 = vmatpush.msrb.mxu0 %v2607_v23  ;;  %v4621_v39 = vld [vmem:[#allocation2 + $0x52] sm:$0xff] }
 0x133   : > { %1677 = vrot.lane.b32.xlu0 %v4415_v11, %s3796_s12  ;;  %v2591_v11 = vand.u32 4294901760, %v2590_v63 }
 0x135   : > { %v906_v60 = vpop.permute.xlu0 %905  ;;  %1257 = vrot.lane.b32.xlu2 %v4394_v59, %s3798_s14  ;;  %3761 = vmatpush.msra.mxu3 %v2591_v11 }
 0x136   : > { %983 = vst.msk [vmem:[#allocation3 + $0x98] sm:$0xff] %vm963_vm8, %v906_v60  ;;  %2063 = vrot.lane.b32.xlu1 %v4520_v50, %s3799_s15  ;;  %2592 = vmatpush.msra.mxu1 %v2591_v11 }
 0x137   : > { %v1286_v7 = vpop.permute.xlu2 %1285  ;;  %3762 = vmatpush.msra.mxu3 %v2597_v20 }
 0x138   : > { %v914_v10 = vpop.permute.xlu1 %913  ;;  %2598 = vmatpush.msra.mxu1 %v2597_v20 }
 0x139   : > { %987 = vst.msk [vmem:[#allocation3 + $0xb8] sm:$0xff] %vm963_vm8, %v914_v10  ;;  %3763 = vmatpush.msra.mxu3 %v2603_v24 }
 0x13a   : > { %2604 = vmatpush.msra.mxu1 %v2603_v24  ;;  %v4697_v24 = vld [vmem:[#allocation2 + $0x139] sm:$0xff] }
 0x13b   : > { %1643 = vrot.lane.b32.xlu0 %v4427_v18, %s3796_s12  ;;  %3764 = vmatpush.msra.mxu3 %v2609_v25 }
 0x13c   : > { %2610 = vmatpush.msra.mxu1 %v2609_v25 }
 0x13d   : > { %v912_v2 = vpop.permute.xlu0 %911  ;;  %1870 = vrot.lane.b32.xlu2 %v4406_v4, %s3800_s16  ;;  %2939 = vmatpush.msrb.mxu3 %v4498_v36 }
 0x13e   : > { %986 = vst.msk [vmem:[#allocation3 + $0xb0] sm:$0xff] %vm963_vm8, %v912_v2  ;;  %1100 = vrot.lane.b32.xlu1 %v4356_v40, %s3795_s11  ;;  %3313 = vmatpush.msrb.mxu1 %v4498_v36  ;;  %v4570_v40 = vld [vmem:[#allocation2 + $0x121] sm:$0xff] }
 0x13f   : > { %v1865_v18 = vpop.permute.xlu2 %1864  ;;  %2941 = vmatpush.msrb.mxu3 %v4505_v42 }
 0x140   : > { %v1093_v9 = vpop.permute.xlu1 %1092  ;;  %3315 = vmatpush.msrb.mxu1 %v4505_v42  ;;  %v4631_v42 = vld [vmem:[#allocation2 + $0x129] sm:$0xff] }
 0x141   : > { %1173 = vst.msk [vmem:[#allocation3 + $0x80] sm:$0xff] %vm1156_vm10, %v1093_v9  ;;  %2943 = vmatpush.msrb.mxu3 %v4514_v49 }
 0x142   : > { %1366 = vst.msk [vmem:[#allocation3 + $0x80] sm:$0xff] %vm1349_vm11, %v1286_v7  ;;  %3317 = vmatpush.msrb.mxu1 %v4514_v49 }
 0x143   : > { %2029 = vrot.lane.b32.xlu0 %v4562_v28, %s3799_s15  ;;  %2945 = vmatpush.msrb.mxu3 %v4528_v57 }
 0x144   : > { %3319 = vmatpush.msrb.mxu1 %v4528_v57 }
 0x145   : > { %v918_v43 = vpop.permute.xlu0 %917  ;;  %1836 = vrot.lane.b32.xlu2 %v4423_v16, %s3800_s16  ;;  %2947 = vmatpush.msrb.mxu3 %v4545_v8 }
 0x146   : > { %989 = vst.msk [vmem:[#allocation3 + $0xc8] sm:$0xff] %vm963_vm8, %v918_v43  ;;  %1486 = vrot.lane.b32.xlu1 %v4570_v40, %s3797_s13  ;;  %3321 = vmatpush.msrb.mxu1 %v4545_v8  ;;  %v4711_v43 = vld [vmem:[#allocation2 + $0x69] sm:$0xff] }
 0x147   : > { %v1288_v46 = vpop.permute.xlu2 %1287 }
 0x148   : > { %v1672_v55 = vpop.permute.xlu1 %1671 }
 0x14b   : > { %1066 = vrot.lane.b32.xlu0 %v4450_v26, %s3795_s11 }
 0x14d   : > { %v1479_v14 = vpop.permute.xlu0 %1478  ;;  %1293 = vrot.lane.b32.xlu2 %v4431_v19, %s3798_s14 }
 0x14e   : > { %1559 = vst.msk [vmem:[#allocation3 + $0x80] sm:$0xff] %vm1542_vm12, %v1479_v14  ;;  %1452 = vrot.lane.b32.xlu1 %v4588_v58, %s3797_s13 }
 0x14f   : > { %1752 = vst.msk [vmem:[#allocation3 + $0x80] sm:$0xff] %vm1735_vm13, %v1672_v55  ;;  %v1254_v29 = vpop.permute.xlu2 %1253 }
 0x150   : > { %1945 = vst.msk [vmem:[#allocation3 + $0x80] sm:$0xff] %vm1928_vm14, %v1865_v18  ;;  %v1095_v26 = vpop.permute.xlu1 %1094 }
 0x151   : > { %1174 = vst.msk [vmem:[#allocation3 + $0x88] sm:$0xff] %vm1156_vm10, %v1095_v26 }
 0x152   : > { %1367 = vst.msk [vmem:[#allocation3 + $0x88] sm:$0xff] %vm1349_vm11, %v1288_v46 }
 0x153   : > { %1679 = vrot.lane.b32.xlu0 %v4368_v48, %s3796_s12 }
 0x155   : > { %v2058_v31 = vpop.permute.xlu0 %2057  ;;  %1259 = vrot.lane.b32.xlu2 %v4441_v0, %s3798_s14 }
 0x156   : > { %2138 = vst.msk [vmem:[#allocation3 + $0x80] sm:$0xff] %vm2121_vm15, %v2058_v31  ;;  %2065 = vrot.lane.b32.xlu1 %v4602_v30, %s3799_s15  ;;  %v4726_v31 = vld [vmem:[#allocation2 + $0x13a] sm:$0xff] }
 0x157   : > { %v1867_v33 = vpop.permute.xlu2 %1866 }
 0x158   : > { %v1481_v34 = vpop.permute.xlu1 %1480 }
 0x159   : > { %1560 = vst.msk [vmem:[#allocation3 + $0x88] sm:$0xff] %vm1542_vm12, %v1481_v34 }
 0x15b   : > { %1645 = vrot.lane.b32.xlu0 %v4473_v15, %s3796_s12 }
 0x15d   : > { %v1061_v48 = vpop.permute.xlu0 %1060  ;;  %v2170_v35 = vld [vmem:[#allocation3 + $0x80] sm:$0xff]  ;;  %1872 = vrot.lane.b32.xlu2 %v4454_v27, %s3800_s16 }
 0x15e   : > { %1157 = vst.msk [vmem:[#allocation3] sm:$0xff] %vm1156_vm10, %v1061_v48  ;;  %v2241_v36 = vsel %vm2191_vm2, %v2170_v35, 0  ;;  %1102 = vrot.lane.b32.xlu1 %v4376_v51, %s3795_s11 }
 0x15f   : > { %1350 = vst.msk [vmem:[#allocation3] sm:$0xff] %vm1349_vm11, %v1254_v29  ;;  %v4619_v37 = vand.u32 4294901760, %v2241_v36  ;;  %v1833_v38 = vpop.permute.xlu2 %1832 }
 0x160   : > { %v1447_v15 = vpop.permute.xlu1 %1446 }
 0x161   : > { %2676 = vmatmul.f32.vlgmr.msra.gmra.mxu3 %v4619_v37  ;;  %1543 = vst.msk [vmem:[#allocation3] sm:$0xff] %vm1542_vm12, %v1447_v15  ;;  %v4626_v41 = vsub.f32 %v2241_v36, %v4619_v37 }
 0x163   : > { %2031 = vrot.lane.b32.xlu0 %v4621_v39, %s3799_s15  ;;  %v6075_v51 = vand.u32 4294901760, %v4626_v41 }
 0x165   : > { %v1674_v44 = vpop.permute.xlu0 %1673  ;;  %v2444_v45 = vsub.f32 %v4626_v41, %v6075_v51  ;;  %1838 = vrot.lane.b32.xlu2 %v4469_v61, %s3800_s16 }
 0x166   : > { %1753 = vst.msk [vmem:[#allocation3 + $0x88] sm:$0xff] %vm1735_vm13, %v1674_v44  ;;  %1488 = vrot.lane.b32.xlu1 %v4631_v42, %s3797_s13 }
 0x167   : > { %1946 = vst.msk [vmem:[#allocation3 + $0x88] sm:$0xff] %vm1928_vm14, %v1867_v33  ;;  %v2445_v47 = vand.u32 4294901760, %v2444_v45  ;;  %v1290_v49 = vpop.permute.xlu2 %1289 }
 0x168   : > { %v2060_v52 = vpop.permute.xlu1 %2059 }
 0x169   : > { %2446 = vmatmul.f32.vlgmr.msra.gmra.mxu2 %v2445_v47  ;;  %2139 = vst.msk [vmem:[#allocation3 + $0x88] sm:$0xff] %vm2121_vm15, %v2060_v52  ;;  %v4753_v52 = vld [vmem:[#allocation2 + $0x6a] sm:$0xff] }
 0x16b   : > { %1068 = vrot.lane.b32.xlu0 %v4394_v59, %s3795_s11 }
 0x16d   : > { %v1640_v54 = vpop.permute.xlu0 %1639  ;;  %1295 = vrot.lane.b32.xlu2 %v4477_v21, %s3798_s14 }
 0x16e   : > { %1736 = vst.msk [vmem:[#allocation3] sm:$0xff] %vm1735_vm13, %v1640_v54  ;;  %1454 = vrot.lane.b32.xlu1 %v4645_v53, %s3797_s13 }
 0x16f   : > { %1929 = vst.msk [vmem:[#allocation3] sm:$0xff] %vm1928_vm14, %v1833_v38  ;;  %v1256_v56 = vpop.permute.xlu2 %1255 }
 0x170   : > { %v1097_v57 = vpop.permute.xlu1 %1096  ;;  %v2171_v60 = vld [vmem:[#allocation3 + $0x88] sm:$0xff] }
 0x171   : > { %1175 = vst.msk [vmem:[#allocation3 + $0x90] sm:$0xff] %vm1156_vm10, %v1097_v57  ;;  %v2244_v59 = vsel %vm2191_vm2, %v2171_v60, 0 }
 0x172   : > { %1368 = vst.msk [vmem:[#allocation3 + $0x90] sm:$0xff] %vm1349_vm11, %v1290_v49  ;;  %v4656_v1 = vand.u32 4294901760, %v2244_v59 }
 0x173   : > { %1681 = vrot.lane.b32.xlu0 %v4406_v4, %s3796_s12 }
 0x174   : > { %2680 = vmatmul.f32.gmra.mxu3 %v4656_v1  ;;  %v4664_v63 = vsub.f32 %v2244_v59, %v4656_v1 }
 0x175   : > { %v2026_v3 = vpop.permute.xlu0 %2025  ;;  %1261 = vrot.lane.b32.xlu2 %v4488_v32, %s3798_s14 }
 0x176   : > { %2122 = vst.msk [vmem:[#allocation3] sm:$0xff] %vm2121_vm15, %v2026_v3  ;;  %2067 = vrot.lane.b32.xlu1 %v4660_v62, %s3799_s15  ;;  %v6074_v6 = vand.u32 4294901760, %v4664_v63 }
 0x177   : > { %v1869_v7 = vpop.permute.xlu2 %1868 }
 0x178   : > { %v1483_v4 = vpop.permute.xlu1 %1482  ;;  %v2452_v8 = vsub.f32 %v4664_v63, %v6074_v6  ;;  %v5135_v6 = vld [vmem:[#allocation2 + $0x182] sm:$0xff] }
 0x179   : > { %1561 = vst.msk [vmem:[#allocation3 + $0x90] sm:$0xff] %vm1542_vm12, %v1483_v4  ;;  %v4777_v4 = vld [vmem:[#allocation2 + $0x79] sm:$0xff] }
 0x17a   : > { %v2453_v10 = vand.u32 4294901760, %v2452_v8 }
 0x17b   : > { %1647 = vrot.lane.b32.xlu0 %v4423_v16, %s3796_s12 }
 0x17c   : > { %2454 = vmatmul.f32.gmra.mxu2 %v2453_v10 }
 0x17d   : > { %v1063_v11 = vpop.permute.xlu0 %1062  ;;  %v2154_v12 = vld [vmem:[#allocation3] sm:$0xff]  ;;  %1874 = vrot.lane.b32.xlu2 %v4520_v50, %s3800_s16 }
 0x17e   : > { %1158 = vst.msk [vmem:[#allocation3 + $0x8] sm:$0xff] %vm1156_vm10, %v1063_v11  ;;  %v2193_v13 = vsel %vm2191_vm2, %v2154_v12, 0  ;;  %1104 = vrot.lane.b32.xlu1 %v4431_v19, %s3795_s11 }
 0x17f   : > { %1351 = vst.msk [vmem:[#allocation3 + $0x8] sm:$0xff] %vm1349_vm11, %v1256_v56  ;;  %v4685_v17 = vand.u32 4294901760, %v2193_v13  ;;  %v1835_v20 = vpop.permute.xlu2 %1834  ;;  %v4763_v56 = vld [vmem:[#allocation2 + $0x141] sm:$0xff] }
 0x180   : > { %v1449_v16 = vpop.permute.xlu1 %1448 }
 0x181   : > { %2612 = vmatmul.f32.vlgmr.msra.gmra.mxu1 %v4685_v17  ;;  %1544 = vst.msk [vmem:[#allocation3 + $0x8] sm:$0xff] %vm1542_vm12, %v1449_v16  ;;  %v4692_v23 = vsub.f32 %v2193_v13, %v4685_v17 }
 0x183   : > { %2033 = vrot.lane.b32.xlu0 %v4687_v22, %s3799_s15  ;;  %v6086_v19 = vand.u32 4294901760, %v4692_v23 }
 0x185   : > { %v1676_v2 = vpop.permute.xlu0 %1675  ;;  %v2316_v5 = vsub.f32 %v4692_v23, %v6086_v19  ;;  %1840 = vrot.lane.b32.xlu2 %v4562_v28, %s3800_s16  ;;  %v5267_v19 = vld [vmem:[#allocation2 + $0xc9] sm:$0xff] }
 0x186   : > { %1754 = vst.msk [vmem:[#allocation3 + $0x90] sm:$0xff] %vm1735_vm13, %v1676_v2  ;;  %1490 = vrot.lane.b32.xlu1 %v4697_v24, %s3797_s13 }
 0x187   : > { %1947 = vst.msk [vmem:[#allocation3 + $0x90] sm:$0xff] %vm1928_vm14, %v1869_v7  ;;  %v2317_v18 = vand.u32 4294901760, %v2316_v5  ;;  %v1292_v25 = vpop.permute.xlu2 %1291 }
 0x188   : > { %v2062_v9 = vpop.permute.xlu1 %2061 }
 0x189   : > { %2318 = vmatmul.f32.vlgmr.msra.gmra.mxu0 %v2317_v18  ;;  %2140 = vst.msk [vmem:[#allocation3 + $0x90] sm:$0xff] %vm2121_vm15, %v2062_v9 }
 0x18b   : > { %1070 = vrot.lane.b32.xlu0 %v4441_v0, %s3795_s11 }
 0x18d   : > { %v1642_v46 = vpop.permute.xlu0 %1641  ;;  %1297 = vrot.lane.b32.xlu2 %v4570_v40, %s3798_s14 }
 0x18e   : > { %1737 = vst.msk [vmem:[#allocation3 + $0x8] sm:$0xff] %vm1735_vm13, %v1642_v46  ;;  %1456 = vrot.lane.b32.xlu1 %v4711_v43, %s3797_s13 }
 0x18f   : > { %1930 = vst.msk [vmem:[#allocation3 + $0x8] sm:$0xff] %vm1928_vm14, %v1835_v20  ;;  %v1258_v55 = vpop.permute.xlu2 %1257  ;;  %v4792_v20 = vld [vmem:[#allocation2 + $0x142] sm:$0xff] }
 0x190   : > { %v1099_v14 = vpop.permute.xlu1 %1098  ;;  %v2172_v29 = vld [vmem:[#allocation3 + $0x90] sm:$0xff] }
 0x191   : > { %1176 = vst.msk [vmem:[#allocation3 + $0x98] sm:$0xff] %vm1156_vm10, %v1099_v14  ;;  %v2247_v0 = vsel %vm2191_vm2, %v2172_v29, 0 }
 0x192   : > { %1369 = vst.msk [vmem:[#allocation3 + $0x98] sm:$0xff] %vm1349_vm11, %v1292_v25  ;;  %v4722_v26 = vand.u32 4294901760, %v2247_v0 }
 0x193   : > { %1683 = vrot.lane.b32.xlu0 %v4454_v27, %s3796_s12 }
 0x194   : > { %2684 = vmatmul.f32.gmra.mxu3 %v4722_v26  ;;  %v4730_v33 = vsub.f32 %v2247_v0, %v4722_v26 }
 0x195   : > { %v2028_v34 = vpop.permute.xlu0 %2027  ;;  %1263 = vrot.lane.b32.xlu2 %v4588_v58, %s3798_s14 }
 0x196   : > { %2123 = vst.msk [vmem:[#allocation3 + $0x8] sm:$0xff] %vm2121_vm15, %v2028_v34  ;;  %2069 = vrot.lane.b32.xlu1 %v4726_v31, %s3799_s15  ;;  %v6073_v48 = vand.u32 4294901760, %v4730_v33  ;;  %v4819_v34 = vld [vmem:[#allocation2 + $0x7a] sm:$0xff] }
 0x197   : > { %v1871_v35 = vpop.permute.xlu2 %1870 }
 0x198   : > { %v1485_v27 = vpop.permute.xlu1 %1484  ;;  %v2460_v36 = vsub.f32 %v4730_v33, %v6073_v48  ;;  %v831_v48 = vld [vmem:[#allocation2 + $0x180] sm:$0xff] }
 0x199   : > { %1562 = vst.msk [vmem:[#allocation3 + $0x98] sm:$0xff] %vm1542_vm12, %v1485_v27  ;;  %v4829_v27 = vld [vmem:[#allocation2 + $0x151] sm:$0xff] }
 0x19a   : > { %v2461_v38 = vand.u32 4294901760, %v2460_v36 }
 0x19b   : > { %1649 = vrot.lane.b32.xlu0 %v4469_v61, %s3796_s12 }
 0x19c   : > { %2462 = vmatmul.f32.gmra.mxu2 %v2461_v38 }
 0x19d   : > { %v1065_v15 = vpop.permute.xlu0 %1064  ;;  %v2155_v44 = vld [vmem:[#allocation3 + $0x8] sm:$0xff]  ;;  %1876 = vrot.lane.b32.xlu2 %v4602_v30, %s3800_s16 }
 0x19e   : > { %1159 = vst.msk [vmem:[#allocation3 + $0x10] sm:$0xff] %vm1156_vm10, %v1065_v15  ;;  %v2196_v45 = vsel %vm2191_vm2, %v2155_v44, 0  ;;  %1106 = vrot.lane.b32.xlu1 %v4477_v21, %s3795_s11 }
 0x19f   : > { %1352 = vst.msk [vmem:[#allocation3 + $0x10] sm:$0xff] %vm1349_vm11, %v1258_v55  ;;  %v4751_v47 = vand.u32 4294901760, %v2196_v45  ;;  %v1837_v49 = vpop.permute.xlu2 %1836 }
 0x1a0   : > { %v1451_v61 = vpop.permute.xlu1 %1450 }
 0x1a1   : > { %2616 = vmatmul.f32.gmra.mxu1 %v4751_v47  ;;  %1545 = vst.msk [vmem:[#allocation3 + $0x10] sm:$0xff] %vm1542_vm12, %v1451_v61  ;;  %v4758_v54 = vsub.f32 %v2196_v45, %v4751_v47 }
 0x1a3   : > { %2035 = vrot.lane.b32.xlu0 %v4753_v52, %s3799_s15  ;;  %v6085_v21 = vand.u32 4294901760, %v4758_v54 }
 0x1a5   : > { %v1678_v57 = vpop.permute.xlu0 %1677  ;;  %v2324_v60 = vsub.f32 %v4758_v54, %v6085_v21  ;;  %1842 = vrot.lane.b32.xlu2 %v4621_v39, %s3800_s16 }
 0x1a6   : > { %1755 = vst.msk [vmem:[#allocation3 + $0x98] sm:$0xff] %vm1735_vm13, %v1678_v57  ;;  %1492 = vrot.lane.b32.xlu1 %v4763_v56, %s3797_s13 }
 0x1a7   : > { %1948 = vst.msk [vmem:[#allocation3 + $0x98] sm:$0xff] %vm1928_vm14, %v1871_v35  ;;  %v2325_v59 = vand.u32 4294901760, %v2324_v60  ;;  %v1294_v3 = vpop.permute.xlu2 %1293 }
 0x1a8   : > { %v2064_v7 = vpop.permute.xlu1 %2063 }
 0x1a9   : > { %2326 = vmatmul.f32.gmra.mxu0 %v2325_v59  ;;  %2141 = vst.msk [vmem:[#allocation3 + $0x98] sm:$0xff] %vm2121_vm15, %v2064_v7  ;;  %v4858_v7 = vld [vmem:[#allocation2 + $0x152] sm:$0xff] }
 0x1ab   : > { %1072 = vrot.lane.b32.xlu0 %v4488_v32, %s3795_s11 }
 0x1ad   : > { %v1644_v8 = vpop.permute.xlu0 %1643  ;;  %1299 = vrot.lane.b32.xlu2 %v4631_v42, %s3798_s14 }
 0x1ae   : > { %1738 = vst.msk [vmem:[#allocation3 + $0x10] sm:$0xff] %vm1735_vm13, %v1644_v8  ;;  %1458 = vrot.lane.b32.xlu1 %v4777_v4, %s3797_s13 }
 0x1af   : > { %1931 = vst.msk [vmem:[#allocation3 + $0x10] sm:$0xff] %vm1928_vm14, %v1837_v49  ;;  %v1260_v10 = vpop.permute.xlu2 %1259  ;;  %v4843_v49 = vld [vmem:[#allocation2 + $0x81] sm:$0xff] }
 0x1b0   : > { %v1101_v11 = vpop.permute.xlu1 %1100  ;;  %v2173_v12 = vld [vmem:[#allocation3 + $0x98] sm:$0xff] }
 0x1b1   : > { %1177 = vst.msk [vmem:[#allocation3 + $0xa0] sm:$0xff] %vm1156_vm10, %v1101_v11  ;;  %v2250_v32 = vsel %vm2191_vm2, %v2173_v12, 0 }
 0x1b2   : > { %1370 = vst.msk [vmem:[#allocation3 + $0xa0] sm:$0xff] %vm1349_vm11, %v1294_v3  ;;  %v4788_v13 = vand.u32 4294901760, %v2250_v32 }
 0x1b3   : > { %1685 = vrot.lane.b32.xlu0 %v4520_v50, %s3796_s12 }
 0x1b4   : > { %2688 = vmatmul.f32.gmra.mxu3 %v4788_v13  ;;  %v4796_v16 = vsub.f32 %v2250_v32, %v4788_v13 }
 0x1b5   : > { %v2030_v2 = vpop.permute.xlu0 %2029  ;;  %1265 = vrot.lane.b32.xlu2 %v4645_v53, %s3798_s14 }
 0x1b6   : > { %2124 = vst.msk [vmem:[#allocation3 + $0x10] sm:$0xff] %vm2121_vm15, %v2030_v2  ;;  %2071 = vrot.lane.b32.xlu1 %v4792_v20, %s3799_s15  ;;  %v6072_v5 = vand.u32 4294901760, %v4796_v16 }
 0x1b7   : > { %v1873_v18 = vpop.permute.xlu2 %1872 }
 0x1b8   : > { %v1487_v50 = vpop.permute.xlu1 %1486  ;;  %v2468_v25 = vsub.f32 %v4796_v16, %v6072_v5 }
 0x1b9   : > { %1563 = vst.msk [vmem:[#allocation3 + $0xa0] sm:$0xff] %vm1542_vm12, %v1487_v50 }
 0x1ba   : > { %v2469_v9 = vand.u32 4294901760, %v2468_v25 }
 0x1bb   : > { %1651 = vrot.lane.b32.xlu0 %v4562_v28, %s3796_s12 }
 0x1bc   : > { %2470 = vmatmul.f32.gmra.mxu2 %v2469_v9 }
 0x1bd   : > { %v1067_v46 = vpop.permute.xlu0 %1066  ;;  %v2156_v55 = vld [vmem:[#allocation3 + $0x10] sm:$0xff]  ;;  %1878 = vrot.lane.b32.xlu2 %v4660_v62, %s3800_s16 }
 0x1be   : > { %1160 = vst.msk [vmem:[#allocation3 + $0x18] sm:$0xff] %vm1156_vm10, %v1067_v46  ;;  %v2199_v14 = vsel %vm2191_vm2, %v2156_v55, 0  ;;  %1108 = vrot.lane.b32.xlu1 %v4570_v40, %s3795_s11  ;;  %v4885_v55 = vld [vmem:[#allocation2 + $0x82] sm:$0xff] }
 0x1bf   : > { %1353 = vst.msk [vmem:[#allocation3 + $0x18] sm:$0xff] %vm1349_vm11, %v1260_v10  ;;  %v4817_v29 = vand.u32 4294901760, %v2199_v14  ;;  %v1839_v0 = vpop.permute.xlu2 %1838 }
 0x1c0   : > { %v1453_v28 = vpop.permute.xlu1 %1452 }
 0x1c1   : > { %2620 = vmatmul.f32.gmra.mxu1 %v4817_v29  ;;  %1546 = vst.msk [vmem:[#allocation3 + $0x18] sm:$0xff] %vm1542_vm12, %v1453_v28  ;;  %v4824_v35 = vsub.f32 %v2199_v14, %v4817_v29 }
 0x1c3   : > { %2037 = vrot.lane.b32.xlu0 %v4819_v34, %s3799_s15  ;;  %v6084_v40 = vand.u32 4294901760, %v4824_v35 }
 0x1c5   : > { %v1680_v36 = vpop.permute.xlu0 %1679  ;;  %v2332_v38 = vsub.f32 %v4824_v35, %v6084_v40  ;;  %1844 = vrot.lane.b32.xlu2 %v4687_v22, %s3800_s16 }
 0x1c6   : > { %1756 = vst.msk [vmem:[#allocation3 + $0xa0] sm:$0xff] %vm1735_vm13, %v1680_v36  ;;  %1494 = vrot.lane.b32.xlu1 %v4829_v27, %s3797_s13 }
 0x1c7   : > { %1949 = vst.msk [vmem:[#allocation3 + $0xa0] sm:$0xff] %vm1928_vm14, %v1873_v18  ;;  %v2333_v15 = vand.u32 4294901760, %v2332_v38  ;;  %v1296_v44 = vpop.permute.xlu2 %1295 }
 0x1c8   : > { %v2066_v45 = vpop.permute.xlu1 %2065 }
 0x1c9   : > { %2334 = vmatmul.f32.gmra.mxu0 %v2333_v15  ;;  %2142 = vst.msk [vmem:[#allocation3 + $0xa0] sm:$0xff] %vm2121_vm15, %v2066_v45  ;;  %v4909_v45 = vld [vmem:[#allocation2 + $0x91] sm:$0xff] }
 0x1cb   : > { %1074 = vrot.lane.b32.xlu0 %v4588_v58, %s3795_s11 }
 0x1cd   : > { %v1646_v61 = vpop.permute.xlu0 %1645  ;;  %1301 = vrot.lane.b32.xlu2 %v4697_v24, %s3798_s14 }
 0x1ce   : > { %1739 = vst.msk [vmem:[#allocation3 + $0x18] sm:$0xff] %vm1735_vm13, %v1646_v61  ;;  %1460 = vrot.lane.b32.xlu1 %v4843_v49, %s3797_s13 }
 0x1cf   : > { %1932 = vst.msk [vmem:[#allocation3 + $0x18] sm:$0xff] %vm1928_vm14, %v1839_v0  ;;  %v1262_v57 = vpop.permute.xlu2 %1261  ;;  %v4895_v0 = vld [vmem:[#allocation2 + $0x159] sm:$0xff] }
 0x1d0   : > { %v1103_v60 = vpop.permute.xlu1 %1102  ;;  %v2174_v59 = vld [vmem:[#allocation3 + $0xa0] sm:$0xff] }
 0x1d1   : > { %1178 = vst.msk [vmem:[#allocation3 + $0xa8] sm:$0xff] %vm1156_vm10, %v1103_v60  ;;  %v2253_v58 = vsel %vm2191_vm2, %v2174_v59, 0 }
 0x1d2   : > { %1371 = vst.msk [vmem:[#allocation3 + $0xa8] sm:$0xff] %vm1349_vm11, %v1296_v44  ;;  %v4854_v3 = vand.u32 4294901760, %v2253_v58 }
 0x1d3   : > { %1687 = vrot.lane.b32.xlu0 %v4602_v30, %s3796_s12 }
 0x1d4   : > { %2692 = vmatmul.f32.gmra.mxu3 %v4854_v3  ;;  %v4862_v8 = vsub.f32 %v2253_v58, %v4854_v3 }
 0x1d5   : > { %v2032_v10 = vpop.permute.xlu0 %2031  ;;  %1267 = vrot.lane.b32.xlu2 %v4711_v43, %s3798_s14 }
 0x1d6   : > { %2125 = vst.msk [vmem:[#allocation3 + $0x18] sm:$0xff] %vm2121_vm15, %v2032_v10  ;;  %2073 = vrot.lane.b32.xlu1 %v4858_v7, %s3799_s15  ;;  %v6071_v11 = vand.u32 4294901760, %v4862_v8  ;;  %v4924_v10 = vld [vmem:[#allocation2 + $0x15a] sm:$0xff] }
 0x1d7   : > { %v1875_v12 = vpop.permute.xlu2 %1874 }
 0x1d8   : > { %v1489_v30 = vpop.permute.xlu1 %1488  ;;  %v2476_v32 = vsub.f32 %v4862_v8, %v6071_v11  ;;  %v5098_v11 = vld [vmem:[#allocation2 + $0xaa] sm:$0xff] }
 0x1d9   : > { %1564 = vst.msk [vmem:[#allocation3 + $0xa8] sm:$0xff] %vm1542_vm12, %v1489_v30 }
 0x1da   : > { %v2477_v2 = vand.u32 4294901760, %v2476_v32 }
 0x1db   : > { %1653 = vrot.lane.b32.xlu0 %v4621_v39, %s3796_s12 }
 0x1dc   : > { %2478 = vmatmul.f32.gmra.mxu2 %v2477_v2 }
 0x1dd   : > { %v1069_v18 = vpop.permute.xlu0 %1068  ;;  %v2157_v50 = vld [vmem:[#allocation3 + $0x18] sm:$0xff]  ;;  %1880 = vrot.lane.b32.xlu2 %v4726_v31, %s3800_s16 }
 0x1de   : > { %1161 = vst.msk [vmem:[#allocation3 + $0x20] sm:$0xff] %vm1156_vm10, %v1069_v18  ;;  %v2202_v25 = vsel %vm2191_vm2, %v2157_v50, 0  ;;  %1110 = vrot.lane.b32.xlu1 %v4631_v42, %s3795_s11 }
 0x1df   : > { %1354 = vst.msk [vmem:[#allocation3 + $0x20] sm:$0xff] %vm1349_vm11, %v1262_v57  ;;  %v4883_v9 = vand.u32 4294901760, %v2202_v25  ;;  %v1841_v46 = vpop.permute.xlu2 %1840 }
 0x1e0   : > { %v1455_v39 = vpop.permute.xlu1 %1454 }
 0x1e1   : > { %2624 = vmatmul.f32.gmra.mxu1 %v4883_v9  ;;  %1547 = vst.msk [vmem:[#allocation3 + $0x20] sm:$0xff] %vm1542_vm12, %v1455_v39  ;;  %v4890_v14 = vsub.f32 %v2202_v25, %v4883_v9  ;;  %v4942_v25 = vld [vmem:[#allocation2 + $0x92] sm:$0xff] }
 0x1e3   : > { %2039 = vrot.lane.b32.xlu0 %v4885_v55, %s3799_s15  ;;  %v6081_v42 = vand.u32 4294901760, %v4890_v14 }
 0x1e5   : > { %v1682_v28 = vpop.permute.xlu0 %1681  ;;  %v2340_v36 = vsub.f32 %v4890_v14, %v6081_v42  ;;  %1846 = vrot.lane.b32.xlu2 %v4753_v52, %s3800_s16  ;;  %v5197_v42 = vld [vmem:[#allocation2 + $0x189] sm:$0xff] }
 0x1e6   : > { %1757 = vst.msk [vmem:[#allocation3 + $0xa8] sm:$0xff] %vm1735_vm13, %v1682_v28  ;;  %1496 = vrot.lane.b32.xlu1 %v4895_v0, %s3797_s13 }
 0x1e7   : > { %1950 = vst.msk [vmem:[#allocation3 + $0xa8] sm:$0xff] %vm1928_vm14, %v1875_v12  ;;  %v2341_v38 = vand.u32 4294901760, %v2340_v36  ;;  %v1298_v15 = vpop.permute.xlu2 %1297 }
 0x1e8   : > { %v2068_v44 = vpop.permute.xlu1 %2067 }
 0x1e9   : > { %2342 = vmatmul.f32.gmra.mxu0 %v2341_v38  ;;  %2143 = vst.msk [vmem:[#allocation3 + $0xa8] sm:$0xff] %vm2121_vm15, %v2068_v44  ;;  %v829_v38 = vld [vmem:[#allocation2 + $0x168] sm:$0xff] }
 0x1eb   : > { %1076 = vrot.lane.b32.xlu0 %v4645_v53, %s3795_s11 }
 0x1ed   : > { %v1648_v61 = vpop.permute.xlu0 %1647  ;;  %1303 = vrot.lane.b32.xlu2 %v4763_v56, %s3798_s14 }
 0x1ee   : > { %1740 = vst.msk [vmem:[#allocation3 + $0x20] sm:$0xff] %vm1735_vm13, %v1648_v61  ;;  %1462 = vrot.lane.b32.xlu1 %v4909_v45, %s3797_s13 }
 0x1ef   : > { %1933 = vst.msk [vmem:[#allocation3 + $0x20] sm:$0xff] %vm1928_vm14, %v1841_v46  ;;  %v1264_v57 = vpop.permute.xlu2 %1263 }
 0x1f0   : > { %v1105_v60 = vpop.permute.xlu1 %1104  ;;  %v2175_v59 = vld [vmem:[#allocation3 + $0xa8] sm:$0xff] }
 0x1f1   : > { %1179 = vst.msk [vmem:[#allocation3 + $0xb0] sm:$0xff] %vm1156_vm10, %v1105_v60  ;;  %v2256_v53 = vsel %vm2191_vm2, %v2175_v59, 0 }
 0x1f2   : > { %1372 = vst.msk [vmem:[#allocation3 + $0xb0] sm:$0xff] %vm1349_vm11, %v1298_v15  ;;  %v4920_v58 = vand.u32 4294901760, %v2256_v53 }
 0x1f3   : > { %1689 = vrot.lane.b32.xlu0 %v4660_v62, %s3796_s12 }
 0x1f4   : > { %2696 = vmatmul.f32.gmra.mxu3 %v4920_v58  ;;  %v4928_v12 = vsub.f32 %v2256_v53, %v4920_v58 }
 0x1f5   : > { %v2034_v30 = vpop.permute.xlu0 %2033  ;;  %1269 = vrot.lane.b32.xlu2 %v4777_v4, %s3798_s14 }
 0x1f6   : > { %2126 = vst.msk [vmem:[#allocation3 + $0x20] sm:$0xff] %vm2121_vm15, %v2034_v30  ;;  %2075 = vrot.lane.b32.xlu1 %v4924_v10, %s3799_s15  ;;  %v6069_v32 = vand.u32 4294901760, %v4928_v12 }
 0x1f7   : > { %v1877_v2 = vpop.permute.xlu2 %1876 }
 0x1f8   : > { %v1491_v62 = vpop.permute.xlu1 %1490  ;;  %v2484_v18 = vsub.f32 %v4928_v12, %v6069_v32 }
 0x1f9   : > { %1565 = vst.msk [vmem:[#allocation3 + $0xb0] sm:$0xff] %vm1542_vm12, %v1491_v62 }
 0x1fa   : > { %v2485_v50 = vand.u32 4294901760, %v2484_v18 }
 0x1fb   : > { %1655 = vrot.lane.b32.xlu0 %v4687_v22, %s3796_s12 }
 0x1fc   : > { %2486 = vmatmul.f32.gmra.mxu2 %v2485_v50 }
 0x1fd   : > { %v1071_v46 = vpop.permute.xlu0 %1070  ;;  %v2158_v39 = vld [vmem:[#allocation3 + $0x20] sm:$0xff]  ;;  %1882 = vrot.lane.b32.xlu2 %v4792_v20, %s3800_s16 }
 0x1fe   : > { %1162 = vst.msk [vmem:[#allocation3 + $0x28] sm:$0xff] %vm1156_vm10, %v1071_v46  ;;  %v2205_v28 = vsel %vm2191_vm2, %v2158_v39, 0  ;;  %2041 = vrot.lane.b32.xlu1 %v4942_v25, %s3799_s15  ;;  %v4983_v39 = vld [vmem:[#allocation2 + $0x169] sm:$0xff] }
 0x1ff   : > { %1355 = vst.msk [vmem:[#allocation3 + $0x28] sm:$0xff] %vm1349_vm11, %v1264_v57  ;;  %v4951_v36 = vand.u32 4294901760, %v2205_v28  ;;  %v1843_v22 = vpop.permute.xlu2 %1842 }
 0x200   : > { %v1457_v15 = vpop.permute.xlu1 %1456 }
 0x201   : > { %2628 = vmatmul.f32.gmra.mxu1 %v4951_v36  ;;  %1548 = vst.msk [vmem:[#allocation3 + $0x28] sm:$0xff] %vm1542_vm12, %v1457_v15  ;;  %v4956_v44 = vsub.f32 %v2205_v28, %v4951_v36 }
 0x203   : > { %919 = vrot.lane.b32.xlu0 %v829_v38, %s3794_s10  ;;  %v6080_v61 = vand.u32 4294901760, %v4956_v44 }
 0x205   : > { %v1684_v60 = vpop.permute.xlu0 %1683  ;;  %v2348_v57 = vsub.f32 %v4956_v44, %v6080_v61  ;;  %1848 = vrot.lane.b32.xlu2 %v4819_v34, %s3800_s16 }
 0x206   : > { %1758 = vst.msk [vmem:[#allocation3 + $0xb0] sm:$0xff] %vm1735_vm13, %v1684_v60  ;;  %1078 = vrot.lane.b32.xlu1 %v4711_v43, %s3795_s11 }
 0x207   : > { %1951 = vst.msk [vmem:[#allocation3 + $0xb0] sm:$0xff] %vm1928_vm14, %v1877_v2  ;;  %v2349_v59 = vand.u32 4294901760, %v2348_v57  ;;  %v1300_v53 = vpop.permute.xlu2 %1299  ;;  %v5001_v57 = vld [vmem:[#allocation2 + $0x99] sm:$0xff] }
 0x208   : > { %v2070_v30 = vpop.permute.xlu1 %2069 }
 0x209   : > { %2350 = vmatmul.f32.gmra.mxu0 %v2349_v59  ;;  %2144 = vst.msk [vmem:[#allocation3 + $0xb0] sm:$0xff] %vm2121_vm15, %v2070_v30  ;;  %v830_v59 = vld [vmem:[#allocation2 + $0x170] sm:$0xff] }
 0x20b   : > { %1305 = vrot.lane.b32.xlu0 %v4829_v27, %s3798_s14 }
 0x20d   : > { %v1650_v62 = vpop.permute.xlu0 %1649  ;;  %1112 = vrot.lane.b32.xlu2 %v4697_v24, %s3795_s11 }
 0x20e   : > { %1741 = vst.msk [vmem:[#allocation3 + $0x28] sm:$0xff] %vm1735_vm13, %v1650_v62  ;;  %1691 = vrot.lane.b32.xlu1 %v4726_v31, %s3796_s12 }
 0x20f   : > { %1934 = vst.msk [vmem:[#allocation3 + $0x28] sm:$0xff] %vm1928_vm14, %v1843_v22  ;;  %v1266_v43 = vpop.permute.xlu2 %1265 }
 0x210   : > { %v1107_v2 = vpop.permute.xlu1 %1106  ;;  %v2176_v18 = vld [vmem:[#allocation3 + $0xb0] sm:$0xff] }
 0x211   : > { %1180 = vst.msk [vmem:[#allocation3 + $0xb8] sm:$0xff] %vm1156_vm10, %v1107_v2  ;;  %v2259_v50 = vsel %vm2191_vm2, %v2176_v18, 0 }
 0x212   : > { %1373 = vst.msk [vmem:[#allocation3 + $0xb8] sm:$0xff] %vm1349_vm11, %v1300_v53  ;;  %v4981_v46 = vand.u32 4294901760, %v2259_v50 }
 0x213   : > { %1271 = vrot.lane.b32.xlu0 %v4843_v49, %s3798_s14 }
 0x214   : > { %2700 = vmatmul.f32.gmra.mxu3 %v4981_v46  ;;  %v4989_v24 = vsub.f32 %v2259_v50, %v4981_v46 }
 0x215   : > { %v2036_v31 = vpop.permute.xlu0 %2035  ;;  %1498 = vrot.lane.b32.xlu2 %v4983_v39, %s3797_s13 }
 0x216   : > { %2127 = vst.msk [vmem:[#allocation3 + $0x28] sm:$0xff] %vm2121_vm15, %v2036_v31  ;;  %1657 = vrot.lane.b32.xlu1 %v4753_v52, %s3796_s12  ;;  %v6068_v28 = vand.u32 4294901760, %v4989_v24  ;;  %v5018_v31 = vld [vmem:[#allocation2 + $0x16a] sm:$0xff] }
 0x217   : > { %v1879_v22 = vpop.permute.xlu2 %1878 }
 0x218   : > { %v1493_v38 = vpop.permute.xlu1 %1492  ;;  %v2492_v15 = vsub.f32 %v4989_v24, %v6068_v28 }
 0x219   : > { %1566 = vst.msk [vmem:[#allocation3 + $0xb8] sm:$0xff] %vm1542_vm12, %v1493_v38 }
 0x21a   : > { %v2493_v60 = vand.u32 4294901760, %v2492_v15 }
 0x21b   : > { %1884 = vrot.lane.b32.xlu0 %v4858_v7, %s3800_s16 }
 0x21c   : > { %2494 = vmatmul.f32.gmra.mxu2 %v2493_v60 }
 0x21d   : > { %v1073_v53 = vpop.permute.xlu0 %1072  ;;  %v2159_v52 = vld [vmem:[#allocation3 + $0x28] sm:$0xff]  ;;  %1464 = vrot.lane.b32.xlu2 %v5001_v57, %s3797_s13 }
 0x21e   : > { %1163 = vst.msk [vmem:[#allocation3 + $0x30] sm:$0xff] %vm1156_vm10, %v1073_v53  ;;  %v2208_v30 = vsel %vm2191_vm2, %v2159_v52, 0  ;;  %921 = vrot.lane.b32.xlu1 %v830_v59, %s3794_s10  ;;  %v5033_v52 = vld [vmem:[#allocation2 + $0x9a] sm:$0xff] }
 0x21f   : > { %1356 = vst.msk [vmem:[#allocation3 + $0x30] sm:$0xff] %vm1349_vm11, %v1266_v43  ;;  %v5011_v62 = vand.u32 4294901760, %v2208_v30  ;;  %v1845_v2 = vpop.permute.xlu2 %1844 }
 0x220   : > { %v1459_v18 = vpop.permute.xlu1 %1458 }
 0x221   : > { %2632 = vmatmul.f32.gmra.mxu1 %v5011_v62  ;;  %1549 = vst.msk [vmem:[#allocation3 + $0x30] sm:$0xff] %vm1542_vm12, %v1459_v18  ;;  %v5016_v50 = vsub.f32 %v2208_v30, %v5011_v62  ;;  %v5043_v18 = vld [vmem:[#allocation2 + $0x171] sm:$0xff] }
 0x223   : > { %1850 = vrot.lane.b32.xlu0 %v4885_v55, %s3800_s16  ;;  %v6078_v38 = vand.u32 4294901760, %v5016_v50 }
 0x225   : > { %v1686_v15 = vpop.permute.xlu0 %1685  ;;  %v2356_v43 = vsub.f32 %v5016_v50, %v6078_v38  ;;  %2077 = vrot.lane.b32.xlu2 %v5018_v31, %s3799_s15 }
 0x226   : > { %1759 = vst.msk [vmem:[#allocation3 + $0xb8] sm:$0xff] %vm1735_vm13, %v1686_v15  ;;  %1307 = vrot.lane.b32.xlu1 %v4895_v0, %s3798_s14 }
 0x227   : > { %1952 = vst.msk [vmem:[#allocation3 + $0xb8] sm:$0xff] %vm1928_vm14, %v1879_v22  ;;  %v2357_v60 = vand.u32 4294901760, %v2356_v43  ;;  %v1302_v59 = vpop.permute.xlu2 %1301 }
 0x228   : > { %v2072_v53 = vpop.permute.xlu1 %2071 }
 0x229   : > { %2358 = vmatmul.f32.gmra.mxu0 %v2357_v60  ;;  %2145 = vst.msk [vmem:[#allocation3 + $0xb8] sm:$0xff] %vm2121_vm15, %v2072_v53 }
 0x22b   : > { %1114 = vrot.lane.b32.xlu0 %v4763_v56, %s3795_s11 }
 0x22d   : > { %v1652_v30 = vpop.permute.xlu0 %1651  ;;  %2043 = vrot.lane.b32.xlu2 %v5033_v52, %s3799_s15 }
 0x22e   : > { %1742 = vst.msk [vmem:[#allocation3 + $0x30] sm:$0xff] %vm1735_vm13, %v1652_v30  ;;  %1273 = vrot.lane.b32.xlu1 %v4909_v45, %s3798_s14 }
 0x22f   : > { %1935 = vst.msk [vmem:[#allocation3 + $0x30] sm:$0xff] %vm1928_vm14, %v1845_v2  ;;  %v1268_v22 = vpop.permute.xlu2 %1267 }
 0x230   : > { %v1109_v15 = vpop.permute.xlu1 %1108  ;;  %v2177_v43 = vld [vmem:[#allocation3 + $0xb8] sm:$0xff] }
 0x231   : > { %1181 = vst.msk [vmem:[#allocation3 + $0xc0] sm:$0xff] %vm1156_vm10, %v1109_v15  ;;  %v2262_v56 = vsel %vm2191_vm2, %v2177_v43, 0  ;;  %v5062_v15 = vld [vmem:[#allocation2 + $0xa9] sm:$0xff] }
 0x232   : > { %1374 = vst.msk [vmem:[#allocation3 + $0xc0] sm:$0xff] %vm1349_vm11, %v1302_v59  ;;  %v5048_v60 = vand.u32 4294901760, %v2262_v56 }
 0x233   : > { %1500 = vrot.lane.b32.xlu0 %v5043_v18, %s3797_s13 }
 0x234   : > { %2704 = vmatmul.f32.gmra.mxu3 %v5048_v60  ;;  %v5054_v2 = vsub.f32 %v2262_v56, %v5048_v60 }
 0x235   : > { %v2038_v53 = vpop.permute.xlu0 %2037  ;;  %1080 = vrot.lane.b32.xlu2 %v4777_v4, %s3795_s11 }
 0x236   : > { %2128 = vst.msk [vmem:[#allocation3 + $0x30] sm:$0xff] %vm2121_vm15, %v2038_v53  ;;  %1886 = vrot.lane.b32.xlu1 %v4924_v10, %s3800_s16  ;;  %v6070_v59 = vand.u32 4294901760, %v5054_v2 }
 0x237   : > { %v1881_v30 = vpop.permute.xlu2 %1880 }
 0x238   : > { %v1495_v43 = vpop.permute.xlu1 %1494  ;;  %v2500_v56 = vsub.f32 %v5054_v2, %v6070_v59  ;;  %v5079_v59 = vld [vmem:[#allocation2 + $0x172] sm:$0xff] }
 0x239   : > { %1567 = vst.msk [vmem:[#allocation3 + $0xc0] sm:$0xff] %vm1542_vm12, %v1495_v43 }
 0x23a   : > { %v2501_v28 = vand.u32 4294901760, %v2500_v56 }
 0x23b   : > { %1466 = vrot.lane.b32.xlu0 %v5062_v15, %s3797_s13 }
 0x23c   : > { %2502 = vmatmul.f32.gmra.mxu2 %v2501_v28 }
 0x23d   : > { %v1075_v4 = vpop.permute.xlu0 %1074  ;;  %v2160_v53 = vld [vmem:[#allocation3 + $0x30] sm:$0xff]  ;;  %1693 = vrot.lane.b32.xlu2 %v4792_v20, %s3796_s12 }
 0x23e   : > { %1164 = vst.msk [vmem:[#allocation3 + $0x38] sm:$0xff] %vm1156_vm10, %v1075_v4  ;;  %v2211_v32 = vsel %vm2191_vm2, %v2160_v53, 0  ;;  %1852 = vrot.lane.b32.xlu1 %v4942_v25, %s3800_s16 }
 0x23f   : > { %1357 = vst.msk [vmem:[#allocation3 + $0x38] sm:$0xff] %vm1349_vm11, %v1268_v22  ;;  %v5077_v43 = vand.u32 4294901760, %v2211_v32  ;;  %v1847_v56 = vpop.permute.xlu2 %1846 }
 0x240   : > { %v1461_v28 = vpop.permute.xlu1 %1460 }
 0x241   : > { %2636 = vmatmul.f32.gmra.mxu1 %v5077_v43  ;;  %1550 = vst.msk [vmem:[#allocation3 + $0x38] sm:$0xff] %vm1542_vm12, %v1461_v28  ;;  %v5084_v20 = vsub.f32 %v2211_v32, %v5077_v43 }
 0x243   : > { %2079 = vrot.lane.b32.xlu0 %v5079_v59, %s3799_s15  ;;  %v6076_v4 = vand.u32 4294901760, %v5084_v20 }
 0x245   : > { %v1688_v53 = vpop.permute.xlu0 %1687  ;;  %v2364_v22 = vsub.f32 %v5084_v20, %v6076_v4  ;;  %1659 = vrot.lane.b32.xlu2 %v4819_v34, %s3796_s12  ;;  %v5103_v34 = vld [vmem:[#allocation2 + $0x181] sm:$0xff] }
 0x246   : > { %1760 = vst.msk [vmem:[#allocation3 + $0xc0] sm:$0xff] %vm1735_vm13, %v1688_v53  ;;  %1116 = vrot.lane.b32.xlu1 %v4829_v27, %s3795_s11 }
 0x247   : > { %1953 = vst.msk [vmem:[#allocation3 + $0xc0] sm:$0xff] %vm1928_vm14, %v1881_v30  ;;  %v2365_v32 = vand.u32 4294901760, %v2364_v22  ;;  %v1304_v28 = vpop.permute.xlu2 %1303 }
 0x248   : > { %v2074_v5 = vpop.permute.xlu1 %2073 }
 0x249   : > { %2366 = vmatmul.f32.gmra.mxu0 %v2365_v32  ;;  %2146 = vst.msk [vmem:[#allocation3 + $0xc0] sm:$0xff] %vm2121_vm15, %v2074_v5 }
 0x24b   : > { %2045 = vrot.lane.b32.xlu0 %v5098_v11, %s3799_s15 }
 0x24d   : > { %v1654_v53 = vpop.permute.xlu0 %1653  ;;  %923 = vrot.lane.b32.xlu2 %v831_v48, %s3794_s10  ;;  %v5117_v48 = vld [vmem:[#allocation2 + $0xb1] sm:$0xff] }
 0x24e   : > { %1743 = vst.msk [vmem:[#allocation3 + $0x38] sm:$0xff] %vm1735_vm13, %v1654_v53  ;;  %1502 = vrot.lane.b32.xlu1 %v5103_v34, %s3797_s13 }
 0x24f   : > { %1936 = vst.msk [vmem:[#allocation3 + $0x38] sm:$0xff] %vm1928_vm14, %v1847_v56  ;;  %v1270_v27 = vpop.permute.xlu2 %1269 }
 0x250   : > { %v1111_v30 = vpop.permute.xlu1 %1110  ;;  %v2178_v22 = vld [vmem:[#allocation3 + $0xc0] sm:$0xff] }
 0x251   : > { %1182 = vst.msk [vmem:[#allocation3 + $0xc8] sm:$0xff] %vm1156_vm10, %v1111_v30  ;;  %v2265_v5 = vsel %vm2191_vm2, %v2178_v22, 0 }
 0x252   : > { %1375 = vst.msk [vmem:[#allocation3 + $0xc8] sm:$0xff] %vm1349_vm11, %v1304_v28  ;;  %v5113_v32 = vand.u32 4294901760, %v2265_v5 }
 0x253   : > { %1082 = vrot.lane.b32.xlu0 %v4843_v49, %s3795_s11 }
 0x254   : > { %2708 = vmatmul.f32.gmra.mxu3 %v5113_v32  ;;  %v5121_v56 = vsub.f32 %v2265_v5, %v5113_v32 }
 0x255   : > { %v2040_v53 = vpop.permute.xlu0 %2039  ;;  %1309 = vrot.lane.b32.xlu2 %v4983_v39, %s3798_s14 }
 0x256   : > { %2129 = vst.msk [vmem:[#allocation3 + $0x38] sm:$0xff] %vm2121_vm15, %v2040_v53  ;;  %1468 = vrot.lane.b32.xlu1 %v5117_v48, %s3797_s13  ;;  %v6077_v28 = vand.u32 4294901760, %v5121_v56 }
 0x257   : > { %v1883_v30 = vpop.permute.xlu2 %1882 }
 0x258   : > { %v1497_v49 = vpop.permute.xlu1 %1496  ;;  %v2508_v22 = vsub.f32 %v5121_v56, %v6077_v28 }
 0x259   : > { %1568 = vst.msk [vmem:[#allocation3 + $0xc8] sm:$0xff] %vm1542_vm12, %v1497_v49 }
 0x25a   : > { %v2509_v5 = vand.u32 4294901760, %v2508_v22 }
 0x25b   : > { %1695 = vrot.lane.b32.xlu0 %v4858_v7, %s3796_s12 }
 0x25c   : > { %2510 = vmatmul.f32.gmra.mxu2 %v2509_v5 }
 0x25d   : > { %v1077_v53 = vpop.permute.xlu0 %1076  ;;  %v2161_v51 = vld [vmem:[#allocation3 + $0x38] sm:$0xff]  ;;  %1275 = vrot.lane.b32.xlu2 %v5001_v57, %s3798_s14 }
 0x25e   : > { %1165 = vst.msk [vmem:[#allocation3 + $0x40] sm:$0xff] %vm1156_vm10, %v1077_v53  ;;  %v2214_v4 = vsel %vm2191_vm2, %v2161_v51, 0  ;;  %2081 = vrot.lane.b32.xlu1 %v5135_v6, %s3799_s15  ;;  %v5154_v53 = vld [vmem:[#allocation2 + $0xb2] sm:$0xff] }
 0x25f   : > { %1358 = vst.msk [vmem:[#allocation3 + $0x40] sm:$0xff] %vm1349_vm11, %v1270_v27  ;;  %v5144_v49 = vand.u32 4294901760, %v2214_v4  ;;  %v1849_v7 = vpop.permute.xlu2 %1848 }
 0x260   : > { %v1463_v22 = vpop.permute.xlu1 %1462 }
 0x261   : > { %2640 = vmatmul.f32.gmra.mxu1 %v5144_v49  ;;  %1551 = vst.msk [vmem:[#allocation3 + $0x40] sm:$0xff] %vm1542_vm12, %v1463_v22  ;;  %v5149_v5 = vsub.f32 %v2214_v4, %v5144_v49  ;;  %v832_v22 = vld [vmem:[#allocation2 + $0x188] sm:$0xff] }
 0x263   : > { %1661 = vrot.lane.b32.xlu0 %v4885_v55, %s3796_s12  ;;  %v6079_v51 = vand.u32 4294901760, %v5149_v5 }
 0x265   : > { %v1690_v28 = vpop.permute.xlu0 %1689  ;;  %v2372_v27 = vsub.f32 %v5149_v5, %v6079_v51  ;;  %1888 = vrot.lane.b32.xlu2 %v5018_v31, %s3800_s16 }
 0x266   : > { %1761 = vst.msk [vmem:[#allocation3 + $0xc8] sm:$0xff] %vm1735_vm13, %v1690_v28  ;;  %2047 = vrot.lane.b32.xlu1 %v5154_v53, %s3799_s15 }
 0x267   : > { %1954 = vst.msk [vmem:[#allocation3 + $0xc8] sm:$0xff] %vm1928_vm14, %v1883_v30  ;;  %v2373_v55 = vand.u32 4294901760, %v2372_v27  ;;  %v1113_v4 = vpop.permute.xlu2 %1112 }
 0x268   : > { %v2076_v38 = vpop.permute.xlu1 %2075 }
 0x269   : > { %2374 = vmatmul.f32.gmra.mxu0 %v2373_v55  ;;  %2147 = vst.msk [vmem:[#allocation3 + $0xc8] sm:$0xff] %vm2121_vm15, %v2076_v38 }
 0x26b   : > { %925 = vrot.lane.b32.xlu0 %v832_v22, %s3794_s10 }
 0x26d   : > { %v1656_v51 = vpop.permute.xlu0 %1655  ;;  %1854 = vrot.lane.b32.xlu2 %v5033_v52, %s3800_s16 }
 0x26e   : > { %1744 = vst.msk [vmem:[#allocation3 + $0x40] sm:$0xff] %vm1735_vm13, %v1656_v51  ;;  %1084 = vrot.lane.b32.xlu1 %v4909_v45, %s3795_s11 }
 0x26f   : > { %1937 = vst.msk [vmem:[#allocation3 + $0x40] sm:$0xff] %vm1928_vm14, %v1849_v7  ;;  %v1499_v28 = vpop.permute.xlu2 %1498 }
 0x270   : > { %v2042_v30 = vpop.permute.xlu1 %2041  ;;  %v2179_v27 = vld [vmem:[#allocation3 + $0xc8] sm:$0xff] }
 0x271   : > { %2130 = vst.msk [vmem:[#allocation3 + $0x40] sm:$0xff] %vm2121_vm15, %v2042_v30  ;;  %v2268_v38 = vsel %vm2191_vm2, %v2179_v27, 0 }
 0x272   : > { %v5175_v55 = vand.u32 4294901760, %v2268_v38 }
 0x273   : > { %1311 = vrot.lane.b32.xlu0 %v5043_v18, %s3798_s14 }
 0x274   : > { %2712 = vmatmul.f32.gmra.mxu3 %v5175_v55  ;;  %v5181_v51 = vsub.f32 %v2268_v38, %v5175_v55 }
 0x275   : > { %v920_v45 = vpop.permute.xlu0 %919  ;;  %1118 = vrot.lane.b32.xlu2 %v4895_v0, %s3795_s11 }
 0x276   : > { %990 = vst.msk [vmem:[#allocation3 + $0xd0] sm:$0xff] %vm963_vm8, %v920_v45  ;;  %1697 = vrot.lane.b32.xlu1 %v4924_v10, %s3796_s12  ;;  %v6082_v7 = vand.u32 4294901760, %v5181_v51 }
 0x277   : > { %1183 = vst.msk [vmem:[#allocation3 + $0xd0] sm:$0xff] %vm1156_vm10, %v1113_v4  ;;  %v1465_v22 = vpop.permute.xlu2 %1464 }
 0x278   : > { %v1079_v30 = vpop.permute.xlu1 %1078  ;;  %v2516_v27 = vsub.f32 %v5181_v51, %v6082_v7  ;;  %v2162_v38 = vld [vmem:[#allocation3 + $0x40] sm:$0xff]  ;;  %v5216_v7 = vld [vmem:[#allocation2 + $0xc1] sm:$0xff] }
 0x279   : > { %1166 = vst.msk [vmem:[#allocation3 + $0x48] sm:$0xff] %vm1156_vm10, %v1079_v30  ;;  %v2217_v0 = vsel %vm2191_vm2, %v2162_v38, 0 }
 0x27a   : > { %v2517_v61 = vand.u32 4294901760, %v2516_v27  ;;  %v5195_v45 = vand.u32 4294901760, %v2217_v0 }
 0x27b   : > { %1277 = vrot.lane.b32.xlu0 %v5062_v15, %s3798_s14 }
 0x27c   : > { %2518 = vmatmul.f32.gmra.mxu2 %v2517_v61  ;;  %2644 = vmatmul.f32.gmra.mxu1 %v5195_v45  ;;  %v5203_v10 = vsub.f32 %v2217_v0, %v5195_v45 }
 0x27d   : > { %v1306_v4 = vpop.permute.xlu0 %1305  ;;  %1504 = vrot.lane.b32.xlu2 %v5197_v42, %s3797_s13 }
 0x27e   : > { %1376 = vst.msk [vmem:[#allocation3 + $0xd0] sm:$0xff] %vm1349_vm11, %v1306_v4  ;;  %1663 = vrot.lane.b32.xlu1 %v4942_v25, %s3796_s12  ;;  %v6083_v30 = vand.u32 4294901760, %v5203_v10  ;;  %v833_v4 = vld [vmem:[#allocation2 + $0x198] sm:$0xff] }
 0x27f   : > { %1569 = vst.msk [vmem:[#allocation3 + $0xd0] sm:$0xff] %vm1542_vm12, %v1499_v28  ;;  %v2078_v27 = vpop.permute.xlu2 %2077 }
 0x280   : > { %v1692_v61 = vpop.permute.xlu1 %1691  ;;  %v2380_v38 = vsub.f32 %v5203_v10, %v6083_v30 }
 0x281   : > { %1762 = vst.msk [vmem:[#allocation3 + $0xd0] sm:$0xff] %vm1735_vm13, %v1692_v61 }
 0x282   : > { %v2381_v0 = vand.u32 4294901760, %v2380_v38  ;;  %v5226_v38 = vld [vmem:[#allocation2 + $0x18a] sm:$0xff] }
 0x283   : > { %1890 = vrot.lane.b32.xlu0 %v5079_v59, %s3800_s16 }
 0x284   : > { %2382 = vmatmul.f32.gmra.mxu0 %v2381_v0 }
 0x285   : > { %v1272_v25 = vpop.permute.xlu0 %1271  ;;  %1470 = vrot.lane.b32.xlu2 %v5216_v7, %s3797_s13 }
 0x286   : > { %1359 = vst.msk [vmem:[#allocation3 + $0x48] sm:$0xff] %vm1349_vm11, %v1272_v25  ;;  %927 = vrot.lane.b32.xlu1 %v833_v4, %s3794_s10  ;;  %v5238_v25 = vld [vmem:[#allocation2 + $0xc2] sm:$0xff] }
 0x287   : > { %1552 = vst.msk [vmem:[#allocation3 + $0x48] sm:$0xff] %vm1542_vm12, %v1465_v22  ;;  %v2044_v28 = vpop.permute.xlu2 %2043 }
 0x288   : > { %v1658_v61 = vpop.permute.xlu1 %1657 }
 0x289   : > { %1745 = vst.msk [vmem:[#allocation3 + $0x48] sm:$0xff] %vm1735_vm13, %v1658_v61 }
 0x28b   : > { %1856 = vrot.lane.b32.xlu0 %v5098_v11, %s3800_s16 }
 0x28d   : > { %v1885_v0 = vpop.permute.xlu0 %1884  ;;  %2083 = vrot.lane.b32.xlu2 %v5226_v38, %s3799_s15 }
 0x28e   : > { %1955 = vst.msk [vmem:[#allocation3 + $0xd0] sm:$0xff] %vm1928_vm14, %v1885_v0  ;;  %1313 = vrot.lane.b32.xlu1 %v5103_v34, %s3798_s14 }
 0x28f   : > { %2148 = vst.msk [vmem:[#allocation3 + $0xd0] sm:$0xff] %vm2121_vm15, %v2078_v27  ;;  %v1081_v22 = vpop.permute.xlu2 %1080 }
 0x290   : > { %v922_v4 = vpop.permute.xlu1 %921  ;;  %1167 = vst.msk [vmem:[#allocation3 + $0x50] sm:$0xff] %vm1156_vm10, %v1081_v22  ;;  %v1412_v22 = vld [vmem:[#allocation2 + $0x199] sm:$0xff] }
 0x291   : > { %991 = vst.msk [vmem:[#allocation3 + $0xd8] sm:$0xff] %vm963_vm8, %v922_v4 }
 0x293   : > { %1120 = vrot.lane.b32.xlu0 %v4983_v39, %s3795_s11 }
 0x295   : > { %v1851_v61 = vpop.permute.xlu0 %1850  ;;  %2049 = vrot.lane.b32.xlu2 %v5238_v25, %s3799_s15 }
 0x296   : > { %1938 = vst.msk [vmem:[#allocation3 + $0x48] sm:$0xff] %vm1928_vm14, %v1851_v61  ;;  %1279 = vrot.lane.b32.xlu1 %v5117_v48, %s3798_s14  ;;  %v2180_v34 = vld [vmem:[#allocation3 + $0xd0] sm:$0xff] }
 0x297   : > { %2131 = vst.msk [vmem:[#allocation3 + $0x48] sm:$0xff] %vm2121_vm15, %v2044_v28  ;;  %v2271_v27 = vsel %vm2191_vm2, %v2180_v34, 0  ;;  %v1694_v0 = vpop.permute.xlu2 %1693 }
 0x298   : > { %v1308_v4 = vpop.permute.xlu1 %1307  ;;  %v5249_v30 = vand.u32 4294901760, %v2271_v27 }
 0x29a   : > { %6116 = vst [vmem:[#allocation5_spill] sm:$0xff] %v5249_v30  ;;  %2716 = vmatmul.f32.gmra.mxu3 %v5249_v30  ;;  %v5253_v39 = vsub.f32 %v2271_v27, %v5249_v30 }
 0x29b   : > { %1506 = vrot.lane.b32.xlu0 %v1412_v22, %s3797_s13 }
 0x29c   : > { %v6089_v61 = vand.u32 4294901760, %v5253_v39 }
 0x29d   : > { %v1115_v40 = vpop.permute.xlu0 %1114  ;;  %1086 = vrot.lane.b32.xlu2 %v5001_v57, %s3795_s11 }
 0x29e   : > { %1184 = vst.msk [vmem:[#allocation3 + $0xd8] sm:$0xff] %vm1156_vm10, %v1115_v40  ;;  %v2524_v28 = vsub.f32 %v5253_v39, %v6089_v61  ;;  %1892 = vrot.lane.b32.xlu1 %v5135_v6, %s3800_s16  ;;  %v2163_v34 = vld [vmem:[#allocation3 + $0x48] sm:$0xff] }
 0x29f   : > { %1377 = vst.msk [vmem:[#allocation3 + $0xd8] sm:$0xff] %vm1349_vm11, %v1308_v4  ;;  %v2220_v27 = vsel %vm2191_vm2, %v2163_v34, 0  ;;  %v1660_v22 = vpop.permute.xlu2 %1659  ;;  %v1991_v34 = vld [vmem:[#allocation2 + $0x19a] sm:$0xff] }
 0x2a0   : > { %v2525_v21 = vand.u32 4294901760, %v2524_v28  ;;  %v1274_v30 = vpop.permute.xlu1 %1273  ;;  %v5269_v57 = vand.u32 4294901760, %v2220_v27 }
 0x2a1   : > { %1360 = vst.msk [vmem:[#allocation3 + $0x50] sm:$0xff] %vm1349_vm11, %v1274_v30 }
 0x2a2   : > { %2526 = vmatmul.f32.gmra.mxu2 %v2525_v21  ;;  %2648 = vmatmul.f32.gmra.mxu1 %v5269_v57  ;;  %v5274_v40 = vsub.f32 %v2220_v27, %v5269_v57 }
 0x2a3   : > { %1472 = vrot.lane.b32.xlu0 %v5267_v19, %s3797_s13 }
 0x2a4   : > { %v6096_v6 = vand.u32 4294901760, %v5274_v40 }
 0x2a5   : > { %v1501_v4 = vpop.permute.xlu0 %1500  ;;  %1699 = vrot.lane.b32.xlu2 %v5018_v31, %s3796_s12 }
 0x2a6   : > { %1570 = vst.msk [vmem:[#allocation3 + $0xd8] sm:$0xff] %vm1542_vm12, %v1501_v4  ;;  %v2388_v21 = vsub.f32 %v5274_v40, %v6096_v6  ;;  %1858 = vrot.lane.b32.xlu1 %v5154_v53, %s3800_s16  ;;  %v5297_v4 = vld [vmem:[#allocation2 + $0xca] sm:$0xff] }
 0x2a7   : > { %1763 = vst.msk [vmem:[#allocation3 + $0xd8] sm:$0xff] %vm1735_vm13, %v1694_v0  ;;  %v924_v30 = vpop.permute.xlu2 %923 }
 0x2a8   : > { %v2389_v28 = vand.u32 4294901760, %v2388_v21  ;;  %v1887_v27 = vpop.permute.xlu1 %1886  ;;  %992 = vst.msk [vmem:[#allocation3 + $0xe0] sm:$0xff] %vm963_vm8, %v924_v30  ;;  %v834_v30 = vld [vmem:[#allocation2 + $0x1a0] sm:$0xff] }
 0x2a9   : > { %1956 = vst.msk [vmem:[#allocation3 + $0xd8] sm:$0xff] %vm1928_vm14, %v1887_v27 }
 0x2aa   : > { %2390 = vmatmul.f32.gmra.mxu0 %v2389_v28  ;;  %v1413_v28 = vld [vmem:[#allocation2 + $0x1a1] sm:$0xff] }
 0x2ab   : > { %2085 = vrot.lane.b32.xlu0 %v1991_v34, %s3799_s15 }
 0x2ad   : > { %v1467_v31 = vpop.permute.xlu0 %1466  ;;  %1665 = vrot.lane.b32.xlu2 %v5033_v52, %s3796_s12 }
 0x2ae   : > { %1553 = vst.msk [vmem:[#allocation3 + $0x50] sm:$0xff] %vm1542_vm12, %v1467_v31  ;;  %1122 = vrot.lane.b32.xlu1 %v5043_v18, %s3795_s11 }
 0x2af   : > { %1746 = vst.msk [vmem:[#allocation3 + $0x50] sm:$0xff] %vm1735_vm13, %v1660_v22  ;;  %v1310_v0 = vpop.permute.xlu2 %1309  ;;  %v1396_v22 = vld [vmem:[#allocation2 + $0xd9] sm:$0xff] }
 0x2b0   : > { %v1853_v21 = vpop.permute.xlu1 %1852 }
 0x2b1   : > { %1939 = vst.msk [vmem:[#allocation3 + $0x50] sm:$0xff] %vm1928_vm14, %v1853_v21 }
 0x2b3   : > { %2051 = vrot.lane.b32.xlu0 %v5297_v4, %s3799_s15 }
 0x2b5   : > { %v2080_v34 = vpop.permute.xlu0 %2079  ;;  %929 = vrot.lane.b32.xlu2 %v834_v30, %s3794_s10  ;;  %s263_s10 = scalar_lea.vmem %s6067_s6, %s3750_s27 }
 0x2b6   : > { %2149 = vst.msk [vmem:[#allocation3 + $0xd8] sm:$0xff] %vm2121_vm15, %v2080_v34  ;;  %1508 = vrot.lane.b32.xlu1 %v1413_v28, %s3797_s13 }
 0x2b7   : > { %v1276_v52 = vpop.permute.xlu2 %1275 }
 0x2b8   : > { %v1117_v18 = vpop.permute.xlu1 %1116 }
 0x2b9   : > { %1185 = vst.msk [vmem:[#allocation3 + $0xe0] sm:$0xff] %vm1156_vm10, %v1117_v18 }
 0x2ba   : > { %1378 = vst.msk [vmem:[#allocation3 + $0xe0] sm:$0xff] %vm1349_vm11, %v1310_v0  ;;  %v1992_v0 = vld [vmem:[#allocation2 + $0x1a2] sm:$0xff] }
 0x2bb   : > { %1088 = vrot.lane.b32.xlu0 %v5062_v15, %s3795_s11 }
 0x2bd   : > { %v2046_v27 = vpop.permute.xlu0 %2045  ;;  %v2181_v31 = vld [vmem:[#allocation3 + $0xd8] sm:$0xff]  ;;  %1315 = vrot.lane.b32.xlu2 %v5197_v42, %s3798_s14 }
 0x2be   : > { %2132 = vst.msk [vmem:[#allocation3 + $0x50] sm:$0xff] %vm2121_vm15, %v2046_v27  ;;  %v2274_v21 = vsel %vm2191_vm2, %v2181_v31, 0  ;;  %1474 = vrot.lane.b32.xlu1 %v1396_v22, %s3797_s13 }
 0x2bf   : > { %v5314_v30 = vand.u32 4294901760, %v2274_v21  ;;  %v1889_v28 = vpop.permute.xlu2 %1888 }
 0x2c0   : > { %v1503_v34 = vpop.permute.xlu1 %1502 }
 0x2c1   : > { %6117 = vst [vmem:[#allocation6_spill] sm:$0xff] %v5314_v30  ;;  %2720 = vmatmul.f32.gmra.mxu3 %v5314_v30  ;;  %v5319_v15 = vsub.f32 %v2274_v21, %v5314_v30 }
 0x2c2   : > { %1571 = vst.msk [vmem:[#allocation3 + $0xe0] sm:$0xff] %vm1542_vm12, %v1503_v34 }
 0x2c3   : > { %1701 = vrot.lane.b32.xlu0 %v5079_v59, %s3796_s12  ;;  %v6091_v42 = vand.u32 4294901760, %v5319_v15 }
 0x2c5   : > { %v1083_v18 = vpop.permute.xlu0 %1082  ;;  %v2532_v22 = vsub.f32 %v5319_v15, %v6091_v42  ;;  %v2164_v27 = vld [vmem:[#allocation3 + $0x50] sm:$0xff]  ;;  %1281 = vrot.lane.b32.xlu2 %v5216_v7, %s3798_s14 }
 0x2c6   : > { %1168 = vst.msk [vmem:[#allocation3 + $0x58] sm:$0xff] %vm1156_vm10, %v1083_v18  ;;  %v2223_v31 = vsel %vm2191_vm2, %v2164_v27, 0  ;;  %2087 = vrot.lane.b32.xlu1 %v1992_v0, %s3799_s15 }
 0x2c7   : > { %1361 = vst.msk [vmem:[#allocation3 + $0x58] sm:$0xff] %vm1349_vm11, %v1276_v52  ;;  %v2533_v59 = vand.u32 4294901760, %v2532_v22  ;;  %v5333_v21 = vand.u32 4294901760, %v2223_v31  ;;  %v1855_v34 = vpop.permute.xlu2 %1854 }
 0x2c8   : > { %v1469_v61 = vpop.permute.xlu1 %1468 }
 0x2c9   : > { %2534 = vmatmul.f32.gmra.mxu2 %v2533_v59  ;;  %2652 = vmatmul.f32.gmra.mxu1 %v5333_v21  ;;  %1554 = vst.msk [vmem:[#allocation3 + $0x58] sm:$0xff] %vm1542_vm12, %v1469_v61  ;;  %v5338_v7 = vsub.f32 %v2223_v31, %v5333_v21 }
 0x2cb   : > { %1667 = vrot.lane.b32.xlu0 %v5098_v11, %s3796_s12  ;;  %v6093_v0 = vand.u32 4294901760, %v5338_v7  ;;  %v1975_v11 = vld [vmem:[#allocation2 + $0xda] sm:$0xff] }
 0x2cd   : > { %v1696_v18 = vpop.permute.xlu0 %1695  ;;  %v2396_v52 = vsub.f32 %v5338_v7, %v6093_v0  ;;  %1894 = vrot.lane.b32.xlu2 %v5226_v38, %s3800_s16  ;;  %v1397_v38 = vld [vmem:[#allocation2 + $0xe1] sm:$0xff] }
 0x2ce   : > { %1764 = vst.msk [vmem:[#allocation3 + $0xe0] sm:$0xff] %vm1735_vm13, %v1696_v18  ;;  %1090 = vrot.lane.b32.xlu1 %v5117_v48, %s3795_s11 }
 0x2cf   : > { %1957 = vst.msk [vmem:[#allocation3 + $0xe0] sm:$0xff] %vm1928_vm14, %v1889_v28  ;;  %v2397_v61 = vand.u32 4294901760, %v2396_v52  ;;  %v1119_v22 = vpop.permute.xlu2 %1118 }
 0x2d0   : > { %v2082_v27 = vpop.permute.xlu1 %2081 }
 0x2d1   : > { %2398 = vmatmul.f32.gmra.mxu0 %v2397_v61  ;;  %2150 = vst.msk [vmem:[#allocation3 + $0xe0] sm:$0xff] %vm2121_vm15, %v2082_v27 }
 0x2d3   : > { %2053 = vrot.lane.b32.xlu0 %v1975_v11, %s3799_s15  ;;  %v1976_v11 = vld [vmem:[#allocation2 + $0xe2] sm:$0xff] }
 0x2d5   : > { %v1662_v31 = vpop.permute.xlu0 %1661  ;;  %1860 = vrot.lane.b32.xlu2 %v5238_v25, %s3800_s16 }
 0x2d6   : > { %1747 = vst.msk [vmem:[#allocation3 + $0x58] sm:$0xff] %vm1735_vm13, %v1662_v31  ;;  %1669 = vrot.lane.b32.xlu1 %v5154_v53, %s3796_s12 }
 0x2d7   : > { %1940 = vst.msk [vmem:[#allocation3 + $0x58] sm:$0xff] %vm1928_vm14, %v1855_v34  ;;  %v1505_v48 = vpop.permute.xlu2 %1504 }
 0x2d8   : > { %v2048_v28 = vpop.permute.xlu1 %2047  ;;  %v2182_v59 = vld [vmem:[#allocation3 + $0xe0] sm:$0xff] }
 0x2d9   : > { %2133 = vst.msk [vmem:[#allocation3 + $0x58] sm:$0xff] %vm2121_vm15, %v2048_v28  ;;  %v2277_v18 = vsel %vm2191_vm2, %v2182_v59, 0 }
 0x2da   : > { %v5362_v52 = vand.u32 4294901760, %v2277_v18 }
 0x2db   : > { %1476 = vrot.lane.b32.xlu0 %v1397_v38, %s3797_s13 }
 0x2dc   : > { %6118 = vst [vmem:[#allocation7_spill] sm:$0xff] %v5362_v52  ;;  %2724 = vmatmul.f32.gmra.mxu3 %v5362_v52  ;;  %v5367_v25 = vsub.f32 %v2277_v18, %v5362_v52 }
 0x2dd   : > { %v926_v53 = vpop.permute.xlu0 %925  ;;  %1283 = vrot.lane.b32.xlu2 %v5267_v19, %s3798_s14 }
 0x2de   : > { %993 = vst.msk [vmem:[#allocation3 + $0xe8] sm:$0xff] %vm963_vm8, %v926_v53  ;;  %v6090_v34 = vand.u32 4294901760, %v5367_v25 }
 0x2df   : > { %1186 = vst.msk [vmem:[#allocation3 + $0xe8] sm:$0xff] %vm1156_vm10, %v1119_v22  ;;  %v1471_v61 = vpop.permute.xlu2 %1470 }
 0x2e0   : > { %v1085_v27 = vpop.permute.xlu1 %1084  ;;  %v2540_v31 = vsub.f32 %v5367_v25, %v6090_v34  ;;  %v2165_v38 = vld [vmem:[#allocation3 + $0x58] sm:$0xff] }
 0x2e1   : > { %1169 = vst.msk [vmem:[#allocation3 + $0x60] sm:$0xff] %vm1156_vm10, %v1085_v27  ;;  %v2226_v28 = vsel %vm2191_vm2, %v2165_v38, 0 }
 0x2e2   : > { %v2541_v59 = vand.u32 4294901760, %v2540_v31  ;;  %v5379_v19 = vand.u32 4294901760, %v2226_v28 }
 0x2e3   : > { %2055 = vrot.lane.b32.xlu0 %v1976_v11, %s3799_s15 }
 0x2e4   : > { %2542 = vmatmul.f32.gmra.mxu2 %v2541_v59  ;;  %2656 = vmatmul.f32.gmra.mxu1 %v5379_v19  ;;  %v5384_v22 = vsub.f32 %v2226_v28, %v5379_v19 }
 0x2e5   : > { %v1312_v18 = vpop.permute.xlu0 %1311  ;;  %1862 = vrot.lane.b32.xlu2 %v5297_v4, %s3800_s16 }
 0x2e6   : > { %1379 = vst.msk [vmem:[#allocation3 + $0xe8] sm:$0xff] %vm1349_vm11, %v1312_v18  ;;  %v6092_v53 = vand.u32 4294901760, %v5384_v22 }
 0x2e7   : > { %1572 = vst.msk [vmem:[#allocation3 + $0xe8] sm:$0xff] %vm1542_vm12, %v1505_v48  ;;  %v2084_v27 = vpop.permute.xlu2 %2083 }
 0x2e8   : > { %v1698_v31 = vpop.permute.xlu1 %1697  ;;  %v2404_v11 = vsub.f32 %v5384_v22, %v6092_v53 }
 0x2e9   : > { %1765 = vst.msk [vmem:[#allocation3 + $0xe8] sm:$0xff] %vm1735_vm13, %v1698_v31 }
 0x2ea   : > { %v2405_v38 = vand.u32 4294901760, %v2404_v11 }
 0x2ec   : > { %2406 = vmatmul.f32.gmra.mxu0 %v2405_v38 }
 0x2ed   : > { %v1278_v28 = vpop.permute.xlu0 %1277 }
 0x2ee   : > { %1362 = vst.msk [vmem:[#allocation3 + $0x60] sm:$0xff] %vm1349_vm11, %v1278_v28 }
 0x2ef   : > { %1555 = vst.msk [vmem:[#allocation3 + $0x60] sm:$0xff] %vm1542_vm12, %v1471_v61  ;;  %v2050_v4 = vpop.permute.xlu2 %2049 }
 0x2f0   : > { %v1664_v59 = vpop.permute.xlu1 %1663 }
 0x2f1   : > { %1748 = vst.msk [vmem:[#allocation3 + $0x60] sm:$0xff] %vm1735_vm13, %v1664_v59 }
 0x2f5   : > { %v1891_v48 = vpop.permute.xlu0 %1890 }
 0x2f6   : > { %1958 = vst.msk [vmem:[#allocation3 + $0xe8] sm:$0xff] %vm1928_vm14, %v1891_v48 }
 0x2f7   : > { %2151 = vst.msk [vmem:[#allocation3 + $0xe8] sm:$0xff] %vm2121_vm15, %v2084_v27  ;;  %v1087_v18 = vpop.permute.xlu2 %1086 }
 0x2f8   : > { %v928_v34 = vpop.permute.xlu1 %927  ;;  %1170 = vst.msk [vmem:[#allocation3 + $0x68] sm:$0xff] %vm1156_vm10, %v1087_v18 }
 0x2f9   : > { %994 = vst.msk [vmem:[#allocation3 + $0xf0] sm:$0xff] %vm963_vm8, %v928_v34 }
 0x2fd   : > { %v1857_v31 = vpop.permute.xlu0 %1856 }
 0x2fe   : > { %1941 = vst.msk [vmem:[#allocation3 + $0x60] sm:$0xff] %vm1928_vm14, %v1857_v31  ;;  %v2183_v11 = vld [vmem:[#allocation3 + $0xe8] sm:$0xff] }
 0x2ff   : > { %2134 = vst.msk [vmem:[#allocation3 + $0x60] sm:$0xff] %vm2121_vm15, %v2050_v4  ;;  %v2280_v61 = vsel %vm2191_vm2, %v2183_v11, 0  ;;  %v1700_v38 = vpop.permute.xlu2 %1699 }
 0x300   : > { %v1314_v28 = vpop.permute.xlu1 %1313  ;;  %v5405_v59 = vand.u32 4294901760, %v2280_v61 }
 0x302   : > { %6119 = vst [vmem:[#allocation8_spill] sm:$0xff] %v5405_v59  ;;  %2728 = vmatmul.f32.gmra.mxu3 %v5405_v59  ;;  %v5409_v27 = vsub.f32 %v2280_v61, %v5405_v59 }
 0x304   : > { %v6094_v48 = vand.u32 4294901760, %v5409_v27 }
 0x305   : > { %v1121_v34 = vpop.permute.xlu0 %1120 }
 0x306   : > { %1187 = vst.msk [vmem:[#allocation3 + $0xf0] sm:$0xff] %vm1156_vm10, %v1121_v34  ;;  %v2548_v4 = vsub.f32 %v5409_v27, %v6094_v48  ;;  %v2166_v18 = vld [vmem:[#allocation3 + $0x60] sm:$0xff] }
 0x307   : > { %1380 = vst.msk [vmem:[#allocation3 + $0xf0] sm:$0xff] %vm1349_vm11, %v1314_v28  ;;  %v2229_v31 = vsel %vm2191_vm2, %v2166_v18, 0  ;;  %v1666_v11 = vpop.permute.xlu2 %1665 }
 0x308   : > { %v2549_v42 = vand.u32 4294901760, %v2548_v4  ;;  %v1280_v53 = vpop.permute.xlu1 %1279  ;;  %v5418_v0 = vand.u32 4294901760, %v2229_v31 }
 0x309   : > { %1363 = vst.msk [vmem:[#allocation3 + $0x68] sm:$0xff] %vm1349_vm11, %v1280_v53 }
 0x30a   : > { %2550 = vmatmul.f32.gmra.mxu2 %v2549_v42  ;;  %2660 = vmatmul.f32.gmra.mxu1 %v5418_v0  ;;  %v5423_v61 = vsub.f32 %v2229_v31, %v5418_v0 }
 0x30c   : > { %v6095_v34 = vand.u32 4294901760, %v5423_v61 }
 0x30d   : > { %v1507_v48 = vpop.permute.xlu0 %1506 }
 0x30e   : > { %1573 = vst.msk [vmem:[#allocation3 + $0xf0] sm:$0xff] %vm1542_vm12, %v1507_v48  ;;  %v2412_v28 = vsub.f32 %v5423_v61, %v6095_v34 }
 0x30f   : > { %1766 = vst.msk [vmem:[#allocation3 + $0xf0] sm:$0xff] %vm1735_vm13, %v1700_v38  ;;  %v930_v4 = vpop.permute.xlu2 %929 }
 0x310   : > { %v2413_v18 = vand.u32 4294901760, %v2412_v28  ;;  %v1893_v53 = vpop.permute.xlu1 %1892  ;;  %995 = vst.msk [vmem:[#allocation3 + $0xf8] sm:$0xff] %vm963_vm8, %v930_v4 }
 0x311   : > { %1959 = vst.msk [vmem:[#allocation3 + $0xf0] sm:$0xff] %vm1928_vm14, %v1893_v53 }
 0x312   : > { %2414 = vmatmul.f32.gmra.mxu0 %v2413_v18 }
 0x315   : > { %v1473_v42 = vpop.permute.xlu0 %1472 }
 0x316   : > { %1556 = vst.msk [vmem:[#allocation3 + $0x68] sm:$0xff] %vm1542_vm12, %v1473_v42 }
 0x317   : > { %1749 = vst.msk [vmem:[#allocation3 + $0x68] sm:$0xff] %vm1735_vm13, %v1666_v11  ;;  %v1316_v48 = vpop.permute.xlu2 %1315 }
 0x318   : > { %v1859_v31 = vpop.permute.xlu1 %1858 }
 0x319   : > { %1942 = vst.msk [vmem:[#allocation3 + $0x68] sm:$0xff] %vm1928_vm14, %v1859_v31 }
 0x31d   : > { %v2086_v34 = vpop.permute.xlu0 %2085 }
 0x31e   : > { %2152 = vst.msk [vmem:[#allocation3 + $0xf0] sm:$0xff] %vm2121_vm15, %v2086_v34 }
 0x31f   : > { %v1282_v28 = vpop.permute.xlu2 %1281 }
 0x320   : > { %v1123_v38 = vpop.permute.xlu1 %1122 }
 0x321   : > { %1188 = vst.msk [vmem:[#allocation3 + $0xf8] sm:$0xff] %vm1156_vm10, %v1123_v38 }
 0x322   : > { %1381 = vst.msk [vmem:[#allocation3 + $0xf8] sm:$0xff] %vm1349_vm11, %v1316_v48 }
 0x325   : > { %v2052_v4 = vpop.permute.xlu0 %2051  ;;  %v2184_v18 = vld [vmem:[#allocation3 + $0xf0] sm:$0xff] }
 0x326   : > { %2135 = vst.msk [vmem:[#allocation3 + $0x68] sm:$0xff] %vm2121_vm15, %v2052_v4  ;;  %v2283_v53 = vsel %vm2191_vm2, %v2184_v18, 0 }
 0x327   : > { %v5441_v11 = vand.u32 4294901760, %v2283_v53  ;;  %v1895_v38 = vpop.permute.xlu2 %1894 }
 0x328   : > { %v1509_v42 = vpop.permute.xlu1 %1508 }
 0x329   : > { %6120 = vst [vmem:[#allocation9_spill] sm:$0xff] %v5441_v11  ;;  %2732 = vmatmul.f32.gmra.mxu3 %v5441_v11  ;;  %v5446_v34 = vsub.f32 %v2283_v53, %v5441_v11 }
 0x32a   : > { %1574 = vst.msk [vmem:[#allocation3 + $0xf8] sm:$0xff] %vm1542_vm12, %v1509_v42 }
 0x32b   : > { %6121 = vst [vmem:[#allocation10_spill] sm:$0xff] %v5446_v34  ;;  %v6101_v31 = vand.u32 4294901760, %v5446_v34 }
 0x32d   : > { %v1089_v48 = vpop.permute.xlu0 %1088  ;;  %v2556_v4 = vsub.f32 %v5446_v34, %v6101_v31  ;;  %v2167_v6 = vld [vmem:[#allocation3 + $0x68] sm:$0xff] }
 0x32e   : > { %1171 = vst.msk [vmem:[#allocation3 + $0x70] sm:$0xff] %vm1156_vm10, %v1089_v48  ;;  %v2232_v18 = vsel %vm2191_vm2, %v2167_v6, 0 }
 0x32f   : > { %v2557_v59 = vand.u32 4294901760, %v2556_v4  ;;  %v5454_v52 = vand.u32 4294901760, %v2232_v18  ;;  %1364 = vst.msk [vmem:[#allocation3 + $0x70] sm:$0xff] %vm1349_vm11, %v1282_v28  ;;  %v1861_v48 = vpop.permute.xlu2 %1860 }
 0x330   : > { %v1475_v53 = vpop.permute.xlu1 %1474 }
 0x331   : > { %2558 = vmatmul.f32.gmra.mxu2 %v2557_v59  ;;  %2664 = vmatmul.f32.gmra.mxu1 %v5454_v52  ;;  %1557 = vst.msk [vmem:[#allocation3 + $0x70] sm:$0xff] %vm1542_vm12, %v1475_v53  ;;  %v5460_v42 = vsub.f32 %v2232_v18, %v5454_v52 }
 0x333   : > { %v6106_v31 = vand.u32 4294901760, %v5460_v42 }
 0x335   : > { %v1702_v11 = vpop.permute.xlu0 %1701  ;;  %v2420_v6 = vsub.f32 %v5460_v42, %v6106_v31 }
 0x336   : > { %1767 = vst.msk [vmem:[#allocation3 + $0xf8] sm:$0xff] %vm1735_vm13, %v1702_v11 }
 0x337   : > { %v2421_v28 = vand.u32 4294901760, %v2420_v6  ;;  %1960 = vst.msk [vmem:[#allocation3 + $0xf8] sm:$0xff] %vm1928_vm14, %v1895_v38  ;;  %v1284_v18 = vpop.permute.xlu2 %1283 }
 0x338   : > { %v2088_v59 = vpop.permute.xlu1 %2087 }
 0x339   : > { %2422 = vmatmul.f32.gmra.mxu0 %v2421_v28  ;;  %2153 = vst.msk [vmem:[#allocation3 + $0xf8] sm:$0xff] %vm2121_vm15, %v2088_v59 }
 0x33d   : > { %v1668_v4 = vpop.permute.xlu0 %1667 }
 0x33e   : > { %1750 = vst.msk [vmem:[#allocation3 + $0x70] sm:$0xff] %vm1735_vm13, %v1668_v4 }
 0x33f   : > { %1943 = vst.msk [vmem:[#allocation3 + $0x70] sm:$0xff] %vm1928_vm14, %v1861_v48  ;;  %v1863_v34 = vpop.permute.xlu2 %1862 }
 0x340   : > { %v2185_v53 = vld [vmem:[#allocation3 + $0xf8] sm:$0xff]  ;;  %v1091_v30 = vpop.permute.xlu1 %1090 }
 0x341   : > { %v2286_v31 = vsel %vm2191_vm2, %v2185_v53, 0  ;;  %1172 = vst.msk [vmem:[#allocation3 + $0x78] sm:$0xff] %vm1156_vm10, %v1091_v30  ;;  %v6124_v30 = vand.u32 4294901760, %v4692_v23 }
 0x342   : > { %v5473_v11 = vand.u32 4294901760, %v2286_v31  ;;  %1365 = vst.msk [vmem:[#allocation3 + $0x78] sm:$0xff] %vm1349_vm11, %v1284_v18 }
 0x344   : > { %6122 = vst [vmem:[#allocation11_spill] sm:$0xff] %v5473_v11  ;;  %2736 = vmatmul.f32.gmra.mxu3 %v5473_v11  ;;  %v5478_v38 = vsub.f32 %v2286_v31, %v5473_v11 }
 0x345   : > { %v2054_v6 = vpop.permute.xlu0 %2053 }
 0x346   : > { %6123 = vst [vmem:[#allocation12_spill] sm:$0xff] %v5478_v38  ;;  %v6111_v48 = vand.u32 4294901760, %v5478_v38 }
 0x347   : > { %2136 = vst.msk [vmem:[#allocation3 + $0x70] sm:$0xff] %vm2121_vm15, %v2054_v6  ;;  %v5489_v6 = vpop.f32.mrf.mxu3 }
 0x348   : > { %v2564_v28 = vsub.f32 %v5478_v38, %v6111_v48  ;;  %v1670_v4 = vpop.permute.xlu1 %1669  ;;  %6125 = vst [vmem:[#allocation13_spill] sm:$0xff] %v5489_v6 }
 0x34a   : > { %v2565_v59 = vand.u32 4294901760, %v2564_v28 }
 0x34c   : > { %2566 = vmatmul.f32.gmra.mxu2 %v2565_v59  ;;  %2951 = vmatmul.f32.vlgmr.msrb.gmra.mxu3 %v6124_v30  ;;  %v6126_v30 = vand.u32 4294901760, %v4758_v54 }
 0x34d   : > { %v1477_v18 = vpop.permute.xlu0 %1476 }
 0x34e   : > { %v2168_v53 = vld [vmem:[#allocation3 + $0x70] sm:$0xff]  ;;  %1558 = vst.msk [vmem:[#allocation3 + $0x78] sm:$0xff] %vm1542_vm12, %v1477_v18 }
 0x34f   : > { %v2235_v31 = vsel %vm2191_vm2, %v2168_v53, 0  ;;  %1751 = vst.msk [vmem:[#allocation3 + $0x78] sm:$0xff] %vm1735_vm13, %v1670_v4  ;;  %v5509_v4 = vpop.f32.mrf.mxu3 }
 0x350   : > { %v5491_v11 = vand.u32 4294901760, %v2235_v31  ;;  %1944 = vst.msk [vmem:[#allocation3 + $0x78] sm:$0xff] %vm1928_vm14, %v1863_v34  ;;  %v5507_v34 = vpop.f32.mrf.mxu2 }
 0x351   : > { %6127 = vst [vmem:[#allocation14_spill] sm:$0xff] %v5507_v34 }
 0x352   : > { %2668 = vmatmul.f32.gmra.mxu1 %v5491_v11  ;;  %v5497_v28 = vsub.f32 %v2235_v31, %v5491_v11  ;;  %6128 = vst [vmem:[#allocation15_spill] sm:$0xff] %v5509_v4 }
 0x354   : > { %v6114_v59 = vand.u32 4294901760, %v5497_v28  ;;  %2768 = vmatmul.f32.vlgmr.msrb.gmra.mxu2 %v4692_v23  ;;  %2957 = vmatmul.f32.gmra.mxu3 %v6126_v30  ;;  %v6129_v23 = vand.u32 4294901760, %v4824_v35 }
 0x355   : > { %v2056_v18 = vpop.permute.xlu0 %2055 }
 0x356   : > { %v2428_v53 = vsub.f32 %v5497_v28, %v6114_v59  ;;  %2137 = vst.msk [vmem:[#allocation3 + $0x78] sm:$0xff] %vm2121_vm15, %v2056_v18 }
 0x357   : > { %v5517_v38 = vpop.f32.mrf.mxu3 }
 0x358   : > { %v2429_v31 = vand.u32 4294901760, %v2428_v53  ;;  %v5515_v6 = vpop.f32.mrf.mxu2  ;;  %6131 = vst [vmem:[#allocation17_spill] sm:$0xff] %v5517_v38 }
 0x359   : > { %6130 = vst [vmem:[#allocation16_spill] sm:$0xff] %v5515_v6 }
 0x35a   : > { %2430 = vmatmul.f32.gmra.mxu0 %v2429_v31  ;;  %v5532_v31 = vpop.f32.mrf.mxu1 }
 0x35c   : > { %2773 = vmatmul.f32.gmra.mxu2 %v4758_v54  ;;  %2963 = vmatmul.f32.gmra.mxu3 %v6129_v23  ;;  %v6132_v54 = vand.u32 4294901760, %v4890_v14 }
 0x35d   : > { %v2169_v48 = vld [vmem:[#allocation3 + $0x78] sm:$0xff] }
 0x35e   : > { %v2238_v30 = vsel %vm2191_vm2, %v2169_v48, 0 }
 0x35f   : > { %v5519_v59 = vand.u32 4294901760, %v2238_v30  ;;  %v5536_v38 = vpop.f32.mrf.mxu3 }
 0x360   : > { %v5534_v23 = vpop.f32.mrf.mxu2  ;;  %6134 = vst [vmem:[#allocation19_spill] sm:$0xff] %v5536_v38 }
 0x361   : > { %2672 = vmatmul.f32.gmra.mxu1 %v5519_v59  ;;  %v5523_v18 = vsub.f32 %v2238_v30, %v5519_v59  ;;  %6133 = vst [vmem:[#allocation18_spill] sm:$0xff] %v5534_v23  ;;  %v5542_v30 = vpop.f32.mrf.mxu0 }
 0x363   : > { %v6115_v53 = vand.u32 4294901760, %v5523_v18 }
 0x364   : > { %2778 = vmatmul.f32.gmra.mxu2 %v4824_v35  ;;  %2969 = vmatmul.f32.gmra.mxu3 %v6132_v54  ;;  %v6135_v35 = vand.u32 4294901760, %v4956_v44  ;;  %v5544_v54 = vpop.f32.mrf.mxu1 }
 0x365   : > { %v2436_v48 = vsub.f32 %v5523_v18, %v6115_v53 }
 0x367   : > { %v2437_v4 = vand.u32 4294901760, %v2436_v48  ;;  %v5548_v6 = vpop.f32.mrf.mxu3 }
 0x368   : > { %v5546_v53 = vpop.f32.mrf.mxu2  ;;  %6137 = vst [vmem:[#allocation21_spill] sm:$0xff] %v5548_v6 }
 0x369   : > { %2438 = vmatmul.f32.gmra.mxu0 %v2437_v4  ;;  %3323 = vmatmul.f32.vlgmr.msrb.gmra.mxu1 %v4685_v17  ;;  %6136 = vst [vmem:[#allocation20_spill] sm:$0xff] %v5546_v53  ;;  %v6138_v4 = vand.u32 4294901760, %v5016_v50 }
 0x36c   : > { %2783 = vmatmul.f32.gmra.mxu2 %v4890_v14  ;;  %2975 = vmatmul.f32.gmra.mxu3 %v6135_v35  ;;  %v5555_v14 = vpop.f32.mrf.mxu0  ;;  %v5557_v48 = vpop.f32.mrf.mxu1 }
 0x36f   : > { %v5561_v38 = vpop.f32.mrf.mxu3 }
 0x370   : > { %v5559_v35 = vpop.f32.mrf.mxu2  ;;  %6140 = vst [vmem:[#allocation23_spill] sm:$0xff] %v5561_v38 }
 0x371   : > { %3173 = vmatmul.f32.vlgmr.msrb.gmra.mxu0 %v4685_v17  ;;  %3327 = vmatmul.f32.gmra.mxu1 %v4751_v47  ;;  %6139 = vst [vmem:[#allocation22_spill] sm:$0xff] %v5559_v35  ;;  %v6141_v17 = vand.u32 4294901760, %v5084_v20 }
 0x374   : > { %2788 = vmatmul.f32.gmra.mxu2 %v4956_v44  ;;  %2981 = vmatmul.f32.gmra.mxu3 %v6138_v4  ;;  %v5568_v44 = vpop.f32.mrf.mxu0  ;;  %v5570_v4 = vpop.f32.mrf.mxu1 }
 0x377   : > { %v5574_v53 = vpop.f32.mrf.mxu3 }
 0x378   : > { %v5572_v6 = vpop.f32.mrf.mxu2  ;;  %6143 = vst [vmem:[#allocation25_spill] sm:$0xff] %v5574_v53 }
 0x379   : > { %3177 = vmatmul.f32.gmra.mxu0 %v4751_v47  ;;  %3331 = vmatmul.f32.gmra.mxu1 %v4817_v29  ;;  %6142 = vst [vmem:[#allocation24_spill] sm:$0xff] %v5572_v6  ;;  %v6144_v47 = vand.u32 4294901760, %v5149_v5 }
 0x37c   : > { %2793 = vmatmul.f32.gmra.mxu2 %v5016_v50  ;;  %2987 = vmatmul.f32.gmra.mxu3 %v6141_v17  ;;  %v5581_v50 = vpop.f32.mrf.mxu0  ;;  %v5583_v17 = vpop.f32.mrf.mxu1 }
 0x37f   : > { %v5587_v35 = vpop.f32.mrf.mxu3 }
 0x380   : > { %v5585_v38 = vpop.f32.mrf.mxu2  ;;  %6146 = vst [vmem:[#allocation27_spill] sm:$0xff] %v5587_v35 }
 0x381   : > { %3181 = vmatmul.f32.gmra.mxu0 %v4817_v29  ;;  %3335 = vmatmul.f32.gmra.mxu1 %v4883_v9  ;;  %6145 = vst [vmem:[#allocation26_spill] sm:$0xff] %v5585_v38  ;;  %v6147_v29 = vand.u32 4294901760, %v5203_v10 }
 0x384   : > { %2798 = vmatmul.f32.gmra.mxu2 %v5084_v20  ;;  %2993 = vmatmul.f32.gmra.mxu3 %v6144_v47  ;;  %v5594_v20 = vpop.f32.mrf.mxu0  ;;  %v5596_v47 = vpop.f32.mrf.mxu1 }
 0x387   : > { %v5600_v6 = vpop.f32.mrf.mxu3 }
 0x388   : > { %v5598_v53 = vpop.f32.mrf.mxu2  ;;  %6149 = vst [vmem:[#allocation29_spill] sm:$0xff] %v5600_v6 }
 0x389   : > { %3185 = vmatmul.f32.gmra.mxu0 %v4883_v9  ;;  %3339 = vmatmul.f32.gmra.mxu1 %v4951_v36  ;;  %6148 = vst [vmem:[#allocation28_spill] sm:$0xff] %v5598_v53  ;;  %v6150_v9 = vand.u32 4294901760, %v5274_v40 }
 0x38c   : > { %2803 = vmatmul.f32.gmra.mxu2 %v5149_v5  ;;  %2999 = vmatmul.f32.gmra.mxu3 %v6147_v29  ;;  %v5607_v5 = vpop.f32.mrf.mxu0  ;;  %v5609_v29 = vpop.f32.mrf.mxu1 }
 0x38f   : > { %v5613_v38 = vpop.f32.mrf.mxu3 }
 0x390   : > { %v5611_v35 = vpop.f32.mrf.mxu2  ;;  %6152 = vst [vmem:[#allocation31_spill] sm:$0xff] %v5613_v38 }
 0x391   : > { %3189 = vmatmul.f32.gmra.mxu0 %v4951_v36  ;;  %3343 = vmatmul.f32.gmra.mxu1 %v5011_v62  ;;  %6151 = vst [vmem:[#allocation30_spill] sm:$0xff] %v5611_v35  ;;  %v6153_v36 = vand.u32 4294901760, %v5338_v7 }
 0x394   : > { %2808 = vmatmul.f32.gmra.mxu2 %v5203_v10  ;;  %3005 = vmatmul.f32.gmra.mxu3 %v6150_v9  ;;  %v5620_v10 = vpop.f32.mrf.mxu0  ;;  %v5622_v9 = vpop.f32.mrf.mxu1 }
 0x397   : > { %v5626_v53 = vpop.f32.mrf.mxu3 }
 0x398   : > { %v5624_v6 = vpop.f32.mrf.mxu2  ;;  %6155 = vst [vmem:[#allocation33_spill] sm:$0xff] %v5626_v53 }
 0x399   : > { %3193 = vmatmul.f32.gmra.mxu0 %v5011_v62  ;;  %3347 = vmatmul.f32.gmra.mxu1 %v5077_v43  ;;  %6154 = vst [vmem:[#allocation32_spill] sm:$0xff] %v5624_v6  ;;  %v6156_v62 = vand.u32 4294901760, %v5384_v22 }
 0x39c   : > { %2813 = vmatmul.f32.gmra.mxu2 %v5274_v40  ;;  %3011 = vmatmul.f32.gmra.mxu3 %v6153_v36  ;;  %v5633_v40 = vpop.f32.mrf.mxu0  ;;  %v5635_v36 = vpop.f32.mrf.mxu1 }
 0x39f   : > { %v5639_v35 = vpop.f32.mrf.mxu3 }
 0x3a0   : > { %v5637_v38 = vpop.f32.mrf.mxu2  ;;  %6158 = vst [vmem:[#allocation35_spill] sm:$0xff] %v5639_v35 }
 0x3a1   : > { %3197 = vmatmul.f32.gmra.mxu0 %v5077_v43  ;;  %3351 = vmatmul.f32.gmra.mxu1 %v5144_v49  ;;  %6157 = vst [vmem:[#allocation34_spill] sm:$0xff] %v5637_v38  ;;  %v6159_v43 = vand.u32 4294901760, %v5423_v61 }
 0x3a4   : > { %2818 = vmatmul.f32.gmra.mxu2 %v5338_v7  ;;  %3017 = vmatmul.f32.gmra.mxu3 %v6156_v62  ;;  %v5646_v7 = vpop.f32.mrf.mxu0  ;;  %v5648_v62 = vpop.f32.mrf.mxu1 }
 0x3a7   : > { %v5652_v6 = vpop.f32.mrf.mxu3 }
 0x3a8   : > { %v5650_v53 = vpop.f32.mrf.mxu2  ;;  %6161 = vst [vmem:[#allocation37_spill] sm:$0xff] %v5652_v6 }
 0x3a9   : > { %3201 = vmatmul.f32.gmra.mxu0 %v5144_v49  ;;  %3355 = vmatmul.f32.gmra.mxu1 %v5195_v45  ;;  %6160 = vst [vmem:[#allocation36_spill] sm:$0xff] %v5650_v53  ;;  %v6162_v49 = vand.u32 4294901760, %v5460_v42 }
 0x3ac   : > { %2823 = vmatmul.f32.gmra.mxu2 %v5384_v22  ;;  %3023 = vmatmul.f32.gmra.mxu3 %v6159_v43  ;;  %v5659_v22 = vpop.f32.mrf.mxu0  ;;  %v5661_v43 = vpop.f32.mrf.mxu1 }
 0x3af   : > { %v5665_v38 = vpop.f32.mrf.mxu3 }
 0x3b0   : > { %v5663_v35 = vpop.f32.mrf.mxu2  ;;  %6164 = vst [vmem:[#allocation39_spill] sm:$0xff] %v5665_v38 }
 0x3b1   : > { %3205 = vmatmul.f32.gmra.mxu0 %v5195_v45  ;;  %3359 = vmatmul.f32.gmra.mxu1 %v5269_v57  ;;  %6163 = vst [vmem:[#allocation38_spill] sm:$0xff] %v5663_v35  ;;  %v6165_v45 = vand.u32 4294901760, %v5497_v28 }
 0x3b4   : > { %2828 = vmatmul.f32.gmra.mxu2 %v5423_v61  ;;  %3029 = vmatmul.f32.gmra.mxu3 %v6162_v49  ;;  %v5672_v61 = vpop.f32.mrf.mxu0  ;;  %v5674_v49 = vpop.f32.mrf.mxu1 }
 0x3b7   : > { %v5678_v53 = vpop.f32.mrf.mxu3 }
 0x3b8   : > { %v5676_v6 = vpop.f32.mrf.mxu2  ;;  %6167 = vst [vmem:[#allocation41_spill] sm:$0xff] %v5678_v53 }
 0x3b9   : > { %3209 = vmatmul.f32.gmra.mxu0 %v5269_v57  ;;  %3363 = vmatmul.f32.gmra.mxu1 %v5333_v21  ;;  %6166 = vst [vmem:[#allocation40_spill] sm:$0xff] %v5676_v6  ;;  %v6168_v57 = vand.u32 4294901760, %v5523_v18 }
 0x3bc   : > { %2833 = vmatmul.f32.gmra.mxu2 %v5460_v42  ;;  %3035 = vmatmul.f32.gmra.mxu3 %v6165_v45  ;;  %v5685_v42 = vpop.f32.mrf.mxu0  ;;  %v5687_v45 = vpop.f32.mrf.mxu1 }
 0x3c0   : > { %v5689_v38 = vpop.f32.mrf.mxu2 }
 0x3c1   : > { %3213 = vmatmul.f32.gmra.mxu0 %v5333_v21  ;;  %3367 = vmatmul.f32.gmra.mxu1 %v5379_v19  ;;  %6169 = vst [vmem:[#allocation42_spill] sm:$0xff] %v5689_v38  ;;  %v6170_v21 = vand.u32 4294901760, %v4626_v41 }
 0x3c4   : > { %2838 = vmatmul.f32.gmra.mxu2 %v5497_v28  ;;  %3041 = vmatmul.f32.gmra.mxu3 %v6168_v57  ;;  %v5696_v28 = vpop.f32.mrf.mxu0  ;;  %v5698_v53 = vpop.f32.mrf.mxu1 }
 0x3c5   : > { %6171 = vst [vmem:[#allocation43_spill] sm:$0xff] %v5698_v53  ;;  %v2618_v53 = vadd.f32 %v5544_v54, %v5555_v14 }
 0x3c7   : > { %v2737_v35 = vpop.f32.mrf.mxu3 }
 0x3c9   : > { %3217 = vmatmul.f32.gmra.mxu0 %v5379_v19  ;;  %3371 = vmatmul.f32.gmra.mxu1 %v5418_v0  ;;  %v6173_v19 = vand.u32 4294901760, %v4664_v63 }
 0x3cc   : > { %2843 = vmatmul.f32.gmra.mxu2 %v5523_v18  ;;  %3047 = vmatmul.f32.gmra.mxu3 %v6170_v21  ;;  %v5707_v18 = vpop.f32.mrf.mxu0 }
 0x3cd   : > { %6174 = vst [vmem:[#allocation45_spill] sm:$0xff] %v5707_v18 }
 0x3cf   : > { %v2567_v57 = vpop.f32.mrf.mxu2  ;;  %v2952_v6 = vpop.f32.mrf.mxu3 }
 0x3d0   : > { %v5700_v23 = vadd.f32 %v2737_v35, %v2567_v57  ;;  %v5709_v21 = vpop.f32.mrf.mxu1 }
 0x3d1   : > { %3221 = vmatmul.f32.gmra.mxu0 %v5418_v0  ;;  %3375 = vmatmul.f32.gmra.mxu1 %v5454_v52  ;;  %6175 = vst [vmem:[#allocation46_spill] sm:$0xff] %v5709_v21  ;;  %v6176_v0 = vand.u32 4294901760, %v4730_v33 }
 0x3d2   : > { %6172 = vst [vmem:[#allocation44_spill] sm:$0xff] %v5700_v23 }
 0x3d4   : > { %2848 = vmatmul.f32.gmra.mxu2 %v4626_v41  ;;  %3053 = vmatmul.f32.gmra.mxu3 %v6173_v19 }
 0x3d7   : > { %v2769_v38 = vpop.f32.mrf.mxu2  ;;  %v2958_v34 = vpop.f32.mrf.mxu3 }
 0x3d8   : > { %v5716_v35 = vpop.f32.mrf.mxu0 }
 0x3d9   : > { %3225 = vmatmul.f32.gmra.mxu0 %v5454_v52  ;;  %3379 = vmatmul.f32.gmra.mxu1 %v5491_v11  ;;  %6177 = vst [vmem:[#allocation47_spill] sm:$0xff] %v5716_v35  ;;  %v6179_v52 = vand.u32 4294901760, %v4796_v16 }
 0x3dc   : > { %2853 = vmatmul.f32.gmra.mxu2 %v4664_v63  ;;  %3059 = vmatmul.f32.gmra.mxu3 %v6176_v0  ;;  %v2614_v0 = vadd.f32 %v5532_v31, %v5542_v30 }
 0x3de   : > { %v5718_v41 = vpop.f32.mrf.mxu1  ;;  %v2770_v35 = vadd.f32 %v2769_v38, %v2614_v0 }
 0x3df   : > { %6178 = vst [vmem:[#allocation48_spill] sm:$0xff] %v5718_v41  ;;  %v2774_v57 = vpop.f32.mrf.mxu2  ;;  %v2964_v19 = vpop.f32.mrf.mxu3 }
 0x3e1   : > { %3229 = vmatmul.f32.gmra.mxu0 %v5491_v11  ;;  %3383 = vmatmul.f32.gmra.mxu1 %v5519_v59  ;;  %v2953_v11 = vadd.f32 %v2952_v6, %v2770_v35  ;;  %v6182_v6 = vand.u32 4294901760, %v4928_v12  ;;  %v2622_v35 = vadd.f32 %v5557_v48, %v5568_v44  ;;  %v6183_v48 = vand.u32 4294901760, %v4989_v24 }
 0x3e4   : > { %2858 = vmatmul.f32.gmra.mxu2 %v4730_v33  ;;  %3065 = vmatmul.f32.gmra.mxu3 %v6179_v52  ;;  %v6181_v33 = vand.u32 4294901760, %v4862_v8 }
 0x3e6   : > { %v5725_v23 = vpop.f32.mrf.mxu0  ;;  %v3324_v63 = vpop.f32.mrf.mxu1 }
 0x3e7   : > { %6180 = vst [vmem:[#allocation49_spill] sm:$0xff] %v5725_v23  ;;  %v2779_v21 = vpop.f32.mrf.mxu2  ;;  %v2970_v41 = vpop.f32.mrf.mxu3 }
 0x3e9   : > { %3233 = vmatmul.f32.gmra.mxu0 %v5519_v59  ;;  %3387 = vmatmul.f32.gmra.mxu1 %v4619_v37 }
 0x3ec   : > { %2863 = vmatmul.f32.gmra.mxu2 %v4796_v16  ;;  %3071 = vmatmul.f32.gmra.mxu3 %v6181_v33  ;;  %v2775_v16 = vadd.f32 %v2774_v57, %v2618_v53 }
 0x3ee   : > { %v3174_v52 = vpop.f32.mrf.mxu0  ;;  %v3328_v23 = vpop.f32.mrf.mxu1  ;;  %v2959_v59 = vadd.f32 %v2958_v34, %v2775_v16 }
 0x3ef   : > { %v3175_v18 = vadd.f32 %v3174_v52, %v2953_v11  ;;  %v2784_v31 = vpop.f32.mrf.mxu2  ;;  %v5736_v30 = vpop.f32.mrf.mxu3 }
 0x3f1   : > { %v3325_v38 = vadd.f32 %v3324_v63, %v3175_v18  ;;  %3237 = vmatmul.f32.gmra.mxu0 %v4619_v37  ;;  %3391 = vmatmul.f32.gmra.mxu1 %v4656_v1  ;;  %v2780_v37 = vadd.f32 %v2779_v21, %v2622_v35 }
 0x3f3   : > { %3451 = vst.msk [vmem:[%s5743_s7] sm:$0xff] %vm467_vm1, %v3325_v38  ;;  %v3553_v63 = vmul.f32 %v3325_v38, %v3325_v38  ;;  %v2965_v44 = vadd.f32 %v2964_v19, %v2780_v37 }
 0x3f4   : > { %2868 = vmatmul.f32.gmra.mxu2 %v4862_v8  ;;  %3077 = vmatmul.f32.gmra.mxu3 %v6182_v6  ;;  %v3483_v8 = vsel %vm467_vm1, %v3325_v38, 0.0  ;;  %v2626_v38 = vadd.f32 %v5570_v4, %v5581_v50  ;;  %v6184_v4 = vand.u32 4294901760, %v5054_v2 }
 0x3f6   : > { %v3178_v54 = vpop.f32.mrf.mxu0  ;;  %v3332_v14 = vpop.f32.mrf.mxu1 }
 0x3f7   : > { %v3179_v53 = vadd.f32 %v3178_v54, %v2959_v59  ;;  %v2789_v18 = vpop.f32.mrf.mxu2  ;;  %v5754_v57 = vpop.f32.mrf.mxu3 }
 0x3f9   : > { %v3329_v0 = vadd.f32 %v3328_v23, %v3179_v53  ;;  %3241 = vmatmul.f32.gmra.mxu0 %v4656_v1  ;;  %3395 = vmatmul.f32.gmra.mxu1 %v4722_v26  ;;  %v3585_v23 = vsel %vm467_vm1, %v3553_v63, 0.0 }
 0x3fb   : > { %3452 = vst.msk [vmem:[%s5743_s7 + $0x8] sm:$0xff] %vm467_vm1, %v3329_v0  ;;  %v3484_v34 = vsel %vm467_vm1, %v3329_v0, 0.0  ;;  %v3554_v33 = vmul.f32 %v3329_v0, %v3329_v0  ;;  %v2630_v0 = vadd.f32 %v5583_v17, %v5594_v20  ;;  %v6185_v17 = vand.u32 4294901760, %v5121_v56 }
 0x3fc   : > { %v3485_v11 = vadd.f32 %v3484_v34, %v3483_v8  ;;  %2873 = vmatmul.f32.gmra.mxu2 %v4928_v12  ;;  %3083 = vmatmul.f32.gmra.mxu3 %v6183_v48  ;;  %v2785_v12 = vadd.f32 %v2784_v31, %v2626_v38 }
 0x3fd   : > { %v3586_v1 = vsel %vm467_vm1, %v3554_v33, 0.0 }
 0x3fe   : > { %v3587_v21 = vadd.f32 %v3586_v1, %v3585_v23  ;;  %v3182_v52 = vpop.f32.mrf.mxu0  ;;  %v3336_v16 = vpop.f32.mrf.mxu1  ;;  %v2971_v31 = vadd.f32 %v2970_v41, %v2785_v12 }
 0x3ff   : > { %v3183_v6 = vadd.f32 %v3182_v52, %v2965_v44  ;;  %v2794_v59 = vpop.f32.mrf.mxu2  ;;  %v5769_v54 = vpop.f32.mrf.mxu3 }
 0x401   : > { %v3333_v35 = vadd.f32 %v3332_v14, %v3183_v6  ;;  %3245 = vmatmul.f32.gmra.mxu0 %v4722_v26  ;;  %3399 = vmatmul.f32.gmra.mxu1 %v4788_v13 }
 0x403   : > { %3453 = vst.msk [vmem:[%s5743_s7 + $0x10] sm:$0xff] %vm467_vm1, %v3333_v35  ;;  %v3486_v19 = vsel %vm467_vm1, %v3333_v35, 0.0  ;;  %v3555_v53 = vmul.f32 %v3333_v35, %v3333_v35 }
 0x404   : > { %v3487_v37 = vadd.f32 %v3486_v19, %v3485_v11  ;;  %2878 = vmatmul.f32.gmra.mxu2 %v4989_v24  ;;  %3089 = vmatmul.f32.gmra.mxu3 %v6184_v4  ;;  %v2790_v11 = vadd.f32 %v2789_v18, %v2630_v0 }
 0x405   : > { %v3588_v50 = vsel %vm467_vm1, %v3555_v53, 0.0 }
 0x406   : > { %v3589_v14 = vadd.f32 %v3588_v50, %v3587_v21  ;;  %v3186_v63 = vpop.f32.mrf.mxu0  ;;  %v3340_v26 = vpop.f32.mrf.mxu1  ;;  %v2977_v18 = vadd.f32 %v5736_v30, %v2790_v11  ;;  %v2634_v21 = vadd.f32 %v5596_v47, %v5607_v5  ;;  %v6186_v47 = vand.u32 4294901760, %v5181_v51 }
 0x407   : > { %v3187_v8 = vadd.f32 %v3186_v63, %v2971_v31  ;;  %v2799_v34 = vpop.f32.mrf.mxu2  ;;  %v5782_v33 = vpop.f32.mrf.mxu3  ;;  %v2642_v11 = vadd.f32 %v5622_v9, %v5633_v40  ;;  %v6188_v9 = vand.u32 4294901760, %v5319_v15 }
 0x408   : > { %v2795_v6 = vadd.f32 %v2794_v59, %v2634_v21 }
 0x409   : > { %v3337_v48 = vadd.f32 %v3336_v16, %v3187_v8  ;;  %3249 = vmatmul.f32.gmra.mxu0 %v4788_v13  ;;  %3403 = vmatmul.f32.gmra.mxu1 %v4854_v3 }
 0x40a   : > { %v2983_v59 = vadd.f32 %v5754_v57, %v2795_v6 }
 0x40b   : > { %3454 = vst.msk [vmem:[%s5743_s7 + $0x18] sm:$0xff] %vm467_vm1, %v3337_v48  ;;  %v3488_v24 = vsel %vm467_vm1, %v3337_v48, 0.0  ;;  %v3556_v41 = vmul.f32 %v3337_v48, %v3337_v48 }
 0x40c   : > { %v3489_v23 = vadd.f32 %v3488_v24, %v3487_v37  ;;  %2883 = vmatmul.f32.gmra.mxu2 %v5054_v2  ;;  %3095 = vmatmul.f32.gmra.mxu3 %v6185_v17  ;;  %v2638_v37 = vadd.f32 %v5609_v29, %v5620_v10  ;;  %v6187_v29 = vand.u32 4294901760, %v5253_v39 }
 0x40d   : > { %v3590_v20 = vsel %vm467_vm1, %v3556_v41, 0.0 }
 0x40e   : > { %v3591_v1 = vadd.f32 %v3590_v20, %v3589_v14  ;;  %v3190_v13 = vpop.f32.mrf.mxu0  ;;  %v3344_v44 = vpop.f32.mrf.mxu1  ;;  %v2800_v14 = vadd.f32 %v2799_v34, %v2638_v37 }
 0x40f   : > { %v3191_v52 = vadd.f32 %v3190_v13, %v2977_v18  ;;  %v2804_v16 = vpop.f32.mrf.mxu2  ;;  %v5796_v38 = vpop.f32.mrf.mxu3 }
 0x410   : > { %v2989_v0 = vadd.f32 %v5769_v54, %v2800_v14 }
 0x411   : > { %v3341_v12 = vadd.f32 %v3340_v26, %v3191_v52  ;;  %3253 = vmatmul.f32.gmra.mxu0 %v4854_v3  ;;  %3407 = vmatmul.f32.gmra.mxu1 %v4920_v58 }
 0x413   : > { %3455 = vst.msk [vmem:[%s5743_s7 + $0x20] sm:$0xff] %vm467_vm1, %v3341_v12  ;;  %v3490_v2 = vsel %vm467_vm1, %v3341_v12, 0.0  ;;  %v3557_v30 = vmul.f32 %v3341_v12, %v3341_v12 }
 0x414   : > { %v3491_v35 = vadd.f32 %v3490_v2, %v3489_v23  ;;  %2888 = vmatmul.f32.gmra.mxu2 %v5121_v56  ;;  %3101 = vmatmul.f32.gmra.mxu3 %v6186_v47  ;;  %v2805_v23 = vadd.f32 %v2804_v16, %v2642_v11 }
 0x415   : > { %v3592_v5 = vsel %vm467_vm1, %v3557_v30, 0.0 }
 0x416   : > { %v3593_v19 = vadd.f32 %v3592_v5, %v3591_v1  ;;  %v3194_v3 = vpop.f32.mrf.mxu0  ;;  %v3348_v53 = vpop.f32.mrf.mxu1  ;;  %v2995_v18 = vadd.f32 %v5782_v33, %v2805_v23  ;;  %v2650_v5 = vadd.f32 %v5648_v62, %v5659_v22  ;;  %v6190_v62 = vand.u32 4294901760, %v5409_v27 }
 0x417   : > { %v3195_v4 = vadd.f32 %v3194_v3, %v2983_v59  ;;  %v2809_v50 = vpop.f32.mrf.mxu2  ;;  %v5810_v31 = vpop.f32.mrf.mxu3  ;;  %v2658_v23 = vadd.f32 %v5674_v49, %v5685_v42  ;;  %v6195_v49 = vld [vmem:[#allocation12_spill] sm:$0xff] }
 0x418   : > { %v6196_v42 = vand.u32 4294901760, %v6195_v49 }
 0x419   : > { %v3345_v63 = vadd.f32 %v3344_v44, %v3195_v4  ;;  %3257 = vmatmul.f32.gmra.mxu0 %v4920_v58  ;;  %3411 = vmatmul.f32.gmra.mxu1 %v4981_v46  ;;  %v2646_v44 = vadd.f32 %v5635_v36, %v5646_v7  ;;  %v6189_v36 = vand.u32 4294901760, %v5367_v25 }
 0x41b   : > { %3456 = vst.msk [vmem:[%s5743_s7 + $0x28] sm:$0xff] %vm467_vm1, %v3345_v63  ;;  %v3492_v56 = vsel %vm467_vm1, %v3345_v63, 0.0  ;;  %v3558_v57 = vmul.f32 %v3345_v63, %v3345_v63  ;;  %v2810_v6 = vadd.f32 %v2809_v50, %v2646_v44 }
 0x41c   : > { %v3493_v26 = vadd.f32 %v3492_v56, %v3491_v35  ;;  %2893 = vmatmul.f32.gmra.mxu2 %v5181_v51  ;;  %3107 = vmatmul.f32.gmra.mxu3 %v6187_v29  ;;  %v2654_v56 = vadd.f32 %v5661_v43, %v5672_v61  ;;  %v6192_v43 = vld [vmem:[#allocation10_spill] sm:$0xff] }
 0x41d   : > { %v3594_v10 = vsel %vm467_vm1, %v3558_v57, 0.0  ;;  %v3001_v30 = vadd.f32 %v5796_v38, %v2810_v6  ;;  %v6193_v61 = vand.u32 4294901760, %v6192_v43 }
 0x41e   : > { %v3595_v8 = vadd.f32 %v3594_v10, %v3593_v19  ;;  %v3198_v58 = vpop.f32.mrf.mxu0  ;;  %v3352_v34 = vpop.f32.mrf.mxu1 }
 0x41f   : > { %v3199_v48 = vadd.f32 %v3198_v58, %v2989_v0  ;;  %v2814_v24 = vpop.f32.mrf.mxu2  ;;  %v5824_v41 = vpop.f32.mrf.mxu3 }
 0x421   : > { %v3349_v17 = vadd.f32 %v3348_v53, %v3199_v48  ;;  %3261 = vmatmul.f32.gmra.mxu0 %v4981_v46  ;;  %3415 = vmatmul.f32.gmra.mxu1 %v5048_v60  ;;  %v2815_v53 = vadd.f32 %v2814_v24, %v2650_v5  ;;  %v6198_v5 = vld [vmem:[#allocation45_spill] sm:$0xff] }
 0x423   : > { %3457 = vst.msk [vmem:[%s5743_s7 + $0x30] sm:$0xff] %vm467_vm1, %v3349_v17  ;;  %v3494_v51 = vsel %vm467_vm1, %v3349_v17, 0.0  ;;  %v3559_v54 = vmul.f32 %v3349_v17, %v3349_v17  ;;  %v3007_v50 = vadd.f32 %v5810_v31, %v2815_v53 }
 0x424   : > { %v3495_v20 = vadd.f32 %v3494_v51, %v3493_v26  ;;  %2898 = vmatmul.f32.gmra.mxu2 %v5253_v39  ;;  %3113 = vmatmul.f32.gmra.mxu3 %v6188_v9 }
 0x425   : > { %v3596_v40 = vsel %vm467_vm1, %v3559_v54, 0.0 }
 0x426   : > { %v3597_v1 = vadd.f32 %v3596_v40, %v3595_v8  ;;  %v3202_v46 = vpop.f32.mrf.mxu0  ;;  %v3356_v13 = vpop.f32.mrf.mxu1 }
 0x427   : > { %v3203_v21 = vadd.f32 %v3202_v46, %v2995_v18  ;;  %v2819_v52 = vpop.f32.mrf.mxu2  ;;  %v5838_v16 = vpop.f32.mrf.mxu3 }
 0x428   : > { %v2820_v10 = vadd.f32 %v2819_v52, %v2654_v56  ;;  %v2662_v52 = vadd.f32 %v5687_v45, %v5696_v28 }
 0x429   : > { %v3353_v12 = vadd.f32 %v3352_v34, %v3203_v21  ;;  %3265 = vmatmul.f32.gmra.mxu0 %v5048_v60  ;;  %3419 = vmatmul.f32.gmra.mxu1 %v5113_v32 }
 0x42a   : > { %v3013_v11 = vadd.f32 %v5824_v41, %v2820_v10  ;;  %v6202_v10 = vld [vmem:[#allocation46_spill] sm:$0xff] }
 0x42b   : > { %3458 = vst.msk [vmem:[%s5743_s7 + $0x38] sm:$0xff] %vm467_vm1, %v3353_v12  ;;  %v3496_v39 = vsel %vm467_vm1, %v3353_v12, 0.0  ;;  %v3560_v33 = vmul.f32 %v3353_v12, %v3353_v12 }
 0x42c   : > { %v3497_v2 = vadd.f32 %v3496_v39, %v3495_v20  ;;  %2903 = vmatmul.f32.gmra.mxu2 %v5319_v15  ;;  %3119 = vmatmul.f32.gmra.mxu3 %v6189_v36  ;;  %v6197_v36 = vld [vmem:[#allocation7_spill] sm:$0xff] }
 0x42d   : > { %v3598_v7 = vsel %vm467_vm1, %v3560_v33, 0.0 }
 0x42e   : > { %v3599_v35 = vadd.f32 %v3598_v7, %v3597_v1  ;;  %v3206_v60 = vpop.f32.mrf.mxu0  ;;  %v3360_v47 = vpop.f32.mrf.mxu1 }
 0x42f   : > { %v3207_v59 = vadd.f32 %v3206_v60, %v3001_v30  ;;  %v2824_v19 = vpop.f32.mrf.mxu2  ;;  %v5852_v3 = vpop.f32.mrf.mxu3 }
 0x430   : > { %v2825_v20 = vadd.f32 %v2824_v19, %v2658_v23 }
 0x431   : > { %v3357_v37 = vadd.f32 %v3356_v13, %v3207_v59  ;;  %3269 = vmatmul.f32.gmra.mxu0 %v5113_v32  ;;  %3423 = vmatmul.f32.gmra.mxu1 %v5175_v55  ;;  %v6199_v59 = vld [vmem:[#allocation43_spill] sm:$0xff] }
 0x432   : > { %v3019_v46 = vadd.f32 %v5838_v16, %v2825_v20  ;;  %v2666_v19 = vadd.f32 %v6199_v59, %v6198_v5  ;;  %v6205_v20 = vld [vmem:[#allocation48_spill] sm:$0xff] }
 0x433   : > { %3459 = vst.msk [vmem:[%s5743_s7 + $0x40] sm:$0xff] %vm467_vm1, %v3357_v37  ;;  %v3498_v15 = vsel %vm467_vm1, %v3357_v37, 0.0  ;;  %v3561_v38 = vmul.f32 %v3357_v37, %v3357_v37 }
 0x434   : > { %v3499_v4 = vadd.f32 %v3498_v15, %v3497_v2  ;;  %2908 = vmatmul.f32.gmra.mxu2 %v5367_v25  ;;  %3125 = vmatmul.f32.gmra.mxu3 %v6190_v62  ;;  %v6191_v25 = vld [vmem:[#allocation5_spill] sm:$0xff]  ;;  %v6200_v62 = vld [vmem:[#allocation8_spill] sm:$0xff] }
 0x435   : > { %v3600_v22 = vsel %vm467_vm1, %v3561_v38, 0.0 }
 0x436   : > { %v3601_v14 = vadd.f32 %v3600_v22, %v3599_v35  ;;  %v3210_v32 = vpop.f32.mrf.mxu0  ;;  %v3364_v63 = vpop.f32.mrf.mxu1 }
 0x437   : > { %v3211_v57 = vadd.f32 %v3210_v32, %v3007_v50  ;;  %v2829_v26 = vpop.f32.mrf.mxu2  ;;  %v5866_v29 = vpop.f32.mrf.mxu3 }
 0x438   : > { %v2830_v33 = vadd.f32 %v2829_v26, %v2662_v52  ;;  %v6201_v26 = vld [vmem:[#allocation47_spill] sm:$0xff] }
 0x439   : > { %v3361_v0 = vadd.f32 %v3360_v47, %v3211_v57  ;;  %3273 = vmatmul.f32.gmra.mxu0 %v5175_v55  ;;  %3427 = vmatmul.f32.gmra.mxu1 %v6191_v25 }
 0x43a   : > { %v3025_v28 = vadd.f32 %v5852_v3, %v2830_v33  ;;  %v6208_v33 = vld [vmem:[#allocation13_spill] sm:$0xff] }
 0x43b   : > { %3460 = vst.msk [vmem:[%s5743_s7 + $0x48] sm:$0xff] %vm467_vm1, %v3361_v0  ;;  %v3500_v31 = vsel %vm467_vm1, %v3361_v0, 0.0  ;;  %v3562_v8 = vmul.f32 %v3361_v0, %v3361_v0  ;;  %v2670_v0 = vadd.f32 %v6202_v10, %v6201_v26 }
 0x43c   : > { %v3501_v58 = vadd.f32 %v3500_v31, %v3499_v4  ;;  %2913 = vmatmul.f32.gmra.mxu2 %v5409_v27  ;;  %3131 = vmatmul.f32.gmra.mxu3 %v6193_v61  ;;  %v6194_v27 = vld [vmem:[#allocation6_spill] sm:$0xff]  ;;  %v6203_v61 = vld [vmem:[#allocation9_spill] sm:$0xff] }
 0x43d   : > { %v3602_v34 = vsel %vm467_vm1, %v3562_v8, 0.0 }
 0x43e   : > { %v3603_v48 = vadd.f32 %v3602_v34, %v3601_v14  ;;  %v3214_v55 = vpop.f32.mrf.mxu0  ;;  %v3368_v24 = vpop.f32.mrf.mxu1 }
 0x43f   : > { %v3215_v17 = vadd.f32 %v3214_v55, %v3013_v11  ;;  %v2834_v51 = vpop.f32.mrf.mxu2  ;;  %v5880_v54 = vpop.f32.mrf.mxu3 }
 0x440   : > { %v2835_v38 = vadd.f32 %v2834_v51, %v2666_v19  ;;  %v6204_v51 = vld [vmem:[#allocation49_spill] sm:$0xff] }
 0x441   : > { %v3365_v9 = vadd.f32 %v3364_v63, %v3215_v17  ;;  %3277 = vmatmul.f32.gmra.mxu0 %v6191_v25  ;;  %3431 = vmatmul.f32.gmra.mxu1 %v6194_v27 }
 0x442   : > { %v3031_v32 = vadd.f32 %v5866_v29, %v2835_v38 }
 0x443   : > { %3461 = vst.msk [vmem:[%s5743_s7 + $0x50] sm:$0xff] %vm467_vm1, %v3365_v9  ;;  %v3502_v41 = vsel %vm467_vm1, %v3365_v9, 0.0  ;;  %v3563_v40 = vmul.f32 %v3365_v9, %v3365_v9  ;;  %v2674_v9 = vadd.f32 %v6205_v20, %v6204_v51  ;;  %v6213_v51 = vld [vmem:[#allocation20_spill] sm:$0xff]  ;;  %v6214_v20 = vld [vmem:[#allocation19_spill] sm:$0xff] }
 0x444   : > { %v3503_v18 = vadd.f32 %v3502_v41, %v3501_v58  ;;  %2918 = vmatmul.f32.gmra.mxu2 %v6192_v43  ;;  %3137 = vmatmul.f32.gmra.mxu3 %v6196_v42 }
 0x445   : > { %v3604_v1 = vsel %vm467_vm1, %v3563_v40, 0.0 }
 0x446   : > { %v3605_v13 = vadd.f32 %v3604_v1, %v3603_v48  ;;  %v3218_v44 = vpop.f32.mrf.mxu0  ;;  %v3372_v21 = vpop.f32.mrf.mxu1 }
 0x447   : > { %v3219_v6 = vadd.f32 %v3218_v44, %v3019_v46  ;;  %v2839_v12 = vpop.f32.mrf.mxu2  ;;  %v3042_v39 = vpop.f32.mrf.mxu3 }
 0x448   : > { %v2840_v58 = vadd.f32 %v2839_v12, %v2670_v0  ;;  %v6207_v12 = vld [vmem:[#allocation14_spill] sm:$0xff] }
 0x449   : > { %v3369_v2 = vadd.f32 %v3368_v24, %v3219_v6  ;;  %3281 = vmatmul.f32.gmra.mxu0 %v6194_v27  ;;  %3435 = vmatmul.f32.gmra.mxu1 %v6197_v36  ;;  %v6211_v0 = vld [vmem:[#allocation18_spill] sm:$0xff] }
 0x44a   : > { %v3037_v55 = vadd.f32 %v5880_v54, %v2840_v58 }
 0x44b   : > { %3462 = vst.msk [vmem:[%s5743_s7 + $0x58] sm:$0xff] %vm467_vm1, %v3369_v2  ;;  %v3504_v7 = vsel %vm467_vm1, %v3369_v2, 0.0  ;;  %v3564_v16 = vmul.f32 %v3369_v2, %v3369_v2  ;;  %v2678_v2 = vadd.f32 %v6208_v33, %v6207_v12  ;;  %v6216_v12 = vld [vmem:[#allocation21_spill] sm:$0xff] }
 0x44c   : > { %v3505_v30 = vadd.f32 %v3504_v7, %v3503_v18  ;;  %2923 = vmatmul.f32.gmra.mxu2 %v6195_v49  ;;  %v6206_v49 = vld [vmem:[#allocation11_spill] sm:$0xff] }
 0x44d   : > { %v3606_v45 = vsel %vm467_vm1, %v3564_v16, 0.0 }
 0x44e   : > { %v3607_v35 = vadd.f32 %v3606_v45, %v3605_v13  ;;  %v3222_v60 = vpop.f32.mrf.mxu0  ;;  %v3376_v47 = vpop.f32.mrf.mxu1 }
 0x44f   : > { %v3223_v53 = vadd.f32 %v3222_v60, %v3025_v28  ;;  %v2844_v37 = vpop.f32.mrf.mxu2  ;;  %v3048_v15 = vpop.f32.mrf.mxu3 }
 0x450   : > { %v2845_v40 = vadd.f32 %v2844_v37, %v2674_v9  ;;  %v6210_v37 = vld [vmem:[#allocation15_spill] sm:$0xff]  ;;  %v2690_v9 = vadd.f32 %v6214_v20, %v6213_v51 }
 0x451   : > { %v3373_v4 = vadd.f32 %v3372_v21, %v3223_v53  ;;  %3285 = vmatmul.f32.gmra.mxu0 %v6197_v36  ;;  %3439 = vmatmul.f32.gmra.mxu1 %v6200_v62  ;;  %v6209_v53 = vld [vmem:[#allocation16_spill] sm:$0xff] }
 0x452   : > { %v3043_v44 = vadd.f32 %v3042_v39, %v2845_v40  ;;  %v2682_v38 = vadd.f32 %v6210_v37, %v6209_v53  ;;  %v6218_v53 = vld [vmem:[#allocation23_spill] sm:$0xff] }
 0x453   : > { %3463 = vst.msk [vmem:[%s5743_s7 + $0x60] sm:$0xff] %vm467_vm1, %v3373_v4  ;;  %v3506_v22 = vsel %vm467_vm1, %v3373_v4, 0.0  ;;  %v3565_v3 = vmul.f32 %v3373_v4, %v3373_v4 }
 0x454   : > { %v3507_v50 = vadd.f32 %v3506_v22, %v3505_v30 }
 0x455   : > { %v3608_v14 = vsel %vm467_vm1, %v3565_v3, 0.0 }
 0x456   : > { %v3609_v63 = vadd.f32 %v3608_v14, %v3607_v35  ;;  %v3226_v56 = vpop.f32.mrf.mxu0  ;;  %v3380_v57 = vpop.f32.mrf.mxu1 }
 0x457   : > { %v3227_v25 = vadd.f32 %v3226_v56, %v3031_v32  ;;  %v2849_v31 = vpop.f32.mrf.mxu2  ;;  %v3054_v8 = vpop.f32.mrf.mxu3 }
 0x458   : > { %v2850_v16 = vadd.f32 %v2849_v31, %v2678_v2 }
 0x459   : > { %v3377_v43 = vadd.f32 %v3376_v47, %v3227_v25  ;;  %3289 = vmatmul.f32.gmra.mxu0 %v6200_v62  ;;  %3443 = vmatmul.f32.gmra.mxu1 %v6203_v61  ;;  %v6212_v25 = vld [vmem:[#allocation17_spill] sm:$0xff] }
 0x45a   : > { %v3049_v47 = vadd.f32 %v3048_v15, %v2850_v16  ;;  %v2686_v31 = vadd.f32 %v6212_v25, %v6211_v0  ;;  %v6220_v0 = vld [vmem:[#allocation25_spill] sm:$0xff] }
 0x45b   : > { %3464 = vst.msk [vmem:[%s5743_s7 + $0x68] sm:$0xff] %vm467_vm1, %v3377_v43  ;;  %v3508_v34 = vsel %vm467_vm1, %v3377_v43, 0.0  ;;  %v3566_v29 = vmul.f32 %v3377_v43, %v3377_v43 }
 0x45c   : > { %v3509_v11 = vadd.f32 %v3508_v34, %v3507_v50 }
 0x45d   : > { %v3610_v48 = vsel %vm467_vm1, %v3566_v29, 0.0 }
 0x45e   : > { %v3611_v24 = vadd.f32 %v3610_v48, %v3609_v63  ;;  %v3230_v23 = vpop.f32.mrf.mxu0  ;;  %v3384_v17 = vpop.f32.mrf.mxu1 }
 0x45f   : > { %v3231_v27 = vadd.f32 %v3230_v23, %v3037_v55  ;;  %v2854_v41 = vpop.f32.mrf.mxu2  ;;  %v3060_v42 = vpop.f32.mrf.mxu3 }
 0x460   : > { %v2855_v22 = vadd.f32 %v2854_v41, %v2682_v38 }
 0x461   : > { %v3381_v18 = vadd.f32 %v3380_v57, %v3231_v27  ;;  %3293 = vmatmul.f32.gmra.mxu0 %v6203_v61  ;;  %3447 = vmatmul.f32.gmra.mxu1 %v6206_v49 }
 0x462   : > { %v3055_v56 = vadd.f32 %v3054_v8, %v2855_v22 }
 0x463   : > { %3465 = vst.msk [vmem:[%s5743_s7 + $0x70] sm:$0xff] %vm467_vm1, %v3381_v18  ;;  %v3510_v54 = vsel %vm467_vm1, %v3381_v18, 0.0  ;;  %v3567_v1 = vmul.f32 %v3381_v18, %v3381_v18 }
 0x464   : > { %v3511_v46 = vadd.f32 %v3510_v54, %v3509_v11 }
 0x465   : > { %v3612_v13 = vsel %vm467_vm1, %v3567_v1, 0.0 }
 0x466   : > { %v3613_v21 = vadd.f32 %v3612_v13, %v3611_v24  ;;  %v3234_v52 = vpop.f32.mrf.mxu0  ;;  %v3388_v6 = vpop.f32.mrf.mxu1 }
 0x467   : > { %v3235_v36 = vadd.f32 %v3234_v52, %v3043_v44  ;;  %v2859_v7 = vpop.f32.mrf.mxu2  ;;  %v3066_v35 = vpop.f32.mrf.mxu3 }
 0x468   : > { %v2860_v61 = vadd.f32 %v2859_v7, %v2686_v31 }
 0x469   : > { %v3385_v30 = vadd.f32 %v3384_v17, %v3235_v36  ;;  %3297 = vmatmul.f32.gmra.mxu0 %v6206_v49 }
 0x46a   : > { %v3061_v8 = vadd.f32 %v3060_v42, %v2860_v61 }
 0x46b   : > { %3466 = vst.msk [vmem:[%s5743_s7 + $0x78] sm:$0xff] %vm467_vm1, %v3385_v30  ;;  %v3512_v45 = vsel %vm467_vm1, %v3385_v30, 0.0  ;;  %v3568_v28 = vmul.f32 %v3385_v30, %v3385_v30 }
 0x46c   : > { %v3513_v39 = vadd.f32 %v3512_v45, %v3511_v46 }
 0x46d   : > { %v3614_v60 = vsel %vm467_vm1, %v3568_v28, 0.0 }
 0x46e   : > { %v3615_v5 = vadd.f32 %v3614_v60, %v3613_v21  ;;  %v3238_v59 = vpop.f32.mrf.mxu0  ;;  %v3392_v19 = vpop.f32.mrf.mxu1 }
 0x46f   : > { %v3239_v4 = vadd.f32 %v3238_v59, %v3049_v47  ;;  %v2864_v62 = vpop.f32.mrf.mxu2  ;;  %v3072_v15 = vpop.f32.mrf.mxu3 }
 0x470   : > { %v2865_v18 = vadd.f32 %v2864_v62, %v2690_v9 }
 0x471   : > { %v3389_v3 = vadd.f32 %v3388_v6, %v3239_v4  ;;  %v6215_v6 = vld [vmem:[#allocation22_spill] sm:$0xff] }
 0x472   : > { %v3067_v13 = vadd.f32 %v3066_v35, %v2865_v18  ;;  %v2694_v33 = vadd.f32 %v6216_v12, %v6215_v6  ;;  %v6224_v18 = vld [vmem:[#allocation29_spill] sm:$0xff]  ;;  %v6225_v6 = vld [vmem:[#allocation32_spill] sm:$0xff]  ;;  %v6226_v12 = vld [vmem:[#allocation31_spill] sm:$0xff] }
 0x473   : > { %3467 = vst.msk [vmem:[%s5743_s7 + $0x80] sm:$0xff] %vm467_vm1, %v3389_v3  ;;  %v3514_v50 = vsel %vm467_vm1, %v3389_v3, 0.0  ;;  %v3569_v14 = vmul.f32 %v3389_v3, %v3389_v3 }
 0x474   : > { %v3515_v32 = vadd.f32 %v3514_v50, %v3513_v39 }
 0x475   : > { %v3616_v63 = vsel %vm467_vm1, %v3569_v14, 0.0 }
 0x476   : > { %v3617_v57 = vadd.f32 %v3616_v63, %v3615_v5  ;;  %v3242_v26 = vpop.f32.mrf.mxu0  ;;  %v3396_v10 = vpop.f32.mrf.mxu1 }
 0x477   : > { %v3243_v58 = vadd.f32 %v3242_v26, %v3055_v56  ;;  %v2869_v43 = vpop.f32.mrf.mxu2  ;;  %v3078_v27 = vpop.f32.mrf.mxu3 }
 0x478   : > { %v2870_v7 = vadd.f32 %v2869_v43, %v2694_v33  ;;  %v2714_v33 = vadd.f32 %v6226_v12, %v6225_v6 }
 0x479   : > { %v3393_v34 = vadd.f32 %v3392_v19, %v3243_v58  ;;  %v6217_v19 = vld [vmem:[#allocation24_spill] sm:$0xff] }
 0x47a   : > { %v3073_v60 = vadd.f32 %v3072_v15, %v2870_v7  ;;  %v2698_v37 = vadd.f32 %v6218_v53, %v6217_v19 }
 0x47b   : > { %3468 = vst.msk [vmem:[%s5743_s7 + $0x88] sm:$0xff] %vm467_vm1, %v3393_v34  ;;  %v3516_v29 = vsel %vm467_vm1, %v3393_v34, 0.0  ;;  %v3570_v11 = vmul.f32 %v3393_v34, %v3393_v34 }
 0x47c   : > { %v3517_v48 = vadd.f32 %v3516_v29, %v3515_v32 }
 0x47d   : > { %v3618_v55 = vsel %vm467_vm1, %v3570_v11, 0.0 }
 0x47e   : > { %v3619_v24 = vadd.f32 %v3618_v55, %v3617_v57  ;;  %v3246_v23 = vpop.f32.mrf.mxu0  ;;  %v3400_v17 = vpop.f32.mrf.mxu1  ;;  %v6221_v55 = vld [vmem:[#allocation28_spill] sm:$0xff] }
 0x47f   : > { %v3247_v41 = vadd.f32 %v3246_v23, %v3061_v8  ;;  %v2874_v40 = vpop.f32.mrf.mxu2  ;;  %v3084_v16 = vpop.f32.mrf.mxu3  ;;  %v6222_v8 = vld [vmem:[#allocation27_spill] sm:$0xff] }
 0x480   : > { %v2875_v62 = vadd.f32 %v2874_v40, %v2698_v37  ;;  %v6223_v40 = vld [vmem:[#allocation30_spill] sm:$0xff] }
 0x481   : > { %v3397_v49 = vadd.f32 %v3396_v10, %v3247_v41  ;;  %v6219_v10 = vld [vmem:[#allocation26_spill] sm:$0xff] }
 0x482   : > { %v3079_v15 = vadd.f32 %v3078_v27, %v2875_v62  ;;  %v2702_v25 = vadd.f32 %v6220_v0, %v6219_v10  ;;  %v6230_v62 = vld [vmem:[#allocation35_spill] sm:$0xff]  ;;  %v6231_v0 = vld [vmem:[#allocation38_spill] sm:$0xff] }
 0x483   : > { %3469 = vst.msk [vmem:[%s5743_s7 + $0x90] sm:$0xff] %vm467_vm1, %v3397_v49  ;;  %v3518_v54 = vsel %vm467_vm1, %v3397_v49, 0.0  ;;  %v3571_v1 = vmul.f32 %v3397_v49, %v3397_v49  ;;  %v2710_v49 = vadd.f32 %v6224_v18, %v6223_v40 }
 0x484   : > { %v3519_v46 = vadd.f32 %v3518_v54, %v3517_v48 }
 0x485   : > { %v3620_v42 = vsel %vm467_vm1, %v3571_v1, 0.0 }
 0x486   : > { %v3621_v44 = vadd.f32 %v3620_v42, %v3619_v24  ;;  %v3250_v21 = vpop.f32.mrf.mxu0  ;;  %v3404_v52 = vpop.f32.mrf.mxu1  ;;  %v2706_v24 = vadd.f32 %v6222_v8, %v6221_v55  ;;  %v6233_v8 = vld [vmem:[#allocation40_spill] sm:$0xff] }
 0x487   : > { %v3251_v2 = vadd.f32 %v3250_v21, %v3067_v13  ;;  %v2879_v36 = vpop.f32.mrf.mxu2  ;;  %v3090_v3 = vpop.f32.mrf.mxu3 }
 0x488   : > { %v2880_v43 = vadd.f32 %v2879_v36, %v2702_v25  ;;  %v6232_v25 = vld [vmem:[#allocation37_spill] sm:$0xff] }
 0x489   : > { %v3401_v30 = vadd.f32 %v3400_v17, %v3251_v2 }
 0x48a   : > { %v3085_v29 = vadd.f32 %v3084_v16, %v2880_v43 }
 0x48b   : > { %3470 = vst.msk [vmem:[%s5743_s7 + $0x98] sm:$0xff] %vm467_vm1, %v3401_v30  ;;  %v3520_v45 = vsel %vm467_vm1, %v3401_v30, 0.0  ;;  %v3572_v28 = vmul.f32 %v3401_v30, %v3401_v30 }
 0x48c   : > { %v3521_v39 = vadd.f32 %v3520_v45, %v3519_v46 }
 0x48d   : > { %v3622_v35 = vsel %vm467_vm1, %v3572_v28, 0.0 }
 0x48e   : > { %v3623_v47 = vadd.f32 %v3622_v35, %v3621_v44  ;;  %v3254_v5 = vpop.f32.mrf.mxu0  ;;  %v3408_v59 = vpop.f32.mrf.mxu1  ;;  %v6227_v35 = vld [vmem:[#allocation34_spill] sm:$0xff] }
 0x48f   : > { %v3255_v38 = vadd.f32 %v3254_v5, %v3073_v60  ;;  %v2884_v4 = vpop.f32.mrf.mxu2  ;;  %v3096_v34 = vpop.f32.mrf.mxu3  ;;  %v6228_v60 = vld [vmem:[#allocation33_spill] sm:$0xff] }
 0x490   : > { %v2885_v17 = vadd.f32 %v2884_v4, %v2706_v24  ;;  %v6229_v4 = vld [vmem:[#allocation36_spill] sm:$0xff]  ;;  %v6234_v24 = vld [vmem:[#allocation39_spill] sm:$0xff] }
 0x491   : > { %v3405_v22 = vadd.f32 %v3404_v52, %v3255_v38 }
 0x492   : > { %v3091_v9 = vadd.f32 %v3090_v3, %v2885_v17 }
 0x493   : > { %3471 = vst.msk [vmem:[%s5743_s7 + $0xa0] sm:$0xff] %vm467_vm1, %v3405_v22  ;;  %v3522_v50 = vsel %vm467_vm1, %v3405_v22, 0.0  ;;  %v3573_v14 = vmul.f32 %v3405_v22, %v3405_v22  ;;  %v2722_v22 = vadd.f32 %v6230_v62, %v6229_v4 }
 0x494   : > { %v5964_v32 = vadd.f32 %v3522_v50, %v3521_v39 }
 0x495   : > { %v3624_v63 = vsel %vm467_vm1, %v3573_v14, 0.0 }
 0x496   : > { %v5967_v56 = vadd.f32 %v3624_v63, %v3623_v47  ;;  %v3258_v57 = vpop.f32.mrf.mxu0  ;;  %v3412_v26 = vpop.f32.mrf.mxu1  ;;  %v2718_v47 = vadd.f32 %v6228_v60, %v6227_v35 }
 0x497   : > { %v3259_v31 = vadd.f32 %v3258_v57, %v3079_v15  ;;  %v2889_v58 = vpop.f32.mrf.mxu2  ;;  %v3102_v1 = vpop.f32.mrf.mxu3 }
 0x498   : > { %v2890_v46 = vadd.f32 %v2889_v58, %v2710_v49 }
 0x499   : > { %v5971_v61 = vadd.f32 %v3408_v59, %v3259_v31  ;;  %v2726_v31 = vadd.f32 %v6232_v25, %v6231_v0  ;;  %v6237_v0 = vld [vmem:[#allocation44_spill] sm:$0xff] }
 0x49a   : > { %v3097_v44 = vadd.f32 %v3096_v34, %v2890_v46  ;;  %v6235_v46 = vld [vmem:[#allocation42_spill] sm:$0xff] }
 0x49b   : > { %3472 = vst.msk [vmem:[%s5743_s7 + $0xa8] sm:$0xff] %vm467_vm1, %v5971_v61 }
 0x49e   : > { %v3262_v11 = vpop.f32.mrf.mxu0  ;;  %v3416_v48 = vpop.f32.mrf.mxu1 }
 0x49f   : > { %v3263_v23 = vadd.f32 %v3262_v11, %v3085_v29  ;;  %v2894_v20 = vpop.f32.mrf.mxu2  ;;  %v3108_v16 = vpop.f32.mrf.mxu3 }
 0x4a0   : > { %v2895_v36 = vadd.f32 %v2894_v20, %v2714_v33 }
 0x4a1   : > { %v5978_v51 = vadd.f32 %v3412_v26, %v3263_v23  ;;  %v2730_v23 = vadd.f32 %v6234_v24, %v6233_v8 }
 0x4a2   : > { %v3103_v45 = vadd.f32 %v3102_v1, %v2895_v36 }
 0x4a3   : > { %3473 = vst.msk [vmem:[%s5743_s7 + $0xb0] sm:$0xff] %vm467_vm1, %v5978_v51  ;;  %v3575_v18 = vmul.f32 %v5978_v51, %v5978_v51  ;;  %v3526_v6 = vsel %vm467_vm1, %v5978_v51, 0.0 }
 0x4a5   : > { %v3628_v36 = vsel %vm467_vm1, %v3575_v18, 0.0 }
 0x4a6   : > { %v3266_v27 = vpop.f32.mrf.mxu0  ;;  %v3420_v41 = vpop.f32.mrf.mxu1 }
 0x4a7   : > { %v3267_v54 = vadd.f32 %v3266_v27, %v3091_v9  ;;  %v2899_v13 = vpop.f32.mrf.mxu2  ;;  %v3114_v53 = vpop.f32.mrf.mxu3 }
 0x4a8   : > { %v2900_v59 = vadd.f32 %v2899_v13, %v2718_v47  ;;  %v6236_v13 = vld [vmem:[#allocation41_spill] sm:$0xff] }
 0x4a9   : > { %v5985_v42 = vadd.f32 %v3416_v48, %v3267_v54  ;;  %v3524_v54 = vsel %vm467_vm1, %v5971_v61, 0.0 }
 0x4aa   : > { %v3109_v37 = vadd.f32 %v3108_v16, %v2900_v59 }
 0x4ab   : > { %3474 = vst.msk [vmem:[%s5743_s7 + $0xb8] sm:$0xff] %vm467_vm1, %v5985_v42  ;;  %v3576_v12 = vmul.f32 %v5985_v42, %v5985_v42 }
 0x4ad   : > { %v3630_v51 = vsel %vm467_vm1, %v3576_v12, 0.0 }
 0x4ae   : > { %v3270_v21 = vpop.f32.mrf.mxu0  ;;  %v3424_v52 = vpop.f32.mrf.mxu1 }
 0x4af   : > { %v3271_v2 = vadd.f32 %v3270_v21, %v3097_v44  ;;  %v2904_v30 = vpop.f32.mrf.mxu2  ;;  %v3120_v26 = vpop.f32.mrf.mxu3  ;;  %v2734_v44 = vadd.f32 %v6236_v13, %v6235_v46 }
 0x4b0   : > { %v2905_v63 = vadd.f32 %v2904_v30, %v2722_v22 }
 0x4b1   : > { %v3421_v7 = vadd.f32 %v3420_v41, %v3271_v2  ;;  %v3574_v41 = vmul.f32 %v5971_v61, %v5971_v61  ;;  %v3525_v2 = vadd.f32 %v3524_v54, %v5964_v32  ;;  %v3528_v61 = vsel %vm467_vm1, %v5985_v42, 0.0 }
 0x4b2   : > { %v3115_v57 = vadd.f32 %v3114_v53, %v2905_v63 }
 0x4b3   : > { %3475 = vst.msk [vmem:[%s5743_s7 + $0xc0] sm:$0xff] %vm467_vm1, %v3421_v7  ;;  %v3577_v16 = vmul.f32 %v3421_v7, %v3421_v7  ;;  %v3530_v60 = vsel %vm467_vm1, %v3421_v7, 0.0 }
 0x4b5   : > { %v3632_v53 = vsel %vm467_vm1, %v3577_v16, 0.0 }
 0x4b6   : > { %v3274_v28 = vpop.f32.mrf.mxu0  ;;  %v3428_v39 = vpop.f32.mrf.mxu1 }
 0x4b7   : > { %v3275_v5 = vadd.f32 %v3274_v28, %v3103_v45  ;;  %v2909_v3 = vpop.f32.mrf.mxu2  ;;  %v3126_v20 = vpop.f32.mrf.mxu3 }
 0x4b8   : > { %v2910_v43 = vadd.f32 %v2909_v3, %v2726_v31 }
 0x4b9   : > { %v3425_v19 = vadd.f32 %v3424_v52, %v3275_v5  ;;  %v3626_v52 = vsel %vm467_vm1, %v3574_v41, 0.0 }
 0x4ba   : > { %v3121_v48 = vadd.f32 %v3120_v26, %v2910_v43  ;;  %v3627_v28 = vadd.f32 %v3626_v52, %v5967_v56 }
 0x4bb   : > { %3476 = vst.msk [vmem:[%s5743_s7 + $0xc8] sm:$0xff] %vm467_vm1, %v3425_v19  ;;  %v3578_v47 = vmul.f32 %v3425_v19, %v3425_v19  ;;  %v3532_v42 = vsel %vm467_vm1, %v3425_v19, 0.0 }
 0x4bc   : > { %v3629_v32 = vadd.f32 %v3628_v36, %v3627_v28 }
 0x4bd   : > { %v3634_v3 = vsel %vm467_vm1, %v3578_v47, 0.0 }
 0x4be   : > { %v3278_v38 = vpop.f32.mrf.mxu0  ;;  %v3432_v14 = vpop.f32.mrf.mxu1  ;;  %v3631_v4 = vadd.f32 %v3630_v51, %v3629_v32 }
 0x4bf   : > { %v3279_v50 = vadd.f32 %v3278_v38, %v3109_v37  ;;  %v2914_v34 = vpop.f32.mrf.mxu2  ;;  %v3132_v35 = vpop.f32.mrf.mxu3 }
 0x4c0   : > { %v2915_v9 = vadd.f32 %v2914_v34, %v2730_v23  ;;  %v3633_v63 = vadd.f32 %v3632_v53, %v3631_v4 }
 0x4c1   : > { %v3429_v15 = vadd.f32 %v3428_v39, %v3279_v50  ;;  %v3527_v39 = vadd.f32 %v3526_v6, %v3525_v2 }
 0x4c2   : > { %v3127_v1 = vadd.f32 %v3126_v20, %v2915_v9 }
 0x4c3   : > { %3477 = vst.msk [vmem:[%s5743_s7 + $0xd0] sm:$0xff] %vm467_vm1, %v3429_v15  ;;  %v3529_v5 = vadd.f32 %v3528_v61, %v3527_v39  ;;  %v3579_v59 = vmul.f32 %v3429_v15, %v3429_v15  ;;  %v3534_v7 = vsel %vm467_vm1, %v3429_v15, 0.0 }
 0x4c5   : > { %v3531_v56 = vadd.f32 %v3530_v60, %v3529_v5  ;;  %v3636_v26 = vsel %vm467_vm1, %v3579_v59, 0.0 }
 0x4c6   : > { %v3282_v10 = vpop.f32.mrf.mxu0  ;;  %v3436_v11 = vpop.f32.mrf.mxu1 }
 0x4c7   : > { %v3283_v58 = vadd.f32 %v3282_v10, %v3115_v57  ;;  %v2919_v40 = vpop.f32.mrf.mxu2  ;;  %v3533_v57 = vadd.f32 %v3532_v42, %v3531_v56  ;;  %v3138_v8 = vpop.f32.mrf.mxu3 }
 0x4c8   : > { %v2920_v30 = vadd.f32 %v2919_v40, %v2734_v44 }
 0x4c9   : > { %v3433_v29 = vadd.f32 %v3432_v14, %v3283_v58  ;;  %v3635_v58 = vadd.f32 %v3634_v3, %v3633_v63  ;;  %v3535_v43 = vadd.f32 %v3534_v7, %v3533_v57 }
 0x4ca   : > { %v3133_v38 = vadd.f32 %v3132_v35, %v2920_v30 }
 0x4cb   : > { %3478 = vst.msk [vmem:[%s5743_s7 + $0xd8] sm:$0xff] %vm467_vm1, %v3433_v29  ;;  %v3580_v50 = vmul.f32 %v3433_v29, %v3433_v29  ;;  %v3536_v10 = vsel %vm467_vm1, %v3433_v29, 0.0  ;;  %v3637_v15 = vadd.f32 %v3636_v26, %v3635_v58 }
 0x4cd   : > { %v3638_v34 = vsel %vm467_vm1, %v3580_v50, 0.0 }
 0x4ce   : > { %v3286_v55 = vpop.f32.mrf.mxu0  ;;  %v3440_v49 = vpop.f32.mrf.mxu1  ;;  %v3639_v20 = vadd.f32 %v3638_v34, %v3637_v15 }
 0x4cf   : > { %v3287_v17 = vadd.f32 %v3286_v55, %v3121_v48  ;;  %v2924_v37 = vpop.f32.mrf.mxu2  ;;  %v3537_v55 = vadd.f32 %v3536_v10, %v3535_v43 }
 0x4d0   : > { %v2925_v25 = vadd.f32 %v2924_v37, %v6237_v0 }
 0x4d1   : > { %v3437_v27 = vadd.f32 %v3436_v11, %v3287_v17 }
 0x4d2   : > { %v3139_v17 = vadd.f32 %v3138_v8, %v2925_v25 }
 0x4d3   : > { %3479 = vst.msk [vmem:[%s5743_s7 + $0xe0] sm:$0xff] %vm467_vm1, %v3437_v27  ;;  %v3581_v19 = vmul.f32 %v3437_v27, %v3437_v27  ;;  %v3538_v11 = vsel %vm467_vm1, %v3437_v27, 0.0 }
 0x4d4   : > { %v3539_v9 = vadd.f32 %v3538_v11, %v3537_v55 }
 0x4d5   : > { %v3640_v24 = vsel %vm467_vm1, %v3581_v19, 0.0 }
 0x4d6   : > { %v3290_v21 = vpop.f32.mrf.mxu0  ;;  %v3444_v62 = vpop.f32.mrf.mxu1 }
 0x4d7   : > { %v3291_v33 = vadd.f32 %v3290_v21, %v3127_v1 }
 0x4d9   : > { %v3441_v45 = vadd.f32 %v3440_v49, %v3291_v33  ;;  %v3641_v49 = vadd.f32 %v3640_v24, %v3639_v20 }
 0x4db   : > { %3480 = vst.msk [vmem:[%s5743_s7 + $0xe8] sm:$0xff] %vm467_vm1, %v3441_v45  ;;  %v3582_v48 = vmul.f32 %v3441_v45, %v3441_v45  ;;  %v3540_v29 = vsel %vm467_vm1, %v3441_v45, 0.0 }
 0x4dc   : > { %v3541_v54 = vadd.f32 %v3540_v29, %v3539_v9 }
 0x4dd   : > { %v3642_v40 = vsel %vm467_vm1, %v3582_v48, 0.0 }
 0x4de   : > { %v3294_v22 = vpop.f32.mrf.mxu0  ;;  %v3448_v1 = vpop.f32.mrf.mxu1  ;;  %v3643_v44 = vadd.f32 %v3642_v40, %v3641_v49 }
 0x4df   : > { %v3295_v14 = vadd.f32 %v3294_v22, %v3133_v38 }
 0x4e1   : > { %v3445_v31 = vadd.f32 %v3444_v62, %v3295_v14 }
 0x4e3   : > { %3481 = vst.msk [vmem:[%s5743_s7 + $0xf0] sm:$0xff] %vm467_vm1, %v3445_v31  ;;  %v3583_v23 = vmul.f32 %v3445_v31, %v3445_v31  ;;  %v3542_v27 = vsel %vm467_vm1, %v3445_v31, 0.0 }
 0x4e4   : > { %v3543_v21 = vadd.f32 %v3542_v27, %v3541_v54 }
 0x4e5   : > { %v3644_v46 = vsel %vm467_vm1, %v3583_v23, 0.0 }
 0x4e6   : > { %v3298_v41 = vpop.f32.mrf.mxu0  ;;  %v3645_v12 = vadd.f32 %v3644_v46, %v3643_v44 }
 0x4e7   : > { %v3299_v18 = vadd.f32 %v3298_v41, %v3139_v17 }
 0x4e9   : > { %v3449_v13 = vadd.f32 %v3448_v1, %v3299_v18 }
 0x4eb   : > { %3482 = vst.msk [vmem:[%s5743_s7 + $0xf8] sm:$0xff] %vm467_vm1, %v3449_v13  ;;  %v3544_v52 = vsel %vm467_vm1, %v3449_v13, 0.0  ;;  %v3584_v6 = vmul.f32 %v3449_v13, %v3449_v13 }
 0x4ec   : > { %v3545_v33 = vadd.f32 %v3544_v52, %v3543_v21 }
 0x4ed   : > { %v3646_v2 = vsel %vm467_vm1, %v3584_v6, 0.0 }
 0x4ee   : > { %v3546_v36 = vrot.slane %v3545_v33, 4  ;;  %v3647_v61 = vadd.f32 %v3646_v2, %v3645_v12 }
 0x4f0   : > { %v3547_v16 = vadd.f32 %v3546_v36, %v3545_v33  ;;  %v3648_v30 = vrot.slane %v3647_v61, 4 }
 0x4f2   : > { %v3548_v45 = vrot.slane %v3547_v16, 2  ;;  %v3649_v28 = vadd.f32 %v3648_v30, %v3647_v61 }
 0x4f4   : > { %v3549_v39 = vadd.f32 %v3548_v45, %v3547_v16  ;;  %v3650_v35 = vrot.slane %v3649_v28, 2 }
 0x4f6   : > { %v3550_v51 = vrot.slane %v3549_v39, 1  ;;  %v3651_v60 = vadd.f32 %v3650_v35, %v3649_v28 }
 0x4f8   : > { %v3551_v47 = vadd.f32 %v3550_v51, %v3549_v39  ;;  %v3652_v32 = vrot.slane %v3651_v60, 1 }
 0x4fa   : > { %3552 = vst.msk [vmem:[%s263_s10] sm:$0x1] %vm508_vm0, %v3551_v47  ;;  %v3653_v5 = vadd.f32 %v3652_v32, %v3651_v60 }
 0x4fc   : > { %3654 = vst.msk [vmem:[%s263_s10 + $0x1] sm:$0x1] %vm508_vm0, %v3653_v5 }
 0x4fd PF: > { %s18_s23 = sadd.s32 1, %s3790_s23  }
 0x4fe   : > { %p15_p4 = scmp.ge.s32.totalorder %s18_s23, 4  }
 0x500   :  { %17 = sbr.rel (!%p15_p4) target bundleno = 2 (0x2), region = 85 }

</bundles_post_ra>
